<compile_context>
chip_gen: v7x
topology: tpu7x:2x2x1
jax: 0.10.0
libtpu: 0.0.40
codegen_flags: <defaults>
</compile_context>

<pallas_src>
import jax
import jax.numpy as jnp
from jax.experimental import pallas as pl
from jax.experimental.pallas import tpu as pltpu

# ----------------------------------------------------------------------------
# Config (reduced-width ResNet-50: same topology, base width 16 instead of 64)
# ----------------------------------------------------------------------------
BASE = 16
EXPANSION = 4
# (num_blocks, bottleneck_width, first_block_stride)
LAYER_CFG = [(3, BASE, 1), (4, BASE * 2, 2), (6, BASE * 4, 2), (3, BASE * 8, 2)]
BN_EPS = 1e-5

_LANE = 128     # lane width / channel padding
_SUB = 8        # sublane alignment
_MAX_TM = 256   # max rows per tile


def _round_up(x, m):
    return (x + m - 1) // m * m


def _pick_tm(rows):
    """Largest row tile <= _MAX_TM that divides `rows` (rows is a multiple of 8)."""
    if rows <= _MAX_TM:
        return rows
    for d in range(_MAX_TM, _SUB - 1, -_SUB):
        if rows % d == 0:
            return d
    return _SUB


def _pad2d(a, rows, cols):
    return jnp.pad(a, ((0, rows - a.shape[0]), (0, cols - a.shape[1])))


# ----------------------------------------------------------------------------
# The single fused kernel:  X @ W -> folded BN -> [+residual] -> [ReLU]
#                           -> bf16 activation (+ optional f32 probe partials)
# ----------------------------------------------------------------------------
def _make_kernel(*, relu, has_res, dual, has_probe, tm, split, valid,
                 n_samples, hw, probe_start):
    """relu: 'all' | 'none' | 'first' (rows < split).  All arguments static."""

    def kernel(*refs):
        it = iter(refs)
        x_ref = next(it)                              # (tm, Kp)        bf16
        w_ref = next(it)                              # (Kp, Cp)        bf16
        s_ref = next(it)                              # (1, Cp)         f32
        b_ref = next(it)                              # (1, Cp)         f32
        res_ref = next(it) if has_res else None       # (tm, Cp)        bf16
        out_ref = next(it)                            # (tm, Cp) / (2, tm, Cp)
        psum_ref = next(it) if has_probe else None    # (1, 8, Cp)      f32

        i = pl.program_id(0)

        # MXU: bf16 x bf16 -> f32, single reduction step (whole K resident)
        acc = jnp.dot(x_ref[...], w_ref[...], preferred_element_type=jnp.float32)
        out = acc * s_ref[...] + b_ref[...]           # folded BN, f32 epilogue

        rows = i * tm + jax.lax.broadcasted_iota(jnp.int32, (tm, 1), 0)
        if split > 0:
            vmask = (rows < valid) | ((rows >= split) & (rows < split + valid))
        else:
            vmask = rows < valid

        if has_res:
            res = res_ref[...].astype(jnp.float32)
            out = out + jnp.where(rows < split, res, 0.0)     # real half only

        if relu == "all":
            out = jnp.maximum(out, 0.0)
        elif relu == "first":
            out = jnp.where(rows < split, jnp.maximum(out, 0.0), out)

        out = jnp.where(vmask, out, 0.0)     # keep padded rows exactly zero

        if dual:
            out_ref[0] = jnp.maximum(out, 0.0).astype(out_ref.dtype)  # real path
            out_ref[1] = out.astype(out_ref.dtype)                    # probe path
        else:
            out_ref[...] = out.astype(out_ref.dtype)

        if has_probe:
            # Per-sample spatial-sum probe as PER-TILE partial sums: a (8, tm)
            # 0/1 selection matrix x out on the MXU.  No cross-tile accumulation,
            # so the grid axis stays "parallel" (v7x: both TCs share it).
            rr = i * tm + jax.lax.broadcasted_iota(jnp.int32, (_SUB, tm), 1)
            sid = jax.lax.broadcasted_iota(jnp.int32, (_SUB, tm), 0)
            lo = probe_start + sid * hw
            sel = jnp.where((sid < n_samples) & (rr >= lo) & (rr < lo + hw),
                            1.0, 0.0)
            psum_ref[0] = jnp.dot(sel, out, preferred_element_type=jnp.float32)

    return kernel


def fused_matmul(x2d, w2d, scale, bias, *, rows, valid, split=0, relu="all",
                 residual=None, dual=False, probe=None):
    """One fused (matmul + folded-BN + residual + ReLU + probe) pallas_call.

    x2d:      (>=rows, Kp) bf16 -- only the first `rows` rows are read.
    w2d:      (Kp, Cp) bf16,   scale/bias: (Cp,) f32 (folded BN).
    rows:     output row count (multiple of 8).
    valid:    valid rows per half (rows beyond are zeroed).
    split:    row index where the probe half starts (0 = single path).
    relu:     "all" | "none" | "first"  (first = rows < split only).
    residual: optional (rows, Cp) bf16, added to rows < split.
    dual:     emit (2, rows, Cp): [0] = relu(out), [1] = out.
    probe:    None or (probe_start, n_samples, hw) -> extra (rows//tm, 8, Cp)
              f32 per-tile partial sums (reduced in JAX by the caller).
    """
    x2d = x2d.astype(jnp.bfloat16)
    w2d = w2d.astype(jnp.bfloat16)
    Kp = x2d.shape[1]
    Cp = w2d.shape[1]
    tm = _pick_tm(rows)
    assert rows % tm == 0
    grid = (rows // tm,)

    s2 = scale.reshape(1, Cp).astype(jnp.float32)
    b2 = bias.reshape(1, Cp).astype(jnp.float32)

    inputs = [x2d, w2d, s2, b2]
    in_specs = [
        pl.BlockSpec((tm, Kp), lambda i: (i, 0)),
        pl.BlockSpec((Kp, Cp), lambda i: (0, 0)),   # constant block: DMA'd once
        pl.BlockSpec((1, Cp), lambda i: (0, 0)),
        pl.BlockSpec((1, Cp), lambda i: (0, 0)),
    ]
    if residual is not None:
        inputs.append(residual.astype(jnp.bfloat16))
        in_specs.append(pl.BlockSpec((tm, Cp), lambda i: (i, 0)))

    out_shape = []
    out_specs = []
    if dual:
        out_shape.append(jax.ShapeDtypeStruct((2, rows, Cp), jnp.bfloat16))
        out_specs.append(pl.BlockSpec((2, tm, Cp), lambda i: (0, i, 0)))
    else:
        out_shape.append(jax.ShapeDtypeStruct((rows, Cp), jnp.bfloat16))
        out_specs.append(pl.BlockSpec((tm, Cp), lambda i: (i, 0)))
    if probe is not None:
        out_shape.append(jax.ShapeDtypeStruct((grid[0], _SUB, Cp), jnp.float32))
        out_specs.append(pl.BlockSpec((1, _SUB, Cp), lambda i: (i, 0, 0)))

    probe_start, n_samples, hw = probe if probe is not None else (0, 0, 1)
    kernel = _make_kernel(relu=relu, has_res=residual is not None, dual=dual,
                          has_probe=probe is not None, tm=tm, split=split,
                          valid=valid, n_samples=n_samples, hw=hw,
                          probe_start=probe_start)

    outs = pl.pallas_call(
        kernel,
        grid=grid,
        in_specs=in_specs,
        out_specs=tuple(out_specs),
        out_shape=tuple(out_shape),
        compiler_params=pltpu.CompilerParams(dimension_semantics=("parallel",)),
    )(*inputs)

    if probe is not None:
        return outs[0], outs[1]
    return outs[0], None


# ----------------------------------------------------------------------------
# Plain-JAX glue (patch extraction, maxpool) -- fused by XLA under the jit.
# ----------------------------------------------------------------------------
def _im2col(x, kh, kw, stride):
    """x: (B, H, W, C) -> patches (B, Ho, Wo, kh*kw*C), 'same'-style padding."""
    B, H, W, C = x.shape
    ph, pw = (kh - 1) // 2, (kw - 1) // 2
    Ho = (H + 2 * ph - kh) // stride + 1
    Wo = (W + 2 * pw - kw) // stride + 1
    xp = jnp.pad(x, ((0, 0), (ph, ph), (pw, pw), (0, 0)))
    cols = [xp[:, di:di + (Ho - 1) * stride + 1:stride,
               dj:dj + (Wo - 1) * stride + 1:stride, :]
            for di in range(kh) for dj in range(kw)]
    return jnp.concatenate(cols, axis=-1), Ho, Wo


def _maxpool_3x3_s2(x):
    """MaxPool2d(kernel=3, stride=2, padding=1) as a 9-way max tree."""
    N, H, W, C = x.shape
    Ho = (H + 2 - 3) // 2 + 1
    Wo = (W + 2 - 3) // 2 + 1
    xp = jnp.pad(x, ((0, 0), (1, 1), (1, 1), (0, 0)),
                 constant_values=-jnp.inf)
    out = None
    for di in range(3):
        for dj in range(3):
            tap = xp[:, di:di + 2 * (Ho - 1) + 1:2, dj:dj + 2 * (Wo - 1) + 1:2, :]
            out = tap if out is None else jnp.maximum(out, tap)
    return out


# ----------------------------------------------------------------------------
# One bottleneck block: probe path and real path merged.
# ----------------------------------------------------------------------------
def _bottleneck(x_arr, meta, blk, N):
    """x_arr: flat padded activation; real rows first.  Returns (out, meta, probe)."""
    H, W = meta["H"], meta["W"]
    Mv_in, Mp_in = meta["Mv"], meta["Mp"]
    s = blk["stride"]
    width, out_c = blk["width"], blk["out_c"]

    # conv1 (1x1) + bn1: computed ONCE, dual output [relu(t1); t1]
    t, _ = fused_matmul(x_arr, blk["w1_2d"], blk["s1"], blk["b1"],
                        rows=Mp_in, valid=Mv_in, relu="none", dual=True)

    # conv2 (3x3, stride s) + bn2, real+probe merged; ReLU on real half only.
    # TODO(synk): fuse the 3x3 patch extraction into the kernel (haloed spatial
    # BlockSpec / in-VMEM shifted reads) instead of the XLA im2col below.
    t_sp = t[:, :Mv_in, :width].reshape(2 * N, H, W, width)
    patches, Ho, Wo = _im2col(t_sp, 3, 3, s)
    M2 = N * Ho * Wo
    Mp2 = _round_up(M2, _SUB)
    K2 = 9 * width
    Kp2 = blk["w2_2d"].shape[0]
    p = patches.reshape(2, M2, K2)
    p = jnp.pad(p, ((0, 0), (0, Mp2 - M2), (0, Kp2 - K2)))
    p = p.reshape(2 * Mp2, Kp2)
    r2, _ = fused_matmul(p, blk["w2_2d"], blk["s2"], blk["b2"],
                         rows=2 * Mp2, valid=M2, split=Mp2, relu="first")

    # identity / downsample (residual for the real half of conv3)
    if "wd_2d" in blk:
        cp_in = x_arr.shape[1]
        xr = x_arr[:Mv_in, :].reshape(N, H, W, cp_in)[:, ::s, ::s, :]
        xr = jnp.pad(xr.reshape(M2, cp_in), ((0, 2 * Mp2 - M2), (0, 0)))
        identity, _ = fused_matmul(xr, blk["wd_2d"], blk["sd"], blk["bd"],
                                   rows=2 * Mp2, valid=M2, relu="none")
    else:
        identity = x_arr            # merged block input: real-half rows match 1:1

    # conv3 (1x1) + bn3 (+identity on real half) + ReLU + fused per-sample probe
    out, psum = fused_matmul(r2, blk["w3_2d"], blk["s3"], blk["b3"],
                             rows=2 * Mp2, valid=M2, split=Mp2, relu="all",
                             residual=identity, probe=(Mp2, N, Ho * Wo))
    probe = psum.sum(axis=0)[:N, :out_c]
    meta = {"H": Ho, "W": Wo, "Mv": M2, "Mp": Mp2}
    return out, meta, probe


# ----------------------------------------------------------------------------
# Forward pass (mirrors ResNet50.forward from the PyTorch module)
# ----------------------------------------------------------------------------
def forward(x_nchw, params):
    stem, layers = params
    N = x_nchw.shape[0]
    x = jnp.transpose(x_nchw, (0, 2, 3, 1))            # NHWC f32
    probes = []

    # stem: 7x7 s2 conv + folded BN + ReLU; per-sample probe fused in the kernel
    patches, Ho, Wo = _im2col(x, 7, 7, 2)
    M = N * Ho * Wo
    K = patches.shape[-1]
    Kp = stem["w2d"].shape[0]
    Mp = _round_up(M, _SUB)
    xs = _pad2d(patches.reshape(M, K), Mp, Kp)
    act, psum = fused_matmul(xs, stem["w2d"], stem["scale"], stem["bias"],
                             rows=Mp, valid=M, relu="all", probe=(0, N, Ho * Wo))
    probes.append(psum.sum(axis=0)[:N, :BASE])

    # maxpool 3x3 s2 (plain-JAX 9-way max tree on the bf16 activation)
    sp = _maxpool_3x3_s2(act[:M].reshape(N, Ho, Wo, act.shape[1]))
    H, W = sp.shape[1], sp.shape[2]
    Mv = N * H * W
    x_arr = sp.reshape(Mv, sp.shape[3])
    Mp_cur = _round_up(Mv, _SUB)
    if Mp_cur != Mv:
        x_arr = jnp.pad(x_arr, ((0, Mp_cur - Mv), (0, 0)))
    meta = {"H": H, "W": W, "Mv": Mv, "Mp": Mp_cur}

    for blocks in layers:
        for blk in blocks:
            x_arr, meta, probe = _bottleneck(x_arr, meta, blk, N)
            probes.append(probe)
    return probes


# ----------------------------------------------------------------------------
# Deterministic parameter construction (raw f32 for the reference, packed
# padded bf16/f32 for the Pallas forward).  BN is folded into scale/bias.
# ----------------------------------------------------------------------------
def init_raw_params(key):
    keys = iter(jax.random.split(key, 512))

    def conv_w(cin, cout, k):
        return (jax.random.normal(next(keys), (k, k, cin, cout), jnp.float32)
                * jnp.sqrt(2.0 / (k * k * cin)))

    def bn(c):
        k1, k2, k3, k4 = jax.random.split(next(keys), 4)
        gamma = 1.0 + 0.1 * jax.random.normal(k1, (c,), jnp.float32)
        beta = 0.1 * jax.random.normal(k2, (c,), jnp.float32)
        mean = 0.1 * jax.random.normal(k3, (c,), jnp.float32)
        var = 1.0 + 0.1 * jax.random.uniform(k4, (c,), jnp.float32)
        scale = gamma / jnp.sqrt(var + BN_EPS)
        bias = beta - mean * scale
        return scale, bias

    s0, b0 = bn(BASE)
    stem = {"w": conv_w(3, BASE, 7), "scale": s0, "bias": b0}

    layers = []
    inplanes = BASE
    for (nblocks, width, stride) in LAYER_CFG:
        out_c = width * EXPANSION
        blocks = []
        for bidx in range(nblocks):
            s = stride if bidx == 0 else 1
            w1 = conv_w(inplanes, width, 1); s1, b1 = bn(width)
            w2 = conv_w(width, width, 3);    s2, b2 = bn(width)
            w3 = conv_w(width, out_c, 1);    s3, b3 = bn(out_c)
            blk = {"stride": s, "width": width, "out_c": out_c,
                   "w1": w1, "s1": s1, "b1": b1,
                   "w2": w2, "s2": s2, "b2": b2,
                   "w3": w3, "s3": s3, "b3": b3}
            if bidx == 0:   # first block of each stage has a downsample conv+bn
                blk["wd"] = conv_w(inplanes, out_c, 1)
                blk["sd"], blk["bd"] = bn(out_c)
            blocks.append(blk)
            inplanes = out_c
        layers.append(blocks)
    return stem, layers


def pack_params(raw):
    stem_raw, layers_raw = raw
    cp_stem = _round_up(BASE, _LANE)
    stem = {
        "w2d": _pad2d(stem_raw["w"].reshape(49 * 3, BASE),
                      _round_up(49 * 3, _LANE), cp_stem).astype(jnp.bfloat16),
        "scale": jnp.pad(stem_raw["scale"], (0, cp_stem - BASE)),
        "bias": jnp.pad(stem_raw["bias"], (0, cp_stem - BASE)),
    }

    def pv(v, cp):
        return jnp.pad(v, (0, cp - v.shape[0]))

    layers = []
    for blocks_raw in layers_raw:
        blocks = []
        for rb in blocks_raw:
            width, out_c = rb["width"], rb["out_c"]
            cin = rb["w1"].shape[2]
            cp_in = _round_up(cin, _LANE)
            cp_mid = _round_up(width, _LANE)
            cp_out = _round_up(out_c, _LANE)
            blk = {
                "stride": rb["stride"], "width": width, "out_c": out_c,
                "w1_2d": _pad2d(rb["w1"].reshape(cin, width),
                                cp_in, cp_mid).astype(jnp.bfloat16),
                "s1": pv(rb["s1"], cp_mid), "b1": pv(rb["b1"], cp_mid),
                "w2_2d": _pad2d(rb["w2"].reshape(9 * width, width),
                                _round_up(9 * width, _LANE),
                                cp_mid).astype(jnp.bfloat16),
                "s2": pv(rb["s2"], cp_mid), "b2": pv(rb["b2"], cp_mid),
                "w3_2d": _pad2d(rb["w3"].reshape(width, out_c),
                                cp_mid, cp_out).astype(jnp.bfloat16),
                "s3": pv(rb["s3"], cp_out), "b3": pv(rb["b3"], cp_out),
            }
            if "wd" in rb:
                blk["wd_2d"] = _pad2d(rb["wd"].reshape(cin, out_c),
                                      cp_in, cp_out).astype(jnp.bfloat16)
                blk["sd"] = pv(rb["sd"], cp_out)
                blk["bd"] = pv(rb["bd"], cp_out)
            blocks.append(blk)
        layers.append(blocks)
    return stem, layers


# ----------------------------------------------------------------------------
# Plain-JAX f32 reference of the same probe-forward (for a correctness check).
# ----------------------------------------------------------------------------
def _ref_conv(x, w, stride):
    kh, kw = w.shape[0], w.shape[1]
    pad = (((kh - 1) // 2,) * 2, ((kw - 1) // 2,) * 2)
    return jax.lax.conv_general_dilated(
        x, w, window_strides=(stride, stride), padding=pad,
        dimension_numbers=("NHWC", "HWIO", "NHWC"),
        precision=jax.lax.Precision.HIGHEST)


def _ref_maxpool(x):
    return jax.lax.reduce_window(x, -jnp.inf, jax.lax.max,
                                 (1, 3, 3, 1), (1, 2, 2, 1),
                                 [(0, 0), (1, 1), (1, 1), (0, 0)])


def ref_forward(x_nchw, raw):
    stem, layers = raw
    x = jnp.transpose(x_nchw, (0, 2, 3, 1))
    probes = []
    x = _ref_conv(x, stem["w"], 2) * stem["scale"] + stem["bias"]
    x = jnp.maximum(x, 0.0)
    probes.append(jnp.sum(x, axis=(1, 2)))
    x = _ref_maxpool(x)
    for blocks in layers:
        for blk in blocks:
            s = blk["stride"]
            # probe path (no intermediate ReLUs, exactly as in the PyTorch forward)
            t = _ref_conv(x, blk["w1"], 1) * blk["s1"] + blk["b1"]
            t = _ref_conv(t, blk["w2"], s) * blk["s2"] + blk["b2"]
            t = _ref_conv(t, blk["w3"], 1) * blk["s3"] + blk["b3"]
            probes.append(jnp.sum(jnp.maximum(t, 0.0), axis=(1, 2)))
            # real path: x = layer(x)
            r = jnp.maximum(_ref_conv(x, blk["w1"], 1) * blk["s1"] + blk["b1"], 0.0)
            r = jnp.maximum(_ref_conv(r, blk["w2"], s) * blk["s2"] + blk["b2"], 0.0)
            r = _ref_conv(r, blk["w3"], 1) * blk["s3"] + blk["b3"]
            if "wd" in blk:
                idn = _ref_conv(x, blk["wd"], s) * blk["sd"] + blk["bd"]
            else:
                idn = x
            x = jnp.maximum(r + idn, 0.0)
    return probes


# ----------------------------------------------------------------------------
if __name__ == "__main__":
    key = jax.random.PRNGKey(0)
    k_params, k_x = jax.random.split(key)
    raw = init_raw_params(k_params)
    packed = pack_params(raw)

    # small input consistent with the module's NCHW convention (batch=2, 3ch, 32x32)
    x = jax.random.normal(k_x, (2, 3, 32, 32), jnp.float32)

    # one jit over the whole probe-forward: single dispatch, glue fused by XLA
    fwd = jax.jit(lambda inp: forward(inp, packed))
    results = fwd(x)
    results = [jax.block_until_ready(r) for r in results]

    # 1 stem probe + (3 + 4 + 6 + 3) block probes = 17 arrays, each (N, C)
    assert len(results) == 17, len(results)
    assert results[0].shape == (2, BASE)
    assert results[-1].shape == (2, BASE * 8 * EXPANSION)
    assert all(bool(jnp.all(jnp.isfinite(r))) for r in results)

    # cross-check against the plain-JAX f32 reference (loose tolerance: the
    # kernel stores activations / weights in bf16 by design)
    ref = jax.jit(lambda inp: ref_forward(inp, raw))(x)
    ref = [jax.block_until_ready(r) for r in ref]
    for i, (a, b) in enumerate(zip(results, ref)):
        denom = float(jnp.max(jnp.abs(b))) + 1e-3
        err = float(jnp.max(jnp.abs(a.astype(jnp.float32) - b))) / denom
        assert err < 0.35, f"probe {i}: normalized error {err:.4f}"

    print("KERNEL_OK")
</pallas_src>

<mosaic_0001>
module attributes {stable_mosaic.version = 11 : i64} {
  func.func @kernel(%arg0: i32, %arg1: memref<256x256xbf16, #tpu.memory_space<vmem>>, %arg2: memref<256x128xbf16, #tpu.memory_space<vmem>>, %arg3: memref<1x128xf32, #tpu.memory_space<vmem>>, %arg4: memref<1x128xf32, #tpu.memory_space<vmem>>, %arg5: memref<256x128xbf16, #tpu.memory_space<vmem>>, %arg6: memref<1x8x128xf32, #tpu.memory_space<vmem>>) attributes {dimension_semantics = [#tpu.dimension_semantics<parallel>], iteration_bounds = array<i64: 2>, scalar_prefetch = 0 : i64, scratch_operands = 0 : i64, tpu.core_type = #tpu.core_type<tc>, window_params = [{transform_indices = @transform_0, window_bounds = array<i64: 256, 256>}, {pipeline_mode = #tpu.pipeline_mode<synchronous>, transform_indices = @transform_1, window_bounds = array<i64: 256, 128>}, {pipeline_mode = #tpu.pipeline_mode<synchronous>, transform_indices = @transform_2, window_bounds = array<i64: 1, 128>}, {pipeline_mode = #tpu.pipeline_mode<synchronous>, transform_indices = @transform_3, window_bounds = array<i64: 1, 128>}, {transform_indices = @transform_4, window_bounds = array<i64: 256, 128>}, {transform_indices = @transform_5, window_bounds = array<i64: 1, 8, 128>}]} {
    %c0 = arith.constant 0 : index
    %c0_0 = arith.constant 0 : index
    %0 = vector.load %arg1[%c0, %c0_0] : memref<256x256xbf16, #tpu.memory_space<vmem>>, vector<256x256xbf16>
    %c0_1 = arith.constant 0 : index
    %c0_2 = arith.constant 0 : index
    %1 = vector.load %arg2[%c0_1, %c0_2] : memref<256x128xbf16, #tpu.memory_space<vmem>>, vector<256x128xbf16>
    %cst = arith.constant dense<0.000000e+00> : vector<256x128xf32>
    %2 = tpu.matmul %0, %1, %cst {dimension_numbers = #tpu.dot_dimension_numbers<[1], [0], [0], [1], [0, 0, 1, 1], [], []>} : vector<256x256xbf16>, vector<256x128xbf16>, vector<256x128xf32> -> vector<256x128xf32>
    %c0_3 = arith.constant 0 : index
    %c0_4 = arith.constant 0 : index
    %3 = vector.load %arg3[%c0_3, %c0_4] : memref<1x128xf32, #tpu.memory_space<vmem>>, vector<1x128xf32>
    %4 = vector.broadcast %3 : vector<1x128xf32> to vector<256x128xf32>
    %5 = arith.mulf %2, %4 : vector<256x128xf32>
    %c0_5 = arith.constant 0 : index
    %c0_6 = arith.constant 0 : index
    %6 = vector.load %arg4[%c0_5, %c0_6] : memref<1x128xf32, #tpu.memory_space<vmem>>, vector<1x128xf32>
    %7 = vector.broadcast %6 : vector<1x128xf32> to vector<256x128xf32>
    %8 = arith.addf %5, %7 : vector<256x128xf32>
    %c256_i32 = arith.constant 256 : i32
    %9 = arith.muli %arg0, %c256_i32 : i32
    %10 = tpu.iota {dimensions = array<i32: 0>} : vector<256x1xi32>
    %11 = vector.broadcast %9 : i32 to vector<256x1xi32>
    %12 = arith.addi %11, %10 : vector<256x1xi32>
    %c512_i32 = arith.constant 512 : i32
    %13 = vector.broadcast %c512_i32 : i32 to vector<256x1xi32>
    %14 = arith.cmpi slt, %12, %13 : vector<256x1xi32>
    %cst_7 = arith.constant 0.000000e+00 : f32
    %15 = vector.broadcast %cst_7 : f32 to vector<256x128xf32>
    %16 = arith.maximumf %8, %15 : vector<256x128xf32>
    %cst_8 = arith.constant 0.000000e+00 : f32
    %17 = vector.shape_cast %14 : vector<256x1xi1> to vector<256x1xi1>
    %18 = vector.broadcast %17 : vector<256x1xi1> to vector<256x128xi1>
    %19 = vector.broadcast %cst_8 : f32 to vector<256x128xf32>
    %20 = arith.select %18, %16, %19 : vector<256x128xi1>, vector<256x128xf32>
    %21 = arith.truncf %20 : vector<256x128xf32> to vector<256x128xbf16>
    %c0_9 = arith.constant 0 : index
    %c0_10 = arith.constant 0 : index
    %22 = vector.load %arg5[%c0_9, %c0_10] : memref<256x128xbf16, #tpu.memory_space<vmem>>, vector<256x128xbf16>
    tpu.vector_store %arg5[%c0_9, %c0_10], %21 {strides = array<i32>} : memref<256x128xbf16, #tpu.memory_space<vmem>>, vector<256x128xbf16>,
    %c256_i32_11 = arith.constant 256 : i32
    %23 = arith.muli %arg0, %c256_i32_11 : i32
    %24 = tpu.iota {dimensions = array<i32: 1>} : vector<8x256xi32>
    %25 = vector.broadcast %23 : i32 to vector<8x256xi32>
    %26 = arith.addi %25, %24 : vector<8x256xi32>
    %27 = tpu.iota {dimensions = array<i32: 0>} : vector<8x256xi32>
    %c256_i32_12 = arith.constant 256 : i32
    %28 = vector.broadcast %c256_i32_12 : i32 to vector<8x256xi32>
    %29 = arith.muli %27, %28 : vector<8x256xi32>
    %c0_i32 = arith.constant 0 : i32
    %30 = vector.broadcast %c0_i32 : i32 to vector<8x256xi32>
    %31 = arith.addi %30, %29 : vector<8x256xi32>
    %c2_i32 = arith.constant 2 : i32
    %32 = vector.broadcast %c2_i32 : i32 to vector<8x256xi32>
    %33 = arith.cmpi slt, %27, %32 : vector<8x256xi32>
    %34 = arith.cmpi sge, %26, %31 : vector<8x256xi32>
    %35 = arith.andi %33, %34 : vector<8x256xi1>
    %c256_i32_13 = arith.constant 256 : i32
    %36 = vector.broadcast %c256_i32_13 : i32 to vector<8x256xi32>
    %37 = arith.addi %31, %36 : vector<8x256xi32>
    %38 = arith.cmpi slt, %26, %37 : vector<8x256xi32>
    %39 = arith.andi %35, %38 : vector<8x256xi1>
    %cst_14 = arith.constant 1.000000e+00 : f32
    %cst_15 = arith.constant 0.000000e+00 : f32
    %40 = vector.broadcast %cst_14 : f32 to vector<8x256xf32>
    %41 = vector.broadcast %cst_15 : f32 to vector<8x256xf32>
    %42 = arith.select %39, %40, %41 : vector<8x256xi1>, vector<8x256xf32>
    %cst_16 = arith.constant dense<0.000000e+00> : vector<8x128xf32>
    %43 = tpu.matmul %42, %20, %cst_16 {dimension_numbers = #tpu.dot_dimension_numbers<[1], [0], [0], [1], [0, 0, 1, 1], [], []>} : vector<8x256xf32>, vector<256x128xf32>, vector<8x128xf32> -> vector<8x128xf32>
    %c0_17 = arith.constant 0 : index
    %c0_18 = arith.constant 0 : index
    %c0_19 = arith.constant 0 : index
    %44 = vector.load %arg6[%c0_17, %c0_18, %c0_19] : memref<1x8x128xf32, #tpu.memory_space<vmem>>, vector<1x8x128xf32>
    %45 = vector.shape_cast %44 : vector<1x8x128xf32> to vector<8x128xf32>
    %46 = vector.shape_cast %43 : vector<8x128xf32> to vector<1x8x128xf32>
    tpu.vector_store %arg6[%c0_17, %c0_18, %c0_19], %46 {strides = array<i32>} : memref<1x8x128xf32, #tpu.memory_space<vmem>>, vector<1x8x128xf32>,
    return
  }
  func.func @transform_0(%arg0: i32) -> (i32, i32) {
    %c0_i32 = arith.constant 0 : i32
    %c0_i32_0 = arith.constant 0 : i32
    return %arg0, %c0_i32 : i32, i32
  }
  func.func @transform_1(%arg0: i32) -> (i32, i32) {
    %c0_i32 = arith.constant 0 : i32
    %c0_i32_0 = arith.constant 0 : i32
    %c0_i32_1 = arith.constant 0 : i32
    return %c0_i32, %c0_i32_0 : i32, i32
  }
  func.func @transform_2(%arg0: i32) -> (i32, i32) {
    %c0_i32 = arith.constant 0 : i32
    %c0_i32_0 = arith.constant 0 : i32
    %c0_i32_1 = arith.constant 0 : i32
    return %c0_i32, %c0_i32_0 : i32, i32
  }
  func.func @transform_3(%arg0: i32) -> (i32, i32) {
    %c0_i32 = arith.constant 0 : i32
    %c0_i32_0 = arith.constant 0 : i32
    %c0_i32_1 = arith.constant 0 : i32
    return %c0_i32, %c0_i32_0 : i32, i32
  }
  func.func @transform_4(%arg0: i32) -> (i32, i32) {
    %c0_i32 = arith.constant 0 : i32
    %c0_i32_0 = arith.constant 0 : i32
    return %arg0, %c0_i32 : i32, i32
  }
  func.func @transform_5(%arg0: i32) -> (i32, i32, i32) {
    %c0_i32 = arith.constant 0 : i32
    %c0_i32_0 = arith.constant 0 : i32
    %c0_i32_1 = arith.constant 0 : i32
    return %arg0, %c0_i32, %c0_i32_0 : i32, i32, i32
  }
}

module attributes {stable_mosaic.version = 11 : i64} {
  func.func @kernel(%arg0: i32, %arg1: memref<128x128xbf16, #tpu.memory_space<vmem>>, %arg2: memref<128x128xbf16, #tpu.memory_space<vmem>>, %arg3: memref<1x128xf32, #tpu.memory_space<vmem>>, %arg4: memref<1x128xf32, #tpu.memory_space<vmem>>, %arg5: memref<2x128x128xbf16, #tpu.memory_space<vmem>>) attributes {dimension_semantics = [#tpu.dimension_semantics<parallel>], iteration_bounds = array<i64: 1>, scalar_prefetch = 0 : i64, scratch_operands = 0 : i64, tpu.core_type = #tpu.core_type<tc>, window_params = [{transform_indices = @transform_0, window_bounds = array<i64: 128, 128>}, {pipeline_mode = #tpu.pipeline_mode<synchronous>, transform_indices = @transform_1, window_bounds = array<i64: 128, 128>}, {pipeline_mode = #tpu.pipeline_mode<synchronous>, transform_indices = @transform_2, window_bounds = array<i64: 1, 128>}, {pipeline_mode = #tpu.pipeline_mode<synchronous>, transform_indices = @transform_3, window_bounds = array<i64: 1, 128>}, {transform_indices = @transform_4, window_bounds = array<i64: 2, 128, 128>}]} {
    %c0 = arith.constant 0 : index
    %c0_0 = arith.constant 0 : index
    %0 = vector.load %arg1[%c0, %c0_0] : memref<128x128xbf16, #tpu.memory_space<vmem>>, vector<128x128xbf16>
    %c0_1 = arith.constant 0 : index
    %c0_2 = arith.constant 0 : index
    %1 = vector.load %arg2[%c0_1, %c0_2] : memref<128x128xbf16, #tpu.memory_space<vmem>>, vector<128x128xbf16>
    %cst = arith.constant dense<0.000000e+00> : vector<128x128xf32>
    %2 = tpu.matmul %0, %1, %cst {dimension_numbers = #tpu.dot_dimension_numbers<[1], [0], [0], [1], [0, 0, 1, 1], [], []>} : vector<128x128xbf16>, vector<128x128xbf16>, vector<128x128xf32> -> vector<128x128xf32>
    %c0_3 = arith.constant 0 : index
    %c0_4 = arith.constant 0 : index
    %3 = vector.load %arg3[%c0_3, %c0_4] : memref<1x128xf32, #tpu.memory_space<vmem>>, vector<1x128xf32>
    %4 = vector.broadcast %3 : vector<1x128xf32> to vector<128x128xf32>
    %5 = arith.mulf %2, %4 : vector<128x128xf32>
    %c0_5 = arith.constant 0 : index
    %c0_6 = arith.constant 0 : index
    %6 = vector.load %arg4[%c0_5, %c0_6] : memref<1x128xf32, #tpu.memory_space<vmem>>, vector<1x128xf32>
    %7 = vector.broadcast %6 : vector<1x128xf32> to vector<128x128xf32>
    %8 = arith.addf %5, %7 : vector<128x128xf32>
    %c128_i32 = arith.constant 128 : i32
    %9 = arith.muli %arg0, %c128_i32 : i32
    %10 = tpu.iota {dimensions = array<i32: 0>} : vector<128x1xi32>
    %11 = vector.broadcast %9 : i32 to vector<128x1xi32>
    %12 = arith.addi %11, %10 : vector<128x1xi32>
    %c128_i32_7 = arith.constant 128 : i32
    %13 = vector.broadcast %c128_i32_7 : i32 to vector<128x1xi32>
    %14 = arith.cmpi slt, %12, %13 : vector<128x1xi32>
    %cst_8 = arith.constant 0.000000e+00 : f32
    %15 = vector.shape_cast %14 : vector<128x1xi1> to vector<128x1xi1>
    %16 = vector.broadcast %15 : vector<128x1xi1> to vector<128x128xi1>
    %17 = vector.broadcast %cst_8 : f32 to vector<128x128xf32>
    %18 = arith.select %16, %8, %17 : vector<128x128xi1>, vector<128x128xf32>
    %cst_9 = arith.constant 0.000000e+00 : f32
    %19 = vector.broadcast %cst_9 : f32 to vector<128x128xf32>
    %20 = arith.maximumf %18, %19 : vector<128x128xf32>
    %21 = arith.truncf %20 : vector<128x128xf32> to vector<128x128xbf16>
    %c0_10 = arith.constant 0 : index
    %c0_11 = arith.constant 0 : index
    %c0_12 = arith.constant 0 : index
    %22 = vector.load %arg5[%c0_10, %c0_11, %c0_12] : memref<2x128x128xbf16, #tpu.memory_space<vmem>>, vector<1x128x128xbf16>
    %23 = vector.shape_cast %22 : vector<1x128x128xbf16> to vector<128x128xbf16>
    %24 = vector.shape_cast %21 : vector<128x128xbf16> to vector<1x128x128xbf16>
    tpu.vector_store %arg5[%c0_10, %c0_11, %c0_12], %24 {strides = array<i32>} : memref<2x128x128xbf16, #tpu.memory_space<vmem>>, vector<1x128x128xbf16>,
    %25 = arith.truncf %18 : vector<128x128xf32> to vector<128x128xbf16>
    %c1 = arith.constant 1 : index
    %c0_13 = arith.constant 0 : index
    %c0_14 = arith.constant 0 : index
    %26 = vector.load %arg5[%c1, %c0_13, %c0_14] : memref<2x128x128xbf16, #tpu.memory_space<vmem>>, vector<1x128x128xbf16>
    %27 = vector.shape_cast %26 : vector<1x128x128xbf16> to vector<128x128xbf16>
    %28 = vector.shape_cast %25 : vector<128x128xbf16> to vector<1x128x128xbf16>
    tpu.vector_store %arg5[%c1, %c0_13, %c0_14], %28 {strides = array<i32>} : memref<2x128x128xbf16, #tpu.memory_space<vmem>>, vector<1x128x128xbf16>,
    return
  }
  func.func @transform_0(%arg0: i32) -> (i32, i32) {
    %c0_i32 = arith.constant 0 : i32
    %c0_i32_0 = arith.constant 0 : i32
    return %arg0, %c0_i32 : i32, i32
  }
  func.func @transform_1(%arg0: i32) -> (i32, i32) {
    %c0_i32 = arith.constant 0 : i32
    %c0_i32_0 = arith.constant 0 : i32
    %c0_i32_1 = arith.constant 0 : i32
    return %c0_i32, %c0_i32_0 : i32, i32
  }
  func.func @transform_2(%arg0: i32) -> (i32, i32) {
    %c0_i32 = arith.constant 0 : i32
    %c0_i32_0 = arith.constant 0 : i32
    %c0_i32_1 = arith.constant 0 : i32
    return %c0_i32, %c0_i32_0 : i32, i32
  }
  func.func @transform_3(%arg0: i32) -> (i32, i32) {
    %c0_i32 = arith.constant 0 : i32
    %c0_i32_0 = arith.constant 0 : i32
    %c0_i32_1 = arith.constant 0 : i32
    return %c0_i32, %c0_i32_0 : i32, i32
  }
  func.func @transform_4(%arg0: i32) -> (i32, i32, i32) {
    %c0_i32 = arith.constant 0 : i32
    %c0_i32_0 = arith.constant 0 : i32
    %c0_i32_1 = arith.constant 0 : i32
    return %c0_i32, %arg0, %c0_i32_0 : i32, i32, i32
  }
}

module attributes {stable_mosaic.version = 11 : i64} {
  func.func @kernel(%arg0: i32, %arg1: memref<256x256xbf16, #tpu.memory_space<vmem>>, %arg2: memref<256x128xbf16, #tpu.memory_space<vmem>>, %arg3: memref<1x128xf32, #tpu.memory_space<vmem>>, %arg4: memref<1x128xf32, #tpu.memory_space<vmem>>, %arg5: memref<256x128xbf16, #tpu.memory_space<vmem>>) attributes {dimension_semantics = [#tpu.dimension_semantics<parallel>], iteration_bounds = array<i64: 1>, scalar_prefetch = 0 : i64, scratch_operands = 0 : i64, tpu.core_type = #tpu.core_type<tc>, window_params = [{transform_indices = @transform_0, window_bounds = array<i64: 256, 256>}, {pipeline_mode = #tpu.pipeline_mode<synchronous>, transform_indices = @transform_1, window_bounds = array<i64: 256, 128>}, {pipeline_mode = #tpu.pipeline_mode<synchronous>, transform_indices = @transform_2, window_bounds = array<i64: 1, 128>}, {pipeline_mode = #tpu.pipeline_mode<synchronous>, transform_indices = @transform_3, window_bounds = array<i64: 1, 128>}, {transform_indices = @transform_4, window_bounds = array<i64: 256, 128>}]} {
    %c0 = arith.constant 0 : index
    %c0_0 = arith.constant 0 : index
    %0 = vector.load %arg1[%c0, %c0_0] : memref<256x256xbf16, #tpu.memory_space<vmem>>, vector<256x256xbf16>
    %c0_1 = arith.constant 0 : index
    %c0_2 = arith.constant 0 : index
    %1 = vector.load %arg2[%c0_1, %c0_2] : memref<256x128xbf16, #tpu.memory_space<vmem>>, vector<256x128xbf16>
    %cst = arith.constant dense<0.000000e+00> : vector<256x128xf32>
    %2 = tpu.matmul %0, %1, %cst {dimension_numbers = #tpu.dot_dimension_numbers<[1], [0], [0], [1], [0, 0, 1, 1], [], []>} : vector<256x256xbf16>, vector<256x128xbf16>, vector<256x128xf32> -> vector<256x128xf32>
    %c0_3 = arith.constant 0 : index
    %c0_4 = arith.constant 0 : index
    %3 = vector.load %arg3[%c0_3, %c0_4] : memref<1x128xf32, #tpu.memory_space<vmem>>, vector<1x128xf32>
    %4 = vector.broadcast %3 : vector<1x128xf32> to vector<256x128xf32>
    %5 = arith.mulf %2, %4 : vector<256x128xf32>
    %c0_5 = arith.constant 0 : index
    %c0_6 = arith.constant 0 : index
    %6 = vector.load %arg4[%c0_5, %c0_6] : memref<1x128xf32, #tpu.memory_space<vmem>>, vector<1x128xf32>
    %7 = vector.broadcast %6 : vector<1x128xf32> to vector<256x128xf32>
    %8 = arith.addf %5, %7 : vector<256x128xf32>
    %c256_i32 = arith.constant 256 : i32
    %9 = arith.muli %arg0, %c256_i32 : i32
    %10 = tpu.iota {dimensions = array<i32: 0>} : vector<256x1xi32>
    %11 = vector.broadcast %9 : i32 to vector<256x1xi32>
    %12 = arith.addi %11, %10 : vector<256x1xi32>
    %c128_i32 = arith.constant 128 : i32
    %13 = vector.broadcast %c128_i32 : i32 to vector<256x1xi32>
    %14 = arith.cmpi slt, %12, %13 : vector<256x1xi32>
    %c128_i32_7 = arith.constant 128 : i32
    %15 = vector.broadcast %c128_i32_7 : i32 to vector<256x1xi32>
    %16 = arith.cmpi sge, %12, %15 : vector<256x1xi32>
    %c256_i32_8 = arith.constant 256 : i32
    %17 = vector.broadcast %c256_i32_8 : i32 to vector<256x1xi32>
    %18 = arith.cmpi slt, %12, %17 : vector<256x1xi32>
    %19 = arith.andi %16, %18 : vector<256x1xi1>
    %20 = arith.ori %14, %19 : vector<256x1xi1>
    %c128_i32_9 = arith.constant 128 : i32
    %21 = vector.broadcast %c128_i32_9 : i32 to vector<256x1xi32>
    %22 = arith.cmpi slt, %12, %21 : vector<256x1xi32>
    %cst_10 = arith.constant 0.000000e+00 : f32
    %23 = vector.broadcast %cst_10 : f32 to vector<256x128xf32>
    %24 = arith.maximumf %8, %23 : vector<256x128xf32>
    %25 = vector.shape_cast %22 : vector<256x1xi1> to vector<256x1xi1>
    %26 = vector.broadcast %25 : vector<256x1xi1> to vector<256x128xi1>
    %27 = arith.select %26, %24, %8 : vector<256x128xi1>, vector<256x128xf32>
    %cst_11 = arith.constant 0.000000e+00 : f32
    %28 = vector.shape_cast %20 : vector<256x1xi1> to vector<256x1xi1>
    %29 = vector.broadcast %28 : vector<256x1xi1> to vector<256x128xi1>
    %30 = vector.broadcast %cst_11 : f32 to vector<256x128xf32>
    %31 = arith.select %29, %27, %30 : vector<256x128xi1>, vector<256x128xf32>
    %32 = arith.truncf %31 : vector<256x128xf32> to vector<256x128xbf16>
    %c0_12 = arith.constant 0 : index
    %c0_13 = arith.constant 0 : index
    %33 = vector.load %arg5[%c0_12, %c0_13] : memref<256x128xbf16, #tpu.memory_space<vmem>>, vector<256x128xbf16>
    tpu.vector_store %arg5[%c0_12, %c0_13], %32 {strides = array<i32>} : memref<256x128xbf16, #tpu.memory_space<vmem>>, vector<256x128xbf16>,
    return
  }
  func.func @transform_0(%arg0: i32) -> (i32, i32) {
    %c0_i32 = arith.constant 0 : i32
    %c0_i32_0 = arith.constant 0 : i32
    return %arg0, %c0_i32 : i32, i32
  }
  func.func @transform_1(%arg0: i32) -> (i32, i32) {
    %c0_i32 = arith.constant 0 : i32
    %c0_i32_0 = arith.constant 0 : i32
    %c0_i32_1 = arith.constant 0 : i32
    return %c0_i32, %c0_i32_0 : i32, i32
  }
  func.func @transform_2(%arg0: i32) -> (i32, i32) {
    %c0_i32 = arith.constant 0 : i32
    %c0_i32_0 = arith.constant 0 : i32
    %c0_i32_1 = arith.constant 0 : i32
    return %c0_i32, %c0_i32_0 : i32, i32
  }
  func.func @transform_3(%arg0: i32) -> (i32, i32) {
    %c0_i32 = arith.constant 0 : i32
    %c0_i32_0 = arith.constant 0 : i32
    %c0_i32_1 = arith.constant 0 : i32
    return %c0_i32, %c0_i32_0 : i32, i32
  }
  func.func @transform_4(%arg0: i32) -> (i32, i32) {
    %c0_i32 = arith.constant 0 : i32
    %c0_i32_0 = arith.constant 0 : i32
    return %arg0, %c0_i32 : i32, i32
  }
}

module attributes {stable_mosaic.version = 11 : i64} {
  func.func @kernel(%arg0: i32, %arg1: memref<256x128xbf16, #tpu.memory_space<vmem>>, %arg2: memref<128x128xbf16, #tpu.memory_space<vmem>>, %arg3: memref<1x128xf32, #tpu.memory_space<vmem>>, %arg4: memref<1x128xf32, #tpu.memory_space<vmem>>, %arg5: memref<256x128xbf16, #tpu.memory_space<vmem>>) attributes {dimension_semantics = [#tpu.dimension_semantics<parallel>], iteration_bounds = array<i64: 1>, scalar_prefetch = 0 : i64, scratch_operands = 0 : i64, tpu.core_type = #tpu.core_type<tc>, window_params = [{transform_indices = @transform_0, window_bounds = array<i64: 256, 128>}, {pipeline_mode = #tpu.pipeline_mode<synchronous>, transform_indices = @transform_1, window_bounds = array<i64: 128, 128>}, {pipeline_mode = #tpu.pipeline_mode<synchronous>, transform_indices = @transform_2, window_bounds = array<i64: 1, 128>}, {pipeline_mode = #tpu.pipeline_mode<synchronous>, transform_indices = @transform_3, window_bounds = array<i64: 1, 128>}, {transform_indices = @transform_4, window_bounds = array<i64: 256, 128>}]} {
    %c0 = arith.constant 0 : index
    %c0_0 = arith.constant 0 : index
    %0 = vector.load %arg1[%c0, %c0_0] : memref<256x128xbf16, #tpu.memory_space<vmem>>, vector<256x128xbf16>
    %c0_1 = arith.constant 0 : index
    %c0_2 = arith.constant 0 : index
    %1 = vector.load %arg2[%c0_1, %c0_2] : memref<128x128xbf16, #tpu.memory_space<vmem>>, vector<128x128xbf16>
    %cst = arith.constant dense<0.000000e+00> : vector<256x128xf32>
    %2 = tpu.matmul %0, %1, %cst {dimension_numbers = #tpu.dot_dimension_numbers<[1], [0], [0], [1], [0, 0, 1, 1], [], []>} : vector<256x128xbf16>, vector<128x128xbf16>, vector<256x128xf32> -> vector<256x128xf32>
    %c0_3 = arith.constant 0 : index
    %c0_4 = arith.constant 0 : index
    %3 = vector.load %arg3[%c0_3, %c0_4] : memref<1x128xf32, #tpu.memory_space<vmem>>, vector<1x128xf32>
    %4 = vector.broadcast %3 : vector<1x128xf32> to vector<256x128xf32>
    %5 = arith.mulf %2, %4 : vector<256x128xf32>
    %c0_5 = arith.constant 0 : index
    %c0_6 = arith.constant 0 : index
    %6 = vector.load %arg4[%c0_5, %c0_6] : memref<1x128xf32, #tpu.memory_space<vmem>>, vector<1x128xf32>
    %7 = vector.broadcast %6 : vector<1x128xf32> to vector<256x128xf32>
    %8 = arith.addf %5, %7 : vector<256x128xf32>
    %c256_i32 = arith.constant 256 : i32
    %9 = arith.muli %arg0, %c256_i32 : i32
    %10 = tpu.iota {dimensions = array<i32: 0>} : vector<256x1xi32>
    %11 = vector.broadcast %9 : i32 to vector<256x1xi32>
    %12 = arith.addi %11, %10 : vector<256x1xi32>
    %c128_i32 = arith.constant 128 : i32
    %13 = vector.broadcast %c128_i32 : i32 to vector<256x1xi32>
    %14 = arith.cmpi slt, %12, %13 : vector<256x1xi32>
    %cst_7 = arith.constant 0.000000e+00 : f32
    %15 = vector.shape_cast %14 : vector<256x1xi1> to vector<256x1xi1>
    %16 = vector.broadcast %15 : vector<256x1xi1> to vector<256x128xi1>
    %17 = vector.broadcast %cst_7 : f32 to vector<256x128xf32>
    %18 = arith.select %16, %8, %17 : vector<256x128xi1>, vector<256x128xf32>
    %19 = arith.truncf %18 : vector<256x128xf32> to vector<256x128xbf16>
    %c0_8 = arith.constant 0 : index
    %c0_9 = arith.constant 0 : index
    %20 = vector.load %arg5[%c0_8, %c0_9] : memref<256x128xbf16, #tpu.memory_space<vmem>>, vector<256x128xbf16>
    tpu.vector_store %arg5[%c0_8, %c0_9], %19 {strides = array<i32>} : memref<256x128xbf16, #tpu.memory_space<vmem>>, vector<256x128xbf16>,
    return
  }
  func.func @transform_0(%arg0: i32) -> (i32, i32) {
    %c0_i32 = arith.constant 0 : i32
    %c0_i32_0 = arith.constant 0 : i32
    return %arg0, %c0_i32 : i32, i32
  }
  func.func @transform_1(%arg0: i32) -> (i32, i32) {
    %c0_i32 = arith.constant 0 : i32
    %c0_i32_0 = arith.constant 0 : i32
    %c0_i32_1 = arith.constant 0 : i32
    return %c0_i32, %c0_i32_0 : i32, i32
  }
  func.func @transform_2(%arg0: i32) -> (i32, i32) {
    %c0_i32 = arith.constant 0 : i32
    %c0_i32_0 = arith.constant 0 : i32
    %c0_i32_1 = arith.constant 0 : i32
    return %c0_i32, %c0_i32_0 : i32, i32
  }
  func.func @transform_3(%arg0: i32) -> (i32, i32) {
    %c0_i32 = arith.constant 0 : i32
    %c0_i32_0 = arith.constant 0 : i32
    %c0_i32_1 = arith.constant 0 : i32
    return %c0_i32, %c0_i32_0 : i32, i32
  }
  func.func @transform_4(%arg0: i32) -> (i32, i32) {
    %c0_i32 = arith.constant 0 : i32
    %c0_i32_0 = arith.constant 0 : i32
    return %arg0, %c0_i32 : i32, i32
  }
}

module attributes {stable_mosaic.version = 11 : i64} {
  func.func @kernel(%arg0: i32, %arg1: memref<256x128xbf16, #tpu.memory_space<vmem>>, %arg2: memref<128x128xbf16, #tpu.memory_space<vmem>>, %arg3: memref<1x128xf32, #tpu.memory_space<vmem>>, %arg4: memref<1x128xf32, #tpu.memory_space<vmem>>, %arg5: memref<256x128xbf16, #tpu.memory_space<vmem>>, %arg6: memref<256x128xbf16, #tpu.memory_space<vmem>>, %arg7: memref<1x8x128xf32, #tpu.memory_space<vmem>>) attributes {dimension_semantics = [#tpu.dimension_semantics<parallel>], iteration_bounds = array<i64: 1>, scalar_prefetch = 0 : i64, scratch_operands = 0 : i64, tpu.core_type = #tpu.core_type<tc>, window_params = [{transform_indices = @transform_0, window_bounds = array<i64: 256, 128>}, {pipeline_mode = #tpu.pipeline_mode<synchronous>, transform_indices = @transform_1, window_bounds = array<i64: 128, 128>}, {pipeline_mode = #tpu.pipeline_mode<synchronous>, transform_indices = @transform_2, window_bounds = array<i64: 1, 128>}, {pipeline_mode = #tpu.pipeline_mode<synchronous>, transform_indices = @transform_3, window_bounds = array<i64: 1, 128>}, {transform_indices = @transform_4, window_bounds = array<i64: 256, 128>}, {transform_indices = @transform_5, window_bounds = array<i64: 256, 128>}, {transform_indices = @transform_6, window_bounds = array<i64: 1, 8, 128>}]} {
    %c0 = arith.constant 0 : index
    %c0_0 = arith.constant 0 : index
    %0 = vector.load %arg1[%c0, %c0_0] : memref<256x128xbf16, #tpu.memory_space<vmem>>, vector<256x128xbf16>
    %c0_1 = arith.constant 0 : index
    %c0_2 = arith.constant 0 : index
    %1 = vector.load %arg2[%c0_1, %c0_2] : memref<128x128xbf16, #tpu.memory_space<vmem>>, vector<128x128xbf16>
    %cst = arith.constant dense<0.000000e+00> : vector<256x128xf32>
    %2 = tpu.matmul %0, %1, %cst {dimension_numbers = #tpu.dot_dimension_numbers<[1], [0], [0], [1], [0, 0, 1, 1], [], []>} : vector<256x128xbf16>, vector<128x128xbf16>, vector<256x128xf32> -> vector<256x128xf32>
    %c0_3 = arith.constant 0 : index
    %c0_4 = arith.constant 0 : index
    %3 = vector.load %arg3[%c0_3, %c0_4] : memref<1x128xf32, #tpu.memory_space<vmem>>, vector<1x128xf32>
    %4 = vector.broadcast %3 : vector<1x128xf32> to vector<256x128xf32>
    %5 = arith.mulf %2, %4 : vector<256x128xf32>
    %c0_5 = arith.constant 0 : index
    %c0_6 = arith.constant 0 : index
    %6 = vector.load %arg4[%c0_5, %c0_6] : memref<1x128xf32, #tpu.memory_space<vmem>>, vector<1x128xf32>
    %7 = vector.broadcast %6 : vector<1x128xf32> to vector<256x128xf32>
    %8 = arith.addf %5, %7 : vector<256x128xf32>
    %c256_i32 = arith.constant 256 : i32
    %9 = arith.muli %arg0, %c256_i32 : i32
    %10 = tpu.iota {dimensions = array<i32: 0>} : vector<256x1xi32>
    %11 = vector.broadcast %9 : i32 to vector<256x1xi32>
    %12 = arith.addi %11, %10 : vector<256x1xi32>
    %c128_i32 = arith.constant 128 : i32
    %13 = vector.broadcast %c128_i32 : i32 to vector<256x1xi32>
    %14 = arith.cmpi slt, %12, %13 : vector<256x1xi32>
    %c128_i32_7 = arith.constant 128 : i32
    %15 = vector.broadcast %c128_i32_7 : i32 to vector<256x1xi32>
    %16 = arith.cmpi sge, %12, %15 : vector<256x1xi32>
    %c256_i32_8 = arith.constant 256 : i32
    %17 = vector.broadcast %c256_i32_8 : i32 to vector<256x1xi32>
    %18 = arith.cmpi slt, %12, %17 : vector<256x1xi32>
    %19 = arith.andi %16, %18 : vector<256x1xi1>
    %20 = arith.ori %14, %19 : vector<256x1xi1>
    %c0_9 = arith.constant 0 : index
    %c0_10 = arith.constant 0 : index
    %21 = vector.load %arg5[%c0_9, %c0_10] : memref<256x128xbf16, #tpu.memory_space<vmem>>, vector<256x128xbf16>
    %22 = arith.extf %21 : vector<256x128xbf16> to vector<256x128xf32>
    %c128_i32_11 = arith.constant 128 : i32
    %23 = vector.broadcast %c128_i32_11 : i32 to vector<256x1xi32>
    %24 = arith.cmpi slt, %12, %23 : vector<256x1xi32>
    %cst_12 = arith.constant 0.000000e+00 : f32
    %25 = vector.shape_cast %24 : vector<256x1xi1> to vector<256x1xi1>
    %26 = vector.broadcast %25 : vector<256x1xi1> to vector<256x128xi1>
    %27 = vector.broadcast %cst_12 : f32 to vector<256x128xf32>
    %28 = arith.select %26, %22, %27 : vector<256x128xi1>, vector<256x128xf32>
    %29 = arith.addf %8, %28 : vector<256x128xf32>
    %cst_13 = arith.constant 0.000000e+00 : f32
    %30 = vector.broadcast %cst_13 : f32 to vector<256x128xf32>
    %31 = arith.maximumf %29, %30 : vector<256x128xf32>
    %cst_14 = arith.constant 0.000000e+00 : f32
    %32 = vector.shape_cast %20 : vector<256x1xi1> to vector<256x1xi1>
    %33 = vector.broadcast %32 : vector<256x1xi1> to vector<256x128xi1>
    %34 = vector.broadcast %cst_14 : f32 to vector<256x128xf32>
    %35 = arith.select %33, %31, %34 : vector<256x128xi1>, vector<256x128xf32>
    %36 = arith.truncf %35 : vector<256x128xf32> to vector<256x128xbf16>
    %c0_15 = arith.constant 0 : index
    %c0_16 = arith.constant 0 : index
    %37 = vector.load %arg6[%c0_15, %c0_16] : memref<256x128xbf16, #tpu.memory_space<vmem>>, vector<256x128xbf16>
    tpu.vector_store %arg6[%c0_15, %c0_16], %36 {strides = array<i32>} : memref<256x128xbf16, #tpu.memory_space<vmem>>, vector<256x128xbf16>,
    %c256_i32_17 = arith.constant 256 : i32
    %38 = arith.muli %arg0, %c256_i32_17 : i32
    %39 = tpu.iota {dimensions = array<i32: 1>} : vector<8x256xi32>
    %40 = vector.broadcast %38 : i32 to vector<8x256xi32>
    %41 = arith.addi %40, %39 : vector<8x256xi32>
    %42 = tpu.iota {dimensions = array<i32: 0>} : vector<8x256xi32>
    %c64_i32 = arith.constant 64 : i32
    %43 = vector.broadcast %c64_i32 : i32 to vector<8x256xi32>
    %44 = arith.muli %42, %43 : vector<8x256xi32>
    %c128_i32_18 = arith.constant 128 : i32
    %45 = vector.broadcast %c128_i32_18 : i32 to vector<8x256xi32>
    %46 = arith.addi %45, %44 : vector<8x256xi32>
    %c2_i32 = arith.constant 2 : i32
    %47 = vector.broadcast %c2_i32 : i32 to vector<8x256xi32>
    %48 = arith.cmpi slt, %42, %47 : vector<8x256xi32>
    %49 = arith.cmpi sge, %41, %46 : vector<8x256xi32>
    %50 = arith.andi %48, %49 : vector<8x256xi1>
    %c64_i32_19 = arith.constant 64 : i32
    %51 = vector.broadcast %c64_i32_19 : i32 to vector<8x256xi32>
    %52 = arith.addi %46, %51 : vector<8x256xi32>
    %53 = arith.cmpi slt, %41, %52 : vector<8x256xi32>
    %54 = arith.andi %50, %53 : vector<8x256xi1>
    %cst_20 = arith.constant 1.000000e+00 : f32
    %cst_21 = arith.constant 0.000000e+00 : f32
    %55 = vector.broadcast %cst_20 : f32 to vector<8x256xf32>
    %56 = vector.broadcast %cst_21 : f32 to vector<8x256xf32>
    %57 = arith.select %54, %55, %56 : vector<8x256xi1>, vector<8x256xf32>
    %cst_22 = arith.constant dense<0.000000e+00> : vector<8x128xf32>
    %58 = tpu.matmul %57, %35, %cst_22 {dimension_numbers = #tpu.dot_dimension_numbers<[1], [0], [0], [1], [0, 0, 1, 1], [], []>} : vector<8x256xf32>, vector<256x128xf32>, vector<8x128xf32> -> vector<8x128xf32>
    %c0_23 = arith.constant 0 : index
    %c0_24 = arith.constant 0 : index
    %c0_25 = arith.constant 0 : index
    %59 = vector.load %arg7[%c0_23, %c0_24, %c0_25] : memref<1x8x128xf32, #tpu.memory_space<vmem>>, vector<1x8x128xf32>
    %60 = vector.shape_cast %59 : vector<1x8x128xf32> to vector<8x128xf32>
    %61 = vector.shape_cast %58 : vector<8x128xf32> to vector<1x8x128xf32>
    tpu.vector_store %arg7[%c0_23, %c0_24, %c0_25], %61 {strides = array<i32>} : memref<1x8x128xf32, #tpu.memory_space<vmem>>, vector<1x8x128xf32>,
    return
  }
  func.func @transform_0(%arg0: i32) -> (i32, i32) {
    %c0_i32 = arith.constant 0 : i32
    %c0_i32_0 = arith.constant 0 : i32
    return %arg0, %c0_i32 : i32, i32
  }
  func.func @transform_1(%arg0: i32) -> (i32, i32) {
    %c0_i32 = arith.constant 0 : i32
    %c0_i32_0 = arith.constant 0 : i32
    %c0_i32_1 = arith.constant 0 : i32
    return %c0_i32, %c0_i32_0 : i32, i32
  }
  func.func @transform_2(%arg0: i32) -> (i32, i32) {
    %c0_i32 = arith.constant 0 : i32
    %c0_i32_0 = arith.constant 0 : i32
    %c0_i32_1 = arith.constant 0 : i32
    return %c0_i32, %c0_i32_0 : i32, i32
  }
  func.func @transform_3(%arg0: i32) -> (i32, i32) {
    %c0_i32 = arith.constant 0 : i32
    %c0_i32_0 = arith.constant 0 : i32
    %c0_i32_1 = arith.constant 0 : i32
    return %c0_i32, %c0_i32_0 : i32, i32
  }
  func.func @transform_4(%arg0: i32) -> (i32, i32) {
    %c0_i32 = arith.constant 0 : i32
    %c0_i32_0 = arith.constant 0 : i32
    return %arg0, %c0_i32 : i32, i32
  }
  func.func @transform_5(%arg0: i32) -> (i32, i32) {
    %c0_i32 = arith.constant 0 : i32
    %c0_i32_0 = arith.constant 0 : i32
    return %arg0, %c0_i32 : i32, i32
  }
  func.func @transform_6(%arg0: i32) -> (i32, i32, i32) {
    %c0_i32 = arith.constant 0 : i32
    %c0_i32_0 = arith.constant 0 : i32
    %c0_i32_1 = arith.constant 0 : i32
    return %arg0, %c0_i32, %c0_i32_0 : i32, i32, i32
  }
}

module attributes {stable_mosaic.version = 11 : i64} {
  func.func @kernel(%arg0: i32, %arg1: memref<128x128xbf16, #tpu.memory_space<vmem>>, %arg2: memref<128x128xbf16, #tpu.memory_space<vmem>>, %arg3: memref<1x128xf32, #tpu.memory_space<vmem>>, %arg4: memref<1x128xf32, #tpu.memory_space<vmem>>, %arg5: memref<2x128x128xbf16, #tpu.memory_space<vmem>>) attributes {dimension_semantics = [#tpu.dimension_semantics<parallel>], iteration_bounds = array<i64: 1>, scalar_prefetch = 0 : i64, scratch_operands = 0 : i64, tpu.core_type = #tpu.core_type<tc>, window_params = [{transform_indices = @transform_0, window_bounds = array<i64: 128, 128>}, {pipeline_mode = #tpu.pipeline_mode<synchronous>, transform_indices = @transform_1, window_bounds = array<i64: 128, 128>}, {pipeline_mode = #tpu.pipeline_mode<synchronous>, transform_indices = @transform_2, window_bounds = array<i64: 1, 128>}, {pipeline_mode = #tpu.pipeline_mode<synchronous>, transform_indices = @transform_3, window_bounds = array<i64: 1, 128>}, {transform_indices = @transform_4, window_bounds = array<i64: 2, 128, 128>}]} {
    %c0 = arith.constant 0 : index
    %c0_0 = arith.constant 0 : index
    %0 = vector.load %arg1[%c0, %c0_0] : memref<128x128xbf16, #tpu.memory_space<vmem>>, vector<128x128xbf16>
    %c0_1 = arith.constant 0 : index
    %c0_2 = arith.constant 0 : index
    %1 = vector.load %arg2[%c0_1, %c0_2] : memref<128x128xbf16, #tpu.memory_space<vmem>>, vector<128x128xbf16>
    %cst = arith.constant dense<0.000000e+00> : vector<128x128xf32>
    %2 = tpu.matmul %0, %1, %cst {dimension_numbers = #tpu.dot_dimension_numbers<[1], [0], [0], [1], [0, 0, 1, 1], [], []>} : vector<128x128xbf16>, vector<128x128xbf16>, vector<128x128xf32> -> vector<128x128xf32>
    %c0_3 = arith.constant 0 : index
    %c0_4 = arith.constant 0 : index
    %3 = vector.load %arg3[%c0_3, %c0_4] : memref<1x128xf32, #tpu.memory_space<vmem>>, vector<1x128xf32>
    %4 = vector.broadcast %3 : vector<1x128xf32> to vector<128x128xf32>
    %5 = arith.mulf %2, %4 : vector<128x128xf32>
    %c0_5 = arith.constant 0 : index
    %c0_6 = arith.constant 0 : index
    %6 = vector.load %arg4[%c0_5, %c0_6] : memref<1x128xf32, #tpu.memory_space<vmem>>, vector<1x128xf32>
    %7 = vector.broadcast %6 : vector<1x128xf32> to vector<128x128xf32>
    %8 = arith.addf %5, %7 : vector<128x128xf32>
    %c128_i32 = arith.constant 128 : i32
    %9 = arith.muli %arg0, %c128_i32 : i32
    %10 = tpu.iota {dimensions = array<i32: 0>} : vector<128x1xi32>
    %11 = vector.broadcast %9 : i32 to vector<128x1xi32>
    %12 = arith.addi %11, %10 : vector<128x1xi32>
    %c128_i32_7 = arith.constant 128 : i32
    %13 = vector.broadcast %c128_i32_7 : i32 to vector<128x1xi32>
    %14 = arith.cmpi slt, %12, %13 : vector<128x1xi32>
    %cst_8 = arith.constant 0.000000e+00 : f32
    %15 = vector.shape_cast %14 : vector<128x1xi1> to vector<128x1xi1>
    %16 = vector.broadcast %15 : vector<128x1xi1> to vector<128x128xi1>
    %17 = vector.broadcast %cst_8 : f32 to vector<128x128xf32>
    %18 = arith.select %16, %8, %17 : vector<128x128xi1>, vector<128x128xf32>
    %cst_9 = arith.constant 0.000000e+00 : f32
    %19 = vector.broadcast %cst_9 : f32 to vector<128x128xf32>
    %20 = arith.maximumf %18, %19 : vector<128x128xf32>
    %21 = arith.truncf %20 : vector<128x128xf32> to vector<128x128xbf16>
    %c0_10 = arith.constant 0 : index
    %c0_11 = arith.constant 0 : index
    %c0_12 = arith.constant 0 : index
    %22 = vector.load %arg5[%c0_10, %c0_11, %c0_12] : memref<2x128x128xbf16, #tpu.memory_space<vmem>>, vector<1x128x128xbf16>
    %23 = vector.shape_cast %22 : vector<1x128x128xbf16> to vector<128x128xbf16>
    %24 = vector.shape_cast %21 : vector<128x128xbf16> to vector<1x128x128xbf16>
    tpu.vector_store %arg5[%c0_10, %c0_11, %c0_12], %24 {strides = array<i32>} : memref<2x128x128xbf16, #tpu.memory_space<vmem>>, vector<1x128x128xbf16>,
    %25 = arith.truncf %18 : vector<128x128xf32> to vector<128x128xbf16>
    %c1 = arith.constant 1 : index
    %c0_13 = arith.constant 0 : index
    %c0_14 = arith.constant 0 : index
    %26 = vector.load %arg5[%c1, %c0_13, %c0_14] : memref<2x128x128xbf16, #tpu.memory_space<vmem>>, vector<1x128x128xbf16>
    %27 = vector.shape_cast %26 : vector<1x128x128xbf16> to vector<128x128xbf16>
    %28 = vector.shape_cast %25 : vector<128x128xbf16> to vector<1x128x128xbf16>
    tpu.vector_store %arg5[%c1, %c0_13, %c0_14], %28 {strides = array<i32>} : memref<2x128x128xbf16, #tpu.memory_space<vmem>>, vector<1x128x128xbf16>,
    return
  }
  func.func @transform_0(%arg0: i32) -> (i32, i32) {
    %c0_i32 = arith.constant 0 : i32
    %c0_i32_0 = arith.constant 0 : i32
    return %arg0, %c0_i32 : i32, i32
  }
  func.func @transform_1(%arg0: i32) -> (i32, i32) {
    %c0_i32 = arith.constant 0 : i32
    %c0_i32_0 = arith.constant 0 : i32
    %c0_i32_1 = arith.constant 0 : i32
    return %c0_i32, %c0_i32_0 : i32, i32
  }
  func.func @transform_2(%arg0: i32) -> (i32, i32) {
    %c0_i32 = arith.constant 0 : i32
    %c0_i32_0 = arith.constant 0 : i32
    %c0_i32_1 = arith.constant 0 : i32
    return %c0_i32, %c0_i32_0 : i32, i32
  }
  func.func @transform_3(%arg0: i32) -> (i32, i32) {
    %c0_i32 = arith.constant 0 : i32
    %c0_i32_0 = arith.constant 0 : i32
    %c0_i32_1 = arith.constant 0 : i32
    return %c0_i32, %c0_i32_0 : i32, i32
  }
  func.func @transform_4(%arg0: i32) -> (i32, i32, i32) {
    %c0_i32 = arith.constant 0 : i32
    %c0_i32_0 = arith.constant 0 : i32
    %c0_i32_1 = arith.constant 0 : i32
    return %c0_i32, %arg0, %c0_i32_0 : i32, i32, i32
  }
}

module attributes {stable_mosaic.version = 11 : i64} {
  func.func @kernel(%arg0: i32, %arg1: memref<64x384xbf16, #tpu.memory_space<vmem>>, %arg2: memref<384x128xbf16, #tpu.memory_space<vmem>>, %arg3: memref<1x128xf32, #tpu.memory_space<vmem>>, %arg4: memref<1x128xf32, #tpu.memory_space<vmem>>, %arg5: memref<64x128xbf16, #tpu.memory_space<vmem>>) attributes {dimension_semantics = [#tpu.dimension_semantics<parallel>], iteration_bounds = array<i64: 1>, scalar_prefetch = 0 : i64, scratch_operands = 0 : i64, tpu.core_type = #tpu.core_type<tc>, window_params = [{transform_indices = @transform_0, window_bounds = array<i64: 64, 384>}, {pipeline_mode = #tpu.pipeline_mode<synchronous>, transform_indices = @transform_1, window_bounds = array<i64: 384, 128>}, {pipeline_mode = #tpu.pipeline_mode<synchronous>, transform_indices = @transform_2, window_bounds = array<i64: 1, 128>}, {pipeline_mode = #tpu.pipeline_mode<synchronous>, transform_indices = @transform_3, window_bounds = array<i64: 1, 128>}, {transform_indices = @transform_4, window_bounds = array<i64: 64, 128>}]} {
    %c0 = arith.constant 0 : index
    %c0_0 = arith.constant 0 : index
    %0 = vector.load %arg1[%c0, %c0_0] : memref<64x384xbf16, #tpu.memory_space<vmem>>, vector<64x384xbf16>
    %c0_1 = arith.constant 0 : index
    %c0_2 = arith.constant 0 : index
    %1 = vector.load %arg2[%c0_1, %c0_2] : memref<384x128xbf16, #tpu.memory_space<vmem>>, vector<384x128xbf16>
    %cst = arith.constant dense<0.000000e+00> : vector<64x128xf32>
    %2 = tpu.matmul %0, %1, %cst {dimension_numbers = #tpu.dot_dimension_numbers<[1], [0], [0], [1], [0, 0, 1, 1], [], []>} : vector<64x384xbf16>, vector<384x128xbf16>, vector<64x128xf32> -> vector<64x128xf32>
    %c0_3 = arith.constant 0 : index
    %c0_4 = arith.constant 0 : index
    %3 = vector.load %arg3[%c0_3, %c0_4] : memref<1x128xf32, #tpu.memory_space<vmem>>, vector<1x128xf32>
    %4 = vector.broadcast %3 : vector<1x128xf32> to vector<64x128xf32>
    %5 = arith.mulf %2, %4 : vector<64x128xf32>
    %c0_5 = arith.constant 0 : index
    %c0_6 = arith.constant 0 : index
    %6 = vector.load %arg4[%c0_5, %c0_6] : memref<1x128xf32, #tpu.memory_space<vmem>>, vector<1x128xf32>
    %7 = vector.broadcast %6 : vector<1x128xf32> to vector<64x128xf32>
    %8 = arith.addf %5, %7 : vector<64x128xf32>
    %c64_i32 = arith.constant 64 : i32
    %9 = arith.muli %arg0, %c64_i32 : i32
    %10 = tpu.iota {dimensions = array<i32: 0>} : vector<64x1xi32>
    %11 = vector.broadcast %9 : i32 to vector<64x1xi32>
    %12 = arith.addi %11, %10 : vector<64x1xi32>
    %c32_i32 = arith.constant 32 : i32
    %13 = vector.broadcast %c32_i32 : i32 to vector<64x1xi32>
    %14 = arith.cmpi slt, %12, %13 : vector<64x1xi32>
    %c32_i32_7 = arith.constant 32 : i32
    %15 = vector.broadcast %c32_i32_7 : i32 to vector<64x1xi32>
    %16 = arith.cmpi sge, %12, %15 : vector<64x1xi32>
    %c64_i32_8 = arith.constant 64 : i32
    %17 = vector.broadcast %c64_i32_8 : i32 to vector<64x1xi32>
    %18 = arith.cmpi slt, %12, %17 : vector<64x1xi32>
    %19 = arith.andi %16, %18 : vector<64x1xi1>
    %20 = arith.ori %14, %19 : vector<64x1xi1>
    %c32_i32_9 = arith.constant 32 : i32
    %21 = vector.broadcast %c32_i32_9 : i32 to vector<64x1xi32>
    %22 = arith.cmpi slt, %12, %21 : vector<64x1xi32>
    %cst_10 = arith.constant 0.000000e+00 : f32
    %23 = vector.broadcast %cst_10 : f32 to vector<64x128xf32>
    %24 = arith.maximumf %8, %23 : vector<64x128xf32>
    %25 = vector.shape_cast %22 : vector<64x1xi1> to vector<64x1xi1>
    %26 = vector.broadcast %25 : vector<64x1xi1> to vector<64x128xi1>
    %27 = arith.select %26, %24, %8 : vector<64x128xi1>, vector<64x128xf32>
    %cst_11 = arith.constant 0.000000e+00 : f32
    %28 = vector.shape_cast %20 : vector<64x1xi1> to vector<64x1xi1>
    %29 = vector.broadcast %28 : vector<64x1xi1> to vector<64x128xi1>
    %30 = vector.broadcast %cst_11 : f32 to vector<64x128xf32>
    %31 = arith.select %29, %27, %30 : vector<64x128xi1>, vector<64x128xf32>
    %32 = arith.truncf %31 : vector<64x128xf32> to vector<64x128xbf16>
    %c0_12 = arith.constant 0 : index
    %c0_13 = arith.constant 0 : index
    %33 = vector.load %arg5[%c0_12, %c0_13] : memref<64x128xbf16, #tpu.memory_space<vmem>>, vector<64x128xbf16>
    tpu.vector_store %arg5[%c0_12, %c0_13], %32 {strides = array<i32>} : memref<64x128xbf16, #tpu.memory_space<vmem>>, vector<64x128xbf16>,
    return
  }
  func.func @transform_0(%arg0: i32) -> (i32, i32) {
    %c0_i32 = arith.constant 0 : i32
    %c0_i32_0 = arith.constant 0 : i32
    return %arg0, %c0_i32 : i32, i32
  }
  func.func @transform_1(%arg0: i32) -> (i32, i32) {
    %c0_i32 = arith.constant 0 : i32
    %c0_i32_0 = arith.constant 0 : i32
    %c0_i32_1 = arith.constant 0 : i32
    return %c0_i32, %c0_i32_0 : i32, i32
  }
  func.func @transform_2(%arg0: i32) -> (i32, i32) {
    %c0_i32 = arith.constant 0 : i32
    %c0_i32_0 = arith.constant 0 : i32
    %c0_i32_1 = arith.constant 0 : i32
    return %c0_i32, %c0_i32_0 : i32, i32
  }
  func.func @transform_3(%arg0: i32) -> (i32, i32) {
    %c0_i32 = arith.constant 0 : i32
    %c0_i32_0 = arith.constant 0 : i32
    %c0_i32_1 = arith.constant 0 : i32
    return %c0_i32, %c0_i32_0 : i32, i32
  }
  func.func @transform_4(%arg0: i32) -> (i32, i32) {
    %c0_i32 = arith.constant 0 : i32
    %c0_i32_0 = arith.constant 0 : i32
    return %arg0, %c0_i32 : i32, i32
  }
}

module attributes {stable_mosaic.version = 11 : i64} {
  func.func @kernel(%arg0: i32, %arg1: memref<64x128xbf16, #tpu.memory_space<vmem>>, %arg2: memref<128x128xbf16, #tpu.memory_space<vmem>>, %arg3: memref<1x128xf32, #tpu.memory_space<vmem>>, %arg4: memref<1x128xf32, #tpu.memory_space<vmem>>, %arg5: memref<64x128xbf16, #tpu.memory_space<vmem>>) attributes {dimension_semantics = [#tpu.dimension_semantics<parallel>], iteration_bounds = array<i64: 1>, scalar_prefetch = 0 : i64, scratch_operands = 0 : i64, tpu.core_type = #tpu.core_type<tc>, window_params = [{transform_indices = @transform_0, window_bounds = array<i64: 64, 128>}, {pipeline_mode = #tpu.pipeline_mode<synchronous>, transform_indices = @transform_1, window_bounds = array<i64: 128, 128>}, {pipeline_mode = #tpu.pipeline_mode<synchronous>, transform_indices = @transform_2, window_bounds = array<i64: 1, 128>}, {pipeline_mode = #tpu.pipeline_mode<synchronous>, transform_indices = @transform_3, window_bounds = array<i64: 1, 128>}, {transform_indices = @transform_4, window_bounds = array<i64: 64, 128>}]} {
    %c0 = arith.constant 0 : index
    %c0_0 = arith.constant 0 : index
    %0 = vector.load %arg1[%c0, %c0_0] : memref<64x128xbf16, #tpu.memory_space<vmem>>, vector<64x128xbf16>
    %c0_1 = arith.constant 0 : index
    %c0_2 = arith.constant 0 : index
    %1 = vector.load %arg2[%c0_1, %c0_2] : memref<128x128xbf16, #tpu.memory_space<vmem>>, vector<128x128xbf16>
    %cst = arith.constant dense<0.000000e+00> : vector<64x128xf32>
    %2 = tpu.matmul %0, %1, %cst {dimension_numbers = #tpu.dot_dimension_numbers<[1], [0], [0], [1], [0, 0, 1, 1], [], []>} : vector<64x128xbf16>, vector<128x128xbf16>, vector<64x128xf32> -> vector<64x128xf32>
    %c0_3 = arith.constant 0 : index
    %c0_4 = arith.constant 0 : index
    %3 = vector.load %arg3[%c0_3, %c0_4] : memref<1x128xf32, #tpu.memory_space<vmem>>, vector<1x128xf32>
    %4 = vector.broadcast %3 : vector<1x128xf32> to vector<64x128xf32>
    %5 = arith.mulf %2, %4 : vector<64x128xf32>
    %c0_5 = arith.constant 0 : index
    %c0_6 = arith.constant 0 : index
    %6 = vector.load %arg4[%c0_5, %c0_6] : memref<1x128xf32, #tpu.memory_space<vmem>>, vector<1x128xf32>
    %7 = vector.broadcast %6 : vector<1x128xf32> to vector<64x128xf32>
    %8 = arith.addf %5, %7 : vector<64x128xf32>
    %c64_i32 = arith.constant 64 : i32
    %9 = arith.muli %arg0, %c64_i32 : i32
    %10 = tpu.iota {dimensions = array<i32: 0>} : vector<64x1xi32>
    %11 = vector.broadcast %9 : i32 to vector<64x1xi32>
    %12 = arith.addi %11, %10 : vector<64x1xi32>
    %c32_i32 = arith.constant 32 : i32
    %13 = vector.broadcast %c32_i32 : i32 to vector<64x1xi32>
    %14 = arith.cmpi slt, %12, %13 : vector<64x1xi32>
    %cst_7 = arith.constant 0.000000e+00 : f32
    %15 = vector.shape_cast %14 : vector<64x1xi1> to vector<64x1xi1>
    %16 = vector.broadcast %15 : vector<64x1xi1> to vector<64x128xi1>
    %17 = vector.broadcast %cst_7 : f32 to vector<64x128xf32>
    %18 = arith.select %16, %8, %17 : vector<64x128xi1>, vector<64x128xf32>
    %19 = arith.truncf %18 : vector<64x128xf32> to vector<64x128xbf16>
    %c0_8 = arith.constant 0 : index
    %c0_9 = arith.constant 0 : index
    %20 = vector.load %arg5[%c0_8, %c0_9] : memref<64x128xbf16, #tpu.memory_space<vmem>>, vector<64x128xbf16>
    tpu.vector_store %arg5[%c0_8, %c0_9], %19 {strides = array<i32>} : memref<64x128xbf16, #tpu.memory_space<vmem>>, vector<64x128xbf16>,
    return
  }
  func.func @transform_0(%arg0: i32) -> (i32, i32) {
    %c0_i32 = arith.constant 0 : i32
    %c0_i32_0 = arith.constant 0 : i32
    return %arg0, %c0_i32 : i32, i32
  }
  func.func @transform_1(%arg0: i32) -> (i32, i32) {
    %c0_i32 = arith.constant 0 : i32
    %c0_i32_0 = arith.constant 0 : i32
    %c0_i32_1 = arith.constant 0 : i32
    return %c0_i32, %c0_i32_0 : i32, i32
  }
  func.func @transform_2(%arg0: i32) -> (i32, i32) {
    %c0_i32 = arith.constant 0 : i32
    %c0_i32_0 = arith.constant 0 : i32
    %c0_i32_1 = arith.constant 0 : i32
    return %c0_i32, %c0_i32_0 : i32, i32
  }
  func.func @transform_3(%arg0: i32) -> (i32, i32) {
    %c0_i32 = arith.constant 0 : i32
    %c0_i32_0 = arith.constant 0 : i32
    %c0_i32_1 = arith.constant 0 : i32
    return %c0_i32, %c0_i32_0 : i32, i32
  }
  func.func @transform_4(%arg0: i32) -> (i32, i32) {
    %c0_i32 = arith.constant 0 : i32
    %c0_i32_0 = arith.constant 0 : i32
    return %arg0, %c0_i32 : i32, i32
  }
}

module attributes {stable_mosaic.version = 11 : i64} {
  func.func @kernel(%arg0: i32, %arg1: memref<64x128xbf16, #tpu.memory_space<vmem>>, %arg2: memref<128x128xbf16, #tpu.memory_space<vmem>>, %arg3: memref<1x128xf32, #tpu.memory_space<vmem>>, %arg4: memref<1x128xf32, #tpu.memory_space<vmem>>, %arg5: memref<64x128xbf16, #tpu.memory_space<vmem>>, %arg6: memref<64x128xbf16, #tpu.memory_space<vmem>>, %arg7: memref<1x8x128xf32, #tpu.memory_space<vmem>>) attributes {dimension_semantics = [#tpu.dimension_semantics<parallel>], iteration_bounds = array<i64: 1>, scalar_prefetch = 0 : i64, scratch_operands = 0 : i64, tpu.core_type = #tpu.core_type<tc>, window_params = [{transform_indices = @transform_0, window_bounds = array<i64: 64, 128>}, {pipeline_mode = #tpu.pipeline_mode<synchronous>, transform_indices = @transform_1, window_bounds = array<i64: 128, 128>}, {pipeline_mode = #tpu.pipeline_mode<synchronous>, transform_indices = @transform_2, window_bounds = array<i64: 1, 128>}, {pipeline_mode = #tpu.pipeline_mode<synchronous>, transform_indices = @transform_3, window_bounds = array<i64: 1, 128>}, {transform_indices = @transform_4, window_bounds = array<i64: 64, 128>}, {transform_indices = @transform_5, window_bounds = array<i64: 64, 128>}, {transform_indices = @transform_6, window_bounds = array<i64: 1, 8, 128>}]} {
    %c0 = arith.constant 0 : index
    %c0_0 = arith.constant 0 : index
    %0 = vector.load %arg1[%c0, %c0_0] : memref<64x128xbf16, #tpu.memory_space<vmem>>, vector<64x128xbf16>
    %c0_1 = arith.constant 0 : index
    %c0_2 = arith.constant 0 : index
    %1 = vector.load %arg2[%c0_1, %c0_2] : memref<128x128xbf16, #tpu.memory_space<vmem>>, vector<128x128xbf16>
    %cst = arith.constant dense<0.000000e+00> : vector<64x128xf32>
    %2 = tpu.matmul %0, %1, %cst {dimension_numbers = #tpu.dot_dimension_numbers<[1], [0], [0], [1], [0, 0, 1, 1], [], []>} : vector<64x128xbf16>, vector<128x128xbf16>, vector<64x128xf32> -> vector<64x128xf32>
    %c0_3 = arith.constant 0 : index
    %c0_4 = arith.constant 0 : index
    %3 = vector.load %arg3[%c0_3, %c0_4] : memref<1x128xf32, #tpu.memory_space<vmem>>, vector<1x128xf32>
    %4 = vector.broadcast %3 : vector<1x128xf32> to vector<64x128xf32>
    %5 = arith.mulf %2, %4 : vector<64x128xf32>
    %c0_5 = arith.constant 0 : index
    %c0_6 = arith.constant 0 : index
    %6 = vector.load %arg4[%c0_5, %c0_6] : memref<1x128xf32, #tpu.memory_space<vmem>>, vector<1x128xf32>
    %7 = vector.broadcast %6 : vector<1x128xf32> to vector<64x128xf32>
    %8 = arith.addf %5, %7 : vector<64x128xf32>
    %c64_i32 = arith.constant 64 : i32
    %9 = arith.muli %arg0, %c64_i32 : i32
    %10 = tpu.iota {dimensions = array<i32: 0>} : vector<64x1xi32>
    %11 = vector.broadcast %9 : i32 to vector<64x1xi32>
    %12 = arith.addi %11, %10 : vector<64x1xi32>
    %c32_i32 = arith.constant 32 : i32
    %13 = vector.broadcast %c32_i32 : i32 to vector<64x1xi32>
    %14 = arith.cmpi slt, %12, %13 : vector<64x1xi32>
    %c32_i32_7 = arith.constant 32 : i32
    %15 = vector.broadcast %c32_i32_7 : i32 to vector<64x1xi32>
    %16 = arith.cmpi sge, %12, %15 : vector<64x1xi32>
    %c64_i32_8 = arith.constant 64 : i32
    %17 = vector.broadcast %c64_i32_8 : i32 to vector<64x1xi32>
    %18 = arith.cmpi slt, %12, %17 : vector<64x1xi32>
    %19 = arith.andi %16, %18 : vector<64x1xi1>
    %20 = arith.ori %14, %19 : vector<64x1xi1>
    %c0_9 = arith.constant 0 : index
    %c0_10 = arith.constant 0 : index
    %21 = vector.load %arg5[%c0_9, %c0_10] : memref<64x128xbf16, #tpu.memory_space<vmem>>, vector<64x128xbf16>
    %22 = arith.extf %21 : vector<64x128xbf16> to vector<64x128xf32>
    %c32_i32_11 = arith.constant 32 : i32
    %23 = vector.broadcast %c32_i32_11 : i32 to vector<64x1xi32>
    %24 = arith.cmpi slt, %12, %23 : vector<64x1xi32>
    %cst_12 = arith.constant 0.000000e+00 : f32
    %25 = vector.shape_cast %24 : vector<64x1xi1> to vector<64x1xi1>
    %26 = vector.broadcast %25 : vector<64x1xi1> to vector<64x128xi1>
    %27 = vector.broadcast %cst_12 : f32 to vector<64x128xf32>
    %28 = arith.select %26, %22, %27 : vector<64x128xi1>, vector<64x128xf32>
    %29 = arith.addf %8, %28 : vector<64x128xf32>
    %cst_13 = arith.constant 0.000000e+00 : f32
    %30 = vector.broadcast %cst_13 : f32 to vector<64x128xf32>
    %31 = arith.maximumf %29, %30 : vector<64x128xf32>
    %cst_14 = arith.constant 0.000000e+00 : f32
    %32 = vector.shape_cast %20 : vector<64x1xi1> to vector<64x1xi1>
    %33 = vector.broadcast %32 : vector<64x1xi1> to vector<64x128xi1>
    %34 = vector.broadcast %cst_14 : f32 to vector<64x128xf32>
    %35 = arith.select %33, %31, %34 : vector<64x128xi1>, vector<64x128xf32>
    %36 = arith.truncf %35 : vector<64x128xf32> to vector<64x128xbf16>
    %c0_15 = arith.constant 0 : index
    %c0_16 = arith.constant 0 : index
    %37 = vector.load %arg6[%c0_15, %c0_16] : memref<64x128xbf16, #tpu.memory_space<vmem>>, vector<64x128xbf16>
    tpu.vector_store %arg6[%c0_15, %c0_16], %36 {strides = array<i32>} : memref<64x128xbf16, #tpu.memory_space<vmem>>, vector<64x128xbf16>,
    %c64_i32_17 = arith.constant 64 : i32
    %38 = arith.muli %arg0, %c64_i32_17 : i32
    %39 = tpu.iota {dimensions = array<i32: 1>} : vector<8x64xi32>
    %40 = vector.broadcast %38 : i32 to vector<8x64xi32>
    %41 = arith.addi %40, %39 : vector<8x64xi32>
    %42 = tpu.iota {dimensions = array<i32: 0>} : vector<8x64xi32>
    %c16_i32 = arith.constant 16 : i32
    %43 = vector.broadcast %c16_i32 : i32 to vector<8x64xi32>
    %44 = arith.muli %42, %43 : vector<8x64xi32>
    %c32_i32_18 = arith.constant 32 : i32
    %45 = vector.broadcast %c32_i32_18 : i32 to vector<8x64xi32>
    %46 = arith.addi %45, %44 : vector<8x64xi32>
    %c2_i32 = arith.constant 2 : i32
    %47 = vector.broadcast %c2_i32 : i32 to vector<8x64xi32>
    %48 = arith.cmpi slt, %42, %47 : vector<8x64xi32>
    %49 = arith.cmpi sge, %41, %46 : vector<8x64xi32>
    %50 = arith.andi %48, %49 : vector<8x64xi1>
    %c16_i32_19 = arith.constant 16 : i32
    %51 = vector.broadcast %c16_i32_19 : i32 to vector<8x64xi32>
    %52 = arith.addi %46, %51 : vector<8x64xi32>
    %53 = arith.cmpi slt, %41, %52 : vector<8x64xi32>
    %54 = arith.andi %50, %53 : vector<8x64xi1>
    %cst_20 = arith.constant 1.000000e+00 : f32
    %cst_21 = arith.constant 0.000000e+00 : f32
    %55 = vector.broadcast %cst_20 : f32 to vector<8x64xf32>
    %56 = vector.broadcast %cst_21 : f32 to vector<8x64xf32>
    %57 = arith.select %54, %55, %56 : vector<8x64xi1>, vector<8x64xf32>
    %cst_22 = arith.constant dense<0.000000e+00> : vector<8x128xf32>
    %58 = tpu.matmul %57, %35, %cst_22 {dimension_numbers = #tpu.dot_dimension_numbers<[1], [0], [0], [1], [0, 0, 1, 1], [], []>} : vector<8x64xf32>, vector<64x128xf32>, vector<8x128xf32> -> vector<8x128xf32>
    %c0_23 = arith.constant 0 : index
    %c0_24 = arith.constant 0 : index
    %c0_25 = arith.constant 0 : index
    %59 = vector.load %arg7[%c0_23, %c0_24, %c0_25] : memref<1x8x128xf32, #tpu.memory_space<vmem>>, vector<1x8x128xf32>
    %60 = vector.shape_cast %59 : vector<1x8x128xf32> to vector<8x128xf32>
    %61 = vector.shape_cast %58 : vector<8x128xf32> to vector<1x8x128xf32>
    tpu.vector_store %arg7[%c0_23, %c0_24, %c0_25], %61 {strides = array<i32>} : memref<1x8x128xf32, #tpu.memory_space<vmem>>, vector<1x8x128xf32>,
    return
  }
  func.func @transform_0(%arg0: i32) -> (i32, i32) {
    %c0_i32 = arith.constant 0 : i32
    %c0_i32_0 = arith.constant 0 : i32
    return %arg0, %c0_i32 : i32, i32
  }
  func.func @transform_1(%arg0: i32) -> (i32, i32) {
    %c0_i32 = arith.constant 0 : i32
    %c0_i32_0 = arith.constant 0 : i32
    %c0_i32_1 = arith.constant 0 : i32
    return %c0_i32, %c0_i32_0 : i32, i32
  }
  func.func @transform_2(%arg0: i32) -> (i32, i32) {
    %c0_i32 = arith.constant 0 : i32
    %c0_i32_0 = arith.constant 0 : i32
    %c0_i32_1 = arith.constant 0 : i32
    return %c0_i32, %c0_i32_0 : i32, i32
  }
  func.func @transform_3(%arg0: i32) -> (i32, i32) {
    %c0_i32 = arith.constant 0 : i32
    %c0_i32_0 = arith.constant 0 : i32
    %c0_i32_1 = arith.constant 0 : i32
    return %c0_i32, %c0_i32_0 : i32, i32
  }
  func.func @transform_4(%arg0: i32) -> (i32, i32) {
    %c0_i32 = arith.constant 0 : i32
    %c0_i32_0 = arith.constant 0 : i32
    return %arg0, %c0_i32 : i32, i32
  }
  func.func @transform_5(%arg0: i32) -> (i32, i32) {
    %c0_i32 = arith.constant 0 : i32
    %c0_i32_0 = arith.constant 0 : i32
    return %arg0, %c0_i32 : i32, i32
  }
  func.func @transform_6(%arg0: i32) -> (i32, i32, i32) {
    %c0_i32 = arith.constant 0 : i32
    %c0_i32_0 = arith.constant 0 : i32
    %c0_i32_1 = arith.constant 0 : i32
    return %arg0, %c0_i32, %c0_i32_0 : i32, i32, i32
  }
}

module attributes {stable_mosaic.version = 11 : i64} {
  func.func @kernel(%arg0: i32, %arg1: memref<32x128xbf16, #tpu.memory_space<vmem>>, %arg2: memref<128x128xbf16, #tpu.memory_space<vmem>>, %arg3: memref<1x128xf32, #tpu.memory_space<vmem>>, %arg4: memref<1x128xf32, #tpu.memory_space<vmem>>, %arg5: memref<2x32x128xbf16, #tpu.memory_space<vmem>>) attributes {dimension_semantics = [#tpu.dimension_semantics<parallel>], iteration_bounds = array<i64: 1>, scalar_prefetch = 0 : i64, scratch_operands = 0 : i64, tpu.core_type = #tpu.core_type<tc>, window_params = [{transform_indices = @transform_0, window_bounds = array<i64: 32, 128>}, {pipeline_mode = #tpu.pipeline_mode<synchronous>, transform_indices = @transform_1, window_bounds = array<i64: 128, 128>}, {pipeline_mode = #tpu.pipeline_mode<synchronous>, transform_indices = @transform_2, window_bounds = array<i64: 1, 128>}, {pipeline_mode = #tpu.pipeline_mode<synchronous>, transform_indices = @transform_3, window_bounds = array<i64: 1, 128>}, {transform_indices = @transform_4, window_bounds = array<i64: 2, 32, 128>}]} {
    %c0 = arith.constant 0 : index
    %c0_0 = arith.constant 0 : index
    %0 = vector.load %arg1[%c0, %c0_0] : memref<32x128xbf16, #tpu.memory_space<vmem>>, vector<32x128xbf16>
    %c0_1 = arith.constant 0 : index
    %c0_2 = arith.constant 0 : index
    %1 = vector.load %arg2[%c0_1, %c0_2] : memref<128x128xbf16, #tpu.memory_space<vmem>>, vector<128x128xbf16>
    %cst = arith.constant dense<0.000000e+00> : vector<32x128xf32>
    %2 = tpu.matmul %0, %1, %cst {dimension_numbers = #tpu.dot_dimension_numbers<[1], [0], [0], [1], [0, 0, 1, 1], [], []>} : vector<32x128xbf16>, vector<128x128xbf16>, vector<32x128xf32> -> vector<32x128xf32>
    %c0_3 = arith.constant 0 : index
    %c0_4 = arith.constant 0 : index
    %3 = vector.load %arg3[%c0_3, %c0_4] : memref<1x128xf32, #tpu.memory_space<vmem>>, vector<1x128xf32>
    %4 = vector.broadcast %3 : vector<1x128xf32> to vector<32x128xf32>
    %5 = arith.mulf %2, %4 : vector<32x128xf32>
    %c0_5 = arith.constant 0 : index
    %c0_6 = arith.constant 0 : index
    %6 = vector.load %arg4[%c0_5, %c0_6] : memref<1x128xf32, #tpu.memory_space<vmem>>, vector<1x128xf32>
    %7 = vector.broadcast %6 : vector<1x128xf32> to vector<32x128xf32>
    %8 = arith.addf %5, %7 : vector<32x128xf32>
    %c32_i32 = arith.constant 32 : i32
    %9 = arith.muli %arg0, %c32_i32 : i32
    %10 = tpu.iota {dimensions = array<i32: 0>} : vector<32x1xi32>
    %11 = vector.broadcast %9 : i32 to vector<32x1xi32>
    %12 = arith.addi %11, %10 : vector<32x1xi32>
    %c32_i32_7 = arith.constant 32 : i32
    %13 = vector.broadcast %c32_i32_7 : i32 to vector<32x1xi32>
    %14 = arith.cmpi slt, %12, %13 : vector<32x1xi32>
    %cst_8 = arith.constant 0.000000e+00 : f32
    %15 = vector.shape_cast %14 : vector<32x1xi1> to vector<32x1xi1>
    %16 = vector.broadcast %15 : vector<32x1xi1> to vector<32x128xi1>
    %17 = vector.broadcast %cst_8 : f32 to vector<32x128xf32>
    %18 = arith.select %16, %8, %17 : vector<32x128xi1>, vector<32x128xf32>
    %cst_9 = arith.constant 0.000000e+00 : f32
    %19 = vector.broadcast %cst_9 : f32 to vector<32x128xf32>
    %20 = arith.maximumf %18, %19 : vector<32x128xf32>
    %21 = arith.truncf %20 : vector<32x128xf32> to vector<32x128xbf16>
    %c0_10 = arith.constant 0 : index
    %c0_11 = arith.constant 0 : index
    %c0_12 = arith.constant 0 : index
    %22 = vector.load %arg5[%c0_10, %c0_11, %c0_12] : memref<2x32x128xbf16, #tpu.memory_space<vmem>>, vector<1x32x128xbf16>
    %23 = vector.shape_cast %22 : vector<1x32x128xbf16> to vector<32x128xbf16>
    %24 = vector.shape_cast %21 : vector<32x128xbf16> to vector<1x32x128xbf16>
    tpu.vector_store %arg5[%c0_10, %c0_11, %c0_12], %24 {strides = array<i32>} : memref<2x32x128xbf16, #tpu.memory_space<vmem>>, vector<1x32x128xbf16>,
    %25 = arith.truncf %18 : vector<32x128xf32> to vector<32x128xbf16>
    %c1 = arith.constant 1 : index
    %c0_13 = arith.constant 0 : index
    %c0_14 = arith.constant 0 : index
    %26 = vector.load %arg5[%c1, %c0_13, %c0_14] : memref<2x32x128xbf16, #tpu.memory_space<vmem>>, vector<1x32x128xbf16>
    %27 = vector.shape_cast %26 : vector<1x32x128xbf16> to vector<32x128xbf16>
    %28 = vector.shape_cast %25 : vector<32x128xbf16> to vector<1x32x128xbf16>
    tpu.vector_store %arg5[%c1, %c0_13, %c0_14], %28 {strides = array<i32>} : memref<2x32x128xbf16, #tpu.memory_space<vmem>>, vector<1x32x128xbf16>,
    return
  }
  func.func @transform_0(%arg0: i32) -> (i32, i32) {
    %c0_i32 = arith.constant 0 : i32
    %c0_i32_0 = arith.constant 0 : i32
    return %arg0, %c0_i32 : i32, i32
  }
  func.func @transform_1(%arg0: i32) -> (i32, i32) {
    %c0_i32 = arith.constant 0 : i32
    %c0_i32_0 = arith.constant 0 : i32
    %c0_i32_1 = arith.constant 0 : i32
    return %c0_i32, %c0_i32_0 : i32, i32
  }
  func.func @transform_2(%arg0: i32) -> (i32, i32) {
    %c0_i32 = arith.constant 0 : i32
    %c0_i32_0 = arith.constant 0 : i32
    %c0_i32_1 = arith.constant 0 : i32
    return %c0_i32, %c0_i32_0 : i32, i32
  }
  func.func @transform_3(%arg0: i32) -> (i32, i32) {
    %c0_i32 = arith.constant 0 : i32
    %c0_i32_0 = arith.constant 0 : i32
    %c0_i32_1 = arith.constant 0 : i32
    return %c0_i32, %c0_i32_0 : i32, i32
  }
  func.func @transform_4(%arg0: i32) -> (i32, i32, i32) {
    %c0_i32 = arith.constant 0 : i32
    %c0_i32_0 = arith.constant 0 : i32
    %c0_i32_1 = arith.constant 0 : i32
    return %c0_i32, %arg0, %c0_i32_0 : i32, i32, i32
  }
}

module attributes {stable_mosaic.version = 11 : i64} {
  func.func @kernel(%arg0: i32, %arg1: memref<16x640xbf16, #tpu.memory_space<vmem>>, %arg2: memref<640x128xbf16, #tpu.memory_space<vmem>>, %arg3: memref<1x128xf32, #tpu.memory_space<vmem>>, %arg4: memref<1x128xf32, #tpu.memory_space<vmem>>, %arg5: memref<16x128xbf16, #tpu.memory_space<vmem>>) attributes {dimension_semantics = [#tpu.dimension_semantics<parallel>], iteration_bounds = array<i64: 1>, scalar_prefetch = 0 : i64, scratch_operands = 0 : i64, tpu.core_type = #tpu.core_type<tc>, window_params = [{transform_indices = @transform_0, window_bounds = array<i64: 16, 640>}, {pipeline_mode = #tpu.pipeline_mode<synchronous>, transform_indices = @transform_1, window_bounds = array<i64: 640, 128>}, {pipeline_mode = #tpu.pipeline_mode<synchronous>, transform_indices = @transform_2, window_bounds = array<i64: 1, 128>}, {pipeline_mode = #tpu.pipeline_mode<synchronous>, transform_indices = @transform_3, window_bounds = array<i64: 1, 128>}, {transform_indices = @transform_4, window_bounds = array<i64: 16, 128>}]} {
    %c0 = arith.constant 0 : index
    %c0_0 = arith.constant 0 : index
    %0 = vector.load %arg1[%c0, %c0_0] : memref<16x640xbf16, #tpu.memory_space<vmem>>, vector<16x640xbf16>
    %c0_1 = arith.constant 0 : index
    %c0_2 = arith.constant 0 : index
    %1 = vector.load %arg2[%c0_1, %c0_2] : memref<640x128xbf16, #tpu.memory_space<vmem>>, vector<640x128xbf16>
    %cst = arith.constant dense<0.000000e+00> : vector<16x128xf32>
    %2 = tpu.matmul %0, %1, %cst {dimension_numbers = #tpu.dot_dimension_numbers<[1], [0], [0], [1], [0, 0, 1, 1], [], []>} : vector<16x640xbf16>, vector<640x128xbf16>, vector<16x128xf32> -> vector<16x128xf32>
    %c0_3 = arith.constant 0 : index
    %c0_4 = arith.constant 0 : index
    %3 = vector.load %arg3[%c0_3, %c0_4] : memref<1x128xf32, #tpu.memory_space<vmem>>, vector<1x128xf32>
    %4 = vector.broadcast %3 : vector<1x128xf32> to vector<16x128xf32>
    %5 = arith.mulf %2, %4 : vector<16x128xf32>
    %c0_5 = arith.constant 0 : index
    %c0_6 = arith.constant 0 : index
    %6 = vector.load %arg4[%c0_5, %c0_6] : memref<1x128xf32, #tpu.memory_space<vmem>>, vector<1x128xf32>
    %7 = vector.broadcast %6 : vector<1x128xf32> to vector<16x128xf32>
    %8 = arith.addf %5, %7 : vector<16x128xf32>
    %c16_i32 = arith.constant 16 : i32
    %9 = arith.muli %arg0, %c16_i32 : i32
    %10 = tpu.iota {dimensions = array<i32: 0>} : vector<16x1xi32>
    %11 = vector.broadcast %9 : i32 to vector<16x1xi32>
    %12 = arith.addi %11, %10 : vector<16x1xi32>
    %c8_i32 = arith.constant 8 : i32
    %13 = vector.broadcast %c8_i32 : i32 to vector<16x1xi32>
    %14 = arith.cmpi slt, %12, %13 : vector<16x1xi32>
    %c8_i32_7 = arith.constant 8 : i32
    %15 = vector.broadcast %c8_i32_7 : i32 to vector<16x1xi32>
    %16 = arith.cmpi sge, %12, %15 : vector<16x1xi32>
    %c16_i32_8 = arith.constant 16 : i32
    %17 = vector.broadcast %c16_i32_8 : i32 to vector<16x1xi32>
    %18 = arith.cmpi slt, %12, %17 : vector<16x1xi32>
    %19 = arith.andi %16, %18 : vector<16x1xi1>
    %20 = arith.ori %14, %19 : vector<16x1xi1>
    %c8_i32_9 = arith.constant 8 : i32
    %21 = vector.broadcast %c8_i32_9 : i32 to vector<16x1xi32>
    %22 = arith.cmpi slt, %12, %21 : vector<16x1xi32>
    %cst_10 = arith.constant 0.000000e+00 : f32
    %23 = vector.broadcast %cst_10 : f32 to vector<16x128xf32>
    %24 = arith.maximumf %8, %23 : vector<16x128xf32>
    %25 = vector.shape_cast %22 : vector<16x1xi1> to vector<16x1xi1>
    %26 = vector.broadcast %25 : vector<16x1xi1> to vector<16x128xi1>
    %27 = arith.select %26, %24, %8 : vector<16x128xi1>, vector<16x128xf32>
    %cst_11 = arith.constant 0.000000e+00 : f32
    %28 = vector.shape_cast %20 : vector<16x1xi1> to vector<16x1xi1>
    %29 = vector.broadcast %28 : vector<16x1xi1> to vector<16x128xi1>
    %30 = vector.broadcast %cst_11 : f32 to vector<16x128xf32>
    %31 = arith.select %29, %27, %30 : vector<16x128xi1>, vector<16x128xf32>
    %32 = arith.truncf %31 : vector<16x128xf32> to vector<16x128xbf16>
    %c0_12 = arith.constant 0 : index
    %c0_13 = arith.constant 0 : index
    %33 = vector.load %arg5[%c0_12, %c0_13] : memref<16x128xbf16, #tpu.memory_space<vmem>>, vector<16x128xbf16>
    tpu.vector_store %arg5[%c0_12, %c0_13], %32 {strides = array<i32>} : memref<16x128xbf16, #tpu.memory_space<vmem>>, vector<16x128xbf16>,
    return
  }
  func.func @transform_0(%arg0: i32) -> (i32, i32) {
    %c0_i32 = arith.constant 0 : i32
    %c0_i32_0 = arith.constant 0 : i32
    return %arg0, %c0_i32 : i32, i32
  }
  func.func @transform_1(%arg0: i32) -> (i32, i32) {
    %c0_i32 = arith.constant 0 : i32
    %c0_i32_0 = arith.constant 0 : i32
    %c0_i32_1 = arith.constant 0 : i32
    return %c0_i32, %c0_i32_0 : i32, i32
  }
  func.func @transform_2(%arg0: i32) -> (i32, i32) {
    %c0_i32 = arith.constant 0 : i32
    %c0_i32_0 = arith.constant 0 : i32
    %c0_i32_1 = arith.constant 0 : i32
    return %c0_i32, %c0_i32_0 : i32, i32
  }
  func.func @transform_3(%arg0: i32) -> (i32, i32) {
    %c0_i32 = arith.constant 0 : i32
    %c0_i32_0 = arith.constant 0 : i32
    %c0_i32_1 = arith.constant 0 : i32
    return %c0_i32, %c0_i32_0 : i32, i32
  }
  func.func @transform_4(%arg0: i32) -> (i32, i32) {
    %c0_i32 = arith.constant 0 : i32
    %c0_i32_0 = arith.constant 0 : i32
    return %arg0, %c0_i32 : i32, i32
  }
}

module attributes {stable_mosaic.version = 11 : i64} {
  func.func @kernel(%arg0: i32, %arg1: memref<16x128xbf16, #tpu.memory_space<vmem>>, %arg2: memref<128x256xbf16, #tpu.memory_space<vmem>>, %arg3: memref<1x256xf32, #tpu.memory_space<vmem>>, %arg4: memref<1x256xf32, #tpu.memory_space<vmem>>, %arg5: memref<16x256xbf16, #tpu.memory_space<vmem>>) attributes {dimension_semantics = [#tpu.dimension_semantics<parallel>], iteration_bounds = array<i64: 1>, scalar_prefetch = 0 : i64, scratch_operands = 0 : i64, tpu.core_type = #tpu.core_type<tc>, window_params = [{transform_indices = @transform_0, window_bounds = array<i64: 16, 128>}, {pipeline_mode = #tpu.pipeline_mode<synchronous>, transform_indices = @transform_1, window_bounds = array<i64: 128, 256>}, {pipeline_mode = #tpu.pipeline_mode<synchronous>, transform_indices = @transform_2, window_bounds = array<i64: 1, 256>}, {pipeline_mode = #tpu.pipeline_mode<synchronous>, transform_indices = @transform_3, window_bounds = array<i64: 1, 256>}, {transform_indices = @transform_4, window_bounds = array<i64: 16, 256>}]} {
    %c0 = arith.constant 0 : index
    %c0_0 = arith.constant 0 : index
    %0 = vector.load %arg1[%c0, %c0_0] : memref<16x128xbf16, #tpu.memory_space<vmem>>, vector<16x128xbf16>
    %c0_1 = arith.constant 0 : index
    %c0_2 = arith.constant 0 : index
    %1 = vector.load %arg2[%c0_1, %c0_2] : memref<128x256xbf16, #tpu.memory_space<vmem>>, vector<128x256xbf16>
    %cst = arith.constant dense<0.000000e+00> : vector<16x256xf32>
    %2 = tpu.matmul %0, %1, %cst {dimension_numbers = #tpu.dot_dimension_numbers<[1], [0], [0], [1], [0, 0, 1, 1], [], []>} : vector<16x128xbf16>, vector<128x256xbf16>, vector<16x256xf32> -> vector<16x256xf32>
    %c0_3 = arith.constant 0 : index
    %c0_4 = arith.constant 0 : index
    %3 = vector.load %arg3[%c0_3, %c0_4] : memref<1x256xf32, #tpu.memory_space<vmem>>, vector<1x256xf32>
    %4 = vector.broadcast %3 : vector<1x256xf32> to vector<16x256xf32>
    %5 = arith.mulf %2, %4 : vector<16x256xf32>
    %c0_5 = arith.constant 0 : index
    %c0_6 = arith.constant 0 : index
    %6 = vector.load %arg4[%c0_5, %c0_6] : memref<1x256xf32, #tpu.memory_space<vmem>>, vector<1x256xf32>
    %7 = vector.broadcast %6 : vector<1x256xf32> to vector<16x256xf32>
    %8 = arith.addf %5, %7 : vector<16x256xf32>
    %c16_i32 = arith.constant 16 : i32
    %9 = arith.muli %arg0, %c16_i32 : i32
    %10 = tpu.iota {dimensions = array<i32: 0>} : vector<16x1xi32>
    %11 = vector.broadcast %9 : i32 to vector<16x1xi32>
    %12 = arith.addi %11, %10 : vector<16x1xi32>
    %c8_i32 = arith.constant 8 : i32
    %13 = vector.broadcast %c8_i32 : i32 to vector<16x1xi32>
    %14 = arith.cmpi slt, %12, %13 : vector<16x1xi32>
    %cst_7 = arith.constant 0.000000e+00 : f32
    %15 = vector.shape_cast %14 : vector<16x1xi1> to vector<16x1xi1>
    %16 = vector.broadcast %15 : vector<16x1xi1> to vector<16x256xi1>
    %17 = vector.broadcast %cst_7 : f32 to vector<16x256xf32>
    %18 = arith.select %16, %8, %17 : vector<16x256xi1>, vector<16x256xf32>
    %19 = arith.truncf %18 : vector<16x256xf32> to vector<16x256xbf16>
    %c0_8 = arith.constant 0 : index
    %c0_9 = arith.constant 0 : index
    %20 = vector.load %arg5[%c0_8, %c0_9] : memref<16x256xbf16, #tpu.memory_space<vmem>>, vector<16x256xbf16>
    tpu.vector_store %arg5[%c0_8, %c0_9], %19 {strides = array<i32>} : memref<16x256xbf16, #tpu.memory_space<vmem>>, vector<16x256xbf16>,
    return
  }
  func.func @transform_0(%arg0: i32) -> (i32, i32) {
    %c0_i32 = arith.constant 0 : i32
    %c0_i32_0 = arith.constant 0 : i32
    return %arg0, %c0_i32 : i32, i32
  }
  func.func @transform_1(%arg0: i32) -> (i32, i32) {
    %c0_i32 = arith.constant 0 : i32
    %c0_i32_0 = arith.constant 0 : i32
    %c0_i32_1 = arith.constant 0 : i32
    return %c0_i32, %c0_i32_0 : i32, i32
  }
  func.func @transform_2(%arg0: i32) -> (i32, i32) {
    %c0_i32 = arith.constant 0 : i32
    %c0_i32_0 = arith.constant 0 : i32
    %c0_i32_1 = arith.constant 0 : i32
    return %c0_i32, %c0_i32_0 : i32, i32
  }
  func.func @transform_3(%arg0: i32) -> (i32, i32) {
    %c0_i32 = arith.constant 0 : i32
    %c0_i32_0 = arith.constant 0 : i32
    %c0_i32_1 = arith.constant 0 : i32
    return %c0_i32, %c0_i32_0 : i32, i32
  }
  func.func @transform_4(%arg0: i32) -> (i32, i32) {
    %c0_i32 = arith.constant 0 : i32
    %c0_i32_0 = arith.constant 0 : i32
    return %arg0, %c0_i32 : i32, i32
  }
}

module attributes {stable_mosaic.version = 11 : i64} {
  func.func @kernel(%arg0: i32, %arg1: memref<16x128xbf16, #tpu.memory_space<vmem>>, %arg2: memref<128x256xbf16, #tpu.memory_space<vmem>>, %arg3: memref<1x256xf32, #tpu.memory_space<vmem>>, %arg4: memref<1x256xf32, #tpu.memory_space<vmem>>, %arg5: memref<16x256xbf16, #tpu.memory_space<vmem>>, %arg6: memref<16x256xbf16, #tpu.memory_space<vmem>>, %arg7: memref<1x8x256xf32, #tpu.memory_space<vmem>>) attributes {dimension_semantics = [#tpu.dimension_semantics<parallel>], iteration_bounds = array<i64: 1>, scalar_prefetch = 0 : i64, scratch_operands = 0 : i64, tpu.core_type = #tpu.core_type<tc>, window_params = [{transform_indices = @transform_0, window_bounds = array<i64: 16, 128>}, {pipeline_mode = #tpu.pipeline_mode<synchronous>, transform_indices = @transform_1, window_bounds = array<i64: 128, 256>}, {pipeline_mode = #tpu.pipeline_mode<synchronous>, transform_indices = @transform_2, window_bounds = array<i64: 1, 256>}, {pipeline_mode = #tpu.pipeline_mode<synchronous>, transform_indices = @transform_3, window_bounds = array<i64: 1, 256>}, {transform_indices = @transform_4, window_bounds = array<i64: 16, 256>}, {transform_indices = @transform_5, window_bounds = array<i64: 16, 256>}, {transform_indices = @transform_6, window_bounds = array<i64: 1, 8, 256>}]} {
    %c0 = arith.constant 0 : index
    %c0_0 = arith.constant 0 : index
    %0 = vector.load %arg1[%c0, %c0_0] : memref<16x128xbf16, #tpu.memory_space<vmem>>, vector<16x128xbf16>
    %c0_1 = arith.constant 0 : index
    %c0_2 = arith.constant 0 : index
    %1 = vector.load %arg2[%c0_1, %c0_2] : memref<128x256xbf16, #tpu.memory_space<vmem>>, vector<128x256xbf16>
    %cst = arith.constant dense<0.000000e+00> : vector<16x256xf32>
    %2 = tpu.matmul %0, %1, %cst {dimension_numbers = #tpu.dot_dimension_numbers<[1], [0], [0], [1], [0, 0, 1, 1], [], []>} : vector<16x128xbf16>, vector<128x256xbf16>, vector<16x256xf32> -> vector<16x256xf32>
    %c0_3 = arith.constant 0 : index
    %c0_4 = arith.constant 0 : index
    %3 = vector.load %arg3[%c0_3, %c0_4] : memref<1x256xf32, #tpu.memory_space<vmem>>, vector<1x256xf32>
    %4 = vector.broadcast %3 : vector<1x256xf32> to vector<16x256xf32>
    %5 = arith.mulf %2, %4 : vector<16x256xf32>
    %c0_5 = arith.constant 0 : index
    %c0_6 = arith.constant 0 : index
    %6 = vector.load %arg4[%c0_5, %c0_6] : memref<1x256xf32, #tpu.memory_space<vmem>>, vector<1x256xf32>
    %7 = vector.broadcast %6 : vector<1x256xf32> to vector<16x256xf32>
    %8 = arith.addf %5, %7 : vector<16x256xf32>
    %c16_i32 = arith.constant 16 : i32
    %9 = arith.muli %arg0, %c16_i32 : i32
    %10 = tpu.iota {dimensions = array<i32: 0>} : vector<16x1xi32>
    %11 = vector.broadcast %9 : i32 to vector<16x1xi32>
    %12 = arith.addi %11, %10 : vector<16x1xi32>
    %c8_i32 = arith.constant 8 : i32
    %13 = vector.broadcast %c8_i32 : i32 to vector<16x1xi32>
    %14 = arith.cmpi slt, %12, %13 : vector<16x1xi32>
    %c8_i32_7 = arith.constant 8 : i32
    %15 = vector.broadcast %c8_i32_7 : i32 to vector<16x1xi32>
    %16 = arith.cmpi sge, %12, %15 : vector<16x1xi32>
    %c16_i32_8 = arith.constant 16 : i32
    %17 = vector.broadcast %c16_i32_8 : i32 to vector<16x1xi32>
    %18 = arith.cmpi slt, %12, %17 : vector<16x1xi32>
    %19 = arith.andi %16, %18 : vector<16x1xi1>
    %20 = arith.ori %14, %19 : vector<16x1xi1>
    %c0_9 = arith.constant 0 : index
    %c0_10 = arith.constant 0 : index
    %21 = vector.load %arg5[%c0_9, %c0_10] : memref<16x256xbf16, #tpu.memory_space<vmem>>, vector<16x256xbf16>
    %22 = arith.extf %21 : vector<16x256xbf16> to vector<16x256xf32>
    %c8_i32_11 = arith.constant 8 : i32
    %23 = vector.broadcast %c8_i32_11 : i32 to vector<16x1xi32>
    %24 = arith.cmpi slt, %12, %23 : vector<16x1xi32>
    %cst_12 = arith.constant 0.000000e+00 : f32
    %25 = vector.shape_cast %24 : vector<16x1xi1> to vector<16x1xi1>
    %26 = vector.broadcast %25 : vector<16x1xi1> to vector<16x256xi1>
    %27 = vector.broadcast %cst_12 : f32 to vector<16x256xf32>
    %28 = arith.select %26, %22, %27 : vector<16x256xi1>, vector<16x256xf32>
    %29 = arith.addf %8, %28 : vector<16x256xf32>
    %cst_13 = arith.constant 0.000000e+00 : f32
    %30 = vector.broadcast %cst_13 : f32 to vector<16x256xf32>
    %31 = arith.maximumf %29, %30 : vector<16x256xf32>
    %cst_14 = arith.constant 0.000000e+00 : f32
    %32 = vector.shape_cast %20 : vector<16x1xi1> to vector<16x1xi1>
    %33 = vector.broadcast %32 : vector<16x1xi1> to vector<16x256xi1>
    %34 = vector.broadcast %cst_14 : f32 to vector<16x256xf32>
    %35 = arith.select %33, %31, %34 : vector<16x256xi1>, vector<16x256xf32>
    %36 = arith.truncf %35 : vector<16x256xf32> to vector<16x256xbf16>
    %c0_15 = arith.constant 0 : index
    %c0_16 = arith.constant 0 : index
    %37 = vector.load %arg6[%c0_15, %c0_16] : memref<16x256xbf16, #tpu.memory_space<vmem>>, vector<16x256xbf16>
    tpu.vector_store %arg6[%c0_15, %c0_16], %36 {strides = array<i32>} : memref<16x256xbf16, #tpu.memory_space<vmem>>, vector<16x256xbf16>,
    %c16_i32_17 = arith.constant 16 : i32
    %38 = arith.muli %arg0, %c16_i32_17 : i32
    %39 = tpu.iota {dimensions = array<i32: 1>} : vector<8x16xi32>
    %40 = vector.broadcast %38 : i32 to vector<8x16xi32>
    %41 = arith.addi %40, %39 : vector<8x16xi32>
    %42 = tpu.iota {dimensions = array<i32: 0>} : vector<8x16xi32>
    %c4_i32 = arith.constant 4 : i32
    %43 = vector.broadcast %c4_i32 : i32 to vector<8x16xi32>
    %44 = arith.muli %42, %43 : vector<8x16xi32>
    %c8_i32_18 = arith.constant 8 : i32
    %45 = vector.broadcast %c8_i32_18 : i32 to vector<8x16xi32>
    %46 = arith.addi %45, %44 : vector<8x16xi32>
    %c2_i32 = arith.constant 2 : i32
    %47 = vector.broadcast %c2_i32 : i32 to vector<8x16xi32>
    %48 = arith.cmpi slt, %42, %47 : vector<8x16xi32>
    %49 = arith.cmpi sge, %41, %46 : vector<8x16xi32>
    %50 = arith.andi %48, %49 : vector<8x16xi1>
    %c4_i32_19 = arith.constant 4 : i32
    %51 = vector.broadcast %c4_i32_19 : i32 to vector<8x16xi32>
    %52 = arith.addi %46, %51 : vector<8x16xi32>
    %53 = arith.cmpi slt, %41, %52 : vector<8x16xi32>
    %54 = arith.andi %50, %53 : vector<8x16xi1>
    %cst_20 = arith.constant 1.000000e+00 : f32
    %cst_21 = arith.constant 0.000000e+00 : f32
    %55 = vector.broadcast %cst_20 : f32 to vector<8x16xf32>
    %56 = vector.broadcast %cst_21 : f32 to vector<8x16xf32>
    %57 = arith.select %54, %55, %56 : vector<8x16xi1>, vector<8x16xf32>
    %cst_22 = arith.constant dense<0.000000e+00> : vector<8x256xf32>
    %58 = tpu.matmul %57, %35, %cst_22 {dimension_numbers = #tpu.dot_dimension_numbers<[1], [0], [0], [1], [0, 0, 1, 1], [], []>} : vector<8x16xf32>, vector<16x256xf32>, vector<8x256xf32> -> vector<8x256xf32>
    %c0_23 = arith.constant 0 : index
    %c0_24 = arith.constant 0 : index
    %c0_25 = arith.constant 0 : index
    %59 = vector.load %arg7[%c0_23, %c0_24, %c0_25] : memref<1x8x256xf32, #tpu.memory_space<vmem>>, vector<1x8x256xf32>
    %60 = vector.shape_cast %59 : vector<1x8x256xf32> to vector<8x256xf32>
    %61 = vector.shape_cast %58 : vector<8x256xf32> to vector<1x8x256xf32>
    tpu.vector_store %arg7[%c0_23, %c0_24, %c0_25], %61 {strides = array<i32>} : memref<1x8x256xf32, #tpu.memory_space<vmem>>, vector<1x8x256xf32>,
    return
  }
  func.func @transform_0(%arg0: i32) -> (i32, i32) {
    %c0_i32 = arith.constant 0 : i32
    %c0_i32_0 = arith.constant 0 : i32
    return %arg0, %c0_i32 : i32, i32
  }
  func.func @transform_1(%arg0: i32) -> (i32, i32) {
    %c0_i32 = arith.constant 0 : i32
    %c0_i32_0 = arith.constant 0 : i32
    %c0_i32_1 = arith.constant 0 : i32
    return %c0_i32, %c0_i32_0 : i32, i32
  }
  func.func @transform_2(%arg0: i32) -> (i32, i32) {
    %c0_i32 = arith.constant 0 : i32
    %c0_i32_0 = arith.constant 0 : i32
    %c0_i32_1 = arith.constant 0 : i32
    return %c0_i32, %c0_i32_0 : i32, i32
  }
  func.func @transform_3(%arg0: i32) -> (i32, i32) {
    %c0_i32 = arith.constant 0 : i32
    %c0_i32_0 = arith.constant 0 : i32
    %c0_i32_1 = arith.constant 0 : i32
    return %c0_i32, %c0_i32_0 : i32, i32
  }
  func.func @transform_4(%arg0: i32) -> (i32, i32) {
    %c0_i32 = arith.constant 0 : i32
    %c0_i32_0 = arith.constant 0 : i32
    return %arg0, %c0_i32 : i32, i32
  }
  func.func @transform_5(%arg0: i32) -> (i32, i32) {
    %c0_i32 = arith.constant 0 : i32
    %c0_i32_0 = arith.constant 0 : i32
    return %arg0, %c0_i32 : i32, i32
  }
  func.func @transform_6(%arg0: i32) -> (i32, i32, i32) {
    %c0_i32 = arith.constant 0 : i32
    %c0_i32_0 = arith.constant 0 : i32
    %c0_i32_1 = arith.constant 0 : i32
    return %arg0, %c0_i32, %c0_i32_0 : i32, i32, i32
  }
}

module attributes {stable_mosaic.version = 11 : i64} {
  func.func @kernel(%arg0: i32, %arg1: memref<8x256xbf16, #tpu.memory_space<vmem>>, %arg2: memref<256x128xbf16, #tpu.memory_space<vmem>>, %arg3: memref<1x128xf32, #tpu.memory_space<vmem>>, %arg4: memref<1x128xf32, #tpu.memory_space<vmem>>, %arg5: memref<2x8x128xbf16, #tpu.memory_space<vmem>>) attributes {dimension_semantics = [#tpu.dimension_semantics<parallel>], iteration_bounds = array<i64: 1>, scalar_prefetch = 0 : i64, scratch_operands = 0 : i64, tpu.core_type = #tpu.core_type<tc>, window_params = [{transform_indices = @transform_0, window_bounds = array<i64: 8, 256>}, {pipeline_mode = #tpu.pipeline_mode<synchronous>, transform_indices = @transform_1, window_bounds = array<i64: 256, 128>}, {pipeline_mode = #tpu.pipeline_mode<synchronous>, transform_indices = @transform_2, window_bounds = array<i64: 1, 128>}, {pipeline_mode = #tpu.pipeline_mode<synchronous>, transform_indices = @transform_3, window_bounds = array<i64: 1, 128>}, {transform_indices = @transform_4, window_bounds = array<i64: 2, 8, 128>}]} {
    %c0 = arith.constant 0 : index
    %c0_0 = arith.constant 0 : index
    %0 = vector.load %arg1[%c0, %c0_0] : memref<8x256xbf16, #tpu.memory_space<vmem>>, vector<8x256xbf16>
    %c0_1 = arith.constant 0 : index
    %c0_2 = arith.constant 0 : index
    %1 = vector.load %arg2[%c0_1, %c0_2] : memref<256x128xbf16, #tpu.memory_space<vmem>>, vector<256x128xbf16>
    %cst = arith.constant dense<0.000000e+00> : vector<8x128xf32>
    %2 = tpu.matmul %0, %1, %cst {dimension_numbers = #tpu.dot_dimension_numbers<[1], [0], [0], [1], [0, 0, 1, 1], [], []>} : vector<8x256xbf16>, vector<256x128xbf16>, vector<8x128xf32> -> vector<8x128xf32>
    %c0_3 = arith.constant 0 : index
    %c0_4 = arith.constant 0 : index
    %3 = vector.load %arg3[%c0_3, %c0_4] : memref<1x128xf32, #tpu.memory_space<vmem>>, vector<1x128xf32>
    %4 = vector.broadcast %3 : vector<1x128xf32> to vector<8x128xf32>
    %5 = arith.mulf %2, %4 : vector<8x128xf32>
    %c0_5 = arith.constant 0 : index
    %c0_6 = arith.constant 0 : index
    %6 = vector.load %arg4[%c0_5, %c0_6] : memref<1x128xf32, #tpu.memory_space<vmem>>, vector<1x128xf32>
    %7 = vector.broadcast %6 : vector<1x128xf32> to vector<8x128xf32>
    %8 = arith.addf %5, %7 : vector<8x128xf32>
    %c8_i32 = arith.constant 8 : i32
    %9 = arith.muli %arg0, %c8_i32 : i32
    %10 = tpu.iota {dimensions = array<i32: 0>} : vector<8x1xi32>
    %11 = vector.broadcast %9 : i32 to vector<8x1xi32>
    %12 = arith.addi %11, %10 : vector<8x1xi32>
    %c8_i32_7 = arith.constant 8 : i32
    %13 = vector.broadcast %c8_i32_7 : i32 to vector<8x1xi32>
    %14 = arith.cmpi slt, %12, %13 : vector<8x1xi32>
    %cst_8 = arith.constant 0.000000e+00 : f32
    %15 = vector.shape_cast %14 : vector<8x1xi1> to vector<8x1xi1>
    %16 = vector.broadcast %15 : vector<8x1xi1> to vector<8x128xi1>
    %17 = vector.broadcast %cst_8 : f32 to vector<8x128xf32>
    %18 = arith.select %16, %8, %17 : vector<8x128xi1>, vector<8x128xf32>
    %cst_9 = arith.constant 0.000000e+00 : f32
    %19 = vector.broadcast %cst_9 : f32 to vector<8x128xf32>
    %20 = arith.maximumf %18, %19 : vector<8x128xf32>
    %21 = arith.truncf %20 : vector<8x128xf32> to vector<8x128xbf16>
    %c0_10 = arith.constant 0 : index
    %c0_11 = arith.constant 0 : index
    %c0_12 = arith.constant 0 : index
    %22 = vector.load %arg5[%c0_10, %c0_11, %c0_12] : memref<2x8x128xbf16, #tpu.memory_space<vmem>>, vector<1x8x128xbf16>
    %23 = vector.shape_cast %22 : vector<1x8x128xbf16> to vector<8x128xbf16>
    %24 = vector.shape_cast %21 : vector<8x128xbf16> to vector<1x8x128xbf16>
    tpu.vector_store %arg5[%c0_10, %c0_11, %c0_12], %24 {strides = array<i32>} : memref<2x8x128xbf16, #tpu.memory_space<vmem>>, vector<1x8x128xbf16>,
    %25 = arith.truncf %18 : vector<8x128xf32> to vector<8x128xbf16>
    %c1 = arith.constant 1 : index
    %c0_13 = arith.constant 0 : index
    %c0_14 = arith.constant 0 : index
    %26 = vector.load %arg5[%c1, %c0_13, %c0_14] : memref<2x8x128xbf16, #tpu.memory_space<vmem>>, vector<1x8x128xbf16>
    %27 = vector.shape_cast %26 : vector<1x8x128xbf16> to vector<8x128xbf16>
    %28 = vector.shape_cast %25 : vector<8x128xbf16> to vector<1x8x128xbf16>
    tpu.vector_store %arg5[%c1, %c0_13, %c0_14], %28 {strides = array<i32>} : memref<2x8x128xbf16, #tpu.memory_space<vmem>>, vector<1x8x128xbf16>,
    return
  }
  func.func @transform_0(%arg0: i32) -> (i32, i32) {
    %c0_i32 = arith.constant 0 : i32
    %c0_i32_0 = arith.constant 0 : i32
    return %arg0, %c0_i32 : i32, i32
  }
  func.func @transform_1(%arg0: i32) -> (i32, i32) {
    %c0_i32 = arith.constant 0 : i32
    %c0_i32_0 = arith.constant 0 : i32
    %c0_i32_1 = arith.constant 0 : i32
    return %c0_i32, %c0_i32_0 : i32, i32
  }
  func.func @transform_2(%arg0: i32) -> (i32, i32) {
    %c0_i32 = arith.constant 0 : i32
    %c0_i32_0 = arith.constant 0 : i32
    %c0_i32_1 = arith.constant 0 : i32
    return %c0_i32, %c0_i32_0 : i32, i32
  }
  func.func @transform_3(%arg0: i32) -> (i32, i32) {
    %c0_i32 = arith.constant 0 : i32
    %c0_i32_0 = arith.constant 0 : i32
    %c0_i32_1 = arith.constant 0 : i32
    return %c0_i32, %c0_i32_0 : i32, i32
  }
  func.func @transform_4(%arg0: i32) -> (i32, i32, i32) {
    %c0_i32 = arith.constant 0 : i32
    %c0_i32_0 = arith.constant 0 : i32
    %c0_i32_1 = arith.constant 0 : i32
    return %c0_i32, %arg0, %c0_i32_0 : i32, i32, i32
  }
}

module attributes {stable_mosaic.version = 11 : i64} {
  func.func @kernel(%arg0: i32, %arg1: memref<16x256xbf16, #tpu.memory_space<vmem>>, %arg2: memref<256x512xbf16, #tpu.memory_space<vmem>>, %arg3: memref<1x512xf32, #tpu.memory_space<vmem>>, %arg4: memref<1x512xf32, #tpu.memory_space<vmem>>, %arg5: memref<16x512xbf16, #tpu.memory_space<vmem>>) attributes {dimension_semantics = [#tpu.dimension_semantics<parallel>], iteration_bounds = array<i64: 1>, scalar_prefetch = 0 : i64, scratch_operands = 0 : i64, tpu.core_type = #tpu.core_type<tc>, window_params = [{transform_indices = @transform_0, window_bounds = array<i64: 16, 256>}, {pipeline_mode = #tpu.pipeline_mode<synchronous>, transform_indices = @transform_1, window_bounds = array<i64: 256, 512>}, {pipeline_mode = #tpu.pipeline_mode<synchronous>, transform_indices = @transform_2, window_bounds = array<i64: 1, 512>}, {pipeline_mode = #tpu.pipeline_mode<synchronous>, transform_indices = @transform_3, window_bounds = array<i64: 1, 512>}, {transform_indices = @transform_4, window_bounds = array<i64: 16, 512>}]} {
    %c0 = arith.constant 0 : index
    %c0_0 = arith.constant 0 : index
    %0 = vector.load %arg1[%c0, %c0_0] : memref<16x256xbf16, #tpu.memory_space<vmem>>, vector<16x256xbf16>
    %c0_1 = arith.constant 0 : index
    %c0_2 = arith.constant 0 : index
    %1 = vector.load %arg2[%c0_1, %c0_2] : memref<256x512xbf16, #tpu.memory_space<vmem>>, vector<256x512xbf16>
    %cst = arith.constant dense<0.000000e+00> : vector<16x512xf32>
    %2 = tpu.matmul %0, %1, %cst {dimension_numbers = #tpu.dot_dimension_numbers<[1], [0], [0], [1], [0, 0, 1, 1], [], []>} : vector<16x256xbf16>, vector<256x512xbf16>, vector<16x512xf32> -> vector<16x512xf32>
    %c0_3 = arith.constant 0 : index
    %c0_4 = arith.constant 0 : index
    %3 = vector.load %arg3[%c0_3, %c0_4] : memref<1x512xf32, #tpu.memory_space<vmem>>, vector<1x512xf32>
    %4 = vector.broadcast %3 : vector<1x512xf32> to vector<16x512xf32>
    %5 = arith.mulf %2, %4 : vector<16x512xf32>
    %c0_5 = arith.constant 0 : index
    %c0_6 = arith.constant 0 : index
    %6 = vector.load %arg4[%c0_5, %c0_6] : memref<1x512xf32, #tpu.memory_space<vmem>>, vector<1x512xf32>
    %7 = vector.broadcast %6 : vector<1x512xf32> to vector<16x512xf32>
    %8 = arith.addf %5, %7 : vector<16x512xf32>
    %c16_i32 = arith.constant 16 : i32
    %9 = arith.muli %arg0, %c16_i32 : i32
    %10 = tpu.iota {dimensions = array<i32: 0>} : vector<16x1xi32>
    %11 = vector.broadcast %9 : i32 to vector<16x1xi32>
    %12 = arith.addi %11, %10 : vector<16x1xi32>
    %c2_i32 = arith.constant 2 : i32
    %13 = vector.broadcast %c2_i32 : i32 to vector<16x1xi32>
    %14 = arith.cmpi slt, %12, %13 : vector<16x1xi32>
    %cst_7 = arith.constant 0.000000e+00 : f32
    %15 = vector.shape_cast %14 : vector<16x1xi1> to vector<16x1xi1>
    %16 = vector.broadcast %15 : vector<16x1xi1> to vector<16x512xi1>
    %17 = vector.broadcast %cst_7 : f32 to vector<16x512xf32>
    %18 = arith.select %16, %8, %17 : vector<16x512xi1>, vector<16x512xf32>
    %19 = arith.truncf %18 : vector<16x512xf32> to vector<16x512xbf16>
    %c0_8 = arith.constant 0 : index
    %c0_9 = arith.constant 0 : index
    %20 = vector.load %arg5[%c0_8, %c0_9] : memref<16x512xbf16, #tpu.memory_space<vmem>>, vector<16x512xbf16>
    tpu.vector_store %arg5[%c0_8, %c0_9], %19 {strides = array<i32>} : memref<16x512xbf16, #tpu.memory_space<vmem>>, vector<16x512xbf16>,
    return
  }
  func.func @transform_0(%arg0: i32) -> (i32, i32) {
    %c0_i32 = arith.constant 0 : i32
    %c0_i32_0 = arith.constant 0 : i32
    return %arg0, %c0_i32 : i32, i32
  }
  func.func @transform_1(%arg0: i32) -> (i32, i32) {
    %c0_i32 = arith.constant 0 : i32
    %c0_i32_0 = arith.constant 0 : i32
    %c0_i32_1 = arith.constant 0 : i32
    return %c0_i32, %c0_i32_0 : i32, i32
  }
  func.func @transform_2(%arg0: i32) -> (i32, i32) {
    %c0_i32 = arith.constant 0 : i32
    %c0_i32_0 = arith.constant 0 : i32
    %c0_i32_1 = arith.constant 0 : i32
    return %c0_i32, %c0_i32_0 : i32, i32
  }
  func.func @transform_3(%arg0: i32) -> (i32, i32) {
    %c0_i32 = arith.constant 0 : i32
    %c0_i32_0 = arith.constant 0 : i32
    %c0_i32_1 = arith.constant 0 : i32
    return %c0_i32, %c0_i32_0 : i32, i32
  }
  func.func @transform_4(%arg0: i32) -> (i32, i32) {
    %c0_i32 = arith.constant 0 : i32
    %c0_i32_0 = arith.constant 0 : i32
    return %arg0, %c0_i32 : i32, i32
  }
}

module attributes {stable_mosaic.version = 11 : i64} {
  func.func @kernel(%arg0: i32, %arg1: memref<16x1152xbf16, #tpu.memory_space<vmem>>, %arg2: memref<1152x128xbf16, #tpu.memory_space<vmem>>, %arg3: memref<1x128xf32, #tpu.memory_space<vmem>>, %arg4: memref<1x128xf32, #tpu.memory_space<vmem>>, %arg5: memref<16x128xbf16, #tpu.memory_space<vmem>>) attributes {dimension_semantics = [#tpu.dimension_semantics<parallel>], iteration_bounds = array<i64: 1>, scalar_prefetch = 0 : i64, scratch_operands = 0 : i64, tpu.core_type = #tpu.core_type<tc>, window_params = [{transform_indices = @transform_0, window_bounds = array<i64: 16, 1152>}, {pipeline_mode = #tpu.pipeline_mode<synchronous>, transform_indices = @transform_1, window_bounds = array<i64: 1152, 128>}, {pipeline_mode = #tpu.pipeline_mode<synchronous>, transform_indices = @transform_2, window_bounds = array<i64: 1, 128>}, {pipeline_mode = #tpu.pipeline_mode<synchronous>, transform_indices = @transform_3, window_bounds = array<i64: 1, 128>}, {transform_indices = @transform_4, window_bounds = array<i64: 16, 128>}]} {
    %c0 = arith.constant 0 : index
    %c0_0 = arith.constant 0 : index
    %0 = vector.load %arg1[%c0, %c0_0] : memref<16x1152xbf16, #tpu.memory_space<vmem>>, vector<16x1152xbf16>
    %c0_1 = arith.constant 0 : index
    %c0_2 = arith.constant 0 : index
    %1 = vector.load %arg2[%c0_1, %c0_2] : memref<1152x128xbf16, #tpu.memory_space<vmem>>, vector<1152x128xbf16>
    %cst = arith.constant dense<0.000000e+00> : vector<16x128xf32>
    %2 = tpu.matmul %0, %1, %cst {dimension_numbers = #tpu.dot_dimension_numbers<[1], [0], [0], [1], [0, 0, 1, 1], [], []>} : vector<16x1152xbf16>, vector<1152x128xbf16>, vector<16x128xf32> -> vector<16x128xf32>
    %c0_3 = arith.constant 0 : index
    %c0_4 = arith.constant 0 : index
    %3 = vector.load %arg3[%c0_3, %c0_4] : memref<1x128xf32, #tpu.memory_space<vmem>>, vector<1x128xf32>
    %4 = vector.broadcast %3 : vector<1x128xf32> to vector<16x128xf32>
    %5 = arith.mulf %2, %4 : vector<16x128xf32>
    %c0_5 = arith.constant 0 : index
    %c0_6 = arith.constant 0 : index
    %6 = vector.load %arg4[%c0_5, %c0_6] : memref<1x128xf32, #tpu.memory_space<vmem>>, vector<1x128xf32>
    %7 = vector.broadcast %6 : vector<1x128xf32> to vector<16x128xf32>
    %8 = arith.addf %5, %7 : vector<16x128xf32>
    %c16_i32 = arith.constant 16 : i32
    %9 = arith.muli %arg0, %c16_i32 : i32
    %10 = tpu.iota {dimensions = array<i32: 0>} : vector<16x1xi32>
    %11 = vector.broadcast %9 : i32 to vector<16x1xi32>
    %12 = arith.addi %11, %10 : vector<16x1xi32>
    %c2_i32 = arith.constant 2 : i32
    %13 = vector.broadcast %c2_i32 : i32 to vector<16x1xi32>
    %14 = arith.cmpi slt, %12, %13 : vector<16x1xi32>
    %c8_i32 = arith.constant 8 : i32
    %15 = vector.broadcast %c8_i32 : i32 to vector<16x1xi32>
    %16 = arith.cmpi sge, %12, %15 : vector<16x1xi32>
    %c10_i32 = arith.constant 10 : i32
    %17 = vector.broadcast %c10_i32 : i32 to vector<16x1xi32>
    %18 = arith.cmpi slt, %12, %17 : vector<16x1xi32>
    %19 = arith.andi %16, %18 : vector<16x1xi1>
    %20 = arith.ori %14, %19 : vector<16x1xi1>
    %c8_i32_7 = arith.constant 8 : i32
    %21 = vector.broadcast %c8_i32_7 : i32 to vector<16x1xi32>
    %22 = arith.cmpi slt, %12, %21 : vector<16x1xi32>
    %cst_8 = arith.constant 0.000000e+00 : f32
    %23 = vector.broadcast %cst_8 : f32 to vector<16x128xf32>
    %24 = arith.maximumf %8, %23 : vector<16x128xf32>
    %25 = vector.shape_cast %22 : vector<16x1xi1> to vector<16x1xi1>
    %26 = vector.broadcast %25 : vector<16x1xi1> to vector<16x128xi1>
    %27 = arith.select %26, %24, %8 : vector<16x128xi1>, vector<16x128xf32>
    %cst_9 = arith.constant 0.000000e+00 : f32
    %28 = vector.shape_cast %20 : vector<16x1xi1> to vector<16x1xi1>
    %29 = vector.broadcast %28 : vector<16x1xi1> to vector<16x128xi1>
    %30 = vector.broadcast %cst_9 : f32 to vector<16x128xf32>
    %31 = arith.select %29, %27, %30 : vector<16x128xi1>, vector<16x128xf32>
    %32 = arith.truncf %31 : vector<16x128xf32> to vector<16x128xbf16>
    %c0_10 = arith.constant 0 : index
    %c0_11 = arith.constant 0 : index
    %33 = vector.load %arg5[%c0_10, %c0_11] : memref<16x128xbf16, #tpu.memory_space<vmem>>, vector<16x128xbf16>
    tpu.vector_store %arg5[%c0_10, %c0_11], %32 {strides = array<i32>} : memref<16x128xbf16, #tpu.memory_space<vmem>>, vector<16x128xbf16>,
    return
  }
  func.func @transform_0(%arg0: i32) -> (i32, i32) {
    %c0_i32 = arith.constant 0 : i32
    %c0_i32_0 = arith.constant 0 : i32
    return %arg0, %c0_i32 : i32, i32
  }
  func.func @transform_1(%arg0: i32) -> (i32, i32) {
    %c0_i32 = arith.constant 0 : i32
    %c0_i32_0 = arith.constant 0 : i32
    %c0_i32_1 = arith.constant 0 : i32
    return %c0_i32, %c0_i32_0 : i32, i32
  }
  func.func @transform_2(%arg0: i32) -> (i32, i32) {
    %c0_i32 = arith.constant 0 : i32
    %c0_i32_0 = arith.constant 0 : i32
    %c0_i32_1 = arith.constant 0 : i32
    return %c0_i32, %c0_i32_0 : i32, i32
  }
  func.func @transform_3(%arg0: i32) -> (i32, i32) {
    %c0_i32 = arith.constant 0 : i32
    %c0_i32_0 = arith.constant 0 : i32
    %c0_i32_1 = arith.constant 0 : i32
    return %c0_i32, %c0_i32_0 : i32, i32
  }
  func.func @transform_4(%arg0: i32) -> (i32, i32) {
    %c0_i32 = arith.constant 0 : i32
    %c0_i32_0 = arith.constant 0 : i32
    return %arg0, %c0_i32 : i32, i32
  }
}

module attributes {stable_mosaic.version = 11 : i64} {
  func.func @kernel(%arg0: i32, %arg1: memref<16x128xbf16, #tpu.memory_space<vmem>>, %arg2: memref<128x512xbf16, #tpu.memory_space<vmem>>, %arg3: memref<1x512xf32, #tpu.memory_space<vmem>>, %arg4: memref<1x512xf32, #tpu.memory_space<vmem>>, %arg5: memref<16x512xbf16, #tpu.memory_space<vmem>>, %arg6: memref<16x512xbf16, #tpu.memory_space<vmem>>, %arg7: memref<1x8x512xf32, #tpu.memory_space<vmem>>) attributes {dimension_semantics = [#tpu.dimension_semantics<parallel>], iteration_bounds = array<i64: 1>, scalar_prefetch = 0 : i64, scratch_operands = 0 : i64, tpu.core_type = #tpu.core_type<tc>, window_params = [{transform_indices = @transform_0, window_bounds = array<i64: 16, 128>}, {pipeline_mode = #tpu.pipeline_mode<synchronous>, transform_indices = @transform_1, window_bounds = array<i64: 128, 512>}, {pipeline_mode = #tpu.pipeline_mode<synchronous>, transform_indices = @transform_2, window_bounds = array<i64: 1, 512>}, {pipeline_mode = #tpu.pipeline_mode<synchronous>, transform_indices = @transform_3, window_bounds = array<i64: 1, 512>}, {transform_indices = @transform_4, window_bounds = array<i64: 16, 512>}, {transform_indices = @transform_5, window_bounds = array<i64: 16, 512>}, {transform_indices = @transform_6, window_bounds = array<i64: 1, 8, 512>}]} {
    %c0 = arith.constant 0 : index
    %c0_0 = arith.constant 0 : index
    %0 = vector.load %arg1[%c0, %c0_0] : memref<16x128xbf16, #tpu.memory_space<vmem>>, vector<16x128xbf16>
    %c0_1 = arith.constant 0 : index
    %c0_2 = arith.constant 0 : index
    %1 = vector.load %arg2[%c0_1, %c0_2] : memref<128x512xbf16, #tpu.memory_space<vmem>>, vector<128x512xbf16>
    %cst = arith.constant dense<0.000000e+00> : vector<16x512xf32>
    %2 = tpu.matmul %0, %1, %cst {dimension_numbers = #tpu.dot_dimension_numbers<[1], [0], [0], [1], [0, 0, 1, 1], [], []>} : vector<16x128xbf16>, vector<128x512xbf16>, vector<16x512xf32> -> vector<16x512xf32>
    %c0_3 = arith.constant 0 : index
    %c0_4 = arith.constant 0 : index
    %3 = vector.load %arg3[%c0_3, %c0_4] : memref<1x512xf32, #tpu.memory_space<vmem>>, vector<1x512xf32>
    %4 = vector.broadcast %3 : vector<1x512xf32> to vector<16x512xf32>
    %5 = arith.mulf %2, %4 : vector<16x512xf32>
    %c0_5 = arith.constant 0 : index
    %c0_6 = arith.constant 0 : index
    %6 = vector.load %arg4[%c0_5, %c0_6] : memref<1x512xf32, #tpu.memory_space<vmem>>, vector<1x512xf32>
    %7 = vector.broadcast %6 : vector<1x512xf32> to vector<16x512xf32>
    %8 = arith.addf %5, %7 : vector<16x512xf32>
    %c16_i32 = arith.constant 16 : i32
    %9 = arith.muli %arg0, %c16_i32 : i32
    %10 = tpu.iota {dimensions = array<i32: 0>} : vector<16x1xi32>
    %11 = vector.broadcast %9 : i32 to vector<16x1xi32>
    %12 = arith.addi %11, %10 : vector<16x1xi32>
    %c2_i32 = arith.constant 2 : i32
    %13 = vector.broadcast %c2_i32 : i32 to vector<16x1xi32>
    %14 = arith.cmpi slt, %12, %13 : vector<16x1xi32>
    %c8_i32 = arith.constant 8 : i32
    %15 = vector.broadcast %c8_i32 : i32 to vector<16x1xi32>
    %16 = arith.cmpi sge, %12, %15 : vector<16x1xi32>
    %c10_i32 = arith.constant 10 : i32
    %17 = vector.broadcast %c10_i32 : i32 to vector<16x1xi32>
    %18 = arith.cmpi slt, %12, %17 : vector<16x1xi32>
    %19 = arith.andi %16, %18 : vector<16x1xi1>
    %20 = arith.ori %14, %19 : vector<16x1xi1>
    %c0_7 = arith.constant 0 : index
    %c0_8 = arith.constant 0 : index
    %21 = vector.load %arg5[%c0_7, %c0_8] : memref<16x512xbf16, #tpu.memory_space<vmem>>, vector<16x512xbf16>
    %22 = arith.extf %21 : vector<16x512xbf16> to vector<16x512xf32>
    %c8_i32_9 = arith.constant 8 : i32
    %23 = vector.broadcast %c8_i32_9 : i32 to vector<16x1xi32>
    %24 = arith.cmpi slt, %12, %23 : vector<16x1xi32>
    %cst_10 = arith.constant 0.000000e+00 : f32
    %25 = vector.shape_cast %24 : vector<16x1xi1> to vector<16x1xi1>
    %26 = vector.broadcast %25 : vector<16x1xi1> to vector<16x512xi1>
    %27 = vector.broadcast %cst_10 : f32 to vector<16x512xf32>
    %28 = arith.select %26, %22, %27 : vector<16x512xi1>, vector<16x512xf32>
    %29 = arith.addf %8, %28 : vector<16x512xf32>
    %cst_11 = arith.constant 0.000000e+00 : f32
    %30 = vector.broadcast %cst_11 : f32 to vector<16x512xf32>
    %31 = arith.maximumf %29, %30 : vector<16x512xf32>
    %cst_12 = arith.constant 0.000000e+00 : f32
    %32 = vector.shape_cast %20 : vector<16x1xi1> to vector<16x1xi1>
    %33 = vector.broadcast %32 : vector<16x1xi1> to vector<16x512xi1>
    %34 = vector.broadcast %cst_12 : f32 to vector<16x512xf32>
    %35 = arith.select %33, %31, %34 : vector<16x512xi1>, vector<16x512xf32>
    %36 = arith.truncf %35 : vector<16x512xf32> to vector<16x512xbf16>
    %c0_13 = arith.constant 0 : index
    %c0_14 = arith.constant 0 : index
    %37 = vector.load %arg6[%c0_13, %c0_14] : memref<16x512xbf16, #tpu.memory_space<vmem>>, vector<16x512xbf16>
    tpu.vector_store %arg6[%c0_13, %c0_14], %36 {strides = array<i32>} : memref<16x512xbf16, #tpu.memory_space<vmem>>, vector<16x512xbf16>,
    %c16_i32_15 = arith.constant 16 : i32
    %38 = arith.muli %arg0, %c16_i32_15 : i32
    %39 = tpu.iota {dimensions = array<i32: 1>} : vector<8x16xi32>
    %40 = vector.broadcast %38 : i32 to vector<8x16xi32>
    %41 = arith.addi %40, %39 : vector<8x16xi32>
    %42 = tpu.iota {dimensions = array<i32: 0>} : vector<8x16xi32>
    %c1_i32 = arith.constant 1 : i32
    %43 = vector.broadcast %c1_i32 : i32 to vector<8x16xi32>
    %44 = arith.muli %42, %43 : vector<8x16xi32>
    %c8_i32_16 = arith.constant 8 : i32
    %45 = vector.broadcast %c8_i32_16 : i32 to vector<8x16xi32>
    %46 = arith.addi %45, %44 : vector<8x16xi32>
    %c2_i32_17 = arith.constant 2 : i32
    %47 = vector.broadcast %c2_i32_17 : i32 to vector<8x16xi32>
    %48 = arith.cmpi slt, %42, %47 : vector<8x16xi32>
    %49 = arith.cmpi sge, %41, %46 : vector<8x16xi32>
    %50 = arith.andi %48, %49 : vector<8x16xi1>
    %c1_i32_18 = arith.constant 1 : i32
    %51 = vector.broadcast %c1_i32_18 : i32 to vector<8x16xi32>
    %52 = arith.addi %46, %51 : vector<8x16xi32>
    %53 = arith.cmpi slt, %41, %52 : vector<8x16xi32>
    %54 = arith.andi %50, %53 : vector<8x16xi1>
    %cst_19 = arith.constant 1.000000e+00 : f32
    %cst_20 = arith.constant 0.000000e+00 : f32
    %55 = vector.broadcast %cst_19 : f32 to vector<8x16xf32>
    %56 = vector.broadcast %cst_20 : f32 to vector<8x16xf32>
    %57 = arith.select %54, %55, %56 : vector<8x16xi1>, vector<8x16xf32>
    %cst_21 = arith.constant dense<0.000000e+00> : vector<8x512xf32>
    %58 = tpu.matmul %57, %35, %cst_21 {dimension_numbers = #tpu.dot_dimension_numbers<[1], [0], [0], [1], [0, 0, 1, 1], [], []>} : vector<8x16xf32>, vector<16x512xf32>, vector<8x512xf32> -> vector<8x512xf32>
    %c0_22 = arith.constant 0 : index
    %c0_23 = arith.constant 0 : index
    %c0_24 = arith.constant 0 : index
    %59 = vector.load %arg7[%c0_22, %c0_23, %c0_24] : memref<1x8x512xf32, #tpu.memory_space<vmem>>, vector<1x8x512xf32>
    %60 = vector.shape_cast %59 : vector<1x8x512xf32> to vector<8x512xf32>
    %61 = vector.shape_cast %58 : vector<8x512xf32> to vector<1x8x512xf32>
    tpu.vector_store %arg7[%c0_22, %c0_23, %c0_24], %61 {strides = array<i32>} : memref<1x8x512xf32, #tpu.memory_space<vmem>>, vector<1x8x512xf32>,
    return
  }
  func.func @transform_0(%arg0: i32) -> (i32, i32) {
    %c0_i32 = arith.constant 0 : i32
    %c0_i32_0 = arith.constant 0 : i32
    return %arg0, %c0_i32 : i32, i32
  }
  func.func @transform_1(%arg0: i32) -> (i32, i32) {
    %c0_i32 = arith.constant 0 : i32
    %c0_i32_0 = arith.constant 0 : i32
    %c0_i32_1 = arith.constant 0 : i32
    return %c0_i32, %c0_i32_0 : i32, i32
  }
  func.func @transform_2(%arg0: i32) -> (i32, i32) {
    %c0_i32 = arith.constant 0 : i32
    %c0_i32_0 = arith.constant 0 : i32
    %c0_i32_1 = arith.constant 0 : i32
    return %c0_i32, %c0_i32_0 : i32, i32
  }
  func.func @transform_3(%arg0: i32) -> (i32, i32) {
    %c0_i32 = arith.constant 0 : i32
    %c0_i32_0 = arith.constant 0 : i32
    %c0_i32_1 = arith.constant 0 : i32
    return %c0_i32, %c0_i32_0 : i32, i32
  }
  func.func @transform_4(%arg0: i32) -> (i32, i32) {
    %c0_i32 = arith.constant 0 : i32
    %c0_i32_0 = arith.constant 0 : i32
    return %arg0, %c0_i32 : i32, i32
  }
  func.func @transform_5(%arg0: i32) -> (i32, i32) {
    %c0_i32 = arith.constant 0 : i32
    %c0_i32_0 = arith.constant 0 : i32
    return %arg0, %c0_i32 : i32, i32
  }
  func.func @transform_6(%arg0: i32) -> (i32, i32, i32) {
    %c0_i32 = arith.constant 0 : i32
    %c0_i32_0 = arith.constant 0 : i32
    %c0_i32_1 = arith.constant 0 : i32
    return %arg0, %c0_i32, %c0_i32_0 : i32, i32, i32
  }
}

module attributes {stable_mosaic.version = 11 : i64} {
  func.func @kernel(%arg0: i32, %arg1: memref<8x512xbf16, #tpu.memory_space<vmem>>, %arg2: memref<512x128xbf16, #tpu.memory_space<vmem>>, %arg3: memref<1x128xf32, #tpu.memory_space<vmem>>, %arg4: memref<1x128xf32, #tpu.memory_space<vmem>>, %arg5: memref<2x8x128xbf16, #tpu.memory_space<vmem>>) attributes {dimension_semantics = [#tpu.dimension_semantics<parallel>], iteration_bounds = array<i64: 1>, scalar_prefetch = 0 : i64, scratch_operands = 0 : i64, tpu.core_type = #tpu.core_type<tc>, window_params = [{transform_indices = @transform_0, window_bounds = array<i64: 8, 512>}, {pipeline_mode = #tpu.pipeline_mode<synchronous>, transform_indices = @transform_1, window_bounds = array<i64: 512, 128>}, {pipeline_mode = #tpu.pipeline_mode<synchronous>, transform_indices = @transform_2, window_bounds = array<i64: 1, 128>}, {pipeline_mode = #tpu.pipeline_mode<synchronous>, transform_indices = @transform_3, window_bounds = array<i64: 1, 128>}, {transform_indices = @transform_4, window_bounds = array<i64: 2, 8, 128>}]} {
    %c0 = arith.constant 0 : index
    %c0_0 = arith.constant 0 : index
    %0 = vector.load %arg1[%c0, %c0_0] : memref<8x512xbf16, #tpu.memory_space<vmem>>, vector<8x512xbf16>
    %c0_1 = arith.constant 0 : index
    %c0_2 = arith.constant 0 : index
    %1 = vector.load %arg2[%c0_1, %c0_2] : memref<512x128xbf16, #tpu.memory_space<vmem>>, vector<512x128xbf16>
    %cst = arith.constant dense<0.000000e+00> : vector<8x128xf32>
    %2 = tpu.matmul %0, %1, %cst {dimension_numbers = #tpu.dot_dimension_numbers<[1], [0], [0], [1], [0, 0, 1, 1], [], []>} : vector<8x512xbf16>, vector<512x128xbf16>, vector<8x128xf32> -> vector<8x128xf32>
    %c0_3 = arith.constant 0 : index
    %c0_4 = arith.constant 0 : index
    %3 = vector.load %arg3[%c0_3, %c0_4] : memref<1x128xf32, #tpu.memory_space<vmem>>, vector<1x128xf32>
    %4 = vector.broadcast %3 : vector<1x128xf32> to vector<8x128xf32>
    %5 = arith.mulf %2, %4 : vector<8x128xf32>
    %c0_5 = arith.constant 0 : index
    %c0_6 = arith.constant 0 : index
    %6 = vector.load %arg4[%c0_5, %c0_6] : memref<1x128xf32, #tpu.memory_space<vmem>>, vector<1x128xf32>
    %7 = vector.broadcast %6 : vector<1x128xf32> to vector<8x128xf32>
    %8 = arith.addf %5, %7 : vector<8x128xf32>
    %c8_i32 = arith.constant 8 : i32
    %9 = arith.muli %arg0, %c8_i32 : i32
    %10 = tpu.iota {dimensions = array<i32: 0>} : vector<8x1xi32>
    %11 = vector.broadcast %9 : i32 to vector<8x1xi32>
    %12 = arith.addi %11, %10 : vector<8x1xi32>
    %c2_i32 = arith.constant 2 : i32
    %13 = vector.broadcast %c2_i32 : i32 to vector<8x1xi32>
    %14 = arith.cmpi slt, %12, %13 : vector<8x1xi32>
    %cst_7 = arith.constant 0.000000e+00 : f32
    %15 = vector.shape_cast %14 : vector<8x1xi1> to vector<8x1xi1>
    %16 = vector.broadcast %15 : vector<8x1xi1> to vector<8x128xi1>
    %17 = vector.broadcast %cst_7 : f32 to vector<8x128xf32>
    %18 = arith.select %16, %8, %17 : vector<8x128xi1>, vector<8x128xf32>
    %cst_8 = arith.constant 0.000000e+00 : f32
    %19 = vector.broadcast %cst_8 : f32 to vector<8x128xf32>
    %20 = arith.maximumf %18, %19 : vector<8x128xf32>
    %21 = arith.truncf %20 : vector<8x128xf32> to vector<8x128xbf16>
    %c0_9 = arith.constant 0 : index
    %c0_10 = arith.constant 0 : index
    %c0_11 = arith.constant 0 : index
    %22 = vector.load %arg5[%c0_9, %c0_10, %c0_11] : memref<2x8x128xbf16, #tpu.memory_space<vmem>>, vector<1x8x128xbf16>
    %23 = vector.shape_cast %22 : vector<1x8x128xbf16> to vector<8x128xbf16>
    %24 = vector.shape_cast %21 : vector<8x128xbf16> to vector<1x8x128xbf16>
    tpu.vector_store %arg5[%c0_9, %c0_10, %c0_11], %24 {strides = array<i32>} : memref<2x8x128xbf16, #tpu.memory_space<vmem>>, vector<1x8x128xbf16>,
    %25 = arith.truncf %18 : vector<8x128xf32> to vector<8x128xbf16>
    %c1 = arith.constant 1 : index
    %c0_12 = arith.constant 0 : index
    %c0_13 = arith.constant 0 : index
    %26 = vector.load %arg5[%c1, %c0_12, %c0_13] : memref<2x8x128xbf16, #tpu.memory_space<vmem>>, vector<1x8x128xbf16>
    %27 = vector.shape_cast %26 : vector<1x8x128xbf16> to vector<8x128xbf16>
    %28 = vector.shape_cast %25 : vector<8x128xbf16> to vector<1x8x128xbf16>
    tpu.vector_store %arg5[%c1, %c0_12, %c0_13], %28 {strides = array<i32>} : memref<2x8x128xbf16, #tpu.memory_space<vmem>>, vector<1x8x128xbf16>,
    return
  }
  func.func @transform_0(%arg0: i32) -> (i32, i32) {
    %c0_i32 = arith.constant 0 : i32
    %c0_i32_0 = arith.constant 0 : i32
    return %arg0, %c0_i32 : i32, i32
  }
  func.func @transform_1(%arg0: i32) -> (i32, i32) {
    %c0_i32 = arith.constant 0 : i32
    %c0_i32_0 = arith.constant 0 : i32
    %c0_i32_1 = arith.constant 0 : i32
    return %c0_i32, %c0_i32_0 : i32, i32
  }
  func.func @transform_2(%arg0: i32) -> (i32, i32) {
    %c0_i32 = arith.constant 0 : i32
    %c0_i32_0 = arith.constant 0 : i32
    %c0_i32_1 = arith.constant 0 : i32
    return %c0_i32, %c0_i32_0 : i32, i32
  }
  func.func @transform_3(%arg0: i32) -> (i32, i32) {
    %c0_i32 = arith.constant 0 : i32
    %c0_i32_0 = arith.constant 0 : i32
    %c0_i32_1 = arith.constant 0 : i32
    return %c0_i32, %c0_i32_0 : i32, i32
  }
  func.func @transform_4(%arg0: i32) -> (i32, i32, i32) {
    %c0_i32 = arith.constant 0 : i32
    %c0_i32_0 = arith.constant 0 : i32
    %c0_i32_1 = arith.constant 0 : i32
    return %c0_i32, %arg0, %c0_i32_0 : i32, i32, i32
  }
}

module attributes {stable_mosaic.version = 11 : i64} {
  func.func @kernel(%arg0: i32, %arg1: memref<16x128xbf16, #tpu.memory_space<vmem>>, %arg2: memref<128x512xbf16, #tpu.memory_space<vmem>>, %arg3: memref<1x512xf32, #tpu.memory_space<vmem>>, %arg4: memref<1x512xf32, #tpu.memory_space<vmem>>, %arg5: memref<16x512xbf16, #tpu.memory_space<vmem>>, %arg6: memref<16x512xbf16, #tpu.memory_space<vmem>>, %arg7: memref<1x8x512xf32, #tpu.memory_space<vmem>>) attributes {dimension_semantics = [#tpu.dimension_semantics<parallel>], iteration_bounds = array<i64: 1>, scalar_prefetch = 0 : i64, scratch_operands = 0 : i64, tpu.core_type = #tpu.core_type<tc>, window_params = [{transform_indices = @transform_0, window_bounds = array<i64: 16, 128>}, {pipeline_mode = #tpu.pipeline_mode<synchronous>, transform_indices = @transform_1, window_bounds = array<i64: 128, 512>}, {pipeline_mode = #tpu.pipeline_mode<synchronous>, transform_indices = @transform_2, window_bounds = array<i64: 1, 512>}, {pipeline_mode = #tpu.pipeline_mode<synchronous>, transform_indices = @transform_3, window_bounds = array<i64: 1, 512>}, {transform_indices = @transform_4, window_bounds = array<i64: 16, 512>}, {transform_indices = @transform_5, window_bounds = array<i64: 16, 512>}, {transform_indices = @transform_6, window_bounds = array<i64: 1, 8, 512>}]} {
    %c0 = arith.constant 0 : index
    %c0_0 = arith.constant 0 : index
    %0 = vector.load %arg1[%c0, %c0_0] : memref<16x128xbf16, #tpu.memory_space<vmem>>, vector<16x128xbf16>
    %c0_1 = arith.constant 0 : index
    %c0_2 = arith.constant 0 : index
    %1 = vector.load %arg2[%c0_1, %c0_2] : memref<128x512xbf16, #tpu.memory_space<vmem>>, vector<128x512xbf16>
    %cst = arith.constant dense<0.000000e+00> : vector<16x512xf32>
    %2 = tpu.matmul %0, %1, %cst {dimension_numbers = #tpu.dot_dimension_numbers<[1], [0], [0], [1], [0, 0, 1, 1], [], []>} : vector<16x128xbf16>, vector<128x512xbf16>, vector<16x512xf32> -> vector<16x512xf32>
    %c0_3 = arith.constant 0 : index
    %c0_4 = arith.constant 0 : index
    %3 = vector.load %arg3[%c0_3, %c0_4] : memref<1x512xf32, #tpu.memory_space<vmem>>, vector<1x512xf32>
    %4 = vector.broadcast %3 : vector<1x512xf32> to vector<16x512xf32>
    %5 = arith.mulf %2, %4 : vector<16x512xf32>
    %c0_5 = arith.constant 0 : index
    %c0_6 = arith.constant 0 : index
    %6 = vector.load %arg4[%c0_5, %c0_6] : memref<1x512xf32, #tpu.memory_space<vmem>>, vector<1x512xf32>
    %7 = vector.broadcast %6 : vector<1x512xf32> to vector<16x512xf32>
    %8 = arith.addf %5, %7 : vector<16x512xf32>
    %c16_i32 = arith.constant 16 : i32
    %9 = arith.muli %arg0, %c16_i32 : i32
    %10 = tpu.iota {dimensions = array<i32: 0>} : vector<16x1xi32>
    %11 = vector.broadcast %9 : i32 to vector<16x1xi32>
    %12 = arith.addi %11, %10 : vector<16x1xi32>
    %c2_i32 = arith.constant 2 : i32
    %13 = vector.broadcast %c2_i32 : i32 to vector<16x1xi32>
    %14 = arith.cmpi slt, %12, %13 : vector<16x1xi32>
    %c8_i32 = arith.constant 8 : i32
    %15 = vector.broadcast %c8_i32 : i32 to vector<16x1xi32>
    %16 = arith.cmpi sge, %12, %15 : vector<16x1xi32>
    %c10_i32 = arith.constant 10 : i32
    %17 = vector.broadcast %c10_i32 : i32 to vector<16x1xi32>
    %18 = arith.cmpi slt, %12, %17 : vector<16x1xi32>
    %19 = arith.andi %16, %18 : vector<16x1xi1>
    %20 = arith.ori %14, %19 : vector<16x1xi1>
    %c0_7 = arith.constant 0 : index
    %c0_8 = arith.constant 0 : index
    %21 = vector.load %arg5[%c0_7, %c0_8] : memref<16x512xbf16, #tpu.memory_space<vmem>>, vector<16x512xbf16>
    %22 = arith.extf %21 : vector<16x512xbf16> to vector<16x512xf32>
    %c8_i32_9 = arith.constant 8 : i32
    %23 = vector.broadcast %c8_i32_9 : i32 to vector<16x1xi32>
    %24 = arith.cmpi slt, %12, %23 : vector<16x1xi32>
    %cst_10 = arith.constant 0.000000e+00 : f32
    %25 = vector.shape_cast %24 : vector<16x1xi1> to vector<16x1xi1>
    %26 = vector.broadcast %25 : vector<16x1xi1> to vector<16x512xi1>
    %27 = vector.broadcast %cst_10 : f32 to vector<16x512xf32>
    %28 = arith.select %26, %22, %27 : vector<16x512xi1>, vector<16x512xf32>
    %29 = arith.addf %8, %28 : vector<16x512xf32>
    %cst_11 = arith.constant 0.000000e+00 : f32
    %30 = vector.broadcast %cst_11 : f32 to vector<16x512xf32>
    %31 = arith.maximumf %29, %30 : vector<16x512xf32>
    %cst_12 = arith.constant 0.000000e+00 : f32
    %32 = vector.shape_cast %20 : vector<16x1xi1> to vector<16x1xi1>
    %33 = vector.broadcast %32 : vector<16x1xi1> to vector<16x512xi1>
    %34 = vector.broadcast %cst_12 : f32 to vector<16x512xf32>
    %35 = arith.select %33, %31, %34 : vector<16x512xi1>, vector<16x512xf32>
    %36 = arith.truncf %35 : vector<16x512xf32> to vector<16x512xbf16>
    %c0_13 = arith.constant 0 : index
    %c0_14 = arith.constant 0 : index
    %37 = vector.load %arg6[%c0_13, %c0_14] : memref<16x512xbf16, #tpu.memory_space<vmem>>, vector<16x512xbf16>
    tpu.vector_store %arg6[%c0_13, %c0_14], %36 {strides = array<i32>} : memref<16x512xbf16, #tpu.memory_space<vmem>>, vector<16x512xbf16>,
    %c16_i32_15 = arith.constant 16 : i32
    %38 = arith.muli %arg0, %c16_i32_15 : i32
    %39 = tpu.iota {dimensions = array<i32: 1>} : vector<8x16xi32>
    %40 = vector.broadcast %38 : i32 to vector<8x16xi32>
    %41 = arith.addi %40, %39 : vector<8x16xi32>
    %42 = tpu.iota {dimensions = array<i32: 0>} : vector<8x16xi32>
    %c1_i32 = arith.constant 1 : i32
    %43 = vector.broadcast %c1_i32 : i32 to vector<8x16xi32>
    %44 = arith.muli %42, %43 : vector<8x16xi32>
    %c8_i32_16 = arith.constant 8 : i32
    %45 = vector.broadcast %c8_i32_16 : i32 to vector<8x16xi32>
    %46 = arith.addi %45, %44 : vector<8x16xi32>
    %c2_i32_17 = arith.constant 2 : i32
    %47 = vector.broadcast %c2_i32_17 : i32 to vector<8x16xi32>
    %48 = arith.cmpi slt, %42, %47 : vector<8x16xi32>
    %49 = arith.cmpi sge, %41, %46 : vector<8x16xi32>
    %50 = arith.andi %48, %49 : vector<8x16xi1>
    %c1_i32_18 = arith.constant 1 : i32
    %51 = vector.broadcast %c1_i32_18 : i32 to vector<8x16xi32>
    %52 = arith.addi %46, %51 : vector<8x16xi32>
    %53 = arith.cmpi slt, %41, %52 : vector<8x16xi32>
    %54 = arith.andi %50, %53 : vector<8x16xi1>
    %cst_19 = arith.constant 1.000000e+00 : f32
    %cst_20 = arith.constant 0.000000e+00 : f32
    %55 = vector.broadcast %cst_19 : f32 to vector<8x16xf32>
    %56 = vector.broadcast %cst_20 : f32 to vector<8x16xf32>
    %57 = arith.select %54, %55, %56 : vector<8x16xi1>, vector<8x16xf32>
    %cst_21 = arith.constant dense<0.000000e+00> : vector<8x512xf32>
    %58 = tpu.matmul %57, %35, %cst_21 {dimension_numbers = #tpu.dot_dimension_numbers<[1], [0], [0], [1], [0, 0, 1, 1], [], []>} : vector<8x16xf32>, vector<16x512xf32>, vector<8x512xf32> -> vector<8x512xf32>
    %c0_22 = arith.constant 0 : index
    %c0_23 = arith.constant 0 : index
    %c0_24 = arith.constant 0 : index
    %59 = vector.load %arg7[%c0_22, %c0_23, %c0_24] : memref<1x8x512xf32, #tpu.memory_space<vmem>>, vector<1x8x512xf32>
    %60 = vector.shape_cast %59 : vector<1x8x512xf32> to vector<8x512xf32>
    %61 = vector.shape_cast %58 : vector<8x512xf32> to vector<1x8x512xf32>
    tpu.vector_store %arg7[%c0_22, %c0_23, %c0_24], %61 {strides = array<i32>} : memref<1x8x512xf32, #tpu.memory_space<vmem>>, vector<1x8x512xf32>,
    return
  }
  func.func @transform_0(%arg0: i32) -> (i32, i32) {
    %c0_i32 = arith.constant 0 : i32
    %c0_i32_0 = arith.constant 0 : i32
    return %arg0, %c0_i32 : i32, i32
  }
  func.func @transform_1(%arg0: i32) -> (i32, i32) {
    %c0_i32 = arith.constant 0 : i32
    %c0_i32_0 = arith.constant 0 : i32
    %c0_i32_1 = arith.constant 0 : i32
    return %c0_i32, %c0_i32_0 : i32, i32
  }
  func.func @transform_2(%arg0: i32) -> (i32, i32) {
    %c0_i32 = arith.constant 0 : i32
    %c0_i32_0 = arith.constant 0 : i32
    %c0_i32_1 = arith.constant 0 : i32
    return %c0_i32, %c0_i32_0 : i32, i32
  }
  func.func @transform_3(%arg0: i32) -> (i32, i32) {
    %c0_i32 = arith.constant 0 : i32
    %c0_i32_0 = arith.constant 0 : i32
    %c0_i32_1 = arith.constant 0 : i32
    return %c0_i32, %c0_i32_0 : i32, i32
  }
  func.func @transform_4(%arg0: i32) -> (i32, i32) {
    %c0_i32 = arith.constant 0 : i32
    %c0_i32_0 = arith.constant 0 : i32
    return %arg0, %c0_i32 : i32, i32
  }
  func.func @transform_5(%arg0: i32) -> (i32, i32) {
    %c0_i32 = arith.constant 0 : i32
    %c0_i32_0 = arith.constant 0 : i32
    return %arg0, %c0_i32 : i32, i32
  }
  func.func @transform_6(%arg0: i32) -> (i32, i32, i32) {
    %c0_i32 = arith.constant 0 : i32
    %c0_i32_0 = arith.constant 0 : i32
    %c0_i32_1 = arith.constant 0 : i32
    return %arg0, %c0_i32, %c0_i32_0 : i32, i32, i32
  }
}

</mosaic_0001>

<bundles_post_ra>
// kernel: _lambda_.53
= control target key start
LH: loop header
LB: loop body
LE: loop exit
PB: predicated region body
PF: predicated region fallthrough
CT: control target
= control target key end

     0   :  { %s1946_s18 = smov 0   ;;  %s2494_s0 = inlined_call_operand.vmem [shape: bf16[512,256], index: 0, kind: input, shape index: {}]   ;;  %s2495_s1 = inlined_call_operand.vmem [shape: bf16[256,128], index: 1, kind: input, shape index: {}]   ;;  %s2496_s2 = inlined_call_operand.vmem [shape: f32[1,128], index: 2, kind: input, shape index: {}]   ;;  %s2497_s3 = inlined_call_operand.vmem [shape: f32[1,128], index: 3, kind: input, shape index: {}]   ;;  %s2498_s4 = inlined_call_operand.vmem [shape: bf16[512,128], index: 4, kind: output, shape index: {0}]   ;;  %s2499_s5 = inlined_call_operand.vmem [shape: f32[2,8,128], index: 5, kind: output, shape index: {1}]  }
   0x1 LB: > { %s1952_s19 = sadd.s32 4294967295, %s1913_s18   ;;  %p1369_p0 = scmp.ge.s32.totalorder %s1913_s18, 1  ;;  %s1913_s18 = sphi %s1946_s18, %s16_s18  }
   0x2   : > { %p192_p1 = scmp.lt.s32.totalorder %s1913_s18, 3 }
   0x4   : > { %p193_p2 = pnand %p1369_p0, %p192_p1 }
   0x5   : > { %v1843_v0 = vld [vmem:[%s2495_s1 + $0x40] sm:$0xff] (!%p193_p2)   ;;  %s1370_s22 = sshll.u32 (!%p193_p2), %s1952_s19, 5  ;;  %v1845_v2 = vld [vmem:[%s2495_s1 + $0x48] sm:$0xff] (!%p193_p2)   ;;  %v1847_v4 = vld [vmem:[%s2495_s1 + $0x50] sm:$0xff] (!%p193_p2)   ;;  %v803_v48 = vlaneseq (!%p193_p2)  ;;  %s1426_s10 = sshll.u32 (!%p193_p2), %s1952_s19, 8 }
   0x6   : > { %196 = sbr.rel (%p193_p2) target bundleno = 575 (0x23f), region = 36  ;;  %v1844_v1 = vld [vmem:[%s2495_s1] sm:$0xff] (!%p193_p2)   ;;  %1623 = vmatprep.subr.bf16.mxu0 (!%p193_p2), %v1843_v0  ;;  %1818 = vmatprep.subr.bf16.mxu1 (!%p193_p2), %v1843_v0  ;;  %v1846_v3 = vld [vmem:[%s2495_s1 + $0x8] sm:$0xff] (!%p193_p2)   ;;  %p226_p3 = scmp.lt.s32.totalorder (!%p193_p2), %s1370_s22, 63  ;;  %v1848_v5 = vld [vmem:[%s2495_s1 + $0x10] sm:$0xff] (!%p193_p2)   ;;  %v2049_v51 = vstv (!%p193_p2), %s1426_s10 }
   0x7   : > { %1624 = vmatpush3.bf16.msra.mxu0 (!%p193_p2), %v1844_v1  ;;  %1826 = vmatpush3.bf16.msra.mxu1 (!%p193_p2), %v1844_v1  ;;  %v1849_v6 = vld [vmem:[%s2495_s1 + $0x58] sm:$0xff] (!%p193_p2)   ;;  %v1851_v8 = vld [vmem:[%s2495_s1 + $0x60] sm:$0xff] (!%p193_p2)   ;;  %v1853_v10 = vld [vmem:[%s2495_s1 + $0x68] sm:$0xff] (!%p193_p2)   ;;  %v2045_v49 = vshrl.u32 (!%p193_p2), %v803_v48, 7  ;;  %v1190_v60 = vand.u32 (!%p193_p2), 127, %v803_v48  ;;  %p238_p4 = scmp.lt.s32.totalorder (!%p193_p2), %s1952_s19, 1 }
   0x8   : > { %1625 = vmatprep.subr.bf16.mxu0 (!%p193_p2), %v1845_v2  ;;  %1819 = vmatprep.subr.bf16.mxu1 (!%p193_p2), %v1845_v2  ;;  %v1850_v7 = vld [vmem:[%s2495_s1 + $0x18] sm:$0xff] (!%p193_p2)   ;;  %v1852_v9 = vld [vmem:[%s2495_s1 + $0x20] sm:$0xff] (!%p193_p2)   ;;  %v1854_v12 = vld [vmem:[%s2495_s1 + $0x28] sm:$0xff] (!%p193_p2)  }
   0x9   : > { %v1855_v13 = vld [vmem:[%s2495_s1 + $0x70] sm:$0xff] (!%p193_p2)   ;;  %v1857_v15 = vld [vmem:[%s2495_s1 + $0x78] sm:$0xff] (!%p193_p2)   ;;  %v805_v50 = vadd.s32 (!%p193_p2), 8, %v2045_v49  ;;  %v822_v52 = vadd.s32 (!%p193_p2), 144, %v2045_v49  ;;  %v823_v53 = vadd.s32 (!%p193_p2), 152, %v2045_v49  ;;  %v2055_v54 = vadd.s32 (!%p193_p2), %v2049_v51, %v2045_v49 }
   0xa   : > { %v1856_v14 = vld [vmem:[%s2495_s1 + $0x30] sm:$0xff] (!%p193_p2)   ;;  %v1858_v17 = vld [vmem:[%s2495_s1 + $0x38] sm:$0xff] (!%p193_p2)   ;;  %v1191_v61 = vadd.s32 (!%p193_p2), 128, %v1190_v60  ;;  %v1194_v62 = vmul.u32 (!%p193_p2), 256, %v2045_v49  ;;  %v1192_v0 = vadd.s32 (!%p193_p2), %v1190_v60, %v2049_v51  ;;  %vm1195_vm6 = vcmp.lt.s32.totalorder (!%p193_p2), %v2045_v49, 2 }
   0xb   : > { %1626 = vmatpush3.bf16.msra.mxu0 (!%p193_p2), %v1846_v3  ;;  %1827 = vmatpush3.bf16.msra.mxu1 (!%p193_p2), %v1846_v3  ;;  %v2058_v55 = vadd.s32 (!%p193_p2), %v2049_v51, %v805_v50  ;;  %v2061_v56 = vadd.s32 (!%p193_p2), %v2049_v51, %v822_v52  ;;  %v2064_v57 = vadd.s32 (!%p193_p2), %v2049_v51, %v823_v53  ;;  %vm869_vm0 = vcmp.lt.s32.totalorder (!%p193_p2), %v2055_v54, 512 }
   0xc   : > { %1627 = vmatprep.subr.bf16.mxu0 (!%p193_p2), %v1847_v4  ;;  %1820 = vmatprep.subr.bf16.mxu1 (!%p193_p2), %v1847_v4  ;;  %v1193_v63 = vadd.s32 (!%p193_p2), %v1191_v61, %v2049_v51  ;;  %v1200_v1 = vadd.s32 (!%p193_p2), 256, %v1194_v62  ;;  %vm1196_vm8 = vcmp.ge.s32.totalorder (!%p193_p2), %v1192_v0, %v1194_v62  ;;  %v2511_v3 = vmov (!%p193_p2), 1.0  }
   0xd   : > { %s2543_s22 = smov (!%p226_p3, %s1370_s22), 63  ;;  %vm870_vm1 = vcmp.lt.s32.totalorder %v2058_v55, 512  ;;  %vm887_vm3 = vcmp.lt.s32.totalorder %v2061_v56, 512  ;;  %vm888_vm4 = vcmp.lt.s32.totalorder %v2064_v57, 512  ;;  %vm1198_vm12 = vmand %vm1195_vm6, %vm1196_vm8  ;;  %v806_v4 = vadd.s32 16, %v2045_v49  ;;  %s2545_s19 = smov (!%p238_p4, %s1952_s19), 1 }
   0xe   : > { %s1495_s12 = sshll.u32 %s2543_s22, 3  ;;  %vm2072_vm2 = vmpackc.low %vm870_vm1, %vm869_vm0  ;;  %vm1197_vm7 = vcmp.ge.s32.totalorder %v1193_v63, %v1194_v62  ;;  %vm1201_vm10 = vcmp.lt.s32.totalorder %v1192_v0, %v1200_v1  ;;  %vm1202_vm11 = vcmp.lt.s32.totalorder %v1193_v63, %v1200_v1  ;;  %s1374_s15 = sshll.u32 %s2543_s22, 2  ;;  %v826_v60 = vadd.s32 176, %v2045_v49 }
   0xf   : > { %1628 = vmatpush3.bf16.msra.mxu0 %v1848_v5  ;;  %1828 = vmatpush3.bf16.msra.mxu1 %v1848_v5  ;;  %s1990_s17 = scalar_lea.vmem %s2494_s0, %s1495_s12  ;;  %vm2082_vm5 = vmpackc.low %vm888_vm4, %vm887_vm3  ;;  %s1375_s20 = sshll.u32 %s2545_s19, 3 }
  0x10   : > { %1629 = vmatprep.subr.bf16.mxu0 %v1849_v6  ;;  %1821 = vmatprep.subr.bf16.mxu1 %v1849_v6  ;;  %v1861_v11 = vld [vmem:[%s1990_s17 + $0x4] ss:$8 sps:$4 sm:$0xff]   ;;  %v1879_v16 = vld [vmem:[%s1990_s17 + $0x94] ss:$8 sps:$4 sm:$0xff]   ;;  %v1859_v18 = vld [vmem:[%s1990_s17] ss:$8 sps:$4 sm:$0xff]   ;;  %s241_s24 = scalar_lea.vmem %s2499_s5, %s1375_s20 }
  0x11   : > { %595 = vmatprep.mubr.bf16.mxu0 %v1861_v11  ;;  %667 = vmatprep.mubr.bf16.mxu1 %v1879_v16  ;;  %v1862_v19 = vld [vmem:[%s1990_s17 + $0x14] ss:$8 sps:$4 sm:$0xff]   ;;  %v1877_v20 = vld [vmem:[%s1990_s17 + $0x90] ss:$8 sps:$4 sm:$0xff]   ;;  %v1883_v21 = vld [vmem:[%s1990_s17 + $0xa4] ss:$8 sps:$4 sm:$0xff]  }
  0x12   : > { %v1864_v22 = vld [vmem:[%s1990_s17 + $0x10] ss:$8 sps:$4 sm:$0xff]   ;;  %v1865_v23 = vld [vmem:[%s1990_s17 + $0x24] ss:$8 sps:$4 sm:$0xff]   ;;  %v1885_v24 = vld [vmem:[%s1990_s17 + $0xa0] ss:$8 sps:$4 sm:$0xff]  }
  0x13   : > { %1630 = vmatpush3.bf16.msra.mxu0 %v1850_v7  ;;  %1829 = vmatpush3.bf16.msra.mxu1 %v1850_v7  ;;  %v1889_v25 = vld [vmem:[%s1990_s17 + $0xb4] ss:$8 sps:$4 sm:$0xff]   ;;  %v1867_v26 = vld [vmem:[%s1990_s17 + $0x20] ss:$8 sps:$4 sm:$0xff]   ;;  %v1891_v28 = vld [vmem:[%s1990_s17 + $0xb0] ss:$8 sps:$4 sm:$0xff]  }
  0x14   : > { %1631 = vmatprep.subr.bf16.mxu0 %v1851_v8  ;;  %1822 = vmatprep.subr.bf16.mxu1 %v1851_v8  ;;  %v1868_v27 = vld [vmem:[%s1990_s17 + $0x34] ss:$8 sps:$4 sm:$0xff]   ;;  %v1895_v29 = vld [vmem:[%s1990_s17 + $0xc4] ss:$8 sps:$4 sm:$0xff]   ;;  %v1870_v30 = vld [vmem:[%s1990_s17 + $0x30] ss:$8 sps:$4 sm:$0xff]  }
  0x15   : > { %v1871_v31 = vld [vmem:[%s1990_s17 + $0x44] ss:$8 sps:$4 sm:$0xff]   ;;  %v1897_v32 = vld [vmem:[%s1990_s17 + $0xc0] ss:$8 sps:$4 sm:$0xff]   ;;  %v1898_v33 = vld [vmem:[%s1990_s17 + $0xd4] ss:$8 sps:$4 sm:$0xff]  }
  0x16   : > { %v1873_v34 = vld [vmem:[%s1990_s17 + $0x40] ss:$8 sps:$4 sm:$0xff]   ;;  %v1874_v35 = vld [vmem:[%s1990_s17 + $0x54] ss:$8 sps:$4 sm:$0xff]   ;;  %v1900_v36 = vld [vmem:[%s1990_s17 + $0xd0] ss:$8 sps:$4 sm:$0xff]  }
  0x17   : > { %1632 = vmatpush3.bf16.msra.mxu0 %v1852_v9  ;;  %1830 = vmatpush3.bf16.msra.mxu1 %v1852_v9  ;;  %v1901_v37 = vld [vmem:[%s1990_s17 + $0xe4] ss:$8 sps:$4 sm:$0xff]   ;;  %v1876_v38 = vld [vmem:[%s1990_s17 + $0x50] ss:$8 sps:$4 sm:$0xff]   ;;  %v1903_v40 = vld [vmem:[%s1990_s17 + $0xe0] ss:$8 sps:$4 sm:$0xff]  }
  0x18   : > { %1633 = vmatprep.subr.bf16.mxu0 %v1853_v10  ;;  %1823 = vmatprep.subr.bf16.mxu1 %v1853_v10  ;;  %v1880_v39 = vld [vmem:[%s1990_s17 + $0x64] ss:$8 sps:$4 sm:$0xff]   ;;  %v1904_v41 = vld [vmem:[%s1990_s17 + $0xf4] ss:$8 sps:$4 sm:$0xff]   ;;  %v1882_v42 = vld [vmem:[%s1990_s17 + $0x60] ss:$8 sps:$4 sm:$0xff]  }
  0x19   : > { %v1886_v43 = vld [vmem:[%s1990_s17 + $0x74] ss:$8 sps:$4 sm:$0xff]   ;;  %v1906_v44 = vld [vmem:[%s1990_s17 + $0xf0] ss:$8 sps:$4 sm:$0xff]   ;;  %v1892_v46 = vld [vmem:[%s1990_s17 + $0x84] ss:$8 sps:$4 sm:$0xff]  }
  0x1a   : > { %v1888_v45 = vld [vmem:[%s1990_s17 + $0x70] ss:$8 sps:$4 sm:$0xff]   ;;  %v1894_v47 = vld [vmem:[%s1990_s17 + $0x80] ss:$8 sps:$4 sm:$0xff]   ;;  %vm1199_vm9 = vmand %vm1195_vm6, %vm1197_vm7  ;;  %v807_v9 = vadd.s32 24, %v2045_v49  ;;  %s2160_s17 = scalar_lea.vmem %s2498_s4, %s1374_s15 }
  0x1b   : > { %1634 = vmatpush3.bf16.msra.mxu0 %v1854_v12  ;;  %1831 = vmatpush3.bf16.msra.mxu1 %v1854_v12  ;;  %vm2090_vm13 = vmand %vm1198_vm12, %vm1201_vm10  ;;  %v2099_v7 = vld [vmem:[%s2496_s2] ss:$0 sm:$0xff] }
  0x1c   : > { %1635 = vmatprep.subr.bf16.mxu0 %v1855_v13  ;;  %1824 = vmatprep.subr.bf16.mxu1 %v1855_v13  ;;  %vm1204_vm14 = vmand %vm1199_vm9, %vm1202_vm11  ;;  %v2105_v13 = vld [vmem:[%s2497_s3] ss:$0 sm:$0xff] }
  0x1f   : > { %1636 = vmatpush3.bf16.msra.mxu0 %v1856_v14  ;;  %1832 = vmatpush3.bf16.msra.mxu1 %v1856_v14 }
  0x20   : > { %1637 = vmatprep.subr.bf16.mxu0 %v1857_v15  ;;  %1825 = vmatprep.subr.bf16.mxu1 %v1857_v15 }
  0x23   : > { %1638 = vmatpush3.bf16.msra.mxu0 %v1858_v17  ;;  %1833 = vmatpush3.bf16.msra.mxu1 %v1858_v17  ;;  %v2108_v17 = vadd.s32 %v2049_v51, %v806_v4 }
  0x25   : > { %vm871_vm15 = vcmp.lt.s32.totalorder %v2108_v17, 512 }
  0x26   : > { %596 = vmatmul.mubr.bf16.vlgmr.msra.gmra.mrb[0].mxu0 %v1859_v18  ;;  %668 = vmatmul.mubr.bf16.vlgmr.msra.gmra.mrb[0].mxu1 %v1877_v20  ;;  %v808_v18 = vadd.s32 32, %v2045_v49 }
  0x27   : > { %603 = vmatprep.mubr.bf16.mxu0 %v1862_v19  ;;  %675 = vmatprep.mubr.bf16.mxu1 %v1883_v21  ;;  %v809_v19 = vadd.s32 40, %v2045_v49 }
  0x2e   : > { %604 = vmatmul.mubr.bf16.gmra.mrb[4].mxu0 %v1864_v22  ;;  %676 = vmatmul.mubr.bf16.gmra.mrb[4].mxu1 %v1885_v24  ;;  %v811_v24 = vadd.s32 56, %v2045_v49 }
  0x2f   : > { %611 = vmatprep.mubr.bf16.mxu0 %v1865_v23  ;;  %683 = vmatprep.mubr.bf16.mxu1 %v1889_v25  ;;  %v810_v23 = vadd.s32 48, %v2045_v49 }
  0x36   : > { %612 = vmatmul.mubr.bf16.gmra.mrb[8].mxu0 %v1867_v26  ;;  %684 = vmatmul.mubr.bf16.gmra.mrb[8].mxu1 %v1891_v28  ;;  %v824_v28 = vadd.s32 160, %v2045_v49 }
  0x37   : > { %619 = vmatprep.mubr.bf16.mxu0 %v1868_v27  ;;  %691 = vmatprep.mubr.bf16.mxu1 %v1895_v29  ;;  %v2117_v27 = vadd.s32 %v2049_v51, %v807_v9 }
  0x39   : > { %vm872_vm6 = vcmp.lt.s32.totalorder %v2117_v27, 512 }
  0x3e   : > { %620 = vmatmul.mubr.bf16.gmra.mrb[12].mxu0 %v1870_v30  ;;  %692 = vmatmul.mubr.bf16.gmra.mrb[12].mxu1 %v1897_v32 }
  0x3f   : > { %627 = vmatprep.mubr.bf16.mxu0 %v1871_v31  ;;  %699 = vmatprep.mubr.bf16.mxu1 %v1898_v33  ;;  %v825_v31 = vadd.s32 168, %v2045_v49 }
  0x41   : > { %v2147_v53 = vadd.s32 %v2049_v51, %v825_v31 }
  0x46   : > { %628 = vmatmul.mubr.bf16.gmra.mrb[16].mxu0 %v1873_v34  ;;  %700 = vmatmul.mubr.bf16.gmra.mrb[16].mxu1 %v1900_v36  ;;  %v2126_v34 = vadd.s32 %v2049_v51, %v808_v18  ;;  %v827_v18 = vadd.s32 184, %v2045_v49 }
  0x47   : > { %635 = vmatprep.mubr.bf16.mxu0 %v1874_v35  ;;  %707 = vmatprep.mubr.bf16.mxu1 %v1901_v37  ;;  %v2129_v35 = vadd.s32 %v2049_v51, %v809_v19 }
  0x4e   : > { %636 = vmatmul.mubr.bf16.gmra.mrb[20].mxu0 %v1876_v38  ;;  %708 = vmatmul.mubr.bf16.gmra.mrb[20].mxu1 %v1903_v40  ;;  %v2137_v40 = vadd.s32 %v2049_v51, %v811_v24 }
  0x4f   : > { %643 = vmatprep.mubr.bf16.mxu0 %v1880_v39  ;;  %715 = vmatprep.mubr.bf16.mxu1 %v1904_v41  ;;  %v2134_v39 = vadd.s32 %v2049_v51, %v810_v23 }
  0x50   : > { %vm2503_vm10 = vcmp.lt.s32.totalorder %v2137_v40, 512 }
  0x51   : > { %vm875_vm8 = vcmp.lt.s32.totalorder %v2134_v39, 512 }
  0x56   : > { %644 = vmatmul.mubr.bf16.gmra.mrb[24].mxu0 %v1882_v42  ;;  %716 = vmatmul.mubr.bf16.gmra.mrb[24].mxu1 %v1906_v44 }
  0x57   : > { %651 = vmatprep.mubr.bf16.mxu0 %v1886_v43  ;;  %1491 = vmatprep.mubr.msk.f32.mxu1 %vm1204_vm14, %v2511_v3 }
  0x5e   : > { %652 = vmatmul.mubr.bf16.gmra.mrb[28].mxu0 %v1888_v45  ;;  %v2143_v45 = vadd.s32 %v2049_v51, %v824_v28 }
  0x5f   : > { %659 = vmatprep.mubr.bf16.mxu0 %v1892_v46  ;;  %v812_v46 = vadd.s32 64, %v2045_v49 }
  0x61   : > { %v2180_v57 = vadd.s32 %v2049_v51, %v812_v46 }
  0x63   : > { %vm877_vm12 = vcmp.lt.s32.totalorder %v2180_v57, 512 }
  0x66   : > { %660 = vmatmul.mubr.bf16.gmra.mrb[32].mxu0 %v1894_v47 }
  0xf9   : > { %v1639_v5 = vpop.f32.mrb[0].mxu0  ;;  %v1693_v8 = vpop.f32.mrb[0].mxu1 }
  0xfa   : > { %v1640_v6 = vpop.f32.mrb[1].mxu0  ;;  %v1694_v12 = vpop.f32.mrb[1].mxu1 }
  0xfb   : > { %v1641_v10 = vadd.f32 %v1640_v6, %v1639_v5  ;;  %v1642_v11 = vpop.f32.mrb[2].mxu0  ;;  %v1695_v15 = vadd.f32 %v1694_v12, %v1693_v8  ;;  %v1696_v16 = vpop.f32.mrb[2].mxu1 }
  0xfc   : > { %v1643_v14 = vpop.f32.mrb[3].mxu0  ;;  %v1697_v22 = vpop.f32.mrb[3].mxu1 }
  0xfd   : > { %v731_v20 = vmul.f32 %v1641_v10, %v2099_v7  ;;  %v1644_v21 = vadd.f32 %v1643_v14, %v1642_v11  ;;  %v749_v25 = vmul.f32 %v1695_v15, %v2099_v7  ;;  %v1698_v26 = vadd.f32 %v1697_v22, %v1696_v16 }
  0xff   : > { %v770_v29 = vadd.f32 %v2105_v13, %v731_v20  ;;  %v732_v30 = vmul.f32 %v1644_v21, %v2099_v7  ;;  %v788_v32 = vadd.f32 %v2105_v13, %v749_v25  ;;  %v750_v33 = vmul.f32 %v1698_v26, %v2099_v7 }
 0x100   : > { %v813_v21 = vadd.s32 72, %v2045_v49 }
 0x101   : > { %v901_v36 = vmax.f32 %v770_v29, 0.0  ;;  %v771_v37 = vadd.f32 %v2105_v13, %v732_v30  ;;  %v1645_v38 = vpop.f32.mrb[4].mxu0  ;;  %v919_v42 = vmax.f32 %v788_v32, 0.0  ;;  %v789_v43 = vadd.f32 %v2105_v13, %v750_v33  ;;  %v1699_v44 = vpop.f32.mrb[4].mxu1 }
 0x102   : > { %v1646_v41 = vpop.f32.mrb[5].mxu0  ;;  %v1700_v52 = vpop.f32.mrb[5].mxu1  ;;  %v2187_v30 = vadd.s32 %v2049_v51, %v826_v60 }
 0x103   : > { %v902_v47 = vmax.f32 %v771_v37, 0.0  ;;  %v1647_v48 = vadd.f32 %v1646_v41, %v1645_v38  ;;  %v1648_v50 = vpop.f32.mrb[6].mxu0  ;;  %v920_v62 = vmax.f32 %v789_v43, 0.0  ;;  %v1701_v63 = vadd.f32 %v1700_v52, %v1699_v44  ;;  %v1702_v0 = vpop.f32.mrb[6].mxu1 }
 0x104   : > { %v1649_v61 = vpop.f32.mrb[7].mxu0  ;;  %v997_v1 = vsel %vm869_vm0, %v901_v36, 0.0  ;;  %v1015_v4 = vsel %vm887_vm3, %v919_v42, 0.0  ;;  %v1703_v9 = vpop.f32.mrb[7].mxu1  ;;  %vm889_vm0 = vcmp.lt.s32.totalorder %v2143_v45, 512  ;;  %vm890_vm3 = vcmp.lt.s32.totalorder %v2147_v53, 512 }
 0x105   : > { %v2154_v5 = vpack.c.bf16 %v902_v47, %v901_v36  ;;  %v733_v6 = vmul.f32 %v1647_v48, %v2099_v7  ;;  %v1650_v8 = vadd.f32 %v1649_v61, %v1648_v50  ;;  %v998_v10 = vsel %vm870_vm1, %v902_v47, 0.0 }
 0x106   : > { %v2164_v54 = vpack.c.bf16 %v920_v62, %v919_v42  ;;  %v751_v56 = vmul.f32 %v1701_v63, %v2099_v7  ;;  %v1704_v11 = vadd.f32 %v1703_v9, %v1702_v0  ;;  %v1531_v12 = vpack.c.bf16 %v998_v10, %v997_v1 }
 0x107   : > { %v772_v14 = vadd.f32 %v2105_v13, %v733_v6  ;;  %v734_v15 = vmul.f32 %v1650_v8, %v2099_v7  ;;  %v1016_v16 = vsel %vm888_vm4, %v920_v62, 0.0  ;;  %vm873_vm1 = vcmp.lt.s32.totalorder %v2126_v34, 512 }
 0x108   : > { %v790_v55 = vadd.f32 %v2105_v13, %v751_v56  ;;  %v752_v19 = vmul.f32 %v1704_v11, %v2099_v7  ;;  %1532 = vst [vmem:[%s2160_s17] sm:$0xff] %v1531_v12   ;;  %v1576_v20 = vpack.c.bf16 %v1016_v16, %v1015_v4  ;;  %vm874_vm4 = vcmp.lt.s32.totalorder %v2129_v35, 512 }
 0x109   : > { %v903_v22 = vmax.f32 %v772_v14, 0.0  ;;  %v773_v23 = vadd.f32 %v2105_v13, %v734_v15  ;;  %v1651_v24 = vpop.f32.mrb[8].mxu0  ;;  %v1705_v29 = vpop.f32.mrb[8].mxu1  ;;  %v2190_v37 = vadd.s32 %v2049_v51, %v827_v18  ;;  %v828_v38 = vadd.s32 192, %v2045_v49 }
 0x10a   : > { %v1652_v25 = vpop.f32.mrb[9].mxu0  ;;  %v921_v26 = vmax.f32 %v790_v55, 0.0  ;;  %v791_v28 = vadd.f32 %v2105_v13, %v752_v19  ;;  %1616 = vst [vmem:[%s2160_s17 + $0x48] sm:$0xff] %v1576_v20   ;;  %v1706_v36 = vpop.f32.mrb[9].mxu1  ;;  %v829_v9 = vadd.s32 200, %v2045_v49  ;;  %v2214_v12 = vadd.s32 %v2049_v51, %v813_v21 }
 0x10b   : > { %v904_v31 = vmax.f32 %v773_v23, 0.0  ;;  %v1653_v32 = vadd.f32 %v1652_v25, %v1651_v24  ;;  %v1654_v33 = vpop.f32.mrb[10].mxu0  ;;  %v1707_v43 = vadd.f32 %v1706_v36, %v1705_v29  ;;  %v1708_v44 = vpop.f32.mrb[10].mxu1  ;;  %v999_v46 = vsel %vm871_vm15, %v903_v22, 0.0 }
 0x10c   : > { %v1655_v41 = vpop.f32.mrb[11].mxu0  ;;  %v922_v42 = vmax.f32 %v791_v28, 0.0  ;;  %v1017_v47 = vsel %vm889_vm0, %v921_v26, 0.0  ;;  %v1709_v60 = vpop.f32.mrb[11].mxu1  ;;  %vm891_vm7 = vcmp.lt.s32.totalorder %v2187_v30, 512  ;;  %v814_v18 = vadd.s32 80, %v2045_v49 }
 0x10d   : > { %v2197_v48 = vpack.c.bf16 %v904_v31, %v903_v22  ;;  %v735_v50 = vmul.f32 %v1653_v32, %v2099_v7  ;;  %v1656_v52 = vadd.f32 %v1655_v41, %v1654_v33  ;;  %v1000_v61 = vsel %vm872_vm6, %v904_v31, 0.0 }
 0x10e   : > { %v2202_v62 = vpack.c.bf16 %v922_v42, %v921_v26  ;;  %v753_v63 = vmul.f32 %v1707_v43, %v2099_v7  ;;  %v1710_v0 = vadd.f32 %v1709_v60, %v1708_v44  ;;  %v1536_v1 = vpack.c.bf16 %v1000_v61, %v999_v46 }
 0x10f   : > { %v774_v4 = vadd.f32 %v2105_v13, %v735_v50  ;;  %v736_v6 = vmul.f32 %v1656_v52, %v2099_v7  ;;  %v1018_v8 = vsel %vm890_vm3, %v922_v42, 0.0  ;;  %vm2500_vm9 = vcmp.lt.s32.totalorder %v2190_v37, 512 }
 0x110   : > { %v792_v10 = vadd.f32 %v2105_v13, %v753_v63  ;;  %v754_v56 = vmul.f32 %v1710_v0, %v2099_v7  ;;  %1608 = vst [vmem:[%s2160_s17 + $0x8] sm:$0xff] %v1536_v1   ;;  %v1581_v11 = vpack.c.bf16 %v1018_v8, %v1017_v47  ;;  %v2225_v21 = vadd.s32 %v2049_v51, %v828_v38 }
 0x111   : > { %v905_v14 = vmax.f32 %v774_v4, 0.0  ;;  %v775_v15 = vadd.f32 %v2105_v13, %v736_v6  ;;  %v1657_v16 = vpop.f32.mrb[12].mxu0  ;;  %v1711_v22 = vpop.f32.mrb[12].mxu1  ;;  %v2228_v28 = vadd.s32 %v2049_v51, %v829_v9  ;;  %v830_v29 = vadd.s32 208, %v2045_v49 }
 0x112   : > { %v1658_v55 = vpop.f32.mrb[13].mxu0  ;;  %v923_v19 = vmax.f32 %v792_v10, 0.0  ;;  %v793_v20 = vadd.f32 %v2105_v13, %v754_v56  ;;  %1617 = vst [vmem:[%s2160_s17 + $0x50] sm:$0xff] %v1581_v11   ;;  %v1712_v26 = vpop.f32.mrb[13].mxu1  ;;  %v831_v4 = vadd.s32 216, %v2045_v49  ;;  %v815_v10 = vadd.s32 88, %v2045_v49 }
 0x113   : > { %v906_v23 = vmax.f32 %v775_v15, 0.0  ;;  %v1659_v24 = vadd.f32 %v1658_v55, %v1657_v16  ;;  %v1660_v25 = vpop.f32.mrb[14].mxu0  ;;  %v1713_v33 = vadd.f32 %v1712_v26, %v1711_v22  ;;  %v1714_v36 = vpop.f32.mrb[14].mxu1  ;;  %v1001_v41 = vsel %vm873_vm1, %v905_v14, 0.0 }
 0x114   : > { %v1661_v31 = vpop.f32.mrb[15].mxu0  ;;  %v924_v32 = vmax.f32 %v793_v20, 0.0  ;;  %v1019_v38 = vsel %vm891_vm7, %v923_v19, 0.0  ;;  %v1715_v46 = vpop.f32.mrb[15].mxu1  ;;  %vm2501_vm11 = vcmp.lt.s32.totalorder %v2225_v21, 512  ;;  %v2256_v15 = vadd.s32 %v2049_v51, %v814_v18 }
 0x115   : > { %v2235_v42 = vpack.c.bf16 %v906_v23, %v905_v14  ;;  %v737_v43 = vmul.f32 %v1659_v24, %v2099_v7  ;;  %v1662_v44 = vadd.f32 %v1661_v31, %v1660_v25  ;;  %v1002_v47 = vsel %vm874_vm4, %v906_v23, 0.0 }
 0x116   : > { %v2240_v50 = vpack.c.bf16 %v924_v32, %v923_v19  ;;  %v755_v52 = vmul.f32 %v1713_v33, %v2099_v7  ;;  %v1716_v60 = vadd.f32 %v1715_v46, %v1714_v36  ;;  %v1541_v61 = vpack.c.bf16 %v1002_v47, %v1001_v41 }
 0x117   : > { %v776_v63 = vadd.f32 %v2105_v13, %v737_v43  ;;  %v738_v0 = vmul.f32 %v1662_v44, %v2099_v7  ;;  %v1020_v1 = vsel %vm2500_vm9, %v924_v32, 0.0  ;;  %vm2502_vm14 = vcmp.lt.s32.totalorder %v2228_v28, 512 }
 0x118   : > { %v794_v6 = vadd.f32 %v2105_v13, %v755_v52  ;;  %v756_v8 = vmul.f32 %v1716_v60, %v2099_v7  ;;  %1609 = vst [vmem:[%s2160_s17 + $0x10] sm:$0xff] %v1541_v61   ;;  %v1586_v9 = vpack.c.bf16 %v1020_v1, %v1019_v38  ;;  %vm2505_vm9 = vcmp.lt.s32.totalorder %v2214_v12, 512 }
 0x119   : > { %v907_v56 = vmax.f32 %v776_v63, 0.0  ;;  %v777_v11 = vadd.f32 %v2105_v13, %v738_v0  ;;  %v1663_v14 = vpop.f32.mrb[16].mxu0  ;;  %v1717_v20 = vpop.f32.mrb[16].mxu1  ;;  %v2263_v22 = vadd.s32 %v2049_v51, %v830_v29  ;;  %v2266_v18 = vadd.s32 %v2049_v51, %v831_v4 }
 0x11a   : > { %v1664_v16 = vpop.f32.mrb[17].mxu0  ;;  %v925_v55 = vmax.f32 %v794_v6, 0.0  ;;  %v795_v19 = vadd.f32 %v2105_v13, %v756_v8  ;;  %1618 = vst [vmem:[%s2160_s17 + $0x58] sm:$0xff] %v1586_v9   ;;  %v1718_v26 = vpop.f32.mrb[17].mxu1  ;;  %v832_v31 = vadd.s32 224, %v2045_v49  ;;  %v833_v8 = vadd.s32 232, %v2045_v49 }
 0x11b   : > { %v908_v23 = vmax.f32 %v777_v11, 0.0  ;;  %v1665_v24 = vadd.f32 %v1664_v16, %v1663_v14  ;;  %v1666_v25 = vpop.f32.mrb[18].mxu0  ;;  %v1719_v36 = vadd.f32 %v1718_v26, %v1717_v20  ;;  %v1720_v41 = vpop.f32.mrb[18].mxu1  ;;  %v1003_v38 = vsel %vm875_vm8, %v907_v56, 0.0 }
 0x11c   : > { %v1667_v32 = vpop.f32.mrb[19].mxu0  ;;  %v926_v33 = vmax.f32 %v795_v19, 0.0  ;;  %v1021_v29 = vsel %vm2501_vm11, %v925_v55, 0.0  ;;  %v1721_v47 = vpop.f32.mrb[19].mxu1  ;;  %v2290_v14 = vadd.s32 %v2049_v51, %v815_v10  ;;  %vm2504_vm11 = vcmp.lt.s32.totalorder %v2263_v22, 512 }
 0x11d   : > { %v2273_v43 = vpack.c.bf16 %v908_v23, %v907_v56  ;;  %v739_v44 = vmul.f32 %v1665_v24, %v2099_v7  ;;  %v1668_v46 = vadd.f32 %v1667_v32, %v1666_v25  ;;  %v1004_v52 = vsel %vm2503_vm10, %v908_v23, 0.0 }
 0x11e   : > { %v2278_v60 = vpack.c.bf16 %v926_v33, %v925_v55  ;;  %v757_v61 = vmul.f32 %v1719_v36, %v2099_v7  ;;  %v1722_v63 = vadd.f32 %v1721_v47, %v1720_v41  ;;  %v1546_v0 = vpack.c.bf16 %v1004_v52, %v1003_v38 }
 0x11f   : > { %v778_v1 = vadd.f32 %v2105_v13, %v739_v44  ;;  %v740_v4 = vmul.f32 %v1668_v46, %v2099_v7  ;;  %v1022_v6 = vsel %vm2502_vm14, %v926_v33, 0.0  ;;  %vm2510_vm14 = vcmp.lt.s32.totalorder %v2256_v15, 512 }
 0x120   : > { %v796_v9 = vadd.f32 %v2105_v13, %v757_v61  ;;  %v758_v56 = vmul.f32 %v1722_v63, %v2099_v7  ;;  %1610 = vst [vmem:[%s2160_s17 + $0x18] sm:$0xff] %v1546_v0   ;;  %v1591_v11 = vpack.c.bf16 %v1022_v6, %v1021_v29  ;;  %v816_v20 = vadd.s32 96, %v2045_v49 }
 0x121   : > { %v909_v16 = vmax.f32 %v778_v1, 0.0  ;;  %v779_v55 = vadd.f32 %v2105_v13, %v740_v4  ;;  %v1669_v19 = vpop.f32.mrb[20].mxu0  ;;  %v1723_v26 = vpop.f32.mrb[20].mxu1  ;;  %vm2506_vm10 = vcmp.lt.s32.totalorder %v2266_v18, 512  ;;  %v817_v10 = vadd.s32 104, %v2045_v49 }
 0x122   : > { %v1670_v23 = vpop.f32.mrb[21].mxu0  ;;  %v927_v24 = vmax.f32 %v796_v9, 0.0  ;;  %v797_v25 = vadd.f32 %v2105_v13, %v758_v56  ;;  %1619 = vst [vmem:[%s2160_s17 + $0x60] sm:$0xff] %v1591_v11   ;;  %v1724_v41 = vpop.f32.mrb[21].mxu1  ;;  %v2301_v38 = vadd.s32 %v2049_v51, %v832_v31  ;;  %v2304_v29 = vadd.s32 %v2049_v51, %v833_v8 }
 0x123   : > { %v910_v32 = vmax.f32 %v779_v55, 0.0  ;;  %v1671_v33 = vadd.f32 %v1670_v23, %v1669_v19  ;;  %v1672_v36 = vpop.f32.mrb[22].mxu0  ;;  %v1725_v47 = vadd.f32 %v1724_v41, %v1723_v26  ;;  %v1726_v52 = vpop.f32.mrb[22].mxu1  ;;  %v1005_v61 = vsel %vm877_vm12, %v909_v16, 0.0 }
 0x124   : > { %v1673_v44 = vpop.f32.mrb[23].mxu0  ;;  %v928_v46 = vmax.f32 %v797_v25, 0.0  ;;  %v1023_v63 = vsel %vm2504_vm11, %v927_v24, 0.0  ;;  %v1727_v4 = vpop.f32.mrb[23].mxu1  ;;  %v834_v23 = vadd.s32 240, %v2045_v49  ;;  %vm2508_vm11 = vcmp.lt.s32.totalorder %v2290_v14, 512 }
 0x125   : > { %v2310_v0 = vpack.c.bf16 %v910_v32, %v909_v16  ;;  %v741_v1 = vmul.f32 %v1671_v33, %v2099_v7  ;;  %v1674_v31 = vadd.f32 %v1673_v44, %v1672_v36  ;;  %v1006_v6 = vsel %vm2505_vm9, %v910_v32, 0.0 }
 0x126   : > { %v2315_v8 = vpack.c.bf16 %v928_v46, %v927_v24  ;;  %v759_v9 = vmul.f32 %v1725_v47, %v2099_v7  ;;  %v1728_v56 = vadd.f32 %v1727_v4, %v1726_v52  ;;  %v1551_v11 = vpack.c.bf16 %v1006_v6, %v1005_v61 }
 0x127   : > { %v780_v55 = vadd.f32 %v2105_v13, %v741_v1  ;;  %v742_v19 = vmul.f32 %v1674_v31, %v2099_v7  ;;  %v1024_v16 = vsel %vm2506_vm10, %v928_v46, 0.0  ;;  %vm2507_vm9 = vcmp.lt.s32.totalorder %v2301_v38, 512 }
 0x128   : > { %v798_v25 = vadd.f32 %v2105_v13, %v759_v9  ;;  %v760_v26 = vmul.f32 %v1728_v56, %v2099_v7  ;;  %1611 = vst [vmem:[%s2160_s17 + $0x20] sm:$0xff] %v1551_v11   ;;  %v1596_v24 = vpack.c.bf16 %v1024_v16, %v1023_v63  ;;  %v2330_v41 = vadd.s32 %v2049_v51, %v816_v20 }
 0x129   : > { %v911_v32 = vmax.f32 %v780_v55, 0.0  ;;  %v781_v33 = vadd.f32 %v2105_v13, %v742_v19  ;;  %v1675_v36 = vpop.f32.mrb[24].mxu0  ;;  %v1729_v52 = vpop.f32.mrb[24].mxu1  ;;  %vm2509_vm10 = vcmp.lt.s32.totalorder %v2304_v29, 512  ;;  %v2336_v61 = vadd.s32 %v2049_v51, %v817_v10 }
 0x12a   : > { %v1676_v44 = vpop.f32.mrb[25].mxu0  ;;  %v929_v46 = vmax.f32 %v798_v25, 0.0  ;;  %v799_v47 = vadd.f32 %v2105_v13, %v760_v26  ;;  %1620 = vst [vmem:[%s2160_s17 + $0x68] sm:$0xff] %v1596_v24   ;;  %v1730_v4 = vpop.f32.mrb[25].mxu1  ;;  %v835_v6 = vadd.s32 248, %v2045_v49  ;;  %v2340_v20 = vadd.s32 %v2049_v51, %v834_v23 }
 0x12b   : > { %v912_v63 = vmax.f32 %v781_v33, 0.0  ;;  %v1677_v1 = vadd.f32 %v1676_v44, %v1675_v36  ;;  %v1678_v31 = vpop.f32.mrb[26].mxu0  ;;  %v1731_v11 = vadd.f32 %v1730_v4, %v1729_v52  ;;  %v1732_v55 = vpop.f32.mrb[26].mxu1  ;;  %v1007_v19 = vsel %vm2510_vm14, %v911_v32, 0.0 }
 0x12c   : > { %v1679_v9 = vpop.f32.mrb[27].mxu0  ;;  %v930_v56 = vmax.f32 %v799_v47, 0.0  ;;  %v1025_v10 = vsel %vm2507_vm9, %v929_v46, 0.0  ;;  %v1733_v24 = vpop.f32.mrb[27].mxu1  ;;  %vm2516_vm9 = vcmp.lt.s32.totalorder %v2330_v41, 512 }
 0x12d   : > { %v2346_v16 = vpack.c.bf16 %v912_v63, %v911_v32  ;;  %v743_v25 = vmul.f32 %v1677_v1, %v2099_v7  ;;  %v1680_v26 = vadd.f32 %v1679_v9, %v1678_v31  ;;  %v1008_v23 = vsel %vm2508_vm11, %v912_v63, 0.0 }
 0x12e   : > { %v2351_v33 = vpack.c.bf16 %v930_v56, %v929_v46  ;;  %v761_v36 = vmul.f32 %v1731_v11, %v2099_v7  ;;  %v1734_v44 = vadd.f32 %v1733_v24, %v1732_v55  ;;  %v1556_v47 = vpack.c.bf16 %v1008_v23, %v1007_v19 }
 0x12f   : > { %v782_v52 = vadd.f32 %v2105_v13, %v743_v25  ;;  %v744_v4 = vmul.f32 %v1680_v26, %v2099_v7  ;;  %v1026_v32 = vsel %vm2509_vm10, %v930_v56, 0.0  ;;  %v2359_v1 = vadd.s32 %v2049_v51, %v835_v6 }
 0x130   : > { %v800_v31 = vadd.f32 %v2105_v13, %v761_v36  ;;  %v762_v46 = vmul.f32 %v1734_v44, %v2099_v7  ;;  %1612 = vst [vmem:[%s2160_s17 + $0x28] sm:$0xff] %v1556_v47   ;;  %v1601_v63 = vpack.c.bf16 %v1026_v32, %v1025_v10  ;;  %v818_v9 = vadd.s32 112, %v2045_v49 }
 0x131   : > { %v913_v11 = vmax.f32 %v782_v52, 0.0  ;;  %v783_v55 = vadd.f32 %v2105_v13, %v744_v4  ;;  %v1681_v19 = vpop.f32.mrb[28].mxu0  ;;  %vm2512_vm11 = vcmp.lt.s32.totalorder %v2340_v20, 512  ;;  %vm2515_vm10 = vcmp.lt.s32.totalorder %v2336_v61, 512 }
 0x132   : > { %v1682_v56 = vpop.f32.mrb[29].mxu0  ;;  %v931_v25 = vmax.f32 %v800_v31, 0.0  ;;  %v801_v6 = vadd.f32 %v2105_v13, %v762_v46  ;;  %1621 = vst [vmem:[%s2160_s17 + $0x70] sm:$0xff] %v1601_v63   ;;  %v819_v26 = vadd.s32 120, %v2045_v49  ;;  %vm2513_vm14 = vcmp.lt.s32.totalorder %v2359_v1, 512 }
 0x133   : > { %v914_v10 = vmax.f32 %v783_v55, 0.0  ;;  %v1683_v24 = vadd.f32 %v1682_v56, %v1681_v19  ;;  %v1684_v23 = vpop.f32.mrb[30].mxu0  ;;  %v1009_v47 = vsel %vm2516_vm9, %v913_v11, 0.0  ;;  %v2378_v4 = vadd.s32 %v2049_v51, %v818_v9 }
 0x134   : > { %v1685_v36 = vpop.f32.mrb[31].mxu0  ;;  %v932_v44 = vmax.f32 %v801_v6, 0.0  ;;  %v1027_v52 = vsel %vm2512_vm11, %v931_v25, 0.0  ;;  %v2390_v6 = vadd.s32 %v2049_v51, %v819_v26 }
 0x135   : > { %v2380_v32 = vpack.c.bf16 %v914_v10, %v913_v11  ;;  %v745_v31 = vmul.f32 %v1683_v24, %v2099_v7  ;;  %v1686_v46 = vadd.f32 %v1685_v36, %v1684_v23  ;;  %v1010_v63 = vsel %vm2515_vm10, %v914_v10, 0.0 }
 0x136   : > { %v2385_v55 = vpack.c.bf16 %v932_v44, %v931_v25  ;;  %v1561_v19 = vpack.c.bf16 %v1010_v63, %v1009_v47  ;;  %v1028_v56 = vsel %vm2513_vm14, %v932_v44, 0.0  ;;  %v821_v24 = vadd.s32 136, %v2045_v49 }
 0x137   : > { %v784_v9 = vadd.f32 %v2105_v13, %v745_v31  ;;  %v746_v11 = vmul.f32 %v1686_v46, %v2099_v7  ;;  %v1606_v3 = vpack.c.bf16 %v1028_v56, %v1027_v52  ;;  %vm2514_vm11 = vcmp.lt.s32.totalorder %v2378_v4, 512 }
 0x138   : > { %1613 = vst [vmem:[%s2160_s17 + $0x30] sm:$0xff] %v1561_v19   ;;  %v820_v44 = vadd.s32 128, %v2045_v49  ;;  %vm2517_vm14 = vcmp.lt.s32.totalorder %v2390_v6, 512  ;;  %v854_v46 = vadd.s32 %v2049_v51, %v821_v24 }
 0x139   : > { %v915_v23 = vmax.f32 %v784_v9, 0.0  ;;  %v785_v10 = vadd.f32 %v2105_v13, %v746_v11  ;;  %v1687_v25 = vpop.f32.mrb[32].mxu0  ;;  %1622 = vst [vmem:[%s2160_s17 + $0x78] sm:$0xff] %v1606_v3  }
 0x13a   : > { %v1688_v36 = vpop.f32.mrb[33].mxu0  ;;  %v853_v49 = vadd.s32 %v2049_v51, %v820_v44  ;;  %v2541_v51 = vmov 1.0  }
 0x13b   : > { %v916_v26 = vmax.f32 %v785_v10, 0.0  ;;  %v1689_v47 = vadd.f32 %v1688_v36, %v1687_v25  ;;  %v1690_v31 = vpop.f32.mrb[34].mxu0  ;;  %v1011_v63 = vsel %vm2514_vm11, %v915_v23, 0.0  ;;  %vm886_vm11 = vcmp.lt.s32.totalorder %v854_v46, 512 }
 0x13c   : > { %v1691_v52 = vpop.f32.mrb[35].mxu0  ;;  %vm885_vm10 = vcmp.lt.s32.totalorder %v853_v49, 512 }
 0x13d   : > { %v1815_v19 = vpack.c.bf16 %v916_v26, %v915_v23  ;;  %v747_v3 = vmul.f32 %v1689_v47, %v2099_v7  ;;  %v1692_v56 = vadd.f32 %v1691_v52, %v1690_v31  ;;  %v1012_v9 = vsel %vm2517_vm14, %v916_v26, 0.0  ;;  %vm1771_vm9 = vmpackc.low %vm886_vm11, %vm885_vm10 }
 0x13e   : > { %v1566_v11 = vpack.c.bf16 %v1012_v9, %v1011_v63  ;;  %vm1780_vm14 = vmpackc.low %vm872_vm6, %vm871_vm15  ;;  %vm2525_vm15 = vcmp.lt.s32.totalorder %v2137_v40, 512 }
 0x13f   : > { %v786_v10 = vadd.f32 %v2105_v13, %v747_v3  ;;  %v748_v25 = vmul.f32 %v1692_v56, %v2099_v7  ;;  %vm1792_vm6 = vmpackc.low %vm2525_vm15, %vm875_vm8  ;;  %vm2534_vm15 = vcmp.lt.s32.totalorder %v2304_v29, 512 }
 0x140   : > { %1614 = vst [vmem:[%s2160_s17 + $0x38] sm:$0xff] %v1566_v11  }
 0x141   : > { %v917_v24 = vmax.f32 %v786_v10, 0.0  ;;  %v787_v36 = vadd.f32 %v2105_v13, %v748_v25 }
 0x143   : > { %v918_v23 = vmax.f32 %v787_v36, 0.0  ;;  %v1013_v31 = vsel %vm885_vm10, %v917_v24, 0.0  ;;  %vm1783_vm10 = vmpackc.low %vm890_vm3, %vm889_vm0  ;;  %vm2526_vm0 = vcmp.lt.s32.totalorder %v2225_v21, 512  ;;  %vm2527_vm3 = vcmp.lt.s32.totalorder %v2228_v28, 512 }
 0x145   : > { %v1770_v47 = vpack.c.bf16 %v918_v23, %v917_v24  ;;  %v1014_v52 = vsel %vm886_vm11, %v918_v23, 0.0  ;;  %vm1795_vm11 = vmpackc.low %vm2527_vm3, %vm2526_vm0  ;;  %vm2536_vm0 = vcmp.lt.s32.totalorder %v2336_v61, 512 }
 0x146   : > { %v1571_v26 = vpack.c.bf16 %v1014_v52, %v1013_v31 }
 0x147   : > { %1772 = vmatprep.subr.msk.bf16.mxu1 %vm1771_vm9, %v1770_v47 }
 0x148   : > { %1615 = vst [vmem:[%s2160_s17 + $0x40] sm:$0xff] %v1571_v26   ;;  %1775 = vmatpush3.bf16.msk.msra.mxu1 %vm2072_vm2, %v2154_v5  ;;  %vm1786_vm2 = vmpackc.low %vm874_vm4, %vm873_vm1  ;;  %vm2528_vm1 = vcmp.lt.s32.totalorder %v2214_v12, 512 }
 0x149   : > { %1778 = vmatprep.subr.msk.bf16.mxu1 %vm2082_vm5, %v2164_v54  ;;  %vm2524_vm5 = vcmp.lt.s32.totalorder %v2190_v37, 512  ;;  %vm1798_vm4 = vmpackc.low %vm2528_vm1, %vm877_vm12  ;;  %vm2538_vm1 = vcmp.lt.s32.totalorder %v2359_v1, 512 }
 0x14a   : > { %vm1789_vm9 = vmpackc.low %vm2524_vm5, %vm891_vm7  ;;  %vm2529_vm7 = vcmp.lt.s32.totalorder %v2263_v22, 512 }
 0x14c   : > { %1781 = vmatpush3.bf16.msk.msra.mxu1 %vm1780_vm14, %v2197_v48  ;;  %vm2530_vm14 = vcmp.lt.s32.totalorder %v2266_v18, 512 }
 0x14d   : > { %1784 = vmatprep.subr.msk.bf16.mxu1 %vm1783_vm10, %v2202_v62  ;;  %vm1801_vm8 = vmpackc.low %vm2530_vm14, %vm2529_vm7  ;;  %vm2531_vm10 = vcmp.lt.s32.totalorder %v2256_v15, 512  ;;  %vm2539_vm7 = vcmp.lt.s32.totalorder %v2378_v4, 512  ;;  %vm2540_vm14 = vcmp.lt.s32.totalorder %v2390_v6, 512 }
 0x150   : > { %1787 = vmatpush3.bf16.msk.msra.mxu1 %vm1786_vm2, %v2235_v42  ;;  %vm2532_vm2 = vcmp.lt.s32.totalorder %v2290_v14, 512 }
 0x151   : > { %1790 = vmatprep.subr.msk.bf16.mxu1 %vm1789_vm9, %v2240_v50  ;;  %vm1804_vm5 = vmpackc.low %vm2532_vm2, %vm2531_vm10  ;;  %vm2533_vm9 = vcmp.lt.s32.totalorder %v2301_v38, 512 }
 0x152   : > { %vm1807_vm12 = vmpackc.low %vm2534_vm15, %vm2533_vm9 }
 0x154   : > { %1793 = vmatpush3.bf16.msk.msra.mxu1 %vm1792_vm6, %v2273_v43  ;;  %vm2535_vm6 = vcmp.lt.s32.totalorder %v2330_v41, 512 }
 0x155   : > { %1796 = vmatprep.subr.msk.bf16.mxu1 %vm1795_vm11, %v2278_v60  ;;  %vm1810_vm3 = vmpackc.low %vm2536_vm0, %vm2535_vm6  ;;  %vm2537_vm11 = vcmp.lt.s32.totalorder %v2340_v20, 512 }
 0x158   : > { %1799 = vmatpush3.bf16.msk.msra.mxu1 %vm1798_vm4, %v2310_v0  ;;  %vm1813_vm4 = vmpackc.low %vm2538_vm1, %vm2537_vm11 }
 0x159   : > { %1802 = vmatprep.subr.msk.bf16.mxu1 %vm1801_vm8, %v2315_v8  ;;  %vm1816_vm8 = vmpackc.low %vm2540_vm14, %vm2539_vm7 }
 0x15c   : > { %1805 = vmatpush3.bf16.msk.msra.mxu1 %vm1804_vm5, %v2346_v16 }
 0x15d   : > { %1808 = vmatprep.subr.msk.bf16.mxu1 %vm1807_vm12, %v2351_v33 }
 0x160   : > { %1811 = vmatpush3.bf16.msk.msra.mxu1 %vm1810_vm3, %v2380_v32 }
 0x161   : > { %1814 = vmatprep.subr.msk.bf16.mxu1 %vm1813_vm4, %v2385_v55 }
 0x164   : > { %1817 = vmatpush3.bf16.msk.msra.mxu1 %vm1816_vm8, %v1815_v19 }
 0x167   : > { %1492 = vmatmul.mubr.msk.f32.vlgmr.msra.gmra.mrb[28].mxu1 %vm2090_vm13, %v2541_v51 }
 0x23a   : > { %v1767_v58 = vpop.f32.mrb[28].mxu1 }
 0x23b   : > { %v1768_v59 = vpop.f32.mrb[29].mxu1 }
 0x23c   : > { %v1769_v7 = vadd.f32 %v1768_v59, %v1767_v58 }
 0x23e   : > { %1277 = vst [vmem:[%s241_s24] sm:$0xff] %v1769_v7 }
 0x23f PF: > { %s16_s18 = sadd.s32 1, %s1913_s18  }
 0x240   : > { %p13_p5 = scmp.ge.s32.totalorder %s16_s18, 4  }
 0x242   :  { %15 = sbr.rel (!%p13_p5) target bundleno = 1 (0x1), region = 78 }

// kernel: _lambda_.54
= control target key start
LH: loop header
LB: loop body
LE: loop exit
PB: predicated region body
PF: predicated region fallthrough
CT: control target
= control target key end

     0   :  { %s1005_s1 = inlined_call_operand.vmem [shape: bf16[128,128], index: 1, kind: input, shape index: {}]   ;;  %s1006_s0 = inlined_call_operand.vmem [shape: bf16[128,128], index: 0, kind: input, shape index: {}]   ;;  %s1007_s2 = inlined_call_operand.vmem [shape: f32[1,128], index: 2, kind: input, shape index: {}]   ;;  %s1008_s3 = inlined_call_operand.vmem [shape: f32[1,128], index: 3, kind: input, shape index: {}]   ;;  %s1009_s4 = inlined_call_operand.vmem [shape: bf16[2,128,128], index: 4, kind: output, shape index: {}]  }
   0x1   :  { %v826_v0 = vld [vmem:[%s1005_s1] sm:$0xff]   ;;  %v827_v1 = vld [vmem:[%s1005_s1 + $0x8] sm:$0xff]   ;;  %v828_v2 = vld [vmem:[%s1005_s1 + $0x10] sm:$0xff]  }
   0x2   :  { %778 = vmatprep.subr.bf16.mxu0 %v826_v0  ;;  %810 = vmatprep.subr.bf16.mxu1 %v826_v0  ;;  %v829_v3 = vld [vmem:[%s1005_s1 + $0x18] sm:$0xff]   ;;  %v834_v4 = vld [vmem:[%s1006_s0] sm:$0xff]   ;;  %v831_v7 = vld [vmem:[%s1005_s1 + $0x28] sm:$0xff]  }
   0x3   :  { %779 = vmatpush3.bf16.msra.mxu0 %v826_v0  ;;  %818 = vmatpush3.bf16.msra.mxu1 %v826_v0  ;;  %v835_v5 = vld [vmem:[%s1006_s0 + $0x20] sm:$0xff]   ;;  %v832_v8 = vld [vmem:[%s1005_s1 + $0x30] sm:$0xff]   ;;  %v833_v9 = vld [vmem:[%s1005_s1 + $0x38] sm:$0xff]  }
   0x4   :  { %780 = vmatprep.subr.bf16.mxu0 %v827_v1  ;;  %811 = vmatprep.subr.bf16.mxu1 %v827_v1  ;;  %v830_v6 = vld [vmem:[%s1005_s1 + $0x20] sm:$0xff]   ;;  %v836_v10 = vld [vmem:[%s1006_s0 + $0x8] sm:$0xff]   ;;  %v838_v12 = vld [vmem:[%s1006_s0 + $0x10] sm:$0xff]  }
   0x5   :  { %794 = vmatprep.mubr.bf16.mxu0 %v834_v4  ;;  %802 = vmatprep.mubr.bf16.mxu1 %v835_v5  ;;  %v837_v11 = vld [vmem:[%s1006_s0 + $0x28] sm:$0xff]   ;;  %v839_v13 = vld [vmem:[%s1006_s0 + $0x30] sm:$0xff]   ;;  %v840_v14 = vld [vmem:[%s1006_s0 + $0x18] sm:$0xff]  }
   0x6   :  { %v841_v15 = vld [vmem:[%s1006_s0 + $0x38] sm:$0xff]   ;;  %v918_v16 = vld [vmem:[%s1007_s2] ss:$0 sm:$0xff] }
   0x7   :  { %781 = vmatpush3.bf16.msra.mxu0 %v827_v1  ;;  %819 = vmatpush3.bf16.msra.mxu1 %v827_v1  ;;  %v923_v18 = vld [vmem:[%s1008_s3] ss:$0 sm:$0xff] }
   0x8   :  { %782 = vmatprep.subr.bf16.mxu0 %v828_v2  ;;  %812 = vmatprep.subr.bf16.mxu1 %v828_v2 }
   0xb   :  { %783 = vmatpush3.bf16.msra.mxu0 %v828_v2  ;;  %820 = vmatpush3.bf16.msra.mxu1 %v828_v2 }
   0xc   :  { %784 = vmatprep.subr.bf16.mxu0 %v829_v3  ;;  %813 = vmatprep.subr.bf16.mxu1 %v829_v3 }
   0xf   :  { %785 = vmatpush3.bf16.msra.mxu0 %v829_v3  ;;  %821 = vmatpush3.bf16.msra.mxu1 %v829_v3 }
  0x10   :  { %786 = vmatprep.subr.bf16.mxu0 %v830_v6  ;;  %814 = vmatprep.subr.bf16.mxu1 %v830_v6 }
  0x13   :  { %787 = vmatpush3.bf16.msra.mxu0 %v830_v6  ;;  %822 = vmatpush3.bf16.msra.mxu1 %v830_v6 }
  0x14   :  { %788 = vmatprep.subr.bf16.mxu0 %v831_v7  ;;  %815 = vmatprep.subr.bf16.mxu1 %v831_v7 }
  0x17   :  { %789 = vmatpush3.bf16.msra.mxu0 %v831_v7  ;;  %823 = vmatpush3.bf16.msra.mxu1 %v831_v7 }
  0x18   :  { %790 = vmatprep.subr.bf16.mxu0 %v832_v8  ;;  %816 = vmatprep.subr.bf16.mxu1 %v832_v8 }
  0x1b   :  { %791 = vmatpush3.bf16.msra.mxu0 %v832_v8  ;;  %824 = vmatpush3.bf16.msra.mxu1 %v832_v8 }
  0x1c   :  { %792 = vmatprep.subr.bf16.mxu0 %v833_v9  ;;  %817 = vmatprep.subr.bf16.mxu1 %v833_v9 }
  0x1f   :  { %793 = vmatpush3.bf16.msra.mxu0 %v833_v9  ;;  %825 = vmatpush3.bf16.msra.mxu1 %v833_v9 }
  0x22   :  { %795 = vmatmul.mubr.bf16.vlgmr.msra.gmra.mrb[0].mxu0 %v836_v10  ;;  %803 = vmatmul.mubr.bf16.vlgmr.msra.gmra.mrb[0].mxu1 %v837_v11 }
  0x23   :  { %798 = vmatprep.mubr.bf16.mxu0 %v838_v12  ;;  %806 = vmatprep.mubr.bf16.mxu1 %v839_v13 }
  0x2a   :  { %799 = vmatmul.mubr.bf16.gmra.mrb[4].mxu0 %v840_v14  ;;  %807 = vmatmul.mubr.bf16.gmra.mrb[4].mxu1 %v841_v15 }
  0xf5   :  { %v796_v17 = vpop.f32.mrb[0].mxu0  ;;  %v804_v19 = vpop.f32.mrb[0].mxu1 }
  0xf6   :  { %v252_v20 = vmul.f32 %v796_v17, %v918_v16  ;;  %v260_v21 = vmul.f32 %v804_v19, %v918_v16  ;;  %v180_v22 = vpop.f32.mrb[1].mxu0  ;;  %v212_v23 = vpop.f32.mrb[1].mxu1 }
  0xf7   :  { %v250_v24 = vmul.f32 %v918_v16, %v180_v22  ;;  %v258_v25 = vmul.f32 %v918_v16, %v212_v23  ;;  %v797_v26 = vpop.f32.mrb[2].mxu0  ;;  %v805_v27 = vpop.f32.mrb[2].mxu1 }
  0xf8   :  { %v275_v28 = vadd.f32 %v923_v18, %v252_v20  ;;  %v283_v29 = vadd.f32 %v923_v18, %v260_v21  ;;  %v253_v30 = vmul.f32 %v797_v26, %v918_v16  ;;  %v261_v31 = vmul.f32 %v805_v27, %v918_v16  ;;  %v183_v32 = vpop.f32.mrb[3].mxu0  ;;  %v215_v33 = vpop.f32.mrb[3].mxu1 }
  0xf9   :  { %v273_v34 = vadd.f32 %v923_v18, %v250_v24  ;;  %v281_v35 = vadd.f32 %v923_v18, %v258_v25  ;;  %v251_v36 = vmul.f32 %v918_v16, %v183_v32  ;;  %v259_v37 = vmul.f32 %v918_v16, %v215_v33 }
  0xfa   :  { %v390_v38 = vmax.f32 %v275_v28, 0.0  ;;  %v398_v39 = vmax.f32 %v283_v29, 0.0  ;;  %v276_v40 = vadd.f32 %v923_v18, %v253_v30  ;;  %v284_v41 = vadd.f32 %v923_v18, %v261_v31 }
  0xfb   :  { %v388_v42 = vmax.f32 %v273_v34, 0.0  ;;  %v396_v43 = vmax.f32 %v281_v35, 0.0  ;;  %v274_v44 = vadd.f32 %v923_v18, %v251_v36  ;;  %v282_v45 = vadd.f32 %v923_v18, %v259_v37 }
  0xfc   :  { %v391_v46 = vmax.f32 %v276_v40, 0.0  ;;  %v715_v47 = vpack.c.bf16 %v276_v40, %v275_v28  ;;  %v399_v48 = vmax.f32 %v284_v41, 0.0  ;;  %v735_v49 = vpack.c.bf16 %v284_v41, %v283_v29 }
  0xfd   :  { %v389_v50 = vmax.f32 %v274_v44, 0.0  ;;  %v710_v51 = vpack.c.bf16 %v274_v44, %v273_v34  ;;  %v397_v52 = vmax.f32 %v282_v45, 0.0  ;;  %v730_v53 = vpack.c.bf16 %v282_v45, %v281_v35  ;;  %v800_v54 = vpop.f32.mrb[4].mxu0  ;;  %v808_v55 = vpop.f32.mrb[4].mxu1 }
  0xfe   :  { %v675_v56 = vpack.c.bf16 %v391_v46, %v390_v38  ;;  %755 = vst [vmem:[%s1009_s4 + $0x48] sm:$0xff] %v715_v47   ;;  %v695_v57 = vpack.c.bf16 %v399_v48, %v398_v39  ;;  %759 = vst [vmem:[%s1009_s4 + $0x68] sm:$0xff] %v735_v49   ;;  %v256_v58 = vmul.f32 %v800_v54, %v918_v16  ;;  %v196_v60 = vpop.f32.mrb[5].mxu0  ;;  %v228_v61 = vpop.f32.mrb[5].mxu1 }
  0xff   :  { %v264_v59 = vmul.f32 %v808_v55, %v918_v16  ;;  %v670_v62 = vpack.c.bf16 %v389_v50, %v388_v42  ;;  %754 = vst [vmem:[%s1009_s4 + $0x40] sm:$0xff] %v710_v51   ;;  %v690_v63 = vpack.c.bf16 %v397_v52, %v396_v43  ;;  %758 = vst [vmem:[%s1009_s4 + $0x60] sm:$0xff] %v730_v53   ;;  %v801_v2 = vpop.f32.mrb[6].mxu0  ;;  %v809_v3 = vpop.f32.mrb[6].mxu1 }
 0x100   :  { %v254_v0 = vmul.f32 %v918_v16, %v196_v60  ;;  %v262_v1 = vmul.f32 %v918_v16, %v228_v61  ;;  %747 = vst [vmem:[%s1009_s4 + $0x8] sm:$0xff] %v675_v56   ;;  %751 = vst [vmem:[%s1009_s4 + $0x28] sm:$0xff] %v695_v57   ;;  %v279_v4 = vadd.f32 %v923_v18, %v256_v58  ;;  %v199_v8 = vpop.f32.mrb[7].mxu0  ;;  %v231_v9 = vpop.f32.mrb[7].mxu1 }
 0x101   :  { %v287_v5 = vadd.f32 %v923_v18, %v264_v59  ;;  %v257_v6 = vmul.f32 %v801_v2, %v918_v16  ;;  %v265_v7 = vmul.f32 %v809_v3, %v918_v16  ;;  %671 = vst [vmem:[%s1009_s4] sm:$0xff] %v670_v62   ;;  %750 = vst [vmem:[%s1009_s4 + $0x20] sm:$0xff] %v690_v63  }
 0x102   :  { %v277_v10 = vadd.f32 %v923_v18, %v254_v0  ;;  %v285_v11 = vadd.f32 %v923_v18, %v262_v1  ;;  %v255_v12 = vmul.f32 %v918_v16, %v199_v8  ;;  %v263_v13 = vmul.f32 %v918_v16, %v231_v9 }
 0x103   :  { %v394_v14 = vmax.f32 %v279_v4, 0.0  ;;  %v402_v15 = vmax.f32 %v287_v5, 0.0  ;;  %v280_v17 = vadd.f32 %v923_v18, %v257_v6  ;;  %v288_v19 = vadd.f32 %v923_v18, %v265_v7 }
 0x104   :  { %v392_v20 = vmax.f32 %v277_v10, 0.0  ;;  %v400_v21 = vmax.f32 %v285_v11, 0.0  ;;  %v278_v22 = vadd.f32 %v923_v18, %v255_v12  ;;  %v286_v23 = vadd.f32 %v923_v18, %v263_v13 }
 0x105   :  { %v395_v24 = vmax.f32 %v280_v17, 0.0  ;;  %v725_v25 = vpack.c.bf16 %v280_v17, %v279_v4  ;;  %v403_v26 = vmax.f32 %v288_v19, 0.0  ;;  %v745_v27 = vpack.c.bf16 %v288_v19, %v287_v5 }
 0x106   :  { %v393_v28 = vmax.f32 %v278_v22, 0.0  ;;  %v720_v29 = vpack.c.bf16 %v278_v22, %v277_v10  ;;  %v401_v30 = vmax.f32 %v286_v23, 0.0  ;;  %v740_v16 = vpack.c.bf16 %v286_v23, %v285_v11 }
 0x107   :  { %v685_v31 = vpack.c.bf16 %v395_v24, %v394_v14  ;;  %757 = vst [vmem:[%s1009_s4 + $0x58] sm:$0xff] %v725_v25   ;;  %v705_v32 = vpack.c.bf16 %v403_v26, %v402_v15  ;;  %761 = vst [vmem:[%s1009_s4 + $0x78] sm:$0xff] %v745_v27  }
 0x108   :  { %v680_v33 = vpack.c.bf16 %v393_v28, %v392_v20  ;;  %756 = vst [vmem:[%s1009_s4 + $0x50] sm:$0xff] %v720_v29   ;;  %v700_v18 = vpack.c.bf16 %v401_v30, %v400_v21  ;;  %760 = vst [vmem:[%s1009_s4 + $0x70] sm:$0xff] %v740_v16  }
 0x109   :  { %749 = vst [vmem:[%s1009_s4 + $0x18] sm:$0xff] %v685_v31   ;;  %753 = vst [vmem:[%s1009_s4 + $0x38] sm:$0xff] %v705_v32  }
 0x10a   :  { %748 = vst [vmem:[%s1009_s4 + $0x10] sm:$0xff] %v680_v33   ;;  %752 = vst [vmem:[%s1009_s4 + $0x30] sm:$0xff] %v700_v18  }

// kernel: _lambda_.55
= control target key start
LH: loop header
LB: loop body
LE: loop exit
PB: predicated region body
PF: predicated region fallthrough
CT: control target
= control target key end

     0   :  { %s1884_s1 = inlined_call_operand.vmem [shape: bf16[256,128], index: 1, kind: input, shape index: {}]   ;;  %s1885_s0 = inlined_call_operand.vmem [shape: bf16[256,256], index: 0, kind: input, shape index: {}]   ;;  %s1886_s2 = inlined_call_operand.vmem [shape: f32[1,128], index: 2, kind: input, shape index: {}]   ;;  %s1887_s3 = inlined_call_operand.vmem [shape: f32[1,128], index: 3, kind: input, shape index: {}]   ;;  %s1888_s4 = inlined_call_operand.vmem [shape: bf16[256,128], index: 4, kind: output, shape index: {}]  }
   0x1   :  { %v1529_v0 = vld [vmem:[%s1884_s1 + $0x40] sm:$0xff]   ;;  %v1531_v2 = vld [vmem:[%s1884_s1 + $0x48] sm:$0xff]   ;;  %v1533_v4 = vld [vmem:[%s1884_s1 + $0x50] sm:$0xff]  }
   0x2   :  { %v1530_v1 = vld [vmem:[%s1884_s1] sm:$0xff]   ;;  %1401 = vmatprep.subr.bf16.mxu0 %v1529_v0  ;;  %1513 = vmatprep.subr.bf16.mxu1 %v1529_v0  ;;  %v1532_v3 = vld [vmem:[%s1884_s1 + $0x8] sm:$0xff]   ;;  %v1534_v5 = vld [vmem:[%s1884_s1 + $0x10] sm:$0xff]  }
   0x3   :  { %1402 = vmatpush3.bf16.msra.mxu0 %v1530_v1  ;;  %1521 = vmatpush3.bf16.msra.mxu1 %v1530_v1  ;;  %v1535_v6 = vld [vmem:[%s1884_s1 + $0x58] sm:$0xff]   ;;  %v1537_v8 = vld [vmem:[%s1884_s1 + $0x60] sm:$0xff]   ;;  %v1539_v10 = vld [vmem:[%s1884_s1 + $0x68] sm:$0xff]  }
   0x4   :  { %1403 = vmatprep.subr.bf16.mxu0 %v1531_v2  ;;  %1514 = vmatprep.subr.bf16.mxu1 %v1531_v2  ;;  %v1536_v7 = vld [vmem:[%s1884_s1 + $0x18] sm:$0xff]   ;;  %v1538_v9 = vld [vmem:[%s1884_s1 + $0x20] sm:$0xff]   ;;  %v1540_v13 = vld [vmem:[%s1884_s1 + $0x28] sm:$0xff]  }
   0x5   :  { %v1547_v11 = vld [vmem:[%s1885_s0 + $0x4] ss:$8 sps:$4 sm:$0xff]   ;;  %v1541_v14 = vld [vmem:[%s1884_s1 + $0x70] sm:$0xff]   ;;  %v1543_v16 = vld [vmem:[%s1884_s1 + $0x78] sm:$0xff]  }
   0x6   :  { %v1550_v12 = vld [vmem:[%s1885_s0 + $0x84] ss:$8 sps:$4 sm:$0xff]   ;;  %370 = vmatprep.mubr.bf16.mxu0 %v1547_v11  ;;  %v1542_v15 = vld [vmem:[%s1884_s1 + $0x30] sm:$0xff]   ;;  %v1544_v17 = vld [vmem:[%s1884_s1 + $0x38] sm:$0xff]  }
   0x7   :  { %1404 = vmatpush3.bf16.msra.mxu0 %v1532_v3  ;;  %1522 = vmatpush3.bf16.msra.mxu1 %v1532_v3  ;;  %v1545_v18 = vld [vmem:[%s1885_s0] ss:$8 sps:$4 sm:$0xff]   ;;  %v1551_v20 = vld [vmem:[%s1885_s0 + $0x14] ss:$8 sps:$4 sm:$0xff]   ;;  %v1555_v22 = vld [vmem:[%s1885_s0 + $0x10] ss:$8 sps:$4 sm:$0xff]  }
   0x8   :  { %1405 = vmatprep.subr.bf16.mxu0 %v1533_v4  ;;  %1515 = vmatprep.subr.bf16.mxu1 %v1533_v4  ;;  %v1548_v19 = vld [vmem:[%s1885_s0 + $0x80] ss:$8 sps:$4 sm:$0xff]   ;;  %v1553_v21 = vld [vmem:[%s1885_s0 + $0x94] ss:$8 sps:$4 sm:$0xff]   ;;  %v1556_v23 = vld [vmem:[%s1885_s0 + $0x90] ss:$8 sps:$4 sm:$0xff]  }
   0x9   :  { %434 = vmatprep.mubr.bf16.mxu1 %v1550_v12  ;;  %v1557_v24 = vld [vmem:[%s1885_s0 + $0x24] ss:$8 sps:$4 sm:$0xff]   ;;  %v1561_v26 = vld [vmem:[%s1885_s0 + $0x20] ss:$8 sps:$4 sm:$0xff]   ;;  %v1563_v28 = vld [vmem:[%s1885_s0 + $0x34] ss:$8 sps:$4 sm:$0xff]  }
   0xa   :  { %v1559_v25 = vld [vmem:[%s1885_s0 + $0xa4] ss:$8 sps:$4 sm:$0xff]   ;;  %v1562_v27 = vld [vmem:[%s1885_s0 + $0xa0] ss:$8 sps:$4 sm:$0xff]   ;;  %v1565_v29 = vld [vmem:[%s1885_s0 + $0xb4] ss:$8 sps:$4 sm:$0xff]  }
   0xb   :  { %1406 = vmatpush3.bf16.msra.mxu0 %v1534_v5  ;;  %1523 = vmatpush3.bf16.msra.mxu1 %v1534_v5  ;;  %v1567_v30 = vld [vmem:[%s1885_s0 + $0x30] ss:$8 sps:$4 sm:$0xff]   ;;  %v1569_v32 = vld [vmem:[%s1885_s0 + $0x44] ss:$8 sps:$4 sm:$0xff]   ;;  %v1573_v34 = vld [vmem:[%s1885_s0 + $0x40] ss:$8 sps:$4 sm:$0xff]  }
   0xc   :  { %1407 = vmatprep.subr.bf16.mxu0 %v1535_v6  ;;  %1516 = vmatprep.subr.bf16.mxu1 %v1535_v6  ;;  %v1568_v31 = vld [vmem:[%s1885_s0 + $0xb0] ss:$8 sps:$4 sm:$0xff]   ;;  %v1571_v33 = vld [vmem:[%s1885_s0 + $0xc4] ss:$8 sps:$4 sm:$0xff]   ;;  %v1574_v35 = vld [vmem:[%s1885_s0 + $0xc0] ss:$8 sps:$4 sm:$0xff]  }
   0xd   :  { %v1575_v36 = vld [vmem:[%s1885_s0 + $0x54] ss:$8 sps:$4 sm:$0xff]   ;;  %v1579_v38 = vld [vmem:[%s1885_s0 + $0x50] ss:$8 sps:$4 sm:$0xff]   ;;  %v1581_v40 = vld [vmem:[%s1885_s0 + $0x64] ss:$8 sps:$4 sm:$0xff]  }
   0xe   :  { %v1577_v37 = vld [vmem:[%s1885_s0 + $0xd4] ss:$8 sps:$4 sm:$0xff]   ;;  %v1580_v39 = vld [vmem:[%s1885_s0 + $0xd0] ss:$8 sps:$4 sm:$0xff]   ;;  %v1583_v41 = vld [vmem:[%s1885_s0 + $0xe4] ss:$8 sps:$4 sm:$0xff]  }
   0xf   :  { %1408 = vmatpush3.bf16.msra.mxu0 %v1536_v7  ;;  %1524 = vmatpush3.bf16.msra.mxu1 %v1536_v7  ;;  %v1585_v42 = vld [vmem:[%s1885_s0 + $0x60] ss:$8 sps:$4 sm:$0xff]   ;;  %v1587_v44 = vld [vmem:[%s1885_s0 + $0x74] ss:$8 sps:$4 sm:$0xff]   ;;  %v1591_v46 = vld [vmem:[%s1885_s0 + $0x70] ss:$8 sps:$4 sm:$0xff]  }
  0x10   :  { %1409 = vmatprep.subr.bf16.mxu0 %v1537_v8  ;;  %1517 = vmatprep.subr.bf16.mxu1 %v1537_v8  ;;  %v1586_v43 = vld [vmem:[%s1885_s0 + $0xe0] ss:$8 sps:$4 sm:$0xff]   ;;  %v1589_v45 = vld [vmem:[%s1885_s0 + $0xf4] ss:$8 sps:$4 sm:$0xff]   ;;  %v1592_v47 = vld [vmem:[%s1885_s0 + $0xf0] ss:$8 sps:$4 sm:$0xff]  }
  0x11   :  { %v1765_v51 = vld [vmem:[%s1886_s2] ss:$0 sm:$0xff] }
  0x12   :  { %v1770_v57 = vld [vmem:[%s1887_s3] ss:$0 sm:$0xff] }
  0x13   :  { %1410 = vmatpush3.bf16.msra.mxu0 %v1538_v9  ;;  %1525 = vmatpush3.bf16.msra.mxu1 %v1538_v9 }
  0x14   :  { %1411 = vmatprep.subr.bf16.mxu0 %v1539_v10  ;;  %1518 = vmatprep.subr.bf16.mxu1 %v1539_v10 }
  0x17   :  { %1412 = vmatpush3.bf16.msra.mxu0 %v1540_v13  ;;  %1526 = vmatpush3.bf16.msra.mxu1 %v1540_v13 }
  0x18   :  { %1413 = vmatprep.subr.bf16.mxu0 %v1541_v14  ;;  %1519 = vmatprep.subr.bf16.mxu1 %v1541_v14 }
  0x1b   :  { %1414 = vmatpush3.bf16.msra.mxu0 %v1542_v15  ;;  %1527 = vmatpush3.bf16.msra.mxu1 %v1542_v15 }
  0x1c   :  { %1415 = vmatprep.subr.bf16.mxu0 %v1543_v16  ;;  %1520 = vmatprep.subr.bf16.mxu1 %v1543_v16 }
  0x1f   :  { %1416 = vmatpush3.bf16.msra.mxu0 %v1544_v17  ;;  %1528 = vmatpush3.bf16.msra.mxu1 %v1544_v17 }
  0x22   :  { %371 = vmatmul.mubr.bf16.vlgmr.msra.gmra.mrb[0].mxu0 %v1545_v18  ;;  %435 = vmatmul.mubr.bf16.vlgmr.msra.gmra.mrb[0].mxu1 %v1548_v19 }
  0x23   :  { %378 = vmatprep.mubr.bf16.mxu0 %v1551_v20  ;;  %442 = vmatprep.mubr.bf16.mxu1 %v1553_v21 }
  0x2a   :  { %379 = vmatmul.mubr.bf16.gmra.mrb[4].mxu0 %v1555_v22  ;;  %443 = vmatmul.mubr.bf16.gmra.mrb[4].mxu1 %v1556_v23 }
  0x2b   :  { %386 = vmatprep.mubr.bf16.mxu0 %v1557_v24  ;;  %450 = vmatprep.mubr.bf16.mxu1 %v1559_v25 }
  0x32   :  { %387 = vmatmul.mubr.bf16.gmra.mrb[8].mxu0 %v1561_v26  ;;  %451 = vmatmul.mubr.bf16.gmra.mrb[8].mxu1 %v1562_v27 }
  0x33   :  { %394 = vmatprep.mubr.bf16.mxu0 %v1563_v28  ;;  %458 = vmatprep.mubr.bf16.mxu1 %v1565_v29 }
  0x3a   :  { %395 = vmatmul.mubr.bf16.gmra.mrb[12].mxu0 %v1567_v30  ;;  %459 = vmatmul.mubr.bf16.gmra.mrb[12].mxu1 %v1568_v31 }
  0x3b   :  { %402 = vmatprep.mubr.bf16.mxu0 %v1569_v32  ;;  %466 = vmatprep.mubr.bf16.mxu1 %v1571_v33 }
  0x42   :  { %403 = vmatmul.mubr.bf16.gmra.mrb[16].mxu0 %v1573_v34  ;;  %467 = vmatmul.mubr.bf16.gmra.mrb[16].mxu1 %v1574_v35 }
  0x43   :  { %410 = vmatprep.mubr.bf16.mxu0 %v1575_v36  ;;  %474 = vmatprep.mubr.bf16.mxu1 %v1577_v37 }
  0x4a   :  { %411 = vmatmul.mubr.bf16.gmra.mrb[20].mxu0 %v1579_v38  ;;  %475 = vmatmul.mubr.bf16.gmra.mrb[20].mxu1 %v1580_v39 }
  0x4b   :  { %418 = vmatprep.mubr.bf16.mxu0 %v1581_v40  ;;  %482 = vmatprep.mubr.bf16.mxu1 %v1583_v41 }
  0x52   :  { %419 = vmatmul.mubr.bf16.gmra.mrb[24].mxu0 %v1585_v42  ;;  %483 = vmatmul.mubr.bf16.gmra.mrb[24].mxu1 %v1586_v43 }
  0x53   :  { %426 = vmatprep.mubr.bf16.mxu0 %v1587_v44  ;;  %490 = vmatprep.mubr.bf16.mxu1 %v1589_v45 }
  0x5a   :  { %427 = vmatmul.mubr.bf16.gmra.mrb[28].mxu0 %v1591_v46  ;;  %491 = vmatmul.mubr.bf16.gmra.mrb[28].mxu1 %v1592_v47 }
  0xf5   :  { %v1417_v48 = vpop.f32.mrb[0].mxu0  ;;  %v1465_v49 = vpop.f32.mrb[0].mxu1 }
  0xf6   :  { %v1418_v50 = vpop.f32.mrb[1].mxu0  ;;  %v1466_v52 = vpop.f32.mrb[1].mxu1 }
  0xf7   :  { %v1419_v53 = vadd.f32 %v1418_v50, %v1417_v48  ;;  %v1467_v54 = vadd.f32 %v1466_v52, %v1465_v49  ;;  %v1420_v55 = vpop.f32.mrb[2].mxu0  ;;  %v1468_v56 = vpop.f32.mrb[2].mxu1 }
  0xf8   :  { %v1421_v58 = vpop.f32.mrb[3].mxu0  ;;  %v1469_v59 = vpop.f32.mrb[3].mxu1 }
  0xf9   :  { %v506_v60 = vmul.f32 %v1419_v53, %v1765_v51  ;;  %v522_v61 = vmul.f32 %v1467_v54, %v1765_v51  ;;  %v1422_v62 = vadd.f32 %v1421_v58, %v1420_v55  ;;  %v1470_v63 = vadd.f32 %v1469_v59, %v1468_v56 }
  0xfb   :  { %v545_v0 = vadd.f32 %v1770_v57, %v506_v60  ;;  %v561_v1 = vadd.f32 %v1770_v57, %v522_v61  ;;  %v507_v2 = vmul.f32 %v1422_v62, %v1765_v51  ;;  %v523_v3 = vmul.f32 %v1470_v63, %v1765_v51 }
  0xfd   :  { %v546_v4 = vadd.f32 %v1770_v57, %v507_v2  ;;  %v562_v5 = vadd.f32 %v1770_v57, %v523_v3  ;;  %v1423_v6 = vpop.f32.mrb[4].mxu0  ;;  %v1471_v7 = vpop.f32.mrb[4].mxu1  ;;  %v804_v8 = vmax.f32 %v545_v0, 0.0 }
  0xfe   :  { %v1424_v9 = vpop.f32.mrb[5].mxu0  ;;  %v1472_v10 = vpop.f32.mrb[5].mxu1 }
  0xff   :  { %v805_v11 = vmax.f32 %v546_v4, 0.0  ;;  %v1349_v12 = vpack.c.bf16 %v562_v5, %v561_v1  ;;  %v1425_v13 = vadd.f32 %v1424_v9, %v1423_v6  ;;  %v1473_v14 = vadd.f32 %v1472_v10, %v1471_v7  ;;  %v1426_v15 = vpop.f32.mrb[6].mxu0  ;;  %v1474_v16 = vpop.f32.mrb[6].mxu1 }
 0x100   :  { %v1427_v17 = vpop.f32.mrb[7].mxu0  ;;  %v1475_v18 = vpop.f32.mrb[7].mxu1 }
 0x101   :  { %v1309_v19 = vpack.c.bf16 %v805_v11, %v804_v8  ;;  %1393 = vst [vmem:[%s1888_s4 + $0x40] sm:$0xff] %v1349_v12   ;;  %v508_v20 = vmul.f32 %v1425_v13, %v1765_v51  ;;  %v524_v21 = vmul.f32 %v1473_v14, %v1765_v51  ;;  %v1428_v22 = vadd.f32 %v1427_v17, %v1426_v15 }
 0x102   :  { %v1476_v23 = vadd.f32 %v1475_v18, %v1474_v16 }
 0x103   :  { %1310 = vst [vmem:[%s1888_s4] sm:$0xff] %v1309_v19   ;;  %v547_v24 = vadd.f32 %v1770_v57, %v508_v20  ;;  %v509_v25 = vmul.f32 %v1428_v22, %v1765_v51  ;;  %v563_v26 = vadd.f32 %v1770_v57, %v524_v21 }
 0x104   :  { %v525_v27 = vmul.f32 %v1476_v23, %v1765_v51 }
 0x105   :  { %v548_v28 = vadd.f32 %v1770_v57, %v509_v25  ;;  %v1429_v29 = vpop.f32.mrb[8].mxu0  ;;  %v1477_v30 = vpop.f32.mrb[8].mxu1  ;;  %v806_v34 = vmax.f32 %v547_v24, 0.0 }
 0x106   :  { %v564_v31 = vadd.f32 %v1770_v57, %v525_v27  ;;  %v1430_v32 = vpop.f32.mrb[9].mxu0  ;;  %v1478_v33 = vpop.f32.mrb[9].mxu1 }
 0x107   :  { %v807_v35 = vmax.f32 %v548_v28, 0.0  ;;  %v1431_v36 = vadd.f32 %v1430_v32, %v1429_v29  ;;  %v1479_v37 = vadd.f32 %v1478_v33, %v1477_v30  ;;  %v1432_v38 = vpop.f32.mrb[10].mxu0  ;;  %v1480_v39 = vpop.f32.mrb[10].mxu1 }
 0x108   :  { %v1354_v40 = vpack.c.bf16 %v564_v31, %v563_v26  ;;  %v1433_v41 = vpop.f32.mrb[11].mxu0  ;;  %v1481_v42 = vpop.f32.mrb[11].mxu1 }
 0x109   :  { %v1314_v43 = vpack.c.bf16 %v807_v35, %v806_v34  ;;  %v510_v44 = vmul.f32 %v1431_v36, %v1765_v51  ;;  %v526_v45 = vmul.f32 %v1479_v37, %v1765_v51  ;;  %v1434_v46 = vadd.f32 %v1433_v41, %v1432_v38 }
 0x10a   :  { %1394 = vst [vmem:[%s1888_s4 + $0x48] sm:$0xff] %v1354_v40   ;;  %v1482_v47 = vadd.f32 %v1481_v42, %v1480_v39 }
 0x10b   :  { %1386 = vst [vmem:[%s1888_s4 + $0x8] sm:$0xff] %v1314_v43   ;;  %v549_v48 = vadd.f32 %v1770_v57, %v510_v44  ;;  %v511_v49 = vmul.f32 %v1434_v46, %v1765_v51  ;;  %v565_v50 = vadd.f32 %v1770_v57, %v526_v45 }
 0x10c   :  { %v527_v52 = vmul.f32 %v1482_v47, %v1765_v51 }
 0x10d   :  { %v550_v53 = vadd.f32 %v1770_v57, %v511_v49  ;;  %v1435_v54 = vpop.f32.mrb[12].mxu0  ;;  %v1483_v55 = vpop.f32.mrb[12].mxu1  ;;  %v808_v60 = vmax.f32 %v549_v48, 0.0 }
 0x10e   :  { %v566_v56 = vadd.f32 %v1770_v57, %v527_v52  ;;  %v1436_v58 = vpop.f32.mrb[13].mxu0  ;;  %v1484_v59 = vpop.f32.mrb[13].mxu1 }
 0x10f   :  { %v809_v61 = vmax.f32 %v550_v53, 0.0  ;;  %v1437_v62 = vadd.f32 %v1436_v58, %v1435_v54  ;;  %v1485_v63 = vadd.f32 %v1484_v59, %v1483_v55  ;;  %v1438_v0 = vpop.f32.mrb[14].mxu0  ;;  %v1486_v1 = vpop.f32.mrb[14].mxu1 }
 0x110   :  { %v1359_v2 = vpack.c.bf16 %v566_v56, %v565_v50  ;;  %v1439_v3 = vpop.f32.mrb[15].mxu0  ;;  %v1487_v4 = vpop.f32.mrb[15].mxu1 }
 0x111   :  { %v1319_v5 = vpack.c.bf16 %v809_v61, %v808_v60  ;;  %v512_v6 = vmul.f32 %v1437_v62, %v1765_v51  ;;  %v528_v7 = vmul.f32 %v1485_v63, %v1765_v51  ;;  %v1440_v8 = vadd.f32 %v1439_v3, %v1438_v0 }
 0x112   :  { %1395 = vst [vmem:[%s1888_s4 + $0x50] sm:$0xff] %v1359_v2   ;;  %v1488_v9 = vadd.f32 %v1487_v4, %v1486_v1 }
 0x113   :  { %1387 = vst [vmem:[%s1888_s4 + $0x10] sm:$0xff] %v1319_v5   ;;  %v551_v10 = vadd.f32 %v1770_v57, %v512_v6  ;;  %v513_v11 = vmul.f32 %v1440_v8, %v1765_v51  ;;  %v567_v12 = vadd.f32 %v1770_v57, %v528_v7 }
 0x114   :  { %v529_v13 = vmul.f32 %v1488_v9, %v1765_v51 }
 0x115   :  { %v552_v14 = vadd.f32 %v1770_v57, %v513_v11  ;;  %v1441_v15 = vpop.f32.mrb[16].mxu0  ;;  %v1489_v16 = vpop.f32.mrb[16].mxu1  ;;  %v810_v20 = vmax.f32 %v551_v10, 0.0 }
 0x116   :  { %v568_v17 = vadd.f32 %v1770_v57, %v529_v13  ;;  %v1442_v18 = vpop.f32.mrb[17].mxu0  ;;  %v1490_v19 = vpop.f32.mrb[17].mxu1 }
 0x117   :  { %v811_v21 = vmax.f32 %v552_v14, 0.0  ;;  %v1443_v22 = vadd.f32 %v1442_v18, %v1441_v15  ;;  %v1491_v23 = vadd.f32 %v1490_v19, %v1489_v16  ;;  %v1444_v24 = vpop.f32.mrb[18].mxu0  ;;  %v1492_v25 = vpop.f32.mrb[18].mxu1 }
 0x118   :  { %v1364_v26 = vpack.c.bf16 %v568_v17, %v567_v12  ;;  %v1445_v27 = vpop.f32.mrb[19].mxu0  ;;  %v1493_v28 = vpop.f32.mrb[19].mxu1 }
 0x119   :  { %v1324_v29 = vpack.c.bf16 %v811_v21, %v810_v20  ;;  %v514_v30 = vmul.f32 %v1443_v22, %v1765_v51  ;;  %v530_v31 = vmul.f32 %v1491_v23, %v1765_v51  ;;  %v1446_v32 = vadd.f32 %v1445_v27, %v1444_v24 }
 0x11a   :  { %1396 = vst [vmem:[%s1888_s4 + $0x58] sm:$0xff] %v1364_v26   ;;  %v1494_v33 = vadd.f32 %v1493_v28, %v1492_v25 }
 0x11b   :  { %1388 = vst [vmem:[%s1888_s4 + $0x18] sm:$0xff] %v1324_v29   ;;  %v553_v34 = vadd.f32 %v1770_v57, %v514_v30  ;;  %v515_v35 = vmul.f32 %v1446_v32, %v1765_v51  ;;  %v569_v36 = vadd.f32 %v1770_v57, %v530_v31 }
 0x11c   :  { %v531_v37 = vmul.f32 %v1494_v33, %v1765_v51 }
 0x11d   :  { %v554_v38 = vadd.f32 %v1770_v57, %v515_v35  ;;  %v1447_v39 = vpop.f32.mrb[20].mxu0  ;;  %v1495_v40 = vpop.f32.mrb[20].mxu1  ;;  %v812_v44 = vmax.f32 %v553_v34, 0.0 }
 0x11e   :  { %v570_v41 = vadd.f32 %v1770_v57, %v531_v37  ;;  %v1448_v42 = vpop.f32.mrb[21].mxu0  ;;  %v1496_v43 = vpop.f32.mrb[21].mxu1 }
 0x11f   :  { %v813_v45 = vmax.f32 %v554_v38, 0.0  ;;  %v1449_v46 = vadd.f32 %v1448_v42, %v1447_v39  ;;  %v1497_v47 = vadd.f32 %v1496_v43, %v1495_v40  ;;  %v1450_v48 = vpop.f32.mrb[22].mxu0  ;;  %v1498_v49 = vpop.f32.mrb[22].mxu1 }
 0x120   :  { %v1369_v50 = vpack.c.bf16 %v570_v41, %v569_v36  ;;  %v1451_v52 = vpop.f32.mrb[23].mxu0  ;;  %v1499_v53 = vpop.f32.mrb[23].mxu1 }
 0x121   :  { %v1329_v54 = vpack.c.bf16 %v813_v45, %v812_v44  ;;  %v516_v55 = vmul.f32 %v1449_v46, %v1765_v51  ;;  %v532_v56 = vmul.f32 %v1497_v47, %v1765_v51  ;;  %v1452_v58 = vadd.f32 %v1451_v52, %v1450_v48 }
 0x122   :  { %1397 = vst [vmem:[%s1888_s4 + $0x60] sm:$0xff] %v1369_v50   ;;  %v1500_v59 = vadd.f32 %v1499_v53, %v1498_v49 }
 0x123   :  { %1389 = vst [vmem:[%s1888_s4 + $0x20] sm:$0xff] %v1329_v54   ;;  %v555_v60 = vadd.f32 %v1770_v57, %v516_v55  ;;  %v517_v61 = vmul.f32 %v1452_v58, %v1765_v51  ;;  %v571_v62 = vadd.f32 %v1770_v57, %v532_v56 }
 0x124   :  { %v533_v63 = vmul.f32 %v1500_v59, %v1765_v51 }
 0x125   :  { %v556_v0 = vadd.f32 %v1770_v57, %v517_v61  ;;  %v1453_v1 = vpop.f32.mrb[24].mxu0  ;;  %v1501_v2 = vpop.f32.mrb[24].mxu1  ;;  %v814_v6 = vmax.f32 %v555_v60, 0.0 }
 0x126   :  { %v572_v3 = vadd.f32 %v1770_v57, %v533_v63  ;;  %v1454_v4 = vpop.f32.mrb[25].mxu0  ;;  %v1502_v5 = vpop.f32.mrb[25].mxu1 }
 0x127   :  { %v815_v7 = vmax.f32 %v556_v0, 0.0  ;;  %v1455_v8 = vadd.f32 %v1454_v4, %v1453_v1  ;;  %v1503_v9 = vadd.f32 %v1502_v5, %v1501_v2  ;;  %v1456_v10 = vpop.f32.mrb[26].mxu0  ;;  %v1504_v11 = vpop.f32.mrb[26].mxu1 }
 0x128   :  { %v1374_v12 = vpack.c.bf16 %v572_v3, %v571_v62  ;;  %v1457_v13 = vpop.f32.mrb[27].mxu0  ;;  %v1505_v14 = vpop.f32.mrb[27].mxu1 }
 0x129   :  { %v1334_v15 = vpack.c.bf16 %v815_v7, %v814_v6  ;;  %v518_v16 = vmul.f32 %v1455_v8, %v1765_v51  ;;  %v534_v17 = vmul.f32 %v1503_v9, %v1765_v51  ;;  %v1458_v18 = vadd.f32 %v1457_v13, %v1456_v10 }
 0x12a   :  { %1398 = vst [vmem:[%s1888_s4 + $0x68] sm:$0xff] %v1374_v12   ;;  %v1506_v19 = vadd.f32 %v1505_v14, %v1504_v11 }
 0x12b   :  { %1390 = vst [vmem:[%s1888_s4 + $0x28] sm:$0xff] %v1334_v15   ;;  %v557_v20 = vadd.f32 %v1770_v57, %v518_v16  ;;  %v519_v21 = vmul.f32 %v1458_v18, %v1765_v51  ;;  %v573_v22 = vadd.f32 %v1770_v57, %v534_v17 }
 0x12c   :  { %v535_v23 = vmul.f32 %v1506_v19, %v1765_v51 }
 0x12d   :  { %v558_v24 = vadd.f32 %v1770_v57, %v519_v21  ;;  %v1459_v25 = vpop.f32.mrb[28].mxu0  ;;  %v1507_v26 = vpop.f32.mrb[28].mxu1  ;;  %v816_v30 = vmax.f32 %v557_v20, 0.0 }
 0x12e   :  { %v574_v27 = vadd.f32 %v1770_v57, %v535_v23  ;;  %v1460_v28 = vpop.f32.mrb[29].mxu0  ;;  %v1508_v29 = vpop.f32.mrb[29].mxu1 }
 0x12f   :  { %v817_v31 = vmax.f32 %v558_v24, 0.0  ;;  %v1461_v32 = vadd.f32 %v1460_v28, %v1459_v25  ;;  %v1509_v33 = vadd.f32 %v1508_v29, %v1507_v26  ;;  %v1462_v34 = vpop.f32.mrb[30].mxu0  ;;  %v1510_v35 = vpop.f32.mrb[30].mxu1 }
 0x130   :  { %v1379_v36 = vpack.c.bf16 %v574_v27, %v573_v22  ;;  %v1463_v37 = vpop.f32.mrb[31].mxu0  ;;  %v1511_v38 = vpop.f32.mrb[31].mxu1 }
 0x131   :  { %v1339_v39 = vpack.c.bf16 %v817_v31, %v816_v30  ;;  %v520_v40 = vmul.f32 %v1461_v32, %v1765_v51  ;;  %v536_v41 = vmul.f32 %v1509_v33, %v1765_v51  ;;  %v1464_v42 = vadd.f32 %v1463_v37, %v1462_v34 }
 0x132   :  { %1399 = vst [vmem:[%s1888_s4 + $0x70] sm:$0xff] %v1379_v36   ;;  %v1512_v43 = vadd.f32 %v1511_v38, %v1510_v35 }
 0x133   :  { %1391 = vst [vmem:[%s1888_s4 + $0x30] sm:$0xff] %v1339_v39   ;;  %v559_v44 = vadd.f32 %v1770_v57, %v520_v40  ;;  %v521_v45 = vmul.f32 %v1464_v42, %v1765_v51  ;;  %v575_v46 = vadd.f32 %v1770_v57, %v536_v41 }
 0x134   :  { %v537_v47 = vmul.f32 %v1512_v43, %v1765_v51 }
 0x135   :  { %v560_v48 = vadd.f32 %v1770_v57, %v521_v45  ;;  %v818_v50 = vmax.f32 %v559_v44, 0.0 }
 0x136   :  { %v576_v49 = vadd.f32 %v1770_v57, %v537_v47 }
 0x137   :  { %v819_v52 = vmax.f32 %v560_v48, 0.0 }
 0x138   :  { %v1384_v53 = vpack.c.bf16 %v576_v49, %v575_v46 }
 0x139   :  { %v1344_v54 = vpack.c.bf16 %v819_v52, %v818_v50 }
 0x13a   :  { %1400 = vst [vmem:[%s1888_s4 + $0x78] sm:$0xff] %v1384_v53  }
 0x13b   :  { %1392 = vst [vmem:[%s1888_s4 + $0x38] sm:$0xff] %v1344_v54  }

// kernel: _lambda_.56
= control target key start
LH: loop header
LB: loop body
LE: loop exit
PB: predicated region body
PF: predicated region fallthrough
CT: control target
= control target key end

     0   :  { %v1042_v24 = vmov 0.0|0.0   ;;  %s1254_s1 = inlined_call_operand.vmem [shape: bf16[128,128], index: 1, kind: input, shape index: {}]   ;;  %s1255_s0 = inlined_call_operand.vmem [shape: bf16[256,128], index: 0, kind: input, shape index: {}]   ;;  %s1256_s4 = inlined_call_operand.vmem [shape: bf16[256,128], index: 4, kind: output, shape index: {}]   ;;  %s1257_s2 = inlined_call_operand.vmem [shape: f32[1,128], index: 2, kind: input, shape index: {}]   ;;  %s1258_s3 = inlined_call_operand.vmem [shape: f32[1,128], index: 3, kind: input, shape index: {}]  }
   0x1   :  { %v1018_v0 = vld [vmem:[%s1254_s1] sm:$0xff]   ;;  %v1019_v1 = vld [vmem:[%s1254_s1 + $0x8] sm:$0xff]   ;;  %v1020_v2 = vld [vmem:[%s1254_s1 + $0x10] sm:$0xff]   ;;  %v850_v25 = vcombine.low %v1042_v24, %v1042_v24  ;;  %v851_v26 = vcombine.high %v1042_v24, %v1042_v24 }
   0x2   :  { %953 = vmatprep.subr.bf16.mxu0 %v1018_v0  ;;  %1001 = vmatprep.subr.bf16.mxu1 %v1018_v0  ;;  %v1021_v3 = vld [vmem:[%s1254_s1 + $0x18] sm:$0xff]   ;;  %v1026_v4 = vld [vmem:[%s1255_s0] sm:$0xff]   ;;  %v1023_v7 = vld [vmem:[%s1254_s1 + $0x28] sm:$0xff]  }
   0x3   :  { %954 = vmatpush3.bf16.msra.mxu0 %v1018_v0  ;;  %1009 = vmatpush3.bf16.msra.mxu1 %v1018_v0  ;;  %v1028_v5 = vld [vmem:[%s1255_s0 + $0x40] sm:$0xff]   ;;  %v1024_v8 = vld [vmem:[%s1254_s1 + $0x30] sm:$0xff]   ;;  %v1025_v9 = vld [vmem:[%s1254_s1 + $0x38] sm:$0xff]   ;;  %788 = vst [vmem:[%s1256_s4 + $0x40] sm:$0xf] %v850_v25 }
   0x4   :  { %955 = vmatprep.subr.bf16.mxu0 %v1019_v1  ;;  %1002 = vmatprep.subr.bf16.mxu1 %v1019_v1  ;;  %v1022_v6 = vld [vmem:[%s1254_s1 + $0x20] sm:$0xff]   ;;  %v1027_v10 = vld [vmem:[%s1255_s0 + $0x8] sm:$0xff]   ;;  %v1030_v12 = vld [vmem:[%s1255_s0 + $0x10] sm:$0xff]   ;;  %789 = vst [vmem:[%s1256_s4 + $0x44] sm:$0xf] %v851_v26 }
   0x5   :  { %969 = vmatprep.mubr.bf16.mxu0 %v1026_v4  ;;  %985 = vmatprep.mubr.bf16.mxu1 %v1028_v5  ;;  %v1029_v11 = vld [vmem:[%s1255_s0 + $0x48] sm:$0xff]   ;;  %v1032_v13 = vld [vmem:[%s1255_s0 + $0x50] sm:$0xff]   ;;  %v1031_v14 = vld [vmem:[%s1255_s0 + $0x18] sm:$0xff]   ;;  %790 = vst [vmem:[%s1256_s4 + $0x48] sm:$0xf] %v850_v25 }
   0x6   :  { %v1033_v15 = vld [vmem:[%s1255_s0 + $0x58] sm:$0xff]   ;;  %v1034_v16 = vld [vmem:[%s1255_s0 + $0x20] sm:$0xff]   ;;  %v1035_v18 = vld [vmem:[%s1255_s0 + $0x28] sm:$0xff]   ;;  %791 = vst [vmem:[%s1256_s4 + $0x4c] sm:$0xf] %v851_v26 }
   0x7   :  { %956 = vmatpush3.bf16.msra.mxu0 %v1019_v1  ;;  %1010 = vmatpush3.bf16.msra.mxu1 %v1019_v1  ;;  %v1036_v17 = vld [vmem:[%s1255_s0 + $0x60] sm:$0xff]   ;;  %v1037_v19 = vld [vmem:[%s1255_s0 + $0x68] sm:$0xff]   ;;  %v1038_v20 = vld [vmem:[%s1255_s0 + $0x30] sm:$0xff]   ;;  %792 = vst [vmem:[%s1256_s4 + $0x50] sm:$0xf] %v850_v25 }
   0x8   :  { %957 = vmatprep.subr.bf16.mxu0 %v1020_v2  ;;  %1003 = vmatprep.subr.bf16.mxu1 %v1020_v2  ;;  %v1040_v21 = vld [vmem:[%s1255_s0 + $0x70] sm:$0xff]   ;;  %v1039_v22 = vld [vmem:[%s1255_s0 + $0x38] sm:$0xff]   ;;  %793 = vst [vmem:[%s1256_s4 + $0x54] sm:$0xf] %v851_v26  ;;  %794 = vst [vmem:[%s1256_s4 + $0x58] sm:$0xf] %v850_v25 }
   0x9   :  { %v1041_v23 = vld [vmem:[%s1255_s0 + $0x78] sm:$0xff]   ;;  %795 = vst [vmem:[%s1256_s4 + $0x5c] sm:$0xf] %v851_v26  ;;  %796 = vst [vmem:[%s1256_s4 + $0x60] sm:$0xf] %v850_v25 }
   0xa   :  { %797 = vst [vmem:[%s1256_s4 + $0x64] sm:$0xf] %v851_v26  ;;  %798 = vst [vmem:[%s1256_s4 + $0x68] sm:$0xf] %v850_v25  ;;  %v1191_v27 = vld [vmem:[%s1257_s2] ss:$0 sm:$0xff] }
   0xb   :  { %958 = vmatpush3.bf16.msra.mxu0 %v1020_v2  ;;  %1011 = vmatpush3.bf16.msra.mxu1 %v1020_v2  ;;  %799 = vst [vmem:[%s1256_s4 + $0x6c] sm:$0xf] %v851_v26  ;;  %800 = vst [vmem:[%s1256_s4 + $0x70] sm:$0xf] %v850_v25  ;;  %v1197_v33 = vld [vmem:[%s1258_s3] ss:$0 sm:$0xff] }
   0xc   :  { %959 = vmatprep.subr.bf16.mxu0 %v1021_v3  ;;  %1004 = vmatprep.subr.bf16.mxu1 %v1021_v3  ;;  %801 = vst [vmem:[%s1256_s4 + $0x74] sm:$0xf] %v851_v26  ;;  %802 = vst [vmem:[%s1256_s4 + $0x78] sm:$0xf] %v850_v25 }
   0xd   :  { %803 = vst [vmem:[%s1256_s4 + $0x7c] sm:$0xf] %v851_v26 }
   0xf   :  { %960 = vmatpush3.bf16.msra.mxu0 %v1021_v3  ;;  %1012 = vmatpush3.bf16.msra.mxu1 %v1021_v3 }
  0x10   :  { %961 = vmatprep.subr.bf16.mxu0 %v1022_v6  ;;  %1005 = vmatprep.subr.bf16.mxu1 %v1022_v6 }
  0x13   :  { %962 = vmatpush3.bf16.msra.mxu0 %v1022_v6  ;;  %1013 = vmatpush3.bf16.msra.mxu1 %v1022_v6 }
  0x14   :  { %963 = vmatprep.subr.bf16.mxu0 %v1023_v7  ;;  %1006 = vmatprep.subr.bf16.mxu1 %v1023_v7 }
  0x17   :  { %964 = vmatpush3.bf16.msra.mxu0 %v1023_v7  ;;  %1014 = vmatpush3.bf16.msra.mxu1 %v1023_v7 }
  0x18   :  { %965 = vmatprep.subr.bf16.mxu0 %v1024_v8  ;;  %1007 = vmatprep.subr.bf16.mxu1 %v1024_v8 }
  0x1b   :  { %966 = vmatpush3.bf16.msra.mxu0 %v1024_v8  ;;  %1015 = vmatpush3.bf16.msra.mxu1 %v1024_v8 }
  0x1c   :  { %967 = vmatprep.subr.bf16.mxu0 %v1025_v9  ;;  %1008 = vmatprep.subr.bf16.mxu1 %v1025_v9 }
  0x1f   :  { %968 = vmatpush3.bf16.msra.mxu0 %v1025_v9  ;;  %1016 = vmatpush3.bf16.msra.mxu1 %v1025_v9 }
  0x22   :  { %970 = vmatmul.mubr.bf16.vlgmr.msra.gmra.mrb[0].mxu0 %v1027_v10  ;;  %986 = vmatmul.mubr.bf16.vlgmr.msra.gmra.mrb[0].mxu1 %v1029_v11 }
  0x23   :  { %973 = vmatprep.mubr.bf16.mxu0 %v1030_v12  ;;  %989 = vmatprep.mubr.bf16.mxu1 %v1032_v13 }
  0x2a   :  { %974 = vmatmul.mubr.bf16.gmra.mrb[4].mxu0 %v1031_v14  ;;  %990 = vmatmul.mubr.bf16.gmra.mrb[4].mxu1 %v1033_v15 }
  0x2b   :  { %977 = vmatprep.mubr.bf16.mxu0 %v1034_v16  ;;  %993 = vmatprep.mubr.bf16.mxu1 %v1036_v17 }
  0x32   :  { %978 = vmatmul.mubr.bf16.gmra.mrb[8].mxu0 %v1035_v18  ;;  %994 = vmatmul.mubr.bf16.gmra.mrb[8].mxu1 %v1037_v19 }
  0x33   :  { %981 = vmatprep.mubr.bf16.mxu0 %v1038_v20  ;;  %997 = vmatprep.mubr.bf16.mxu1 %v1040_v21 }
  0x3a   :  { %982 = vmatmul.mubr.bf16.gmra.mrb[12].mxu0 %v1039_v22  ;;  %998 = vmatmul.mubr.bf16.gmra.mrb[12].mxu1 %v1041_v23 }
  0xf5   :  { %v971_v28 = vpop.f32.mrb[0].mxu0  ;;  %v987_v29 = vpop.f32.mrb[0].mxu1 }
  0xf6   :  { %v380_v30 = vmul.f32 %v971_v28, %v1191_v27  ;;  %v244_v31 = vpop.f32.mrb[1].mxu0  ;;  %v308_v32 = vpop.f32.mrb[1].mxu1 }
  0xf7   :  { %v378_v34 = vmul.f32 %v1191_v27, %v244_v31  ;;  %v972_v35 = vpop.f32.mrb[2].mxu0  ;;  %v988_v36 = vpop.f32.mrb[2].mxu1 }
  0xf8   :  { %v381_v37 = vmul.f32 %v972_v35, %v1191_v27  ;;  %v247_v38 = vpop.f32.mrb[3].mxu0  ;;  %v311_v39 = vpop.f32.mrb[3].mxu1  ;;  %v419_v41 = vadd.f32 %v1197_v33, %v380_v30 }
  0xf9   :  { %v379_v40 = vmul.f32 %v1191_v27, %v247_v38  ;;  %v417_v43 = vadd.f32 %v1197_v33, %v378_v34 }
  0xfa   :  { %v420_v42 = vadd.f32 %v1197_v33, %v381_v37 }
  0xfb   :  { %v418_v44 = vadd.f32 %v1197_v33, %v379_v40 }
  0xfc   :  { %v890_v45 = vpack.c.bf16 %v420_v42, %v419_v41 }
  0xfd   :  { %v885_v46 = vpack.c.bf16 %v418_v44, %v417_v43  ;;  %v975_v47 = vpop.f32.mrb[4].mxu0  ;;  %v991_v48 = vpop.f32.mrb[4].mxu1 }
  0xfe   :  { %922 = vst [vmem:[%s1256_s4 + $0x8] sm:$0xff] %v890_v45   ;;  %v384_v49 = vmul.f32 %v975_v47, %v1191_v27  ;;  %v260_v50 = vpop.f32.mrb[5].mxu0  ;;  %v324_v51 = vpop.f32.mrb[5].mxu1 }
  0xff   :  { %886 = vst [vmem:[%s1256_s4] sm:$0xff] %v885_v46   ;;  %v382_v52 = vmul.f32 %v1191_v27, %v260_v50  ;;  %v976_v53 = vpop.f32.mrb[6].mxu0  ;;  %v992_v54 = vpop.f32.mrb[6].mxu1 }
 0x100   :  { %v385_v55 = vmul.f32 %v976_v53, %v1191_v27  ;;  %v263_v56 = vpop.f32.mrb[7].mxu0  ;;  %v327_v57 = vpop.f32.mrb[7].mxu1  ;;  %v423_v59 = vadd.f32 %v1197_v33, %v384_v49 }
 0x101   :  { %v383_v58 = vmul.f32 %v1191_v27, %v263_v56  ;;  %v421_v61 = vadd.f32 %v1197_v33, %v382_v52 }
 0x102   :  { %v424_v60 = vadd.f32 %v1197_v33, %v385_v55 }
 0x103   :  { %v422_v62 = vadd.f32 %v1197_v33, %v383_v58 }
 0x104   :  { %v900_v63 = vpack.c.bf16 %v424_v60, %v423_v59 }
 0x105   :  { %v895_v0 = vpack.c.bf16 %v422_v62, %v421_v61  ;;  %v979_v1 = vpop.f32.mrb[8].mxu0  ;;  %v995_v2 = vpop.f32.mrb[8].mxu1 }
 0x106   :  { %924 = vst [vmem:[%s1256_s4 + $0x18] sm:$0xff] %v900_v63   ;;  %v388_v3 = vmul.f32 %v979_v1, %v1191_v27  ;;  %v276_v4 = vpop.f32.mrb[9].mxu0  ;;  %v340_v5 = vpop.f32.mrb[9].mxu1 }
 0x107   :  { %923 = vst [vmem:[%s1256_s4 + $0x10] sm:$0xff] %v895_v0   ;;  %v386_v6 = vmul.f32 %v1191_v27, %v276_v4  ;;  %v980_v7 = vpop.f32.mrb[10].mxu0  ;;  %v996_v8 = vpop.f32.mrb[10].mxu1 }
 0x108   :  { %v389_v9 = vmul.f32 %v980_v7, %v1191_v27  ;;  %v279_v10 = vpop.f32.mrb[11].mxu0  ;;  %v343_v11 = vpop.f32.mrb[11].mxu1  ;;  %v427_v13 = vadd.f32 %v1197_v33, %v388_v3 }
 0x109   :  { %v387_v12 = vmul.f32 %v1191_v27, %v279_v10  ;;  %v425_v15 = vadd.f32 %v1197_v33, %v386_v6 }
 0x10a   :  { %v428_v14 = vadd.f32 %v1197_v33, %v389_v9 }
 0x10b   :  { %v426_v16 = vadd.f32 %v1197_v33, %v387_v12 }
 0x10c   :  { %v910_v17 = vpack.c.bf16 %v428_v14, %v427_v13 }
 0x10d   :  { %v905_v18 = vpack.c.bf16 %v426_v16, %v425_v15  ;;  %v983_v19 = vpop.f32.mrb[12].mxu0  ;;  %v999_v20 = vpop.f32.mrb[12].mxu1 }
 0x10e   :  { %926 = vst [vmem:[%s1256_s4 + $0x28] sm:$0xff] %v910_v17   ;;  %v392_v21 = vmul.f32 %v983_v19, %v1191_v27  ;;  %v292_v22 = vpop.f32.mrb[13].mxu0  ;;  %v356_v23 = vpop.f32.mrb[13].mxu1 }
 0x10f   :  { %925 = vst [vmem:[%s1256_s4 + $0x20] sm:$0xff] %v905_v18   ;;  %v390_v24 = vmul.f32 %v1191_v27, %v292_v22  ;;  %v984_v25 = vpop.f32.mrb[14].mxu0  ;;  %v1000_v26 = vpop.f32.mrb[14].mxu1 }
 0x110   :  { %v393_v28 = vmul.f32 %v984_v25, %v1191_v27  ;;  %v295_v29 = vpop.f32.mrb[15].mxu0  ;;  %v359_v30 = vpop.f32.mrb[15].mxu1  ;;  %v431_v32 = vadd.f32 %v1197_v33, %v392_v21 }
 0x111   :  { %v391_v31 = vmul.f32 %v1191_v27, %v295_v29  ;;  %v429_v35 = vadd.f32 %v1197_v33, %v390_v24 }
 0x112   :  { %v432_v34 = vadd.f32 %v1197_v33, %v393_v28 }
 0x113   :  { %v430_v36 = vadd.f32 %v1197_v33, %v391_v31 }
 0x114   :  { %v920_v37 = vpack.c.bf16 %v432_v34, %v431_v32 }
 0x115   :  { %v915_v38 = vpack.c.bf16 %v430_v36, %v429_v35 }
 0x116   :  { %928 = vst [vmem:[%s1256_s4 + $0x38] sm:$0xff] %v920_v37  }
 0x117   :  { %927 = vst [vmem:[%s1256_s4 + $0x30] sm:$0xff] %v915_v38  }

// kernel: _lambda_.58
= control target key start
LH: loop header
LB: loop body
LE: loop exit
PB: predicated region body
PF: predicated region fallthrough
CT: control target
= control target key end

     0   :  { %s1005_s1 = inlined_call_operand.vmem [shape: bf16[128,128], index: 1, kind: input, shape index: {}]   ;;  %s1006_s0 = inlined_call_operand.vmem [shape: bf16[256,128], index: 0, kind: input, shape index: {}]   ;;  %s1007_s2 = inlined_call_operand.vmem [shape: f32[1,128], index: 2, kind: input, shape index: {}]   ;;  %s1008_s3 = inlined_call_operand.vmem [shape: f32[1,128], index: 3, kind: input, shape index: {}]   ;;  %s1009_s4 = inlined_call_operand.vmem [shape: bf16[2,128,128], index: 4, kind: output, shape index: {}]  }
   0x1   :  { %v826_v0 = vld [vmem:[%s1005_s1] sm:$0xff]   ;;  %v827_v1 = vld [vmem:[%s1005_s1 + $0x8] sm:$0xff]   ;;  %v828_v2 = vld [vmem:[%s1005_s1 + $0x10] sm:$0xff]  }
   0x2   :  { %778 = vmatprep.subr.bf16.mxu0 %v826_v0  ;;  %810 = vmatprep.subr.bf16.mxu1 %v826_v0  ;;  %v829_v3 = vld [vmem:[%s1005_s1 + $0x18] sm:$0xff]   ;;  %v834_v4 = vld [vmem:[%s1006_s0] sm:$0xff]   ;;  %v831_v7 = vld [vmem:[%s1005_s1 + $0x28] sm:$0xff]  }
   0x3   :  { %779 = vmatpush3.bf16.msra.mxu0 %v826_v0  ;;  %818 = vmatpush3.bf16.msra.mxu1 %v826_v0  ;;  %v835_v5 = vld [vmem:[%s1006_s0 + $0x20] sm:$0xff]   ;;  %v832_v8 = vld [vmem:[%s1005_s1 + $0x30] sm:$0xff]   ;;  %v833_v9 = vld [vmem:[%s1005_s1 + $0x38] sm:$0xff]  }
   0x4   :  { %780 = vmatprep.subr.bf16.mxu0 %v827_v1  ;;  %811 = vmatprep.subr.bf16.mxu1 %v827_v1  ;;  %v830_v6 = vld [vmem:[%s1005_s1 + $0x20] sm:$0xff]   ;;  %v836_v10 = vld [vmem:[%s1006_s0 + $0x8] sm:$0xff]   ;;  %v838_v12 = vld [vmem:[%s1006_s0 + $0x10] sm:$0xff]  }
   0x5   :  { %794 = vmatprep.mubr.bf16.mxu0 %v834_v4  ;;  %802 = vmatprep.mubr.bf16.mxu1 %v835_v5  ;;  %v837_v11 = vld [vmem:[%s1006_s0 + $0x28] sm:$0xff]   ;;  %v839_v13 = vld [vmem:[%s1006_s0 + $0x30] sm:$0xff]   ;;  %v840_v14 = vld [vmem:[%s1006_s0 + $0x18] sm:$0xff]  }
   0x6   :  { %v841_v15 = vld [vmem:[%s1006_s0 + $0x38] sm:$0xff]   ;;  %v918_v16 = vld [vmem:[%s1007_s2] ss:$0 sm:$0xff] }
   0x7   :  { %781 = vmatpush3.bf16.msra.mxu0 %v827_v1  ;;  %819 = vmatpush3.bf16.msra.mxu1 %v827_v1  ;;  %v923_v18 = vld [vmem:[%s1008_s3] ss:$0 sm:$0xff] }
   0x8   :  { %782 = vmatprep.subr.bf16.mxu0 %v828_v2  ;;  %812 = vmatprep.subr.bf16.mxu1 %v828_v2 }
   0xb   :  { %783 = vmatpush3.bf16.msra.mxu0 %v828_v2  ;;  %820 = vmatpush3.bf16.msra.mxu1 %v828_v2 }
   0xc   :  { %784 = vmatprep.subr.bf16.mxu0 %v829_v3  ;;  %813 = vmatprep.subr.bf16.mxu1 %v829_v3 }
   0xf   :  { %785 = vmatpush3.bf16.msra.mxu0 %v829_v3  ;;  %821 = vmatpush3.bf16.msra.mxu1 %v829_v3 }
  0x10   :  { %786 = vmatprep.subr.bf16.mxu0 %v830_v6  ;;  %814 = vmatprep.subr.bf16.mxu1 %v830_v6 }
  0x13   :  { %787 = vmatpush3.bf16.msra.mxu0 %v830_v6  ;;  %822 = vmatpush3.bf16.msra.mxu1 %v830_v6 }
  0x14   :  { %788 = vmatprep.subr.bf16.mxu0 %v831_v7  ;;  %815 = vmatprep.subr.bf16.mxu1 %v831_v7 }
  0x17   :  { %789 = vmatpush3.bf16.msra.mxu0 %v831_v7  ;;  %823 = vmatpush3.bf16.msra.mxu1 %v831_v7 }
  0x18   :  { %790 = vmatprep.subr.bf16.mxu0 %v832_v8  ;;  %816 = vmatprep.subr.bf16.mxu1 %v832_v8 }
  0x1b   :  { %791 = vmatpush3.bf16.msra.mxu0 %v832_v8  ;;  %824 = vmatpush3.bf16.msra.mxu1 %v832_v8 }
  0x1c   :  { %792 = vmatprep.subr.bf16.mxu0 %v833_v9  ;;  %817 = vmatprep.subr.bf16.mxu1 %v833_v9 }
  0x1f   :  { %793 = vmatpush3.bf16.msra.mxu0 %v833_v9  ;;  %825 = vmatpush3.bf16.msra.mxu1 %v833_v9 }
  0x22   :  { %795 = vmatmul.mubr.bf16.vlgmr.msra.gmra.mrb[0].mxu0 %v836_v10  ;;  %803 = vmatmul.mubr.bf16.vlgmr.msra.gmra.mrb[0].mxu1 %v837_v11 }
  0x23   :  { %798 = vmatprep.mubr.bf16.mxu0 %v838_v12  ;;  %806 = vmatprep.mubr.bf16.mxu1 %v839_v13 }
  0x2a   :  { %799 = vmatmul.mubr.bf16.gmra.mrb[4].mxu0 %v840_v14  ;;  %807 = vmatmul.mubr.bf16.gmra.mrb[4].mxu1 %v841_v15 }
  0xf5   :  { %v796_v17 = vpop.f32.mrb[0].mxu0  ;;  %v804_v19 = vpop.f32.mrb[0].mxu1 }
  0xf6   :  { %v252_v20 = vmul.f32 %v796_v17, %v918_v16  ;;  %v260_v21 = vmul.f32 %v804_v19, %v918_v16  ;;  %v180_v22 = vpop.f32.mrb[1].mxu0  ;;  %v212_v23 = vpop.f32.mrb[1].mxu1 }
  0xf7   :  { %v250_v24 = vmul.f32 %v918_v16, %v180_v22  ;;  %v258_v25 = vmul.f32 %v918_v16, %v212_v23  ;;  %v797_v26 = vpop.f32.mrb[2].mxu0  ;;  %v805_v27 = vpop.f32.mrb[2].mxu1 }
  0xf8   :  { %v275_v28 = vadd.f32 %v923_v18, %v252_v20  ;;  %v283_v29 = vadd.f32 %v923_v18, %v260_v21  ;;  %v253_v30 = vmul.f32 %v797_v26, %v918_v16  ;;  %v261_v31 = vmul.f32 %v805_v27, %v918_v16  ;;  %v183_v32 = vpop.f32.mrb[3].mxu0  ;;  %v215_v33 = vpop.f32.mrb[3].mxu1 }
  0xf9   :  { %v273_v34 = vadd.f32 %v923_v18, %v250_v24  ;;  %v281_v35 = vadd.f32 %v923_v18, %v258_v25  ;;  %v251_v36 = vmul.f32 %v918_v16, %v183_v32  ;;  %v259_v37 = vmul.f32 %v918_v16, %v215_v33 }
  0xfa   :  { %v390_v38 = vmax.f32 %v275_v28, 0.0  ;;  %v398_v39 = vmax.f32 %v283_v29, 0.0  ;;  %v276_v40 = vadd.f32 %v923_v18, %v253_v30  ;;  %v284_v41 = vadd.f32 %v923_v18, %v261_v31 }
  0xfb   :  { %v388_v42 = vmax.f32 %v273_v34, 0.0  ;;  %v396_v43 = vmax.f32 %v281_v35, 0.0  ;;  %v274_v44 = vadd.f32 %v923_v18, %v251_v36  ;;  %v282_v45 = vadd.f32 %v923_v18, %v259_v37 }
  0xfc   :  { %v391_v46 = vmax.f32 %v276_v40, 0.0  ;;  %v715_v47 = vpack.c.bf16 %v276_v40, %v275_v28  ;;  %v399_v48 = vmax.f32 %v284_v41, 0.0  ;;  %v735_v49 = vpack.c.bf16 %v284_v41, %v283_v29 }
  0xfd   :  { %v389_v50 = vmax.f32 %v274_v44, 0.0  ;;  %v710_v51 = vpack.c.bf16 %v274_v44, %v273_v34  ;;  %v397_v52 = vmax.f32 %v282_v45, 0.0  ;;  %v730_v53 = vpack.c.bf16 %v282_v45, %v281_v35  ;;  %v800_v54 = vpop.f32.mrb[4].mxu0  ;;  %v808_v55 = vpop.f32.mrb[4].mxu1 }
  0xfe   :  { %v675_v56 = vpack.c.bf16 %v391_v46, %v390_v38  ;;  %755 = vst [vmem:[%s1009_s4 + $0x48] sm:$0xff] %v715_v47   ;;  %v695_v57 = vpack.c.bf16 %v399_v48, %v398_v39  ;;  %759 = vst [vmem:[%s1009_s4 + $0x68] sm:$0xff] %v735_v49   ;;  %v256_v58 = vmul.f32 %v800_v54, %v918_v16  ;;  %v196_v60 = vpop.f32.mrb[5].mxu0  ;;  %v228_v61 = vpop.f32.mrb[5].mxu1 }
  0xff   :  { %v264_v59 = vmul.f32 %v808_v55, %v918_v16  ;;  %v670_v62 = vpack.c.bf16 %v389_v50, %v388_v42  ;;  %754 = vst [vmem:[%s1009_s4 + $0x40] sm:$0xff] %v710_v51   ;;  %v690_v63 = vpack.c.bf16 %v397_v52, %v396_v43  ;;  %758 = vst [vmem:[%s1009_s4 + $0x60] sm:$0xff] %v730_v53   ;;  %v801_v2 = vpop.f32.mrb[6].mxu0  ;;  %v809_v3 = vpop.f32.mrb[6].mxu1 }
 0x100   :  { %v254_v0 = vmul.f32 %v918_v16, %v196_v60  ;;  %v262_v1 = vmul.f32 %v918_v16, %v228_v61  ;;  %747 = vst [vmem:[%s1009_s4 + $0x8] sm:$0xff] %v675_v56   ;;  %751 = vst [vmem:[%s1009_s4 + $0x28] sm:$0xff] %v695_v57   ;;  %v279_v4 = vadd.f32 %v923_v18, %v256_v58  ;;  %v199_v8 = vpop.f32.mrb[7].mxu0  ;;  %v231_v9 = vpop.f32.mrb[7].mxu1 }
 0x101   :  { %v287_v5 = vadd.f32 %v923_v18, %v264_v59  ;;  %v257_v6 = vmul.f32 %v801_v2, %v918_v16  ;;  %v265_v7 = vmul.f32 %v809_v3, %v918_v16  ;;  %671 = vst [vmem:[%s1009_s4] sm:$0xff] %v670_v62   ;;  %750 = vst [vmem:[%s1009_s4 + $0x20] sm:$0xff] %v690_v63  }
 0x102   :  { %v277_v10 = vadd.f32 %v923_v18, %v254_v0  ;;  %v285_v11 = vadd.f32 %v923_v18, %v262_v1  ;;  %v255_v12 = vmul.f32 %v918_v16, %v199_v8  ;;  %v263_v13 = vmul.f32 %v918_v16, %v231_v9 }
 0x103   :  { %v394_v14 = vmax.f32 %v279_v4, 0.0  ;;  %v402_v15 = vmax.f32 %v287_v5, 0.0  ;;  %v280_v17 = vadd.f32 %v923_v18, %v257_v6  ;;  %v288_v19 = vadd.f32 %v923_v18, %v265_v7 }
 0x104   :  { %v392_v20 = vmax.f32 %v277_v10, 0.0  ;;  %v400_v21 = vmax.f32 %v285_v11, 0.0  ;;  %v278_v22 = vadd.f32 %v923_v18, %v255_v12  ;;  %v286_v23 = vadd.f32 %v923_v18, %v263_v13 }
 0x105   :  { %v395_v24 = vmax.f32 %v280_v17, 0.0  ;;  %v725_v25 = vpack.c.bf16 %v280_v17, %v279_v4  ;;  %v403_v26 = vmax.f32 %v288_v19, 0.0  ;;  %v745_v27 = vpack.c.bf16 %v288_v19, %v287_v5 }
 0x106   :  { %v393_v28 = vmax.f32 %v278_v22, 0.0  ;;  %v720_v29 = vpack.c.bf16 %v278_v22, %v277_v10  ;;  %v401_v30 = vmax.f32 %v286_v23, 0.0  ;;  %v740_v16 = vpack.c.bf16 %v286_v23, %v285_v11 }
 0x107   :  { %v685_v31 = vpack.c.bf16 %v395_v24, %v394_v14  ;;  %757 = vst [vmem:[%s1009_s4 + $0x58] sm:$0xff] %v725_v25   ;;  %v705_v32 = vpack.c.bf16 %v403_v26, %v402_v15  ;;  %761 = vst [vmem:[%s1009_s4 + $0x78] sm:$0xff] %v745_v27  }
 0x108   :  { %v680_v33 = vpack.c.bf16 %v393_v28, %v392_v20  ;;  %756 = vst [vmem:[%s1009_s4 + $0x50] sm:$0xff] %v720_v29   ;;  %v700_v18 = vpack.c.bf16 %v401_v30, %v400_v21  ;;  %760 = vst [vmem:[%s1009_s4 + $0x70] sm:$0xff] %v740_v16  }
 0x109   :  { %749 = vst [vmem:[%s1009_s4 + $0x18] sm:$0xff] %v685_v31   ;;  %753 = vst [vmem:[%s1009_s4 + $0x38] sm:$0xff] %v705_v32  }
 0x10a   :  { %748 = vst [vmem:[%s1009_s4 + $0x10] sm:$0xff] %v680_v33   ;;  %752 = vst [vmem:[%s1009_s4 + $0x30] sm:$0xff] %v700_v18  }

// kernel: _lambda_.57
= control target key start
LH: loop header
LB: loop body
LE: loop exit
PB: predicated region body
PF: predicated region fallthrough
CT: control target
= control target key end

     0   :  { %v455_v24 = vlaneseq  ;;  %v1665_v32 = vmov 1.0   ;;  %s1978_s1 = inlined_call_operand.vmem [shape: bf16[128,128], index: 1, kind: input, shape index: {}]   ;;  %s1979_s0 = inlined_call_operand.vmem [shape: bf16[256,128], index: 0, kind: input, shape index: {}]   ;;  %s1980_s4 = inlined_call_operand.vmem [shape: bf16[256,128], index: 4, kind: input, shape index: {}]   ;;  %s1981_s2 = inlined_call_operand.vmem [shape: f32[1,128], index: 2, kind: input, shape index: {}]   ;;  %s1982_s3 = inlined_call_operand.vmem [shape: f32[1,128], index: 3, kind: input, shape index: {}]   ;;  %s1983_s5 = inlined_call_operand.vmem [shape: bf16[256,128], index: 5, kind: output, shape index: {0}]   ;;  %s1984_s6 = inlined_call_operand.vmem [shape: f32[1,8,128], index: 6, kind: output, shape index: {1}]  }
   0x1   :  { %v1641_v0 = vld [vmem:[%s1978_s1] sm:$0xff]   ;;  %v1642_v1 = vld [vmem:[%s1978_s1 + $0x8] sm:$0xff]   ;;  %v1643_v2 = vld [vmem:[%s1978_s1 + $0x10] sm:$0xff]  }
   0x2   :  { %1544 = vmatprep.subr.bf16.mxu0 %v1641_v0  ;;  %1624 = vmatprep.subr.bf16.mxu1 %v1641_v0  ;;  %v1644_v3 = vld [vmem:[%s1978_s1 + $0x18] sm:$0xff]   ;;  %v1649_v4 = vld [vmem:[%s1979_s0] sm:$0xff]   ;;  %v1646_v7 = vld [vmem:[%s1978_s1 + $0x28] sm:$0xff]   ;;  %v456_v25 = vshrl.u32 %v455_v24, 7  ;;  %v1162_v27 = vand.u32 127, %v455_v24 }
   0x3   :  { %1545 = vmatpush3.bf16.msra.mxu0 %v1641_v0  ;;  %1632 = vmatpush3.bf16.msra.mxu1 %v1641_v0  ;;  %v1650_v5 = vld [vmem:[%s1979_s0 + $0x40] sm:$0xff]   ;;  %v1647_v8 = vld [vmem:[%s1978_s1 + $0x30] sm:$0xff]   ;;  %v1648_v9 = vld [vmem:[%s1978_s1 + $0x38] sm:$0xff]  }
   0x4   :  { %1546 = vmatprep.subr.bf16.mxu0 %v1642_v1  ;;  %1625 = vmatprep.subr.bf16.mxu1 %v1642_v1  ;;  %v1645_v6 = vld [vmem:[%s1978_s1 + $0x20] sm:$0xff]   ;;  %v1651_v10 = vld [vmem:[%s1979_s0 + $0x8] sm:$0xff]   ;;  %v1653_v12 = vld [vmem:[%s1979_s0 + $0x10] sm:$0xff]   ;;  %v1166_v26 = vmul.u32 64, %v456_v25  ;;  %v1163_v29 = vadd.s32 128, %v1162_v27  ;;  %vm1168_vm0 = vcmp.lt.s32.totalorder %v456_v25, 2 }
   0x5   :  { %1560 = vmatprep.mubr.bf16.mxu0 %v1649_v4  ;;  %1576 = vmatprep.mubr.bf16.mxu1 %v1650_v5  ;;  %v1652_v11 = vld [vmem:[%s1979_s0 + $0x48] sm:$0xff]   ;;  %v1654_v13 = vld [vmem:[%s1979_s0 + $0x50] sm:$0xff]   ;;  %v1655_v14 = vld [vmem:[%s1979_s0 + $0x18] sm:$0xff]  }
   0x6   :  { %v1656_v15 = vld [vmem:[%s1979_s0 + $0x58] sm:$0xff]   ;;  %v1657_v16 = vld [vmem:[%s1979_s0 + $0x20] sm:$0xff]   ;;  %v1659_v18 = vld [vmem:[%s1979_s0 + $0x28] sm:$0xff]   ;;  %v1167_v28 = vadd.s32 128, %v1166_v26 }
   0x7   :  { %1547 = vmatpush3.bf16.msra.mxu0 %v1642_v1  ;;  %1633 = vmatpush3.bf16.msra.mxu1 %v1642_v1  ;;  %v1658_v17 = vld [vmem:[%s1979_s0 + $0x60] sm:$0xff]   ;;  %v1660_v19 = vld [vmem:[%s1979_s0 + $0x68] sm:$0xff]   ;;  %v1661_v20 = vld [vmem:[%s1979_s0 + $0x30] sm:$0xff]  }
   0x8   :  { %1548 = vmatprep.subr.bf16.mxu0 %v1643_v2  ;;  %1626 = vmatprep.subr.bf16.mxu1 %v1643_v2  ;;  %v1662_v21 = vld [vmem:[%s1979_s0 + $0x70] sm:$0xff]   ;;  %v1663_v22 = vld [vmem:[%s1979_s0 + $0x38] sm:$0xff]   ;;  %v1173_v30 = vadd.s32 64, %v1167_v28  ;;  %vm1169_vm1 = vcmp.ge.s32.totalorder %v1162_v27, %v1167_v28  ;;  %vm1170_vm2 = vcmp.ge.s32.totalorder %v1163_v29, %v1167_v28  ;;  %v1463_v33 = vld [vmem:[%s1980_s4 + $0x8] sm:$0xff]  }
   0x9   :  { %v1664_v23 = vld [vmem:[%s1979_s0 + $0x78] sm:$0xff]   ;;  %vm1171_vm3 = vmand %vm1168_vm0, %vm1169_vm1  ;;  %v1352_v34 = vld [vmem:[%s1980_s4] sm:$0xff]   ;;  %v1357_v40 = vunpack.c.l.bf16 %v1463_v33  ;;  %v1358_v43 = vunpack.c.h.bf16 %v1463_v33 }
   0xa   :  { %vm1174_vm4 = vcmp.lt.s32.totalorder %v1162_v27, %v1173_v30  ;;  %vm1175_vm5 = vcmp.lt.s32.totalorder %v1163_v29, %v1173_v30  ;;  %vm1172_vm6 = vmand %vm1168_vm0, %vm1170_vm2  ;;  %v1787_v35 = vld [vmem:[%s1981_s2] ss:$0 sm:$0xff]  ;;  %v1792_v36 = vld [vmem:[%s1980_s4 + $0x18] sm:$0xff]   ;;  %v1353_v42 = vunpack.c.l.bf16 %v1352_v34  ;;  %v1354_v44 = vunpack.c.h.bf16 %v1352_v34 }
   0xb   :  { %1549 = vmatpush3.bf16.msra.mxu0 %v1643_v2  ;;  %1634 = vmatpush3.bf16.msra.mxu1 %v1643_v2  ;;  %vm1773_vm7 = vmand %vm1171_vm3, %vm1174_vm4  ;;  %v1797_v37 = vld [vmem:[%s1980_s4 + $0x10] sm:$0xff]   ;;  %v1802_v39 = vld [vmem:[%s1982_s3] ss:$0 sm:$0xff]  ;;  %v1365_v49 = vunpack.c.l.bf16 %v1792_v36  ;;  %v1366_v55 = vunpack.c.h.bf16 %v1792_v36 }
   0xc   :  { %1550 = vmatprep.subr.bf16.mxu0 %v1644_v3  ;;  %1627 = vmatprep.subr.bf16.mxu1 %v1644_v3  ;;  %vm1177_vm8 = vmand %vm1172_vm6, %vm1175_vm5  ;;  %v1361_v50 = vunpack.c.l.bf16 %v1797_v37  ;;  %v1362_v56 = vunpack.c.h.bf16 %v1797_v37  ;;  %v1819_v63 = vld [vmem:[%s1980_s4 + $0x28] sm:$0xff]   ;;  %v1828_v4 = vld [vmem:[%s1980_s4 + $0x20] sm:$0xff]  }
   0xf   :  { %1551 = vmatpush3.bf16.msra.mxu0 %v1644_v3  ;;  %1635 = vmatpush3.bf16.msra.mxu1 %v1644_v3 }
  0x10   :  { %1552 = vmatprep.subr.bf16.mxu0 %v1645_v6  ;;  %1628 = vmatprep.subr.bf16.mxu1 %v1645_v6 }
  0x13   :  { %1553 = vmatpush3.bf16.msra.mxu0 %v1645_v6  ;;  %1636 = vmatpush3.bf16.msra.mxu1 %v1645_v6 }
  0x14   :  { %1554 = vmatprep.subr.bf16.mxu0 %v1646_v7  ;;  %1629 = vmatprep.subr.bf16.mxu1 %v1646_v7 }
  0x17   :  { %1555 = vmatpush3.bf16.msra.mxu0 %v1646_v7  ;;  %1637 = vmatpush3.bf16.msra.mxu1 %v1646_v7 }
  0x18   :  { %1556 = vmatprep.subr.bf16.mxu0 %v1647_v8  ;;  %1630 = vmatprep.subr.bf16.mxu1 %v1647_v8 }
  0x1b   :  { %1557 = vmatpush3.bf16.msra.mxu0 %v1647_v8  ;;  %1638 = vmatpush3.bf16.msra.mxu1 %v1647_v8 }
  0x1c   :  { %1558 = vmatprep.subr.bf16.mxu0 %v1648_v9  ;;  %1631 = vmatprep.subr.bf16.mxu1 %v1648_v9 }
  0x1f   :  { %1559 = vmatpush3.bf16.msra.mxu0 %v1648_v9  ;;  %1639 = vmatpush3.bf16.msra.mxu1 %v1648_v9 }
  0x22   :  { %1561 = vmatmul.mubr.bf16.vlgmr.msra.gmra.mrb[0].mxu0 %v1651_v10  ;;  %1577 = vmatmul.mubr.bf16.vlgmr.msra.gmra.mrb[0].mxu1 %v1652_v11 }
  0x23   :  { %1564 = vmatprep.mubr.bf16.mxu0 %v1653_v12  ;;  %1580 = vmatprep.mubr.bf16.mxu1 %v1654_v13  ;;  %v1373_v12 = vunpack.c.l.bf16 %v1819_v63 }
  0x2a   :  { %1565 = vmatmul.mubr.bf16.gmra.mrb[4].mxu0 %v1655_v14  ;;  %1581 = vmatmul.mubr.bf16.gmra.mrb[4].mxu1 %v1656_v15 }
  0x2b   :  { %1568 = vmatprep.mubr.bf16.mxu0 %v1657_v16  ;;  %1584 = vmatprep.mubr.bf16.mxu1 %v1658_v17  ;;  %v1369_v16 = vunpack.c.l.bf16 %v1828_v4 }
  0x32   :  { %1569 = vmatmul.mubr.bf16.gmra.mrb[8].mxu0 %v1659_v18  ;;  %1585 = vmatmul.mubr.bf16.gmra.mrb[8].mxu1 %v1660_v19 }
  0x33   :  { %1572 = vmatprep.mubr.bf16.mxu0 %v1661_v20  ;;  %1588 = vmatprep.mubr.bf16.mxu1 %v1662_v21 }
  0x3a   :  { %1573 = vmatmul.mubr.bf16.gmra.mrb[12].mxu0 %v1663_v22  ;;  %1589 = vmatmul.mubr.bf16.gmra.mrb[12].mxu1 %v1664_v23 }
  0x3b   :  { %1317 = vmatprep.mubr.msk.f32.mxu1 %vm1177_vm8, %v1665_v32 }
  0xf5   :  { %v1562_v38 = vpop.f32.mrb[0].mxu0  ;;  %v1578_v41 = vpop.f32.mrb[0].mxu1 }
  0xf6   :  { %v385_v45 = vmul.f32 %v1562_v38, %v1787_v35  ;;  %v401_v46 = vmul.f32 %v1578_v41, %v1787_v35  ;;  %v249_v47 = vpop.f32.mrb[1].mxu0  ;;  %v313_v48 = vpop.f32.mrb[1].mxu1 }
  0xf7   :  { %v383_v51 = vmul.f32 %v1787_v35, %v249_v47  ;;  %v399_v52 = vmul.f32 %v1787_v35, %v313_v48  ;;  %v1563_v53 = vpop.f32.mrb[2].mxu0  ;;  %v1579_v54 = vpop.f32.mrb[2].mxu1 }
  0xf8   :  { %v424_v57 = vadd.f32 %v1802_v39, %v385_v45  ;;  %v440_v58 = vadd.f32 %v1802_v39, %v401_v46  ;;  %v386_v59 = vmul.f32 %v1563_v53, %v1787_v35  ;;  %v402_v60 = vmul.f32 %v1579_v54, %v1787_v35  ;;  %v252_v61 = vpop.f32.mrb[3].mxu0  ;;  %v316_v62 = vpop.f32.mrb[3].mxu1  ;;  %v1855_v53 = vld [vmem:[%s1980_s4 + $0x38] sm:$0xff]  }
  0xf9   :  { %v422_v0 = vadd.f32 %v1802_v39, %v383_v51  ;;  %v438_v1 = vadd.f32 %v1802_v39, %v399_v52  ;;  %v384_v2 = vmul.f32 %v1787_v35, %v252_v61  ;;  %v400_v3 = vmul.f32 %v1787_v35, %v316_v62 }
  0xfa   :  { %v843_v5 = vadd.f32 %v1357_v40, %v424_v57  ;;  %v891_v6 = vmax.f32 %v440_v58, 0.0  ;;  %v425_v7 = vadd.f32 %v1802_v39, %v386_v59  ;;  %v441_v8 = vadd.f32 %v1802_v39, %v402_v60 }
  0xfb   :  { %v841_v9 = vadd.f32 %v1353_v42, %v422_v0  ;;  %v423_v10 = vadd.f32 %v1802_v39, %v384_v2  ;;  %v439_v11 = vadd.f32 %v1802_v39, %v400_v3  ;;  %v889_v13 = vmax.f32 %v438_v1, 0.0 }
  0xfc   :  { %v844_v14 = vadd.f32 %v1358_v43, %v425_v7  ;;  %v892_v15 = vmax.f32 %v441_v8, 0.0  ;;  %v875_v17 = vmax.f32 %v843_v5, 0.0  ;;  %v1374_v52 = vunpack.c.h.bf16 %v1819_v63 }
  0xfd   :  { %v873_v18 = vmax.f32 %v841_v9, 0.0  ;;  %v842_v19 = vadd.f32 %v1354_v44, %v423_v10  ;;  %v890_v20 = vmax.f32 %v439_v11, 0.0  ;;  %v1566_v21 = vpop.f32.mrb[4].mxu0  ;;  %v1582_v22 = vpop.f32.mrb[4].mxu1  ;;  %v1370_v59 = vunpack.c.h.bf16 %v1828_v4 }
  0xfe   :  { %v876_v23 = vmax.f32 %v844_v14, 0.0  ;;  %v389_v24 = vmul.f32 %v1566_v21, %v1787_v35  ;;  %v405_v25 = vmul.f32 %v1582_v22, %v1787_v35  ;;  %v265_v26 = vpop.f32.mrb[5].mxu0  ;;  %v329_v27 = vpop.f32.mrb[5].mxu1  ;;  %v1431_v28 = vpack.c.bf16 %v892_v15, %v891_v6  ;;  %v1885_v15 = vld [vmem:[%s1980_s4 + $0x30] sm:$0xff]  }
  0xff   :  { %v874_v29 = vmax.f32 %v842_v19, 0.0  ;;  %v387_v30 = vmul.f32 %v1787_v35, %v265_v26  ;;  %v403_v33 = vmul.f32 %v1787_v35, %v329_v27  ;;  %v1567_v34 = vpop.f32.mrb[6].mxu0  ;;  %v1583_v38 = vpop.f32.mrb[6].mxu1  ;;  %v1426_v40 = vpack.c.bf16 %v890_v20, %v889_v13 }
 0x100   :  { %v1391_v41 = vpack.c.bf16 %v876_v23, %v875_v17  ;;  %v428_v42 = vadd.f32 %v1802_v39, %v389_v24  ;;  %v444_v43 = vadd.f32 %v1802_v39, %v405_v25  ;;  %v390_v44 = vmul.f32 %v1567_v34, %v1787_v35  ;;  %v268_v45 = vpop.f32.mrb[7].mxu0  ;;  %v332_v46 = vpop.f32.mrb[7].mxu1  ;;  %1478 = vst [vmem:[%s1983_s5 + $0x48] sm:$0xff] %v1431_v28  }
 0x101   :  { %v1386_v47 = vpack.c.bf16 %v874_v29, %v873_v18  ;;  %v426_v48 = vadd.f32 %v1802_v39, %v387_v30  ;;  %v406_v51 = vmul.f32 %v1583_v38, %v1787_v35  ;;  %1477 = vst [vmem:[%s1983_s5 + $0x40] sm:$0xff] %v1426_v40   ;;  %1593 = vmatprep.subr.bf16.mxu1 %v1426_v40  ;;  %v1381_v3 = vunpack.c.l.bf16 %v1855_v53 }
 0x102   :  { %1470 = vst [vmem:[%s1983_s5 + $0x8] sm:$0xff] %v1391_v41   ;;  %v847_v54 = vadd.f32 %v1365_v49, %v428_v42  ;;  %v429_v57 = vadd.f32 %v1802_v39, %v390_v44  ;;  %v388_v58 = vmul.f32 %v1787_v35, %v268_v45  ;;  %v895_v60 = vmax.f32 %v444_v43, 0.0 }
 0x103   :  { %1387 = vst [vmem:[%s1983_s5] sm:$0xff] %v1386_v47   ;;  %v845_v61 = vadd.f32 %v1361_v50, %v426_v48  ;;  %v445_v62 = vadd.f32 %v1802_v39, %v406_v51  ;;  %v404_v0 = vmul.f32 %v1787_v35, %v332_v46  ;;  %1595 = vmatpush3.bf16.msra.mxu1 %v1386_v47  ;;  %v1377_v30 = vunpack.c.l.bf16 %v1885_v15 }
 0x104   :  { %v442_v49 = vadd.f32 %v1802_v39, %v403_v33  ;;  %v848_v1 = vadd.f32 %v1366_v55, %v429_v57  ;;  %v427_v2 = vadd.f32 %v1802_v39, %v388_v58  ;;  %1597 = vmatprep.subr.bf16.mxu1 %v1431_v28  ;;  %v879_v5 = vmax.f32 %v847_v54, 0.0 }
 0x105   :  { %v877_v6 = vmax.f32 %v845_v61, 0.0  ;;  %v896_v7 = vmax.f32 %v445_v62, 0.0  ;;  %v443_v50 = vadd.f32 %v1802_v39, %v404_v0  ;;  %v1570_v8 = vpop.f32.mrb[8].mxu0  ;;  %v1586_v9 = vpop.f32.mrb[8].mxu1 }
 0x106   :  { %v880_v10 = vmax.f32 %v848_v1, 0.0  ;;  %v846_v11 = vadd.f32 %v1362_v56, %v427_v2  ;;  %v393_v13 = vmul.f32 %v1570_v8, %v1787_v35  ;;  %v409_v36 = vmul.f32 %v1586_v9, %v1787_v35  ;;  %v281_v55 = vpop.f32.mrb[9].mxu0  ;;  %v345_v14 = vpop.f32.mrb[9].mxu1 }
 0x107   :  { %v894_v17 = vmax.f32 %v443_v50, 0.0  ;;  %v391_v18 = vmul.f32 %v1787_v35, %v281_v55  ;;  %v407_v19 = vmul.f32 %v1787_v35, %v345_v14  ;;  %v1571_v20 = vpop.f32.mrb[10].mxu0  ;;  %v1587_v21 = vpop.f32.mrb[10].mxu1  ;;  %1599 = vmatpush3.bf16.msra.mxu1 %v1391_v41  ;;  %v1441_v37 = vpack.c.bf16 %v896_v7, %v895_v60 }
 0x108   :  { %v1889_v56 = vpack.c.bf16 %v880_v10, %v879_v5  ;;  %v878_v22 = vmax.f32 %v846_v11, 0.0  ;;  %v432_v23 = vadd.f32 %v1802_v39, %v393_v13  ;;  %v448_v24 = vadd.f32 %v1802_v39, %v409_v36  ;;  %v284_v25 = vpop.f32.mrb[11].mxu0  ;;  %v348_v26 = vpop.f32.mrb[11].mxu1 }
 0x109   :  { %v430_v27 = vadd.f32 %v1802_v39, %v391_v18  ;;  %v394_v28 = vmul.f32 %v1571_v20, %v1787_v35  ;;  %v410_v29 = vmul.f32 %v1587_v21, %v1787_v35  ;;  %1480 = vst [vmem:[%s1983_s5 + $0x58] sm:$0xff] %v1441_v37   ;;  %v893_v33 = vmax.f32 %v442_v49, 0.0 }
 0x10a   :  { %1472 = vst [vmem:[%s1983_s5 + $0x18] sm:$0xff] %v1889_v56   ;;  %v1396_v34 = vpack.c.bf16 %v878_v22, %v877_v6  ;;  %v851_v38 = vadd.f32 %v1373_v12, %v432_v23  ;;  %v392_v40 = vmul.f32 %v1787_v35, %v284_v25  ;;  %v899_v41 = vmax.f32 %v448_v24, 0.0 }
 0x10b   :  { %v849_v42 = vadd.f32 %v1369_v16, %v430_v27  ;;  %v433_v43 = vadd.f32 %v1802_v39, %v394_v28  ;;  %v449_v44 = vadd.f32 %v1802_v39, %v410_v29  ;;  %v446_v45 = vadd.f32 %v1802_v39, %v407_v19 }
 0x10c   :  { %1471 = vst [vmem:[%s1983_s5 + $0x10] sm:$0xff] %v1396_v34   ;;  %v431_v46 = vadd.f32 %v1802_v39, %v392_v40  ;;  %v408_v12 = vmul.f32 %v1787_v35, %v348_v26  ;;  %v1436_v47 = vpack.c.bf16 %v894_v17, %v893_v33  ;;  %v883_v48 = vmax.f32 %v851_v38, 0.0 }
 0x10d   :  { %v881_v51 = vmax.f32 %v849_v42, 0.0  ;;  %v852_v16 = vadd.f32 %v1374_v52, %v433_v43  ;;  %v900_v54 = vmax.f32 %v449_v44, 0.0  ;;  %v1574_v57 = vpop.f32.mrb[12].mxu0  ;;  %v1590_v58 = vpop.f32.mrb[12].mxu1  ;;  %v1382_v55 = vunpack.c.h.bf16 %v1855_v53 }
 0x10e   :  { %v850_v60 = vadd.f32 %v1370_v59, %v431_v46  ;;  %v447_v61 = vadd.f32 %v1802_v39, %v408_v12  ;;  %1479 = vst [vmem:[%s1983_s5 + $0x50] sm:$0xff] %v1436_v47   ;;  %1601 = vmatprep.subr.bf16.mxu1 %v1436_v47  ;;  %v397_v62 = vmul.f32 %v1574_v57, %v1787_v35  ;;  %v297_v49 = vpop.f32.mrb[13].mxu0  ;;  %v361_v63 = vpop.f32.mrb[13].mxu1  ;;  %v897_v14 = vmax.f32 %v446_v45, 0.0 }
 0x10f   :  { %v413_v0 = vmul.f32 %v1590_v58, %v1787_v35  ;;  %v884_v52 = vmax.f32 %v852_v16, 0.0  ;;  %1603 = vmatpush3.bf16.msra.mxu1 %v1396_v34  ;;  %v395_v1 = vmul.f32 %v1787_v35, %v297_v49  ;;  %v411_v4 = vmul.f32 %v1787_v35, %v361_v63  ;;  %v1575_v59 = vpop.f32.mrb[14].mxu0  ;;  %v1591_v2 = vpop.f32.mrb[14].mxu1 }
 0x110   :  { %v1451_v5 = vpack.c.bf16 %v900_v54, %v899_v41  ;;  %v882_v6 = vmax.f32 %v850_v60, 0.0  ;;  %v898_v7 = vmax.f32 %v447_v61, 0.0  ;;  %1605 = vmatprep.subr.bf16.mxu1 %v1441_v37  ;;  %v436_v50 = vadd.f32 %v1802_v39, %v397_v62  ;;  %v300_v9 = vpop.f32.mrb[15].mxu0  ;;  %v364_v10 = vpop.f32.mrb[15].mxu1 }
 0x111   :  { %v452_v8 = vadd.f32 %v1802_v39, %v413_v0  ;;  %v1411_v11 = vpack.c.bf16 %v884_v52, %v883_v48  ;;  %v434_v13 = vadd.f32 %v1802_v39, %v395_v1  ;;  %v398_v36 = vmul.f32 %v1575_v59, %v1787_v35 }
 0x112   :  { %1482 = vst [vmem:[%s1983_s5 + $0x68] sm:$0xff] %v1451_v5   ;;  %v1406_v17 = vpack.c.bf16 %v882_v6, %v881_v51  ;;  %v414_v18 = vmul.f32 %v1591_v2, %v1787_v35  ;;  %v1378_v19 = vunpack.c.h.bf16 %v1885_v15  ;;  %v855_v20 = vadd.f32 %v1381_v3, %v436_v50 }
 0x113   :  { %1474 = vst [vmem:[%s1983_s5 + $0x28] sm:$0xff] %v1411_v11   ;;  %v450_v21 = vadd.f32 %v1802_v39, %v411_v4  ;;  %v437_v37 = vadd.f32 %v1802_v39, %v398_v36  ;;  %1607 = vmatpush3.bf16.msra.mxu1 %v1889_v56  ;;  %v396_v22 = vmul.f32 %v1787_v35, %v300_v9  ;;  %v903_v23 = vmax.f32 %v452_v8, 0.0 }
 0x114   :  { %1473 = vst [vmem:[%s1983_s5 + $0x20] sm:$0xff] %v1406_v17   ;;  %v453_v24 = vadd.f32 %v1802_v39, %v414_v18  ;;  %v412_v25 = vmul.f32 %v1787_v35, %v364_v10  ;;  %v1446_v26 = vpack.c.bf16 %v898_v7, %v897_v14  ;;  %v853_v53 = vadd.f32 %v1377_v30, %v434_v13 }
 0x115   :  { %v856_v3 = vadd.f32 %v1382_v55, %v437_v37  ;;  %v435_v27 = vadd.f32 %v1802_v39, %v396_v22  ;;  %v887_v29 = vmax.f32 %v855_v20, 0.0  ;;  %v901_v35 = vmax.f32 %v450_v21, 0.0 }
 0x116   :  { %v904_v28 = vmax.f32 %v453_v24, 0.0  ;;  %v451_v56 = vadd.f32 %v1802_v39, %v412_v25  ;;  %1481 = vst [vmem:[%s1983_s5 + $0x60] sm:$0xff] %v1446_v26   ;;  %1609 = vmatprep.subr.bf16.mxu1 %v1446_v26  ;;  %v885_v30 = vmax.f32 %v853_v53, 0.0 }
 0x117   :  { %v888_v33 = vmax.f32 %v856_v3, 0.0  ;;  %v854_v34 = vadd.f32 %v1378_v19, %v435_v27  ;;  %1611 = vmatpush3.bf16.msra.mxu1 %v1406_v17 }
 0x118   :  { %v902_v38 = vmax.f32 %v451_v56, 0.0  ;;  %1613 = vmatprep.subr.bf16.mxu1 %v1451_v5  ;;  %v1461_v15 = vpack.c.bf16 %v904_v28, %v903_v23 }
 0x119   :  { %v1421_v40 = vpack.c.bf16 %v888_v33, %v887_v29  ;;  %v886_v41 = vmax.f32 %v854_v34, 0.0 }
 0x11a   :  { %v1456_v42 = vpack.c.bf16 %v902_v38, %v901_v35  ;;  %1484 = vst [vmem:[%s1983_s5 + $0x78] sm:$0xff] %v1461_v15  }
 0x11b   :  { %1476 = vst [vmem:[%s1983_s5 + $0x38] sm:$0xff] %v1421_v40   ;;  %v1416_v39 = vpack.c.bf16 %v886_v41, %v885_v30  ;;  %1615 = vmatpush3.bf16.msra.mxu1 %v1411_v11 }
 0x11c   :  { %1483 = vst [vmem:[%s1983_s5 + $0x70] sm:$0xff] %v1456_v42   ;;  %1617 = vmatprep.subr.bf16.mxu1 %v1456_v42 }
 0x11d   :  { %1475 = vst [vmem:[%s1983_s5 + $0x30] sm:$0xff] %v1416_v39  }
 0x11f   :  { %1619 = vmatpush3.bf16.msra.mxu1 %v1416_v39 }
 0x120   :  { %1621 = vmatprep.subr.bf16.mxu1 %v1461_v15 }
 0x123   :  { %1623 = vmatpush3.bf16.msra.mxu1 %v1421_v40 }
 0x126   :  { %1318 = vmatmul.mubr.msk.f32.vlgmr.msra.gmra.mrb[16].mxu1 %vm1773_vm7, %v1665_v32 }
 0x1f9   :  { %v1541_v43 = vpop.f32.mrb[16].mxu1 }
 0x1fa   :  { %v1542_v44 = vpop.f32.mrb[17].mxu1 }
 0x1fb   :  { %v1543_v45 = vadd.f32 %v1542_v44, %v1541_v43 }
 0x1fd   :  { %1250 = vst [vmem:[%s1984_s6] sm:$0xff] %v1543_v45 }

// kernel: _lambda_.65
= control target key start
LH: loop header
LB: loop body
LE: loop exit
PB: predicated region body
PF: predicated region fallthrough
CT: control target
= control target key end

     0   :  { %s953_s1 = inlined_call_operand.vmem [shape: bf16[384,128], index: 1, kind: input, shape index: {}]   ;;  %s954_s0 = inlined_call_operand.vmem [shape: bf16[64,384], index: 0, kind: input, shape index: {}]   ;;  %s955_s2 = inlined_call_operand.vmem [shape: f32[1,128], index: 2, kind: input, shape index: {}]   ;;  %s956_s3 = inlined_call_operand.vmem [shape: f32[1,128], index: 3, kind: input, shape index: {}]   ;;  %s957_s4 = inlined_call_operand.vmem [shape: bf16[64,128], index: 4, kind: output, shape index: {}]  }
   0x1   :  { %v762_v0 = vld [vmem:[%s953_s1 + $0x40] sm:$0xff]   ;;  %v765_v3 = vld [vmem:[%s953_s1 + $0x48] sm:$0xff]   ;;  %v768_v6 = vld [vmem:[%s953_s1 + $0x50] sm:$0xff]  }
   0x2   :  { %v763_v1 = vld [vmem:[%s953_s1] sm:$0xff]   ;;  %686 = vmatprep.subr.bf16.mxu0 %v762_v0  ;;  %v766_v4 = vld [vmem:[%s953_s1 + $0x8] sm:$0xff]   ;;  %v769_v7 = vld [vmem:[%s953_s1 + $0x10] sm:$0xff]  }
   0x3   :  { %v764_v2 = vld [vmem:[%s953_s1 + $0x80] sm:$0xff]   ;;  %687 = vmatpush3.bf16.msra.mxu0 %v763_v1  ;;  %v767_v5 = vld [vmem:[%s953_s1 + $0x88] sm:$0xff]   ;;  %v770_v8 = vld [vmem:[%s953_s1 + $0x90] sm:$0xff]  }
   0x4   :  { %738 = vmatprep.subr.bf16.mxu1 %v764_v2  ;;  %688 = vmatprep.subr.bf16.mxu0 %v765_v3  ;;  %v771_v9 = vld [vmem:[%s953_s1 + $0x58] sm:$0xff]   ;;  %v774_v12 = vld [vmem:[%s953_s1 + $0x60] sm:$0xff]   ;;  %v777_v15 = vld [vmem:[%s953_s1 + $0x68] sm:$0xff]  }
   0x5   :  { %739 = vmatpush3.bf16.msra.mxu1 %v764_v2  ;;  %v772_v10 = vld [vmem:[%s953_s1 + $0x18] sm:$0xff]   ;;  %v776_v13 = vld [vmem:[%s953_s1 + $0xa0] sm:$0xff]   ;;  %v779_v16 = vld [vmem:[%s953_s1 + $0xa8] sm:$0xff]  }
   0x6   :  { %740 = vmatprep.subr.bf16.mxu1 %v767_v5  ;;  %v773_v11 = vld [vmem:[%s953_s1 + $0x98] sm:$0xff]   ;;  %v775_v14 = vld [vmem:[%s953_s1 + $0x20] sm:$0xff]   ;;  %v778_v17 = vld [vmem:[%s953_s1 + $0x28] sm:$0xff]  }
   0x7   :  { %689 = vmatpush3.bf16.msra.mxu0 %v766_v4  ;;  %v780_v18 = vld [vmem:[%s953_s1 + $0x70] sm:$0xff]   ;;  %v783_v21 = vld [vmem:[%s953_s1 + $0x78] sm:$0xff]   ;;  %v786_v26 = vld [vmem:[%s954_s0] ss:$12 sps:$4 sm:$0xff]  }
   0x8   :  { %690 = vmatprep.subr.bf16.mxu0 %v768_v6  ;;  %v781_v19 = vld [vmem:[%s953_s1 + $0x30] sm:$0xff]   ;;  %v785_v22 = vld [vmem:[%s953_s1 + $0xb8] sm:$0xff]   ;;  %v790_v28 = vld [vmem:[%s954_s0 + $0x20] ss:$12 sps:$4 sm:$0xff]  }
   0x9   :  { %741 = vmatpush3.bf16.msra.mxu1 %v767_v5  ;;  %v782_v20 = vld [vmem:[%s953_s1 + $0xb0] sm:$0xff]   ;;  %v784_v25 = vld [vmem:[%s953_s1 + $0x38] sm:$0xff]   ;;  %v645_v43 = vld [vmem:[%s955_s2] ss:$0 sm:$0xff] }
   0xa   :  { %742 = vmatprep.subr.bf16.mxu1 %v770_v8  ;;  %v788_v23 = vld [vmem:[%s954_s0 + $0x4] ss:$12 sps:$4 sm:$0xff]   ;;  %v789_v24 = vld [vmem:[%s954_s0 + $0x8] ss:$12 sps:$4 sm:$0xff]   ;;  %v799_v34 = vld [vmem:[%s954_s0 + $0x4c] ss:$12 sps:$4 sm:$0xff]  }
   0xb   :  { %691 = vmatpush3.bf16.msra.mxu0 %v769_v7  ;;  %322 = vmatprep.mubr.bf16.mxu0 %v788_v23  ;;  %v791_v27 = vld [vmem:[%s954_s0 + $0x1c] ss:$12 sps:$4 sm:$0xff]   ;;  %v797_v29 = vld [vmem:[%s954_s0 + $0x38] ss:$12 sps:$4 sm:$0xff]   ;;  %v794_v31 = vld [vmem:[%s954_s0 + $0x34] ss:$12 sps:$4 sm:$0xff]  }
   0xc   :  { %692 = vmatprep.subr.bf16.mxu0 %v771_v9  ;;  %754 = vmatprep.mubr.bf16.mxu1 %v789_v24  ;;  %v793_v30 = vld [vmem:[%s954_s0 + $0x18] ss:$12 sps:$4 sm:$0xff]   ;;  %v798_v32 = vld [vmem:[%s954_s0 + $0x50] ss:$12 sps:$4 sm:$0xff]   ;;  %v801_v35 = vld [vmem:[%s954_s0 + $0x48] ss:$12 sps:$4 sm:$0xff]  }
   0xd   :  { %743 = vmatpush3.bf16.msra.mxu1 %v770_v8  ;;  %v796_v33 = vld [vmem:[%s954_s0 + $0x30] ss:$12 sps:$4 sm:$0xff]   ;;  %v646_v47 = vld [vmem:[%s956_s3] ss:$0 sm:$0xff] }
   0xe   :  { %744 = vmatprep.subr.bf16.mxu1 %v773_v11 }
   0xf   :  { %693 = vmatpush3.bf16.msra.mxu0 %v772_v10 }
  0x10   :  { %694 = vmatprep.subr.bf16.mxu0 %v774_v12 }
  0x11   :  { %745 = vmatpush3.bf16.msra.mxu1 %v773_v11 }
  0x12   :  { %746 = vmatprep.subr.bf16.mxu1 %v776_v13 }
  0x13   :  { %695 = vmatpush3.bf16.msra.mxu0 %v775_v14 }
  0x14   :  { %696 = vmatprep.subr.bf16.mxu0 %v777_v15 }
  0x15   :  { %747 = vmatpush3.bf16.msra.mxu1 %v776_v13 }
  0x16   :  { %748 = vmatprep.subr.bf16.mxu1 %v779_v16 }
  0x17   :  { %697 = vmatpush3.bf16.msra.mxu0 %v778_v17 }
  0x18   :  { %698 = vmatprep.subr.bf16.mxu0 %v780_v18 }
  0x19   :  { %749 = vmatpush3.bf16.msra.mxu1 %v779_v16 }
  0x1a   :  { %750 = vmatprep.subr.bf16.mxu1 %v782_v20 }
  0x1b   :  { %699 = vmatpush3.bf16.msra.mxu0 %v781_v19 }
  0x1c   :  { %700 = vmatprep.subr.bf16.mxu0 %v783_v21 }
  0x1d   :  { %751 = vmatpush3.bf16.msra.mxu1 %v782_v20 }
  0x1e   :  { %752 = vmatprep.subr.bf16.mxu1 %v785_v22 }
  0x1f   :  { %701 = vmatpush3.bf16.msra.mxu0 %v784_v25 }
  0x21   :  { %753 = vmatpush3.bf16.msra.mxu1 %v785_v22 }
  0x22   :  { %323 = vmatmul.mubr.bf16.vlgmr.msra.gmra.mrb[0].mxu0 %v786_v26 }
  0x23   :  { %330 = vmatprep.mubr.bf16.mxu0 %v791_v27 }
  0x24   :  { %755 = vmatmul.mubr.bf16.vlgmr.msra.gmra.mrb[0].mxu1 %v790_v28 }
  0x25   :  { %758 = vmatprep.mubr.bf16.mxu1 %v797_v29 }
  0x2a   :  { %331 = vmatmul.mubr.bf16.gmra.mrb[4].mxu0 %v793_v30 }
  0x2b   :  { %338 = vmatprep.mubr.bf16.mxu0 %v794_v31 }
  0x2c   :  { %759 = vmatmul.mubr.bf16.gmra.mrb[4].mxu1 %v798_v32 }
  0x32   :  { %339 = vmatmul.mubr.bf16.gmra.mrb[8].mxu0 %v796_v33 }
  0x33   :  { %346 = vmatprep.mubr.bf16.mxu0 %v799_v34 }
  0x3a   :  { %347 = vmatmul.mubr.bf16.gmra.mrb[12].mxu0 %v801_v35 }
  0xf5   :  { %v702_v36 = vpop.f32.mrb[0].mxu0 }
  0xf6   :  { %v703_v37 = vpop.f32.mrb[1].mxu0 }
  0xf7   :  { %v704_v38 = vadd.f32 %v703_v37, %v702_v36  ;;  %v705_v39 = vpop.f32.mrb[2].mxu0  ;;  %v756_v40 = vpop.f32.mrb[0].mxu1 }
  0xf8   :  { %v706_v41 = vpop.f32.mrb[3].mxu0  ;;  %v389_v42 = vpop.f32.mrb[1].mxu1 }
  0xf9   :  { %v707_v44 = vadd.f32 %v706_v41, %v705_v39  ;;  %v390_v45 = vadd.f32 %v704_v38, %v389_v42  ;;  %v757_v46 = vpop.f32.mrb[2].mxu1 }
  0xfa   :  { %v392_v48 = vpop.f32.mrb[3].mxu1 }
  0xfb   :  { %v427_v49 = vmul.f32 %v645_v43, %v390_v45  ;;  %v393_v50 = vadd.f32 %v707_v44, %v392_v48 }
  0xfd   :  { %v442_v51 = vadd.f32 %v646_v47, %v427_v49  ;;  %v428_v52 = vmul.f32 %v645_v43, %v393_v50  ;;  %v708_v53 = vpop.f32.mrb[4].mxu0 }
  0xfe   :  { %v709_v54 = vpop.f32.mrb[5].mxu0 }
  0xff   :  { %v443_v55 = vadd.f32 %v646_v47, %v428_v52  ;;  %v710_v56 = vadd.f32 %v709_v54, %v708_v53  ;;  %v711_v57 = vpop.f32.mrb[6].mxu0  ;;  %v760_v58 = vpop.f32.mrb[4].mxu1  ;;  %v509_v61 = vmax.f32 %v442_v51, 0.0 }
 0x100   :  { %v712_v59 = vpop.f32.mrb[7].mxu0  ;;  %v405_v60 = vpop.f32.mrb[5].mxu1 }
 0x101   :  { %v510_v62 = vmax.f32 %v443_v55, 0.0  ;;  %v398_v63 = vadd.f32 %v756_v40, %v710_v56  ;;  %v713_v0 = vadd.f32 %v712_v59, %v711_v57  ;;  %v761_v1 = vpop.f32.mrb[6].mxu1 }
 0x102   :  { %v408_v2 = vpop.f32.mrb[7].mxu1 }
 0x103   :  { %v666_v3 = vpack.c.bf16 %v510_v62, %v509_v61  ;;  %v429_v4 = vmul.f32 %v645_v43, %v398_v63  ;;  %v401_v5 = vadd.f32 %v757_v46, %v713_v0 }
 0x105   :  { %667 = vst [vmem:[%s957_s4] sm:$0xff] %v666_v3   ;;  %v444_v6 = vadd.f32 %v646_v47, %v429_v4  ;;  %v430_v7 = vmul.f32 %v645_v43, %v401_v5  ;;  %v714_v8 = vpop.f32.mrb[8].mxu0 }
 0x106   :  { %v715_v9 = vpop.f32.mrb[9].mxu0 }
 0x107   :  { %v445_v10 = vadd.f32 %v646_v47, %v430_v7  ;;  %v716_v11 = vadd.f32 %v715_v9, %v714_v8  ;;  %v717_v12 = vpop.f32.mrb[10].mxu0  ;;  %v511_v14 = vmax.f32 %v444_v6, 0.0 }
 0x108   :  { %v718_v13 = vpop.f32.mrb[11].mxu0 }
 0x109   :  { %v512_v15 = vmax.f32 %v445_v10, 0.0  ;;  %v719_v16 = vadd.f32 %v718_v13, %v717_v12  ;;  %v406_v17 = vadd.f32 %v716_v11, %v405_v60 }
 0x10b   :  { %v671_v18 = vpack.c.bf16 %v512_v15, %v511_v14  ;;  %v431_v19 = vmul.f32 %v645_v43, %v406_v17  ;;  %v409_v20 = vadd.f32 %v719_v16, %v408_v2 }
 0x10d   :  { %683 = vst [vmem:[%s957_s4 + $0x8] sm:$0xff] %v671_v18   ;;  %v432_v21 = vmul.f32 %v645_v43, %v409_v20  ;;  %v720_v22 = vpop.f32.mrb[12].mxu0  ;;  %v446_v24 = vadd.f32 %v646_v47, %v431_v19 }
 0x10e   :  { %v721_v23 = vpop.f32.mrb[13].mxu0 }
 0x10f   :  { %v447_v25 = vadd.f32 %v646_v47, %v432_v21  ;;  %v722_v26 = vadd.f32 %v721_v23, %v720_v22  ;;  %v723_v27 = vpop.f32.mrb[14].mxu0 }
 0x110   :  { %v724_v28 = vpop.f32.mrb[15].mxu0 }
 0x111   :  { %v676_v29 = vpack.c.bf16 %v447_v25, %v446_v24  ;;  %v414_v30 = vadd.f32 %v760_v58, %v722_v26  ;;  %v725_v31 = vadd.f32 %v724_v28, %v723_v27 }
 0x113   :  { %684 = vst [vmem:[%s957_s4 + $0x10] sm:$0xff] %v676_v29   ;;  %v433_v32 = vmul.f32 %v645_v43, %v414_v30  ;;  %v417_v33 = vadd.f32 %v761_v1, %v725_v31 }
 0x115   :  { %v434_v34 = vmul.f32 %v645_v43, %v417_v33  ;;  %v448_v35 = vadd.f32 %v646_v47, %v433_v32 }
 0x117   :  { %v449_v36 = vadd.f32 %v646_v47, %v434_v34 }
 0x119   :  { %v681_v37 = vpack.c.bf16 %v449_v36, %v448_v35 }
 0x11b   :  { %685 = vst [vmem:[%s957_s4 + $0x18] sm:$0xff] %v681_v37  }

// kernel: _lambda_.66
= control target key start
LH: loop header
LB: loop body
LE: loop exit
PB: predicated region body
PF: predicated region fallthrough
CT: control target
= control target key end

     0   :  { %v406_v12 = vmov 0.0|0.0   ;;  %s492_s1 = inlined_call_operand.vmem [shape: bf16[128,128], index: 1, kind: input, shape index: {}]   ;;  %s493_s0 = inlined_call_operand.vmem [shape: bf16[64,128], index: 0, kind: input, shape index: {}]   ;;  %s494_s4 = inlined_call_operand.vmem [shape: bf16[64,128], index: 4, kind: output, shape index: {}]   ;;  %s495_s2 = inlined_call_operand.vmem [shape: f32[1,128], index: 2, kind: input, shape index: {}]   ;;  %s496_s3 = inlined_call_operand.vmem [shape: f32[1,128], index: 3, kind: input, shape index: {}]  }
   0x1   :  { %v394_v0 = vld [vmem:[%s492_s1] sm:$0xff]   ;;  %v395_v1 = vld [vmem:[%s492_s1 + $0x8] sm:$0xff]   ;;  %v396_v2 = vld [vmem:[%s492_s1 + $0x10] sm:$0xff]   ;;  %v322_v13 = vcombine.low %v406_v12, %v406_v12  ;;  %v323_v14 = vcombine.high %v406_v12, %v406_v12 }
   0x2   :  { %353 = vmatprep.subr.bf16.mxu0 %v394_v0  ;;  %377 = vmatprep.subr.bf16.mxu1 %v394_v0  ;;  %v397_v3 = vld [vmem:[%s492_s1 + $0x18] sm:$0xff]   ;;  %v402_v4 = vld [vmem:[%s493_s0] sm:$0xff]   ;;  %v404_v5 = vld [vmem:[%s493_s0 + $0x10] sm:$0xff]  }
   0x3   :  { %354 = vmatpush3.bf16.msra.mxu0 %v394_v0  ;;  %385 = vmatpush3.bf16.msra.mxu1 %v394_v0  ;;  %v398_v6 = vld [vmem:[%s492_s1 + $0x20] sm:$0xff]   ;;  %v399_v7 = vld [vmem:[%s492_s1 + $0x28] sm:$0xff]   ;;  %v400_v8 = vld [vmem:[%s492_s1 + $0x30] sm:$0xff]   ;;  %296 = vst [vmem:[%s494_s4 + $0x10] sm:$0xf] %v322_v13 }
   0x4   :  { %355 = vmatprep.subr.bf16.mxu0 %v395_v1  ;;  %378 = vmatprep.subr.bf16.mxu1 %v395_v1  ;;  %v401_v9 = vld [vmem:[%s492_s1 + $0x38] sm:$0xff]   ;;  %v403_v10 = vld [vmem:[%s493_s0 + $0x8] sm:$0xff]   ;;  %297 = vst [vmem:[%s494_s4 + $0x14] sm:$0xf] %v323_v14  ;;  %298 = vst [vmem:[%s494_s4 + $0x18] sm:$0xf] %v322_v13 }
   0x5   :  { %369 = vmatprep.mubr.bf16.mxu0 %v402_v4  ;;  %373 = vmatprep.mubr.bf16.mxu1 %v404_v5  ;;  %v405_v11 = vld [vmem:[%s493_s0 + $0x18] sm:$0xff]   ;;  %299 = vst [vmem:[%s494_s4 + $0x1c] sm:$0xf] %v323_v14  ;;  %v316_v15 = vld [vmem:[%s495_s2] ss:$0 sm:$0xff] }
   0x6   :  { %v317_v21 = vld [vmem:[%s496_s3] ss:$0 sm:$0xff] }
   0x7   :  { %356 = vmatpush3.bf16.msra.mxu0 %v395_v1  ;;  %386 = vmatpush3.bf16.msra.mxu1 %v395_v1 }
   0x8   :  { %357 = vmatprep.subr.bf16.mxu0 %v396_v2  ;;  %379 = vmatprep.subr.bf16.mxu1 %v396_v2 }
   0xb   :  { %358 = vmatpush3.bf16.msra.mxu0 %v396_v2  ;;  %387 = vmatpush3.bf16.msra.mxu1 %v396_v2 }
   0xc   :  { %359 = vmatprep.subr.bf16.mxu0 %v397_v3  ;;  %380 = vmatprep.subr.bf16.mxu1 %v397_v3 }
   0xf   :  { %360 = vmatpush3.bf16.msra.mxu0 %v397_v3  ;;  %388 = vmatpush3.bf16.msra.mxu1 %v397_v3 }
  0x10   :  { %361 = vmatprep.subr.bf16.mxu0 %v398_v6  ;;  %381 = vmatprep.subr.bf16.mxu1 %v398_v6 }
  0x13   :  { %362 = vmatpush3.bf16.msra.mxu0 %v398_v6  ;;  %389 = vmatpush3.bf16.msra.mxu1 %v398_v6 }
  0x14   :  { %363 = vmatprep.subr.bf16.mxu0 %v399_v7  ;;  %382 = vmatprep.subr.bf16.mxu1 %v399_v7 }
  0x17   :  { %364 = vmatpush3.bf16.msra.mxu0 %v399_v7  ;;  %390 = vmatpush3.bf16.msra.mxu1 %v399_v7 }
  0x18   :  { %365 = vmatprep.subr.bf16.mxu0 %v400_v8  ;;  %383 = vmatprep.subr.bf16.mxu1 %v400_v8 }
  0x1b   :  { %366 = vmatpush3.bf16.msra.mxu0 %v400_v8  ;;  %391 = vmatpush3.bf16.msra.mxu1 %v400_v8 }
  0x1c   :  { %367 = vmatprep.subr.bf16.mxu0 %v401_v9  ;;  %384 = vmatprep.subr.bf16.mxu1 %v401_v9 }
  0x1f   :  { %368 = vmatpush3.bf16.msra.mxu0 %v401_v9  ;;  %392 = vmatpush3.bf16.msra.mxu1 %v401_v9 }
  0x22   :  { %370 = vmatmul.mubr.bf16.vlgmr.msra.gmra.mrb[0].mxu0 %v403_v10  ;;  %374 = vmatmul.mubr.bf16.vlgmr.msra.gmra.mrb[0].mxu1 %v405_v11 }
  0xf5   :  { %v371_v16 = vpop.f32.mrb[0].mxu0  ;;  %v375_v17 = vpop.f32.mrb[0].mxu1 }
  0xf6   :  { %v188_v18 = vmul.f32 %v371_v16, %v316_v15  ;;  %v148_v19 = vpop.f32.mrb[1].mxu0  ;;  %v164_v20 = vpop.f32.mrb[1].mxu1 }
  0xf7   :  { %v186_v22 = vmul.f32 %v316_v15, %v148_v19  ;;  %v372_v23 = vpop.f32.mrb[2].mxu0  ;;  %v376_v24 = vpop.f32.mrb[2].mxu1 }
  0xf8   :  { %v189_v25 = vmul.f32 %v372_v23, %v316_v15  ;;  %v151_v26 = vpop.f32.mrb[3].mxu0  ;;  %v167_v27 = vpop.f32.mrb[3].mxu1  ;;  %v203_v29 = vadd.f32 %v317_v21, %v188_v18 }
  0xf9   :  { %v187_v28 = vmul.f32 %v316_v15, %v151_v26  ;;  %v201_v31 = vadd.f32 %v317_v21, %v186_v22 }
  0xfa   :  { %v204_v30 = vadd.f32 %v317_v21, %v189_v25 }
  0xfb   :  { %v202_v32 = vadd.f32 %v317_v21, %v187_v28 }
  0xfc   :  { %v338_v33 = vpack.c.bf16 %v204_v30, %v203_v29 }
  0xfd   :  { %v333_v34 = vpack.c.bf16 %v202_v32, %v201_v31 }
  0xfe   :  { %340 = vst [vmem:[%s494_s4 + $0x8] sm:$0xff] %v338_v33  }
  0xff   :  { %334 = vst [vmem:[%s494_s4] sm:$0xff] %v333_v34  }

// kernel: _lambda_.67
= control target key start
LH: loop header
LB: loop body
LE: loop exit
PB: predicated region body
PF: predicated region fallthrough
CT: control target
= control target key end

     0   :  { %v642_v12 = vmov 0.0|0.0   ;;  %vm643_vm0 = vmmov 0   ;;  %v644_v13 = vmov 0.0   ;;  %v215_v19 = vlaneseq  ;;  %s749_s1 = inlined_call_operand.vmem [shape: bf16[128,128], index: 1, kind: input, shape index: {}]   ;;  %s750_s0 = inlined_call_operand.vmem [shape: bf16[64,128], index: 0, kind: input, shape index: {}]   ;;  %s751_s2 = inlined_call_operand.vmem [shape: f32[1,128], index: 2, kind: input, shape index: {}]   ;;  %s752_s4 = inlined_call_operand.vmem [shape: bf16[64,128], index: 4, kind: input, shape index: {}]   ;;  %s753_s3 = inlined_call_operand.vmem [shape: f32[1,128], index: 3, kind: input, shape index: {}]   ;;  %s754_s5 = inlined_call_operand.vmem [shape: bf16[64,128], index: 5, kind: output, shape index: {0}]   ;;  %s755_s6 = inlined_call_operand.vmem [shape: f32[1,8,128], index: 6, kind: output, shape index: {1}]  }
   0x1   :  { %v630_v0 = vld [vmem:[%s749_s1] sm:$0xff]   ;;  %v631_v1 = vld [vmem:[%s749_s1 + $0x8] sm:$0xff]   ;;  %v632_v2 = vld [vmem:[%s749_s1 + $0x10] sm:$0xff]   ;;  %615 = vmatprep.subr.bf16.mxu1 %v642_v12  ;;  %612 = vmatprep.mubr.msk.f32.mxu1 %vm643_vm0, %v644_v13  ;;  %vm405_vm6 = vcmask 523264  }
   0x2   :  { %572 = vmatprep.subr.bf16.mxu0 %v630_v0  ;;  %v633_v3 = vld [vmem:[%s749_s1 + $0x18] sm:$0xff]   ;;  %v638_v4 = vld [vmem:[%s750_s0] sm:$0xff]   ;;  %v635_v6 = vld [vmem:[%s749_s1 + $0x28] sm:$0xff]   ;;  %v216_v33 = vshrl.u32 %v215_v19, 7  ;;  %v394_v60 = vand.u32 127, %v215_v19 }
   0x3   :  { %573 = vmatpush3.bf16.msra.mxu0 %v630_v0  ;;  %588 = vmatprep.mubr.bf16.mxu0 %v638_v4  ;;  %v634_v5 = vld [vmem:[%s749_s1 + $0x20] sm:$0xff]   ;;  %v636_v7 = vld [vmem:[%s749_s1 + $0x30] sm:$0xff]   ;;  %v637_v8 = vld [vmem:[%s749_s1 + $0x38] sm:$0xff]  }
   0x4   :  { %574 = vmatprep.subr.bf16.mxu0 %v631_v1  ;;  %v639_v9 = vld [vmem:[%s750_s0 + $0x8] sm:$0xff]   ;;  %v640_v10 = vld [vmem:[%s750_s0 + $0x10] sm:$0xff]   ;;  %v641_v11 = vld [vmem:[%s750_s0 + $0x18] sm:$0xff]   ;;  %v396_v41 = vmul.u32 16, %v216_v33  ;;  %vm398_vm1 = vcmp.lt.s32.totalorder %v216_v33, 2 }
   0x5   :  { %v500_v14 = vld [vmem:[%s751_s2] ss:$0 sm:$0xff]  ;;  %v547_v15 = vld [vmem:[%s752_s4 + $0x8] sm:$0xff]  }
   0x6   :  { %v520_v16 = vld [vmem:[%s752_s4] sm:$0xff]   ;;  %v525_v21 = vunpack.c.l.bf16 %v547_v15  ;;  %v526_v28 = vunpack.c.h.bf16 %v547_v15  ;;  %v397_v57 = vadd.s32 32, %v396_v41 }
   0x7   :  { %575 = vmatpush3.bf16.msra.mxu0 %v631_v1  ;;  %v501_v18 = vld [vmem:[%s753_s3] ss:$0 sm:$0xff]  ;;  %v521_v25 = vunpack.c.l.bf16 %v520_v16  ;;  %v522_v32 = vunpack.c.h.bf16 %v520_v16 }
   0x8   :  { %576 = vmatprep.subr.bf16.mxu0 %v632_v2  ;;  %v401_v1 = vadd.s32 16, %v397_v57  ;;  %vm399_vm2 = vcmp.ge.s32.totalorder %v394_v60, %v397_v57 }
   0x9   :  { %vm400_vm3 = vmand %vm398_vm1, %vm399_vm2 }
   0xa   :  { %vm402_vm4 = vcmp.lt.s32.totalorder %v394_v60, %v401_v1 }
   0xb   :  { %577 = vmatpush3.bf16.msra.mxu0 %v632_v2  ;;  %vm403_vm5 = vmand %vm400_vm3, %vm402_vm4 }
   0xc   :  { %578 = vmatprep.subr.bf16.mxu0 %v633_v3  ;;  %v404_v4 = vsel %vm403_vm5, 1.0, %v644_v13 }
   0xf   :  { %579 = vmatpush3.bf16.msra.mxu0 %v633_v3 }
  0x10   :  { %580 = vmatprep.subr.bf16.mxu0 %v634_v5 }
  0x13   :  { %581 = vmatpush3.bf16.msra.mxu0 %v634_v5 }
  0x14   :  { %582 = vmatprep.subr.bf16.mxu0 %v635_v6 }
  0x17   :  { %583 = vmatpush3.bf16.msra.mxu0 %v635_v6 }
  0x18   :  { %584 = vmatprep.subr.bf16.mxu0 %v636_v7 }
  0x1b   :  { %585 = vmatpush3.bf16.msra.mxu0 %v636_v7 }
  0x1c   :  { %586 = vmatprep.subr.bf16.mxu0 %v637_v8 }
  0x1f   :  { %587 = vmatpush3.bf16.msra.mxu0 %v637_v8 }
  0x22   :  { %589 = vmatmul.mubr.bf16.vlgmr.msra.gmra.mrb[0].mxu0 %v639_v9 }
  0x23   :  { %592 = vmatprep.mubr.bf16.mxu0 %v640_v10 }
  0x2a   :  { %593 = vmatmul.mubr.bf16.gmra.mrb[4].mxu0 %v641_v11 }
  0xf5   :  { %v590_v17 = vpop.f32.mrb[0].mxu0 }
  0xf6   :  { %v193_v20 = vmul.f32 %v590_v17, %v500_v14  ;;  %v153_v22 = vpop.f32.mrb[1].mxu0 }
  0xf7   :  { %v191_v23 = vmul.f32 %v500_v14, %v153_v22  ;;  %v591_v24 = vpop.f32.mrb[2].mxu0 }
  0xf8   :  { %v208_v26 = vadd.f32 %v501_v18, %v193_v20  ;;  %v194_v27 = vmul.f32 %v591_v24, %v500_v14  ;;  %v156_v29 = vpop.f32.mrb[3].mxu0 }
  0xf9   :  { %v206_v30 = vadd.f32 %v501_v18, %v191_v23  ;;  %v192_v31 = vmul.f32 %v500_v14, %v156_v29 }
  0xfa   :  { %v315_v34 = vadd.f32 %v525_v21, %v208_v26  ;;  %v209_v35 = vadd.f32 %v501_v18, %v194_v27 }
  0xfb   :  { %v207_v36 = vadd.f32 %v501_v18, %v192_v31  ;;  %v313_v37 = vadd.f32 %v521_v25, %v206_v30 }
  0xfc   :  { %v316_v38 = vadd.f32 %v526_v28, %v209_v35  ;;  %v323_v42 = vmax.f32 %v315_v34, 0.0 }
  0xfd   :  { %v594_v39 = vpop.f32.mrb[4].mxu0  ;;  %v314_v40 = vadd.f32 %v522_v32, %v207_v36  ;;  %v321_v48 = vmax.f32 %v313_v37, 0.0 }
  0xfe   :  { %v324_v43 = vmax.f32 %v316_v38, 0.0  ;;  %v197_v44 = vmul.f32 %v594_v39, %v500_v14  ;;  %v169_v45 = vpop.f32.mrb[5].mxu0 }
  0xff   :  { %v195_v46 = vmul.f32 %v500_v14, %v169_v45  ;;  %v595_v47 = vpop.f32.mrb[6].mxu0  ;;  %v322_v49 = vmax.f32 %v314_v40, 0.0 }
 0x100   :  { %v212_v50 = vadd.f32 %v501_v18, %v197_v44  ;;  %v198_v51 = vmul.f32 %v595_v47, %v500_v14  ;;  %v172_v52 = vpop.f32.mrb[7].mxu0  ;;  %v535_v53 = vpack.c.bf16 %v324_v43, %v323_v42 }
 0x101   :  { %v210_v54 = vadd.f32 %v501_v18, %v195_v46  ;;  %v196_v55 = vmul.f32 %v500_v14, %v172_v52  ;;  %v530_v56 = vpack.c.bf16 %v322_v49, %v321_v48 }
 0x102   :  { %v327_v58 = vmax.f32 %v212_v50, 0.0  ;;  %v213_v59 = vadd.f32 %v501_v18, %v198_v51  ;;  %548 = vst [vmem:[%s754_s5 + $0x8] sm:$0xff] %v535_v53  }
 0x103   :  { %v325_v61 = vmax.f32 %v210_v54, 0.0  ;;  %v211_v62 = vadd.f32 %v501_v18, %v196_v55  ;;  %531 = vst [vmem:[%s754_s5] sm:$0xff] %v530_v56   ;;  %617 = vmatpush3.bf16.msra.mxu1 %v530_v56 }
 0x104   :  { %v328_v63 = vmax.f32 %v213_v59, 0.0  ;;  %618 = vmatprep.subr.bf16.mxu1 %v642_v12 }
 0x105   :  { %v326_v0 = vmax.f32 %v211_v62, 0.0 }
 0x106   :  { %v545_v2 = vpack.c.bf16 %v328_v63, %v327_v58 }
 0x107   :  { %620 = vmatpush3.bf16.msra.mxu1 %v535_v53  ;;  %v540_v3 = vpack.c.bf16 %v326_v0, %v325_v61 }
 0x108   :  { %621 = vmatprep.subr.bf16.mxu1 %v642_v12  ;;  %550 = vst [vmem:[%s754_s5 + $0x18] sm:$0xff] %v545_v2  }
 0x109   :  { %549 = vst [vmem:[%s754_s5 + $0x10] sm:$0xff] %v540_v3  }
 0x10b   :  { %623 = vmatpush3.bf16.msra.mxu1 %v540_v3 }
 0x10c   :  { %624 = vmatprep.subr.bf16.mxu1 %v642_v12 }
 0x10f   :  { %626 = vmatpush3.bf16.msra.mxu1 %v545_v2 }
 0x112   :  { %613 = vmatmul.mubr.msk.f32.vlgmr.msra.gmra.mrb[0].mxu1 %vm405_vm6, %v404_v4 }
 0x1e5   :  { %v475_v5 = vpop.f32.mrb[0].mxu1 }
 0x1e6   :  { %479 = vst [vmem:[%s755_s6] sm:$0xff] %v475_v5  ;;  %v614_v6 = vpop.f32.mrb[1].mxu1 }

// kernel: _lambda_.68
= control target key start
LH: loop header
LB: loop body
LE: loop exit
PB: predicated region body
PF: predicated region fallthrough
CT: control target
= control target key end

     0   :  { %s413_s1 = inlined_call_operand.vmem [shape: bf16[128,128], index: 1, kind: input, shape index: {}]   ;;  %s414_s0 = inlined_call_operand.vmem [shape: bf16[64,128], index: 0, kind: input, shape index: {}]   ;;  %s415_s2 = inlined_call_operand.vmem [shape: f32[1,128], index: 2, kind: input, shape index: {}]   ;;  %s416_s3 = inlined_call_operand.vmem [shape: f32[1,128], index: 3, kind: input, shape index: {}]   ;;  %s417_s4 = inlined_call_operand.vmem [shape: bf16[2,32,128], index: 4, kind: output, shape index: {}]  }
   0x1   :  { %v330_v0 = vld [vmem:[%s413_s1] sm:$0xff]   ;;  %v331_v1 = vld [vmem:[%s413_s1 + $0x8] sm:$0xff]   ;;  %v332_v2 = vld [vmem:[%s413_s1 + $0x10] sm:$0xff]  }
   0x2   :  { %310 = vmatprep.subr.bf16.mxu0 %v330_v0  ;;  %v333_v3 = vld [vmem:[%s413_s1 + $0x18] sm:$0xff]   ;;  %v338_v4 = vld [vmem:[%s414_s0] sm:$0xff]   ;;  %v335_v6 = vld [vmem:[%s413_s1 + $0x28] sm:$0xff]  }
   0x3   :  { %311 = vmatpush3.bf16.msra.mxu0 %v330_v0  ;;  %326 = vmatprep.mubr.bf16.mxu0 %v338_v4  ;;  %v334_v5 = vld [vmem:[%s413_s1 + $0x20] sm:$0xff]   ;;  %v336_v7 = vld [vmem:[%s413_s1 + $0x30] sm:$0xff]   ;;  %v337_v8 = vld [vmem:[%s413_s1 + $0x38] sm:$0xff]  }
   0x4   :  { %312 = vmatprep.subr.bf16.mxu0 %v331_v1  ;;  %v339_v9 = vld [vmem:[%s414_s0 + $0x8] sm:$0xff]   ;;  %v255_v10 = vld [vmem:[%s415_s2] ss:$0 sm:$0xff] }
   0x5   :  { %v256_v12 = vld [vmem:[%s416_s3] ss:$0 sm:$0xff] }
   0x7   :  { %313 = vmatpush3.bf16.msra.mxu0 %v331_v1 }
   0x8   :  { %314 = vmatprep.subr.bf16.mxu0 %v332_v2 }
   0xb   :  { %315 = vmatpush3.bf16.msra.mxu0 %v332_v2 }
   0xc   :  { %316 = vmatprep.subr.bf16.mxu0 %v333_v3 }
   0xf   :  { %317 = vmatpush3.bf16.msra.mxu0 %v333_v3 }
  0x10   :  { %318 = vmatprep.subr.bf16.mxu0 %v334_v5 }
  0x13   :  { %319 = vmatpush3.bf16.msra.mxu0 %v334_v5 }
  0x14   :  { %320 = vmatprep.subr.bf16.mxu0 %v335_v6 }
  0x17   :  { %321 = vmatpush3.bf16.msra.mxu0 %v335_v6 }
  0x18   :  { %322 = vmatprep.subr.bf16.mxu0 %v336_v7 }
  0x1b   :  { %323 = vmatpush3.bf16.msra.mxu0 %v336_v7 }
  0x1c   :  { %324 = vmatprep.subr.bf16.mxu0 %v337_v8 }
  0x1f   :  { %325 = vmatpush3.bf16.msra.mxu0 %v337_v8 }
  0x22   :  { %327 = vmatmul.mubr.bf16.vlgmr.msra.gmra.mrb[0].mxu0 %v339_v9 }
  0xf5   :  { %v328_v11 = vpop.f32.mrb[0].mxu0 }
  0xf6   :  { %v156_v13 = vmul.f32 %v328_v11, %v255_v10  ;;  %v132_v14 = vpop.f32.mrb[1].mxu0 }
  0xf7   :  { %v154_v15 = vmul.f32 %v255_v10, %v132_v14  ;;  %v329_v16 = vpop.f32.mrb[2].mxu0 }
  0xf8   :  { %v167_v17 = vadd.f32 %v256_v12, %v156_v13  ;;  %v157_v18 = vmul.f32 %v329_v16, %v255_v10  ;;  %v135_v19 = vpop.f32.mrb[3].mxu0 }
  0xf9   :  { %v165_v20 = vadd.f32 %v256_v12, %v154_v15  ;;  %v155_v21 = vmul.f32 %v255_v10, %v135_v19 }
  0xfa   :  { %v168_v22 = vadd.f32 %v256_v12, %v157_v18  ;;  %v198_v24 = vmax.f32 %v167_v17, 0.0 }
  0xfb   :  { %v166_v23 = vadd.f32 %v256_v12, %v155_v21  ;;  %v196_v27 = vmax.f32 %v165_v20, 0.0 }
  0xfc   :  { %v199_v25 = vmax.f32 %v168_v22, 0.0  ;;  %v295_v26 = vpack.c.bf16 %v168_v22, %v167_v17 }
  0xfd   :  { %v197_v28 = vmax.f32 %v166_v23, 0.0  ;;  %v290_v29 = vpack.c.bf16 %v166_v23, %v165_v20 }
  0xfe   :  { %v285_v30 = vpack.c.bf16 %v199_v25, %v198_v24  ;;  %299 = vst [vmem:[%s417_s4 + $0x18] sm:$0xff] %v295_v26  }
  0xff   :  { %v280_v31 = vpack.c.bf16 %v197_v28, %v196_v27  ;;  %298 = vst [vmem:[%s417_s4 + $0x10] sm:$0xff] %v290_v29  }
 0x100   :  { %297 = vst [vmem:[%s417_s4 + $0x8] sm:$0xff] %v285_v30  }
 0x101   :  { %281 = vst [vmem:[%s417_s4] sm:$0xff] %v280_v31  }

// kernel: _lambda_.78
= control target key start
LH: loop header
LB: loop body
LE: loop exit
PB: predicated region body
PF: predicated region fallthrough
CT: control target
= control target key end

     0   :  { %v734_v34 = vmov 0.0   ;;  %vm735_vm0 = vmmov 0   ;;  %s905_s1 = inlined_call_operand.vmem [shape: bf16[640,128], index: 1, kind: input, shape index: {}]   ;;  %s906_s0 = inlined_call_operand.vmem [shape: bf16[16,640], index: 0, kind: input, shape index: {}]   ;;  %s907_s2 = inlined_call_operand.vmem [shape: f32[1,128], index: 2, kind: input, shape index: {}]   ;;  %s908_s3 = inlined_call_operand.vmem [shape: f32[1,128], index: 3, kind: input, shape index: {}]   ;;  %s909_s4 = inlined_call_operand.vmem [shape: bf16[16,128], index: 4, kind: output, shape index: {}]  }
   0x1   :  { %v687_v0 = vld [vmem:[%s905_s1 + $0x40] sm:$0xff]   ;;  %v691_v4 = vld [vmem:[%s905_s1 + $0x48] sm:$0xff]   ;;  %v695_v8 = vld [vmem:[%s905_s1 + $0x50] sm:$0xff]  }
   0x2   :  { %v688_v1 = vld [vmem:[%s905_s1 + $0xc0] sm:$0xff]   ;;  %612 = vmatprep.subr.bf16.mxu0 %v687_v0  ;;  %v692_v5 = vld [vmem:[%s905_s1 + $0xc8] sm:$0xff]   ;;  %v696_v9 = vld [vmem:[%s905_s1 + $0xd0] sm:$0xff]  }
   0x3   :  { %v689_v2 = vld [vmem:[%s905_s1] sm:$0xff]   ;;  %634 = vmatprep.subr.bf16.mxu1 %v688_v1  ;;  %v693_v6 = vld [vmem:[%s905_s1 + $0x8] sm:$0xff]   ;;  %v697_v10 = vld [vmem:[%s905_s1 + $0x10] sm:$0xff]  }
   0x4   :  { %v690_v3 = vld [vmem:[%s905_s1 + $0x80] sm:$0xff]   ;;  %613 = vmatpush3.bf16.msra.mxu0 %v689_v2  ;;  %v694_v7 = vld [vmem:[%s905_s1 + $0x88] sm:$0xff]   ;;  %v698_v11 = vld [vmem:[%s905_s1 + $0x90] sm:$0xff]  }
   0x5   :  { %635 = vmatpush3.bf16.msra.mxu1 %v690_v3  ;;  %614 = vmatprep.subr.bf16.mxu0 %v691_v4  ;;  %v699_v12 = vld [vmem:[%s905_s1 + $0x58] sm:$0xff]   ;;  %v703_v16 = vld [vmem:[%s905_s1 + $0x60] sm:$0xff]   ;;  %v707_v20 = vld [vmem:[%s905_s1 + $0x68] sm:$0xff]  }
   0x6   :  { %636 = vmatprep.subr.bf16.mxu1 %v692_v5  ;;  %v700_v13 = vld [vmem:[%s905_s1 + $0xd8] sm:$0xff]   ;;  %v704_v17 = vld [vmem:[%s905_s1 + $0xe0] sm:$0xff]   ;;  %v708_v21 = vld [vmem:[%s905_s1 + $0xe8] sm:$0xff]  }
   0x7   :  { %v701_v14 = vld [vmem:[%s905_s1 + $0x18] sm:$0xff]   ;;  %v705_v18 = vld [vmem:[%s905_s1 + $0x20] sm:$0xff]   ;;  %v709_v22 = vld [vmem:[%s905_s1 + $0x28] sm:$0xff]  }
   0x8   :  { %615 = vmatpush3.bf16.msra.mxu0 %v693_v6  ;;  %v702_v15 = vld [vmem:[%s905_s1 + $0x98] sm:$0xff]   ;;  %v706_v19 = vld [vmem:[%s905_s1 + $0xa0] sm:$0xff]   ;;  %v710_v23 = vld [vmem:[%s905_s1 + $0xa8] sm:$0xff]  }
   0x9   :  { %637 = vmatpush3.bf16.msra.mxu1 %v694_v7  ;;  %616 = vmatprep.subr.bf16.mxu0 %v695_v8  ;;  %v711_v24 = vld [vmem:[%s905_s1 + $0x70] sm:$0xff]   ;;  %v715_v28 = vld [vmem:[%s905_s1 + $0x78] sm:$0xff]   ;;  %v724_v36 = vld [vmem:[%s906_s0 + $0xc] ss:$20 sps:$4 sm:$0xff]  }
   0xa   :  { %638 = vmatprep.subr.bf16.mxu1 %v696_v9  ;;  %v712_v25 = vld [vmem:[%s905_s1 + $0xf0] sm:$0xff]   ;;  %v716_v29 = vld [vmem:[%s905_s1 + $0xf8] sm:$0xff]   ;;  %v725_v37 = vld [vmem:[%s905_s1 + $0x100] sm:$0xff]   ;;  %443 = vmatprep.mubr.bf16.mxu1 %v724_v36 }
   0xb   :  { %v713_v26 = vld [vmem:[%s905_s1 + $0x30] sm:$0xff]   ;;  %v717_v30 = vld [vmem:[%s905_s1 + $0x38] sm:$0xff]   ;;  %v726_v38 = vld [vmem:[%s905_s1 + $0x108] sm:$0xff]  }
   0xc   :  { %617 = vmatpush3.bf16.msra.mxu0 %v697_v10  ;;  %v714_v27 = vld [vmem:[%s905_s1 + $0xb0] sm:$0xff]   ;;  %v718_v31 = vld [vmem:[%s905_s1 + $0xb8] sm:$0xff]   ;;  %v729_v41 = vld [vmem:[%s905_s1 + $0x120] sm:$0xff]  }
   0xd   :  { %639 = vmatpush3.bf16.msra.mxu1 %v698_v11  ;;  %618 = vmatprep.subr.bf16.mxu0 %v699_v12  ;;  %v719_v32 = vld [vmem:[%s906_s0] ss:$20 sps:$4 sm:$0xff]   ;;  %v721_v33 = vld [vmem:[%s906_s0 + $0x4] ss:$20 sps:$4 sm:$0xff]   ;;  %v722_v35 = vld [vmem:[%s906_s0 + $0x8] ss:$20 sps:$4 sm:$0xff]  }
   0xe   :  { %640 = vmatprep.subr.bf16.mxu1 %v700_v13  ;;  %402 = vmatprep.mubr.bf16.mxu0 %v721_v33  ;;  %v727_v39 = vld [vmem:[%s905_s1 + $0x110] sm:$0xff]   ;;  %v728_v40 = vld [vmem:[%s905_s1 + $0x118] sm:$0xff]   ;;  %v730_v42 = vld [vmem:[%s905_s1 + $0x128] sm:$0xff]  }
   0xf   :  { %v731_v43 = vld [vmem:[%s905_s1 + $0x130] sm:$0xff]   ;;  %v732_v44 = vld [vmem:[%s905_s1 + $0x138] sm:$0xff]   ;;  %v601_v61 = vld [vmem:[%s907_s2] ss:$0 sm:$0xff] }
  0x10   :  { %619 = vmatpush3.bf16.msra.mxu0 %v701_v14  ;;  %v733_v45 = vld [vmem:[%s906_s0 + $0x10] ss:$20 sps:$4 sm:$0xff]   ;;  %v602_v0 = vld [vmem:[%s908_s3] ss:$0 sm:$0xff] }
  0x11   :  { %641 = vmatpush3.bf16.msra.mxu1 %v702_v15  ;;  %620 = vmatprep.subr.bf16.mxu0 %v703_v16 }
  0x12   :  { %642 = vmatprep.subr.bf16.mxu1 %v704_v17 }
  0x14   :  { %621 = vmatpush3.bf16.msra.mxu0 %v705_v18 }
  0x15   :  { %643 = vmatpush3.bf16.msra.mxu1 %v706_v19  ;;  %622 = vmatprep.subr.bf16.mxu0 %v707_v20 }
  0x16   :  { %644 = vmatprep.subr.bf16.mxu1 %v708_v21 }
  0x18   :  { %623 = vmatpush3.bf16.msra.mxu0 %v709_v22 }
  0x19   :  { %645 = vmatpush3.bf16.msra.mxu1 %v710_v23  ;;  %624 = vmatprep.subr.bf16.mxu0 %v711_v24 }
  0x1a   :  { %646 = vmatprep.subr.bf16.mxu1 %v712_v25 }
  0x1c   :  { %625 = vmatpush3.bf16.msra.mxu0 %v713_v26 }
  0x1d   :  { %647 = vmatpush3.bf16.msra.mxu1 %v714_v27  ;;  %626 = vmatprep.subr.bf16.mxu0 %v715_v28 }
  0x1e   :  { %648 = vmatprep.subr.bf16.mxu1 %v716_v29 }
  0x20   :  { %627 = vmatpush3.bf16.msra.mxu0 %v717_v30 }
  0x21   :  { %649 = vmatpush3.bf16.msra.mxu1 %v718_v31  ;;  %665 = vmatprep.subr.bf16.mxu0 %v734_v34 }
  0x23   :  { %403 = vmatmul.mubr.bf16.vlgmr.msra.gmra.mrb[0].mxu0 %v719_v32 }
  0x24   :  { %444 = vmatmul.mubr.bf16.vlgmr.msra.gmra.mrb[0].mxu1 %v722_v35  ;;  %666 = vmatpush3.bf16.msra.mxu0 %v725_v37 }
  0x25   :  { %667 = vmatprep.subr.bf16.mxu0 %v734_v34  ;;  %681 = vmatprep.mubr.msk.bf16.mxu0 %vm735_vm0, %v734_v34 }
  0x28   :  { %668 = vmatpush3.bf16.msra.mxu0 %v726_v38 }
  0x29   :  { %669 = vmatprep.subr.bf16.mxu0 %v734_v34 }
  0x2c   :  { %670 = vmatpush3.bf16.msra.mxu0 %v727_v39 }
  0x2d   :  { %671 = vmatprep.subr.bf16.mxu0 %v734_v34 }
  0x30   :  { %672 = vmatpush3.bf16.msra.mxu0 %v728_v40 }
  0x31   :  { %673 = vmatprep.subr.bf16.mxu0 %v734_v34 }
  0x34   :  { %674 = vmatpush3.bf16.msra.mxu0 %v729_v41 }
  0x35   :  { %675 = vmatprep.subr.bf16.mxu0 %v734_v34 }
  0x38   :  { %676 = vmatpush3.bf16.msra.mxu0 %v730_v42 }
  0x39   :  { %677 = vmatprep.subr.bf16.mxu0 %v734_v34 }
  0x3c   :  { %678 = vmatpush3.bf16.msra.mxu0 %v731_v43 }
  0x3d   :  { %679 = vmatprep.subr.bf16.mxu0 %v734_v34 }
  0x40   :  { %680 = vmatpush3.bf16.msra.mxu0 %v732_v44 }
  0x43   :  { %682 = vmatmul.mubr.bf16.vlgmr.msra.gmra.mrb[4].mxu0 %v733_v45 }
  0xf6   :  { %v628_v46 = vpop.f32.mrb[0].mxu0 }
  0xf7   :  { %v650_v47 = vpop.f32.mrb[0].mxu1  ;;  %v629_v48 = vpop.f32.mrb[1].mxu0 }
  0xf8   :  { %v630_v49 = vadd.f32 %v629_v48, %v628_v46  ;;  %v651_v50 = vpop.f32.mrb[1].mxu1  ;;  %v631_v51 = vpop.f32.mrb[2].mxu0 }
  0xf9   :  { %v652_v52 = vadd.f32 %v651_v50, %v650_v47  ;;  %v653_v53 = vpop.f32.mrb[2].mxu1  ;;  %v632_v54 = vpop.f32.mrb[3].mxu0 }
  0xfa   :  { %v633_v55 = vadd.f32 %v632_v54, %v631_v51  ;;  %v654_v56 = vpop.f32.mrb[3].mxu1 }
  0xfb   :  { %v655_v57 = vadd.f32 %v654_v56, %v653_v53  ;;  %v446_v58 = vadd.f32 %v652_v52, %v630_v49 }
  0xfd   :  { %v449_v59 = vadd.f32 %v655_v57, %v633_v55 }
 0x116   :  { %v486_v60 = vpop.f32.mrb[4].mxu0 }
 0x117   :  { %v487_v62 = vadd.f32 %v486_v60, %v446_v58  ;;  %v683_v63 = vpop.f32.mrb[5].mxu0 }
 0x118   :  { %v489_v1 = vpop.f32.mrb[6].mxu0 }
 0x119   :  { %v500_v2 = vmul.f32 %v601_v61, %v487_v62  ;;  %v490_v3 = vadd.f32 %v489_v1, %v449_v59  ;;  %v684_v4 = vpop.f32.mrb[7].mxu0 }
 0x11b   :  { %v509_v5 = vadd.f32 %v602_v0, %v500_v2  ;;  %v501_v6 = vmul.f32 %v601_v61, %v490_v3 }
 0x11d   :  { %v528_v7 = vmax.f32 %v509_v5, 0.0  ;;  %v510_v8 = vadd.f32 %v602_v0, %v501_v6 }
 0x11f   :  { %v610_v9 = vpack.c.bf16 %v510_v8, %v528_v7 }
 0x121   :  { %611 = vst [vmem:[%s909_s4] sm:$0xff] %v610_v9  }

// kernel: _lambda_.79
= control target key start
LH: loop header
LB: loop body
LE: loop exit
PB: predicated region body
PF: predicated region fallthrough
CT: control target
= control target key end

     0   :  { %v280_v1 = vmov 0   ;;  %v281_v18 = vmov 0.0|0.0   ;;  %v167_v19 = vlaneseq  ;;  %s370_s1 = inlined_call_operand.vmem [shape: bf16[128,256], index: 1, kind: input, shape index: {}]   ;;  %s371_s0 = inlined_call_operand.vmem [shape: bf16[16,128], index: 0, kind: input, shape index: {}]   ;;  %s372_s4 = inlined_call_operand.vmem [shape: bf16[16,256], index: 4, kind: output, shape index: {}]   ;;  %s373_s2 = inlined_call_operand.vmem [shape: f32[1,256], index: 2, kind: input, shape index: {}]   ;;  %s374_s3 = inlined_call_operand.vmem [shape: f32[1,256], index: 3, kind: input, shape index: {}]  }
   0x1   :  { %v255_v0 = vld [vmem:[%s370_s1 + $0x4] ss:$8 sps:$4 sm:$0xff]   ;;  %154 = vmatprep.mubr.bf16.mxu0 %v280_v1  ;;  %v257_v2 = vld [vmem:[%s370_s1] ss:$8 sps:$4 sm:$0xff]   ;;  %v258_v3 = vld [vmem:[%s370_s1 + $0x14] ss:$8 sps:$4 sm:$0xff]  }
   0x2   :  { %122 = vmatprep.subr.bf16.mxu0 %v255_v0  ;;  %v260_v4 = vld [vmem:[%s370_s1 + $0x10] ss:$8 sps:$4 sm:$0xff]   ;;  %v261_v5 = vld [vmem:[%s370_s1 + $0x24] ss:$8 sps:$4 sm:$0xff]   ;;  %v263_v6 = vld [vmem:[%s370_s1 + $0x20] ss:$8 sps:$4 sm:$0xff]  }
   0x3   :  { %123 = vmatpush1.bf16.msra.mxu0 %v257_v2  ;;  %v264_v7 = vld [vmem:[%s370_s1 + $0x34] ss:$8 sps:$4 sm:$0xff]   ;;  %v266_v8 = vld [vmem:[%s370_s1 + $0x30] ss:$8 sps:$4 sm:$0xff]   ;;  %v267_v9 = vld [vmem:[%s370_s1 + $0x44] ss:$8 sps:$4 sm:$0xff]  }
   0x4   :  { %124 = vmatprep.subr.bf16.mxu0 %v258_v3  ;;  %v269_v10 = vld [vmem:[%s370_s1 + $0x40] ss:$8 sps:$4 sm:$0xff]   ;;  %v270_v11 = vld [vmem:[%s370_s1 + $0x54] ss:$8 sps:$4 sm:$0xff]   ;;  %v272_v12 = vld [vmem:[%s370_s1 + $0x50] ss:$8 sps:$4 sm:$0xff]  }
   0x5   :  { %v273_v13 = vld [vmem:[%s370_s1 + $0x64] ss:$8 sps:$4 sm:$0xff]   ;;  %v275_v14 = vld [vmem:[%s370_s1 + $0x60] ss:$8 sps:$4 sm:$0xff]   ;;  %v276_v15 = vld [vmem:[%s370_s1 + $0x74] ss:$8 sps:$4 sm:$0xff]  }
   0x6   :  { %v278_v16 = vld [vmem:[%s370_s1 + $0x70] ss:$8 sps:$4 sm:$0xff]   ;;  %v279_v17 = vld [vmem:[%s371_s0] sm:$0xff]   ;;  %227 = vst [vmem:[%s372_s4 + $0x8] sm:$0xff] %v281_v18  ;;  %v168_v20 = vshrl.u32 %v167_v19, 7 }
   0x7   :  { %125 = vmatpush1.bf16.msra.mxu0 %v260_v4  ;;  %v165_v22 = vld [vmem:[%s373_s2] sm:$0x3] }
   0x8   :  { %126 = vmatprep.subr.bf16.mxu0 %v261_v5  ;;  %v169_v21 = vsub.s32 0, %v168_v20  ;;  %v173_v23 = vsub.s32 1, %v168_v20  ;;  %v181_v24 = vld [vmem:[%s374_s3] sm:$0x3] }
   0xa   :  { %v170_v25 = vrot.slane %v165_v22, %v169_v21  ;;  %v174_v26 = vrot.slane %v165_v22, %v173_v23  ;;  %v186_v27 = vrot.slane %v181_v24, %v169_v21  ;;  %v190_v29 = vrot.slane %v181_v24, %v173_v23 }
   0xb   :  { %127 = vmatpush1.bf16.msra.mxu0 %v263_v6 }
   0xc   :  { %128 = vmatprep.subr.bf16.mxu0 %v264_v7 }
   0xf   :  { %129 = vmatpush1.bf16.msra.mxu0 %v266_v8 }
  0x10   :  { %130 = vmatprep.subr.bf16.mxu0 %v267_v9 }
  0x13   :  { %131 = vmatpush1.bf16.msra.mxu0 %v269_v10 }
  0x14   :  { %132 = vmatprep.subr.bf16.mxu0 %v270_v11 }
  0x17   :  { %133 = vmatpush1.bf16.msra.mxu0 %v272_v12 }
  0x18   :  { %134 = vmatprep.subr.bf16.mxu0 %v273_v13 }
  0x1b   :  { %135 = vmatpush1.bf16.msra.mxu0 %v275_v14 }
  0x1c   :  { %136 = vmatprep.subr.bf16.mxu0 %v276_v15 }
  0x1f   :  { %137 = vmatpush1.bf16.msra.mxu0 %v278_v16 }
  0x22   :  { %155 = vmatmul.mubr.bf16.vlgmr.msra.gmra.mrb[0].mxu0 %v279_v17 }
  0xf5   :  { %v156_v28 = vpop.f32.mrb[0].mxu0 }
  0xf6   :  { %v177_v30 = vmul.f32 %v170_v25, %v156_v28  ;;  %v158_v31 = vpop.f32.mrb[1].mxu0 }
  0xf7   :  { %v178_v32 = vmul.f32 %v174_v26, %v158_v31  ;;  %v160_v33 = vpop.f32.mrb[2].mxu0 }
  0xf8   :  { %v193_v34 = vadd.f32 %v186_v27, %v177_v30  ;;  %v162_v35 = vpop.f32.mrb[3].mxu0 }
  0xf9   :  { %v194_v36 = vadd.f32 %v190_v29, %v178_v32 }
  0xfb   :  { %v251_v37 = vpack.c.bf16 %v194_v36, %v193_v34 }
  0xfd   :  { %226 = vst [vmem:[%s372_s4] sm:$0xff] %v251_v37 }

// kernel: _lambda_.81
= control target key start
LH: loop header
LB: loop body
LE: loop exit
PB: predicated region body
PF: predicated region fallthrough
CT: control target
= control target key end

     0   :  { %s380_s1 = inlined_call_operand.vmem [shape: bf16[256,128], index: 1, kind: input, shape index: {}]   ;;  %s381_s0 = inlined_call_operand.vmem [shape: bf16[16,256], index: 0, kind: input, shape index: {}]   ;;  %s382_s2 = inlined_call_operand.vmem [shape: f32[1,128], index: 2, kind: input, shape index: {}]   ;;  %s383_s3 = inlined_call_operand.vmem [shape: f32[1,128], index: 3, kind: input, shape index: {}]   ;;  %s384_s4 = inlined_call_operand.vmem [shape: bf16[2,8,128], index: 4, kind: output, shape index: {}]  }
   0x1   :  { %v277_v0 = vld [vmem:[%s380_s1 + $0x40] sm:$0xff]   ;;  %v279_v2 = vld [vmem:[%s380_s1 + $0x48] sm:$0xff]   ;;  %v281_v4 = vld [vmem:[%s380_s1 + $0x50] sm:$0xff]  }
   0x2   :  { %v278_v1 = vld [vmem:[%s380_s1] sm:$0xff]   ;;  %255 = vmatprep.subr.bf16.mxu0 %v277_v0  ;;  %v280_v3 = vld [vmem:[%s380_s1 + $0x8] sm:$0xff]   ;;  %v282_v5 = vld [vmem:[%s380_s1 + $0x10] sm:$0xff]  }
   0x3   :  { %256 = vmatpush3.bf16.msra.mxu0 %v278_v1  ;;  %v283_v6 = vld [vmem:[%s380_s1 + $0x58] sm:$0xff]   ;;  %v285_v8 = vld [vmem:[%s380_s1 + $0x60] sm:$0xff]   ;;  %v287_v10 = vld [vmem:[%s380_s1 + $0x68] sm:$0xff]  }
   0x4   :  { %257 = vmatprep.subr.bf16.mxu0 %v279_v2  ;;  %v284_v7 = vld [vmem:[%s380_s1 + $0x18] sm:$0xff]   ;;  %v286_v9 = vld [vmem:[%s380_s1 + $0x20] sm:$0xff]   ;;  %v288_v13 = vld [vmem:[%s380_s1 + $0x28] sm:$0xff]  }
   0x5   :  { %v18_v11 = vld [vmem:[%s381_s0] sm:$0xff]  ;;  %v289_v14 = vld [vmem:[%s380_s1 + $0x70] sm:$0xff]   ;;  %v291_v16 = vld [vmem:[%s380_s1 + $0x78] sm:$0xff]  }
   0x6   :  { %v230_v12 = vcombine.high %v18_v11, %v18_v11  ;;  %v290_v15 = vld [vmem:[%s380_s1 + $0x30] sm:$0xff]   ;;  %v292_v17 = vld [vmem:[%s380_s1 + $0x38] sm:$0xff]   ;;  %v229_v18 = vcombine.low %v18_v11, %v18_v11  ;;  %v247_v21 = vld [vmem:[%s382_s2] ss:$0 sm:$0xff] }
   0x7   :  { %258 = vmatpush3.bf16.msra.mxu0 %v280_v3  ;;  %v248_v24 = vld [vmem:[%s383_s3] ss:$0 sm:$0xff] }
   0x8   :  { %259 = vmatprep.subr.bf16.mxu0 %v281_v4  ;;  %186 = vmatprep.mubr.bf16.mxu0 %v230_v12 }
   0xb   :  { %260 = vmatpush3.bf16.msra.mxu0 %v282_v5 }
   0xc   :  { %261 = vmatprep.subr.bf16.mxu0 %v283_v6 }
   0xf   :  { %262 = vmatpush3.bf16.msra.mxu0 %v284_v7 }
  0x10   :  { %263 = vmatprep.subr.bf16.mxu0 %v285_v8 }
  0x13   :  { %264 = vmatpush3.bf16.msra.mxu0 %v286_v9 }
  0x14   :  { %265 = vmatprep.subr.bf16.mxu0 %v287_v10 }
  0x17   :  { %266 = vmatpush3.bf16.msra.mxu0 %v288_v13 }
  0x18   :  { %267 = vmatprep.subr.bf16.mxu0 %v289_v14 }
  0x1b   :  { %268 = vmatpush3.bf16.msra.mxu0 %v290_v15 }
  0x1c   :  { %269 = vmatprep.subr.bf16.mxu0 %v291_v16 }
  0x1f   :  { %270 = vmatpush3.bf16.msra.mxu0 %v292_v17 }
  0x22   :  { %187 = vmatmul.mubr.bf16.vlgmr.msra.gmra.mrb[0].mxu0 %v229_v18 }
  0xf5   :  { %v271_v19 = vpop.f32.mrb[0].mxu0 }
  0xf6   :  { %v272_v20 = vpop.f32.mrb[1].mxu0 }
  0xf7   :  { %v273_v22 = vadd.f32 %v272_v20, %v271_v19  ;;  %v274_v23 = vpop.f32.mrb[2].mxu0 }
  0xf8   :  { %v275_v25 = vpop.f32.mrb[3].mxu0 }
  0xf9   :  { %v201_v26 = vmul.f32 %v273_v22, %v247_v21 }
  0xfb   :  { %v209_v27 = vadd.f32 %v248_v24, %v201_v26 }
  0xfd   :  { %v219_v28 = vmax.f32 %v209_v27, 0.0 }
  0xff   :  { %v253_v29 = vpack.c.bf16 %v209_v27, %v219_v28 }
 0x101   :  { %254 = vst [vmem:[%s384_s4] sm:$0xff] %v253_v29  }

// kernel: _lambda_.80
= control target key start
LH: loop header
LB: loop body
LE: loop exit
PB: predicated region body
PF: predicated region fallthrough
CT: control target
= control target key end

     0   :  { %v413_v1 = vmov 0   ;;  %v414_v18 = vmov 0.0   ;;  %v172_v19 = vlaneseq  ;;  %vm275_vm5 = vcmask 130048   ;;  %s522_s1 = inlined_call_operand.vmem [shape: bf16[128,256], index: 1, kind: input, shape index: {}]   ;;  %s523_s0 = inlined_call_operand.vmem [shape: bf16[16,128], index: 0, kind: input, shape index: {}]   ;;  %s524_s2 = inlined_call_operand.vmem [shape: f32[1,256], index: 2, kind: input, shape index: {}]   ;;  %s525_s3 = inlined_call_operand.vmem [shape: f32[1,256], index: 3, kind: input, shape index: {}]   ;;  %s526_s4 = inlined_call_operand.vmem [shape: bf16[16,256], index: 4, kind: input, shape index: {}]   ;;  %s527_s5 = inlined_call_operand.vmem [shape: bf16[16,256], index: 5, kind: output, shape index: {0}]   ;;  %s528_s6 = inlined_call_operand.vmem [shape: f32[1,8,256], index: 6, kind: output, shape index: {1}]  }
   0x1   :  { %v388_v0 = vld [vmem:[%s522_s1 + $0x4] ss:$8 sps:$4 sm:$0xff]   ;;  %159 = vmatprep.mubr.bf16.mxu0 %v413_v1  ;;  %v390_v2 = vld [vmem:[%s522_s1] ss:$8 sps:$4 sm:$0xff]   ;;  %v391_v3 = vld [vmem:[%s522_s1 + $0x14] ss:$8 sps:$4 sm:$0xff]   ;;  %343 = vmatprep.mubr.f32.mxu1 %v414_v18 }
   0x2   :  { %127 = vmatprep.subr.bf16.mxu0 %v388_v0  ;;  %v393_v4 = vld [vmem:[%s522_s1 + $0x10] ss:$8 sps:$4 sm:$0xff]   ;;  %v394_v5 = vld [vmem:[%s522_s1 + $0x24] ss:$8 sps:$4 sm:$0xff]   ;;  %v396_v6 = vld [vmem:[%s522_s1 + $0x20] ss:$8 sps:$4 sm:$0xff]  }
   0x3   :  { %128 = vmatpush1.bf16.msra.mxu0 %v390_v2  ;;  %v397_v7 = vld [vmem:[%s522_s1 + $0x34] ss:$8 sps:$4 sm:$0xff]   ;;  %v399_v8 = vld [vmem:[%s522_s1 + $0x30] ss:$8 sps:$4 sm:$0xff]   ;;  %v400_v9 = vld [vmem:[%s522_s1 + $0x44] ss:$8 sps:$4 sm:$0xff]  }
   0x4   :  { %129 = vmatprep.subr.bf16.mxu0 %v391_v3  ;;  %v402_v10 = vld [vmem:[%s522_s1 + $0x40] ss:$8 sps:$4 sm:$0xff]   ;;  %v403_v11 = vld [vmem:[%s522_s1 + $0x54] ss:$8 sps:$4 sm:$0xff]   ;;  %v405_v12 = vld [vmem:[%s522_s1 + $0x50] ss:$8 sps:$4 sm:$0xff]  }
   0x5   :  { %v406_v13 = vld [vmem:[%s522_s1 + $0x64] ss:$8 sps:$4 sm:$0xff]   ;;  %v408_v14 = vld [vmem:[%s522_s1 + $0x60] ss:$8 sps:$4 sm:$0xff]   ;;  %v409_v15 = vld [vmem:[%s522_s1 + $0x74] ss:$8 sps:$4 sm:$0xff]  }
   0x6   :  { %v411_v16 = vld [vmem:[%s522_s1 + $0x70] ss:$8 sps:$4 sm:$0xff]   ;;  %v412_v17 = vld [vmem:[%s523_s0] sm:$0xff]   ;;  %v173_v20 = vshrl.u32 %v172_v19, 7  ;;  %v264_v33 = vand.u32 127, %v172_v19 }
   0x7   :  { %130 = vmatpush1.bf16.msra.mxu0 %v393_v4  ;;  %v170_v22 = vld [vmem:[%s524_s2] sm:$0x3] }
   0x8   :  { %131 = vmatprep.subr.bf16.mxu0 %v394_v5  ;;  %v174_v21 = vsub.s32 0, %v173_v20  ;;  %v178_v23 = vsub.s32 1, %v173_v20  ;;  %v266_v24 = vmul.u32 4, %v173_v20  ;;  %v186_v25 = vld [vmem:[%s525_s3] sm:$0x3]  ;;  %vm268_vm0 = vcmp.lt.s32.totalorder %v173_v20, 2 }
   0x9   :  { %v219_v28 = vld [vmem:[%s526_s4] sm:$0xff] }
   0xa   :  { %v175_v26 = vrot.slane %v170_v22, %v174_v21  ;;  %v179_v27 = vrot.slane %v170_v22, %v178_v23  ;;  %v191_v29 = vrot.slane %v186_v25, %v174_v21  ;;  %v267_v30 = vadd.s32 8, %v266_v24 }
   0xb   :  { %132 = vmatpush1.bf16.msra.mxu0 %v396_v6  ;;  %v195_v32 = vrot.slane %v186_v25, %v178_v23  ;;  %v221_v36 = vunpack.c.l.bf16 %v219_v28  ;;  %v222_v39 = vunpack.c.h.bf16 %v219_v28 }
   0xc   :  { %133 = vmatprep.subr.bf16.mxu0 %v397_v7  ;;  %v271_v43 = vadd.s32 4, %v267_v30  ;;  %vm269_vm1 = vcmp.ge.s32.totalorder %v264_v33, %v267_v30 }
   0xd   :  { %vm270_vm2 = vmand %vm268_vm0, %vm269_vm1 }
   0xe   :  { %vm272_vm3 = vcmp.lt.s32.totalorder %v264_v33, %v271_v43 }
   0xf   :  { %134 = vmatpush1.bf16.msra.mxu0 %v399_v8  ;;  %vm273_vm4 = vmand %vm270_vm2, %vm272_vm3 }
  0x10   :  { %135 = vmatprep.subr.bf16.mxu0 %v400_v9  ;;  %v274_v58 = vsel %vm273_vm4, 1.0, %v414_v18 }
  0x13   :  { %136 = vmatpush1.bf16.msra.mxu0 %v402_v10 }
  0x14   :  { %137 = vmatprep.subr.bf16.mxu0 %v403_v11 }
  0x17   :  { %138 = vmatpush1.bf16.msra.mxu0 %v405_v12 }
  0x18   :  { %139 = vmatprep.subr.bf16.mxu0 %v406_v13 }
  0x1b   :  { %140 = vmatpush1.bf16.msra.mxu0 %v408_v14 }
  0x1c   :  { %141 = vmatprep.subr.bf16.mxu0 %v409_v15 }
  0x1f   :  { %142 = vmatpush1.bf16.msra.mxu0 %v411_v16 }
  0x22   :  { %160 = vmatmul.mubr.bf16.vlgmr.msra.gmra.mrb[0].mxu0 %v412_v17 }
  0xf5   :  { %v161_v31 = vpop.f32.mrb[0].mxu0 }
  0xf6   :  { %v182_v34 = vmul.f32 %v175_v26, %v161_v31  ;;  %v163_v35 = vpop.f32.mrb[1].mxu0 }
  0xf7   :  { %v183_v37 = vmul.f32 %v179_v27, %v163_v35  ;;  %v165_v38 = vpop.f32.mrb[2].mxu0 }
  0xf8   :  { %v198_v40 = vadd.f32 %v191_v29, %v182_v34  ;;  %v184_v41 = vmul.f32 %v175_v26, %v165_v38  ;;  %v167_v42 = vpop.f32.mrb[3].mxu0 }
  0xf9   :  { %v199_v44 = vadd.f32 %v195_v32, %v183_v37  ;;  %v185_v45 = vmul.f32 %v179_v27, %v167_v42 }
  0xfa   :  { %v200_v46 = vadd.f32 %v191_v29, %v184_v41  ;;  %v233_v47 = vadd.f32 %v221_v36, %v198_v40 }
  0xfb   :  { %v201_v48 = vadd.f32 %v195_v32, %v185_v45  ;;  %v234_v49 = vadd.f32 %v222_v39, %v199_v44 }
  0xfc   :  { %v239_v50 = vmax.f32 %v200_v46, 0.0  ;;  %v237_v51 = vmax.f32 %v233_v47, 0.0 }
  0xfd   :  { %v238_v52 = vmax.f32 %v234_v49, 0.0  ;;  %v240_v53 = vmax.f32 %v201_v48, 0.0 }
  0xfe   :  { %v384_v54 = vpack.c.bf16 %v239_v50, %v237_v51 }
  0xff   :  { %v381_v55 = vpack.c.bf16 %v240_v53, %v239_v50  ;;  %v382_v56 = vpack.c.bf16 %v240_v53, %v238_v52  ;;  %v380_v57 = vpack.c.bf16 %v238_v52, %v237_v51 }
 0x101   :  { %262 = vst [vmem:[%s527_s5 + $0x8] sm:$0xff] %v381_v55  ;;  %383 = vmatprep.subr.bf16.mxu1 %v382_v56  ;;  %261 = vst [vmem:[%s527_s5] sm:$0xff] %v380_v57 }
 0x102   :  { %385 = vmatpush1.bf16.msra.mxu1 %v384_v54 }
 0x105   :  { %379 = vmatmul.mubr.msk.f32.vlgmr.msra.gmra.mrb[0].mxu1 %vm275_vm5, %v274_v58 }
 0x1d8   :  { %v345_v59 = vpop.f32.mrb[0].mxu1 }
 0x1d9   :  { %350 = vst [vmem:[%s528_s6] sm:$0xff] %v345_v59  ;;  %v347_v60 = vpop.f32.mrb[1].mxu1 }
 0x1da   :  { %351 = vst [vmem:[%s528_s6 + $0x8] sm:$0xff] %v347_v60 }

// kernel: _lambda_.98
= control target key start
LH: loop header
LB: loop body
LE: loop exit
PB: predicated region body
PF: predicated region fallthrough
CT: control target
= control target key end

     0   :  { %s1028_s1 = inlined_call_operand.vmem [shape: bf16[256,512], index: 1, kind: input, shape index: {}]   ;;  %s1029_s0 = inlined_call_operand.vmem [shape: bf16[16,256], index: 0, kind: input, shape index: {}]   ;;  %s1030_s4 = inlined_call_operand.vmem [shape: bf16[16,512], index: 4, kind: output, shape index: {}]   ;;  %s1031_s2 = inlined_call_operand.vmem [shape: f32[1,512], index: 2, kind: input, shape index: {}]   ;;  %s1032_s3 = inlined_call_operand.vmem [shape: f32[1,512], index: 3, kind: input, shape index: {}]  }
   0x1   :  { %v687_v0 = vld [vmem:[%s1028_s1 + $0x4] ss:$16 sps:$4 sm:$0xff]   ;;  %v689_v1 = vld [vmem:[%s1028_s1 + $0xc] ss:$16 sps:$4 sm:$0xff]   ;;  %v691_v2 = vld [vmem:[%s1028_s1] ss:$16 sps:$4 sm:$0xff]  }
   0x2   :  { %413 = vmatprep.subr.bf16.mxu0 %v687_v0  ;;  %v692_v3 = vld [vmem:[%s1028_s1 + $0x8] ss:$16 sps:$4 sm:$0xff]   ;;  %456 = vmatprep.subr.bf16.mxu1 %v689_v1  ;;  %v693_v4 = vld [vmem:[%s1028_s1 + $0x24] ss:$16 sps:$4 sm:$0xff]   ;;  %v695_v5 = vld [vmem:[%s1028_s1 + $0x2c] ss:$16 sps:$4 sm:$0xff]  }
   0x3   :  { %414 = vmatpush1.bf16.msra.mxu0 %v691_v2  ;;  %457 = vmatpush1.bf16.msra.mxu1 %v692_v3  ;;  %v697_v6 = vld [vmem:[%s1028_s1 + $0x20] ss:$16 sps:$4 sm:$0xff]   ;;  %v698_v7 = vld [vmem:[%s1028_s1 + $0x28] ss:$16 sps:$4 sm:$0xff]   ;;  %v699_v8 = vld [vmem:[%s1028_s1 + $0x44] ss:$16 sps:$4 sm:$0xff]   ;;  %v501_v3 = vlaneseq }
   0x4   :  { %415 = vmatprep.subr.bf16.mxu0 %v693_v4  ;;  %458 = vmatprep.subr.bf16.mxu1 %v695_v5  ;;  %v701_v9 = vld [vmem:[%s1028_s1 + $0x4c] ss:$16 sps:$4 sm:$0xff]   ;;  %v703_v10 = vld [vmem:[%s1028_s1 + $0x40] ss:$16 sps:$4 sm:$0xff]   ;;  %v704_v11 = vld [vmem:[%s1028_s1 + $0x48] ss:$16 sps:$4 sm:$0xff]  }
   0x5   :  { %v705_v12 = vld [vmem:[%s1028_s1 + $0x64] ss:$16 sps:$4 sm:$0xff]   ;;  %v707_v13 = vld [vmem:[%s1028_s1 + $0x6c] ss:$16 sps:$4 sm:$0xff]   ;;  %v709_v14 = vld [vmem:[%s1028_s1 + $0x60] ss:$16 sps:$4 sm:$0xff]  }
   0x6   :  { %v710_v15 = vld [vmem:[%s1028_s1 + $0x68] ss:$16 sps:$4 sm:$0xff]   ;;  %v711_v16 = vld [vmem:[%s1028_s1 + $0x84] ss:$16 sps:$4 sm:$0xff]   ;;  %v713_v17 = vld [vmem:[%s1028_s1 + $0x8c] ss:$16 sps:$4 sm:$0xff]  }
   0x7   :  { %416 = vmatpush1.bf16.msra.mxu0 %v697_v6  ;;  %459 = vmatpush1.bf16.msra.mxu1 %v698_v7  ;;  %v715_v18 = vld [vmem:[%s1028_s1 + $0x80] ss:$16 sps:$4 sm:$0xff]   ;;  %v716_v19 = vld [vmem:[%s1028_s1 + $0x88] ss:$16 sps:$4 sm:$0xff]   ;;  %v717_v20 = vld [vmem:[%s1028_s1 + $0xa4] ss:$16 sps:$4 sm:$0xff]  }
   0x8   :  { %417 = vmatprep.subr.bf16.mxu0 %v699_v8  ;;  %460 = vmatprep.subr.bf16.mxu1 %v701_v9  ;;  %v719_v21 = vld [vmem:[%s1028_s1 + $0xac] ss:$16 sps:$4 sm:$0xff]   ;;  %v721_v22 = vld [vmem:[%s1028_s1 + $0xa0] ss:$16 sps:$4 sm:$0xff]   ;;  %v722_v23 = vld [vmem:[%s1028_s1 + $0xa8] ss:$16 sps:$4 sm:$0xff]  }
   0x9   :  { %v723_v24 = vld [vmem:[%s1028_s1 + $0xc4] ss:$16 sps:$4 sm:$0xff]   ;;  %v725_v25 = vld [vmem:[%s1028_s1 + $0xcc] ss:$16 sps:$4 sm:$0xff]   ;;  %v727_v26 = vld [vmem:[%s1028_s1 + $0xc0] ss:$16 sps:$4 sm:$0xff]  }
   0xa   :  { %v728_v27 = vld [vmem:[%s1028_s1 + $0xc8] ss:$16 sps:$4 sm:$0xff]   ;;  %v729_v28 = vld [vmem:[%s1028_s1 + $0xe4] ss:$16 sps:$4 sm:$0xff]   ;;  %v731_v29 = vld [vmem:[%s1028_s1 + $0xec] ss:$16 sps:$4 sm:$0xff]  }
   0xb   :  { %418 = vmatpush1.bf16.msra.mxu0 %v703_v10  ;;  %461 = vmatpush1.bf16.msra.mxu1 %v704_v11  ;;  %v733_v30 = vld [vmem:[%s1028_s1 + $0xe0] ss:$16 sps:$4 sm:$0xff]   ;;  %v734_v31 = vld [vmem:[%s1028_s1 + $0xe8] ss:$16 sps:$4 sm:$0xff]   ;;  %v735_v32 = vld [vmem:[%s1028_s1 + $0x104] ss:$16 sps:$4 sm:$0xff]  }
   0xc   :  { %419 = vmatprep.subr.bf16.mxu0 %v705_v12  ;;  %462 = vmatprep.subr.bf16.mxu1 %v707_v13  ;;  %v737_v33 = vld [vmem:[%s1028_s1 + $0x10c] ss:$16 sps:$4 sm:$0xff]   ;;  %v739_v34 = vld [vmem:[%s1028_s1 + $0x100] ss:$16 sps:$4 sm:$0xff]   ;;  %v740_v35 = vld [vmem:[%s1028_s1 + $0x108] ss:$16 sps:$4 sm:$0xff]  }
   0xd   :  { %v741_v36 = vld [vmem:[%s1028_s1 + $0x124] ss:$16 sps:$4 sm:$0xff]   ;;  %v743_v37 = vld [vmem:[%s1028_s1 + $0x12c] ss:$16 sps:$4 sm:$0xff]   ;;  %v745_v38 = vld [vmem:[%s1028_s1 + $0x120] ss:$16 sps:$4 sm:$0xff]  }
   0xe   :  { %v746_v39 = vld [vmem:[%s1028_s1 + $0x128] ss:$16 sps:$4 sm:$0xff]   ;;  %v747_v40 = vld [vmem:[%s1028_s1 + $0x144] ss:$16 sps:$4 sm:$0xff]   ;;  %v749_v41 = vld [vmem:[%s1028_s1 + $0x14c] ss:$16 sps:$4 sm:$0xff]  }
   0xf   :  { %420 = vmatpush1.bf16.msra.mxu0 %v709_v14  ;;  %463 = vmatpush1.bf16.msra.mxu1 %v710_v15  ;;  %v751_v42 = vld [vmem:[%s1028_s1 + $0x140] ss:$16 sps:$4 sm:$0xff]   ;;  %v752_v43 = vld [vmem:[%s1028_s1 + $0x148] ss:$16 sps:$4 sm:$0xff]   ;;  %v753_v44 = vld [vmem:[%s1028_s1 + $0x164] ss:$16 sps:$4 sm:$0xff]  }
  0x10   :  { %421 = vmatprep.subr.bf16.mxu0 %v711_v16  ;;  %464 = vmatprep.subr.bf16.mxu1 %v713_v17  ;;  %v755_v45 = vld [vmem:[%s1028_s1 + $0x16c] ss:$16 sps:$4 sm:$0xff]   ;;  %v757_v47 = vld [vmem:[%s1028_s1 + $0x160] ss:$16 sps:$4 sm:$0xff]   ;;  %v758_v48 = vld [vmem:[%s1028_s1 + $0x168] ss:$16 sps:$4 sm:$0xff]  }
  0x11   :  { %v785_v46 = vld [vmem:[%s1029_s0 + $0x4] ss:$8 sps:$4 sm:$0xff]   ;;  %v763_v51 = vld [vmem:[%s1028_s1 + $0x180] ss:$16 sps:$4 sm:$0xff]   ;;  %v764_v52 = vld [vmem:[%s1028_s1 + $0x188] ss:$16 sps:$4 sm:$0xff]  }
  0x12   :  { %v759_v49 = vld [vmem:[%s1028_s1 + $0x184] ss:$16 sps:$4 sm:$0xff]   ;;  %v761_v50 = vld [vmem:[%s1028_s1 + $0x18c] ss:$16 sps:$4 sm:$0xff]   ;;  %445 = vmatprep.mubr.bf16.mxu0 %v785_v46  ;;  %488 = vmatprep.mubr.bf16.mxu1 %v785_v46  ;;  %v769_v55 = vld [vmem:[%s1028_s1 + $0x1a0] ss:$16 sps:$4 sm:$0xff]  }
  0x13   :  { %422 = vmatpush1.bf16.msra.mxu0 %v715_v18  ;;  %465 = vmatpush1.bf16.msra.mxu1 %v716_v19  ;;  %v765_v53 = vld [vmem:[%s1028_s1 + $0x1a4] ss:$16 sps:$4 sm:$0xff]   ;;  %v767_v54 = vld [vmem:[%s1028_s1 + $0x1ac] ss:$16 sps:$4 sm:$0xff]   ;;  %v770_v56 = vld [vmem:[%s1028_s1 + $0x1a8] ss:$16 sps:$4 sm:$0xff]  }
  0x14   :  { %423 = vmatprep.subr.bf16.mxu0 %v717_v20  ;;  %466 = vmatprep.subr.bf16.mxu1 %v719_v21  ;;  %v771_v57 = vld [vmem:[%s1028_s1 + $0x1c4] ss:$16 sps:$4 sm:$0xff]   ;;  %v773_v58 = vld [vmem:[%s1028_s1 + $0x1cc] ss:$16 sps:$4 sm:$0xff]   ;;  %v775_v59 = vld [vmem:[%s1028_s1 + $0x1c0] ss:$16 sps:$4 sm:$0xff]  }
  0x15   :  { %v776_v60 = vld [vmem:[%s1028_s1 + $0x1c8] ss:$16 sps:$4 sm:$0xff]   ;;  %v777_v61 = vld [vmem:[%s1028_s1 + $0x1e4] ss:$16 sps:$4 sm:$0xff]   ;;  %v779_v62 = vld [vmem:[%s1028_s1 + $0x1ec] ss:$16 sps:$4 sm:$0xff]  }
  0x16   :  { %v781_v63 = vld [vmem:[%s1028_s1 + $0x1e0] ss:$16 sps:$4 sm:$0xff]   ;;  %v782_v0 = vld [vmem:[%s1028_s1 + $0x1e8] ss:$16 sps:$4 sm:$0xff]   ;;  %v786_v2 = vmov 0.0|0.0   ;;  %v502_v4 = vshrl.u32 %v501_v3, 7 }
  0x17   :  { %424 = vmatpush1.bf16.msra.mxu0 %v721_v22  ;;  %467 = vmatpush1.bf16.msra.mxu1 %v722_v23  ;;  %v783_v1 = vld [vmem:[%s1029_s0] ss:$8 sps:$4 sm:$0xff]   ;;  %606 = vst [vmem:[%s1030_s4 + $0x10] sm:$0xff] %v786_v2  ;;  %607 = vst [vmem:[%s1030_s4 + $0x18] sm:$0xff] %v786_v2 }
  0x18   :  { %425 = vmatprep.subr.bf16.mxu0 %v723_v24  ;;  %468 = vmatprep.subr.bf16.mxu1 %v725_v25  ;;  %v503_v5 = vsub.s32 0, %v502_v4  ;;  %v511_v6 = vsub.s32 2, %v502_v4  ;;  %v499_v7 = vld [vmem:[%s1031_s2] sm:$0xf]  ;;  %v507_v8 = vsub.s32 1, %v502_v4  ;;  %v515_v9 = vsub.s32 3, %v502_v4 }
  0x19   :  { %v529_v10 = vld [vmem:[%s1032_s3] sm:$0xf]  ;;  %vm566_vm0 = vcmp.lt.s32.totalorder %v502_v4, 2 }
  0x1a   :  { %v504_v11 = vrot.slane %v499_v7, %v503_v5  ;;  %v512_v12 = vrot.slane %v499_v7, %v511_v6  ;;  %v508_v13 = vrot.slane %v499_v7, %v507_v8  ;;  %v516_v14 = vrot.slane %v499_v7, %v515_v9 }
  0x1b   :  { %426 = vmatpush1.bf16.msra.mxu0 %v727_v26  ;;  %469 = vmatpush1.bf16.msra.mxu1 %v728_v27  ;;  %v534_v15 = vrot.slane %v529_v10, %v503_v5  ;;  %v542_v16 = vrot.slane %v529_v10, %v511_v6  ;;  %v538_v19 = vrot.slane %v529_v10, %v507_v8 }
  0x1c   :  { %427 = vmatprep.subr.bf16.mxu0 %v729_v28  ;;  %470 = vmatprep.subr.bf16.mxu1 %v731_v29  ;;  %v546_v20 = vrot.slane %v529_v10, %v515_v9 }
  0x1f   :  { %428 = vmatpush1.bf16.msra.mxu0 %v733_v30  ;;  %471 = vmatpush1.bf16.msra.mxu1 %v734_v31 }
  0x20   :  { %429 = vmatprep.subr.bf16.mxu0 %v735_v32  ;;  %472 = vmatprep.subr.bf16.mxu1 %v737_v33 }
  0x23   :  { %430 = vmatpush1.bf16.msra.mxu0 %v739_v34  ;;  %473 = vmatpush1.bf16.msra.mxu1 %v740_v35 }
  0x24   :  { %431 = vmatprep.subr.bf16.mxu0 %v741_v36  ;;  %474 = vmatprep.subr.bf16.mxu1 %v743_v37 }
  0x27   :  { %432 = vmatpush1.bf16.msra.mxu0 %v745_v38  ;;  %475 = vmatpush1.bf16.msra.mxu1 %v746_v39 }
  0x28   :  { %433 = vmatprep.subr.bf16.mxu0 %v747_v40  ;;  %476 = vmatprep.subr.bf16.mxu1 %v749_v41 }
  0x2b   :  { %434 = vmatpush1.bf16.msra.mxu0 %v751_v42  ;;  %477 = vmatpush1.bf16.msra.mxu1 %v752_v43 }
  0x2c   :  { %435 = vmatprep.subr.bf16.mxu0 %v753_v44  ;;  %478 = vmatprep.subr.bf16.mxu1 %v755_v45 }
  0x2f   :  { %436 = vmatpush1.bf16.msra.mxu0 %v757_v47  ;;  %479 = vmatpush1.bf16.msra.mxu1 %v758_v48 }
  0x30   :  { %437 = vmatprep.subr.bf16.mxu0 %v759_v49  ;;  %480 = vmatprep.subr.bf16.mxu1 %v761_v50 }
  0x33   :  { %438 = vmatpush1.bf16.msra.mxu0 %v763_v51  ;;  %481 = vmatpush1.bf16.msra.mxu1 %v764_v52 }
  0x34   :  { %439 = vmatprep.subr.bf16.mxu0 %v765_v53  ;;  %482 = vmatprep.subr.bf16.mxu1 %v767_v54 }
  0x37   :  { %440 = vmatpush1.bf16.msra.mxu0 %v769_v55  ;;  %483 = vmatpush1.bf16.msra.mxu1 %v770_v56 }
  0x38   :  { %441 = vmatprep.subr.bf16.mxu0 %v771_v57  ;;  %484 = vmatprep.subr.bf16.mxu1 %v773_v58 }
  0x3b   :  { %442 = vmatpush1.bf16.msra.mxu0 %v775_v59  ;;  %485 = vmatpush1.bf16.msra.mxu1 %v776_v60 }
  0x3c   :  { %443 = vmatprep.subr.bf16.mxu0 %v777_v61  ;;  %486 = vmatprep.subr.bf16.mxu1 %v779_v62 }
  0x3f   :  { %444 = vmatpush1.bf16.msra.mxu0 %v781_v63  ;;  %487 = vmatpush1.bf16.msra.mxu1 %v782_v0 }
  0x42   :  { %446 = vmatmul.mubr.bf16.vlgmr.msra.gmra.mrb[0].mxu0 %v783_v1  ;;  %489 = vmatmul.mubr.bf16.vlgmr.msra.gmra.mrb[0].mxu1 %v783_v1 }
 0x115   :  { %v447_v17 = vpop.f32.mrb[0].mxu0  ;;  %v490_v18 = vpop.f32.mrb[0].mxu1 }
 0x116   :  { %v521_v21 = vmul.f32 %v504_v11, %v447_v17  ;;  %v523_v22 = vmul.f32 %v512_v12, %v490_v18  ;;  %v449_v23 = vpop.f32.mrb[1].mxu0  ;;  %v492_v24 = vpop.f32.mrb[1].mxu1 }
 0x117   :  { %v522_v25 = vmul.f32 %v508_v13, %v449_v23  ;;  %v524_v26 = vmul.f32 %v516_v14, %v492_v24  ;;  %v451_v27 = vpop.f32.mrb[2].mxu0  ;;  %v494_v28 = vpop.f32.mrb[2].mxu1 }
 0x118   :  { %v551_v29 = vadd.f32 %v534_v15, %v521_v21  ;;  %v553_v30 = vadd.f32 %v542_v16, %v523_v22  ;;  %v453_v31 = vpop.f32.mrb[3].mxu0  ;;  %v496_v32 = vpop.f32.mrb[3].mxu1 }
 0x119   :  { %v552_v33 = vadd.f32 %v538_v19, %v522_v25  ;;  %v554_v34 = vadd.f32 %v546_v20, %v524_v26 }
 0x11a   :  { %v572_v35 = vsel %vm566_vm0, %v551_v29, 0.0  ;;  %v574_v36 = vsel %vm566_vm0, %v553_v30, 0.0 }
 0x11b   :  { %v573_v37 = vsel %vm566_vm0, %v552_v33, 0.0  ;;  %v575_v38 = vsel %vm566_vm0, %v554_v34, 0.0 }
 0x11c   :  { %v682_v39 = vpack.c.bf16 %v573_v37, %v572_v35  ;;  %v683_v40 = vpack.c.bf16 %v575_v38, %v574_v36 }
 0x11e   :  { %604 = vst [vmem:[%s1030_s4] sm:$0xff] %v682_v39  ;;  %605 = vst [vmem:[%s1030_s4 + $0x8] sm:$0xff] %v683_v40 }

// kernel: _lambda_.100
= control target key start
LH: loop header
LB: loop body
LE: loop exit
PB: predicated region body
PF: predicated region fallthrough
CT: control target
= control target key end

     0   :  { %v387_v38 = vlaneseq  ;;  %s665_s1 = inlined_call_operand.vmem [shape: bf16[512,128], index: 1, kind: input, shape index: {}]   ;;  %s666_s0 = inlined_call_operand.vmem [shape: bf16[16,512], index: 0, kind: input, shape index: {}]   ;;  %s667_s2 = inlined_call_operand.vmem [shape: f32[1,128], index: 2, kind: input, shape index: {}]   ;;  %s668_s3 = inlined_call_operand.vmem [shape: f32[1,128], index: 3, kind: input, shape index: {}]   ;;  %s669_s4 = inlined_call_operand.vmem [shape: bf16[2,8,128], index: 4, kind: output, shape index: {}]  }
   0x1   :  { %v493_v0 = vld [vmem:[%s665_s1 + $0x40] sm:$0xff]   ;;  %v497_v4 = vld [vmem:[%s665_s1 + $0x48] sm:$0xff]   ;;  %v501_v8 = vld [vmem:[%s665_s1 + $0x50] sm:$0xff]  }
   0x2   :  { %v494_v1 = vld [vmem:[%s665_s1 + $0xc0] sm:$0xff]   ;;  %449 = vmatprep.subr.bf16.mxu0 %v493_v0  ;;  %v498_v5 = vld [vmem:[%s665_s1 + $0xc8] sm:$0xff]   ;;  %v502_v9 = vld [vmem:[%s665_s1 + $0xd0] sm:$0xff]   ;;  %v388_v48 = vshrl.u32 %v387_v38, 7 }
   0x3   :  { %v495_v2 = vld [vmem:[%s665_s1] sm:$0xff]   ;;  %471 = vmatprep.subr.bf16.mxu1 %v494_v1  ;;  %v499_v6 = vld [vmem:[%s665_s1 + $0x8] sm:$0xff]   ;;  %v503_v10 = vld [vmem:[%s665_s1 + $0x10] sm:$0xff]  }
   0x4   :  { %v496_v3 = vld [vmem:[%s665_s1 + $0x80] sm:$0xff]   ;;  %450 = vmatpush3.bf16.msra.mxu0 %v495_v2  ;;  %v500_v7 = vld [vmem:[%s665_s1 + $0x88] sm:$0xff]   ;;  %v504_v11 = vld [vmem:[%s665_s1 + $0x90] sm:$0xff]   ;;  %vm391_vm0 = vcmp.lt.s32.totalorder %v388_v48, 2 }
   0x5   :  { %472 = vmatpush3.bf16.msra.mxu1 %v496_v3  ;;  %451 = vmatprep.subr.bf16.mxu0 %v497_v4  ;;  %v505_v12 = vld [vmem:[%s665_s1 + $0x58] sm:$0xff]   ;;  %v509_v16 = vld [vmem:[%s665_s1 + $0x60] sm:$0xff]   ;;  %v513_v20 = vld [vmem:[%s665_s1 + $0x68] sm:$0xff]  }
   0x6   :  { %473 = vmatprep.subr.bf16.mxu1 %v498_v5  ;;  %v506_v13 = vld [vmem:[%s665_s1 + $0xd8] sm:$0xff]   ;;  %v510_v17 = vld [vmem:[%s665_s1 + $0xe0] sm:$0xff]   ;;  %v514_v21 = vld [vmem:[%s665_s1 + $0xe8] sm:$0xff]  }
   0x7   :  { %v507_v14 = vld [vmem:[%s665_s1 + $0x18] sm:$0xff]   ;;  %v511_v18 = vld [vmem:[%s665_s1 + $0x20] sm:$0xff]   ;;  %v515_v22 = vld [vmem:[%s665_s1 + $0x28] sm:$0xff]  }
   0x8   :  { %452 = vmatpush3.bf16.msra.mxu0 %v499_v6  ;;  %v508_v15 = vld [vmem:[%s665_s1 + $0x98] sm:$0xff]   ;;  %v512_v19 = vld [vmem:[%s665_s1 + $0xa0] sm:$0xff]   ;;  %v516_v23 = vld [vmem:[%s665_s1 + $0xa8] sm:$0xff]  }
   0x9   :  { %474 = vmatpush3.bf16.msra.mxu1 %v500_v7  ;;  %453 = vmatprep.subr.bf16.mxu0 %v501_v8  ;;  %v517_v24 = vld [vmem:[%s665_s1 + $0x70] sm:$0xff]   ;;  %v521_v28 = vld [vmem:[%s665_s1 + $0x78] sm:$0xff]   ;;  %v18_v32 = vld [vmem:[%s666_s0] sm:$0xff] }
   0xa   :  { %475 = vmatprep.subr.bf16.mxu1 %v502_v9  ;;  %v518_v25 = vld [vmem:[%s665_s1 + $0xf0] sm:$0xff]   ;;  %v522_v29 = vld [vmem:[%s665_s1 + $0xf8] sm:$0xff]   ;;  %v19_v33 = vld [vmem:[%s666_s0 + $0x8] sm:$0xff]  ;;  %v405_v34 = vcombine.low %v18_v32, %v18_v32  ;;  %v406_v35 = vcombine.high %v18_v32, %v18_v32 }
   0xb   :  { %v519_v26 = vld [vmem:[%s665_s1 + $0x30] sm:$0xff]   ;;  %v523_v30 = vld [vmem:[%s665_s1 + $0x38] sm:$0xff]   ;;  %v407_v36 = vcombine.low %v19_v33, %v19_v33  ;;  %v408_v37 = vcombine.high %v19_v33, %v19_v33  ;;  %v441_v47 = vld [vmem:[%s667_s2] ss:$0 sm:$0xff] }
   0xc   :  { %454 = vmatpush3.bf16.msra.mxu0 %v503_v10  ;;  %v520_v27 = vld [vmem:[%s665_s1 + $0xb0] sm:$0xff]   ;;  %v524_v31 = vld [vmem:[%s665_s1 + $0xb8] sm:$0xff]   ;;  %322 = vmatprep.mubr.bf16.mxu0 %v406_v35  ;;  %v442_v52 = vld [vmem:[%s668_s3] ss:$0 sm:$0xff] }
   0xd   :  { %476 = vmatpush3.bf16.msra.mxu1 %v504_v11  ;;  %455 = vmatprep.subr.bf16.mxu0 %v505_v12 }
   0xe   :  { %477 = vmatprep.subr.bf16.mxu1 %v506_v13  ;;  %362 = vmatprep.mubr.bf16.mxu1 %v408_v37 }
  0x10   :  { %456 = vmatpush3.bf16.msra.mxu0 %v507_v14 }
  0x11   :  { %478 = vmatpush3.bf16.msra.mxu1 %v508_v15  ;;  %457 = vmatprep.subr.bf16.mxu0 %v509_v16 }
  0x12   :  { %479 = vmatprep.subr.bf16.mxu1 %v510_v17 }
  0x14   :  { %458 = vmatpush3.bf16.msra.mxu0 %v511_v18 }
  0x15   :  { %480 = vmatpush3.bf16.msra.mxu1 %v512_v19  ;;  %459 = vmatprep.subr.bf16.mxu0 %v513_v20 }
  0x16   :  { %481 = vmatprep.subr.bf16.mxu1 %v514_v21 }
  0x18   :  { %460 = vmatpush3.bf16.msra.mxu0 %v515_v22 }
  0x19   :  { %482 = vmatpush3.bf16.msra.mxu1 %v516_v23  ;;  %461 = vmatprep.subr.bf16.mxu0 %v517_v24 }
  0x1a   :  { %483 = vmatprep.subr.bf16.mxu1 %v518_v25 }
  0x1c   :  { %462 = vmatpush3.bf16.msra.mxu0 %v519_v26 }
  0x1d   :  { %484 = vmatpush3.bf16.msra.mxu1 %v520_v27  ;;  %463 = vmatprep.subr.bf16.mxu0 %v521_v28 }
  0x1e   :  { %485 = vmatprep.subr.bf16.mxu1 %v522_v29 }
  0x20   :  { %464 = vmatpush3.bf16.msra.mxu0 %v523_v30 }
  0x21   :  { %486 = vmatpush3.bf16.msra.mxu1 %v524_v31 }
  0x23   :  { %323 = vmatmul.mubr.bf16.vlgmr.msra.gmra.mrb[0].mxu0 %v405_v34 }
  0x24   :  { %363 = vmatmul.mubr.bf16.vlgmr.msra.gmra.mrb[0].mxu1 %v407_v36 }
  0xf6   :  { %v465_v39 = vpop.f32.mrb[0].mxu0 }
  0xf7   :  { %v487_v40 = vpop.f32.mrb[0].mxu1  ;;  %v466_v41 = vpop.f32.mrb[1].mxu0 }
  0xf8   :  { %v488_v42 = vpop.f32.mrb[1].mxu1  ;;  %v467_v43 = vadd.f32 %v466_v41, %v465_v39  ;;  %v468_v45 = vpop.f32.mrb[2].mxu0 }
  0xf9   :  { %v489_v44 = vadd.f32 %v488_v42, %v487_v40  ;;  %v490_v46 = vpop.f32.mrb[2].mxu1  ;;  %v469_v49 = vpop.f32.mrb[3].mxu0 }
  0xfa   :  { %v491_v50 = vpop.f32.mrb[3].mxu1 }
  0xfb   :  { %v365_v51 = vadd.f32 %v489_v44, %v467_v43 }
  0xfd   :  { %v377_v53 = vmul.f32 %v441_v47, %v365_v51 }
  0xff   :  { %v385_v54 = vadd.f32 %v442_v52, %v377_v53 }
 0x101   :  { %v394_v55 = vsel %vm391_vm0, %v385_v54, 0.0 }
 0x102   :  { %v395_v56 = vmax.f32 %v394_v55, 0.0 }
 0x104   :  { %v447_v57 = vpack.c.bf16 %v394_v55, %v395_v56 }
 0x106   :  { %448 = vst [vmem:[%s669_s4] sm:$0xff] %v447_v57  }

// kernel: _lambda_.99
= control target key start
LH: loop header
LB: loop body
LE: loop exit
PB: predicated region body
PF: predicated region fallthrough
CT: control target
= control target key end

     0   :  { %v750_v1 = vmov 0   ;;  %v751_v34 = vmov 0.0   ;;  %v311_v35 = vlaneseq  ;;  %vm478_vm7 = vcmask 130048   ;;  %s991_s1 = inlined_call_operand.vmem [shape: bf16[128,512], index: 1, kind: input, shape index: {}]   ;;  %s992_s0 = inlined_call_operand.vmem [shape: bf16[16,128], index: 0, kind: input, shape index: {}]   ;;  %s993_s2 = inlined_call_operand.vmem [shape: f32[1,512], index: 2, kind: input, shape index: {}]   ;;  %s994_s3 = inlined_call_operand.vmem [shape: f32[1,512], index: 3, kind: input, shape index: {}]   ;;  %s995_s4 = inlined_call_operand.vmem [shape: bf16[16,512], index: 4, kind: input, shape index: {}]   ;;  %s996_s5 = inlined_call_operand.vmem [shape: bf16[16,512], index: 5, kind: output, shape index: {0}]   ;;  %s997_s6 = inlined_call_operand.vmem [shape: f32[1,8,512], index: 6, kind: output, shape index: {1}]  }
   0x1   :  { %v701_v0 = vld [vmem:[%s991_s1 + $0x4] ss:$16 sps:$4 sm:$0xff]   ;;  %255 = vmatprep.mubr.bf16.mxu0 %v750_v1  ;;  %298 = vmatprep.mubr.bf16.mxu1 %v750_v1  ;;  %v703_v2 = vld [vmem:[%s991_s1 + $0xc] ss:$16 sps:$4 sm:$0xff]   ;;  %v705_v3 = vld [vmem:[%s991_s1] ss:$16 sps:$4 sm:$0xff]  }
   0x2   :  { %223 = vmatprep.subr.bf16.mxu0 %v701_v0  ;;  %v706_v4 = vld [vmem:[%s991_s1 + $0x8] ss:$16 sps:$4 sm:$0xff]   ;;  %266 = vmatprep.subr.bf16.mxu1 %v703_v2  ;;  %v707_v5 = vld [vmem:[%s991_s1 + $0x24] ss:$16 sps:$4 sm:$0xff]   ;;  %v709_v6 = vld [vmem:[%s991_s1 + $0x2c] ss:$16 sps:$4 sm:$0xff]  }
   0x3   :  { %224 = vmatpush1.bf16.msra.mxu0 %v705_v3  ;;  %267 = vmatpush1.bf16.msra.mxu1 %v706_v4  ;;  %v711_v7 = vld [vmem:[%s991_s1 + $0x20] ss:$16 sps:$4 sm:$0xff]   ;;  %v712_v8 = vld [vmem:[%s991_s1 + $0x28] ss:$16 sps:$4 sm:$0xff]   ;;  %v713_v9 = vld [vmem:[%s991_s1 + $0x44] ss:$16 sps:$4 sm:$0xff]  }
   0x4   :  { %225 = vmatprep.subr.bf16.mxu0 %v707_v5  ;;  %268 = vmatprep.subr.bf16.mxu1 %v709_v6  ;;  %v715_v10 = vld [vmem:[%s991_s1 + $0x4c] ss:$16 sps:$4 sm:$0xff]   ;;  %v717_v11 = vld [vmem:[%s991_s1 + $0x40] ss:$16 sps:$4 sm:$0xff]   ;;  %v718_v12 = vld [vmem:[%s991_s1 + $0x48] ss:$16 sps:$4 sm:$0xff]  }
   0x5   :  { %v719_v13 = vld [vmem:[%s991_s1 + $0x64] ss:$16 sps:$4 sm:$0xff]   ;;  %v721_v14 = vld [vmem:[%s991_s1 + $0x6c] ss:$16 sps:$4 sm:$0xff]   ;;  %v723_v15 = vld [vmem:[%s991_s1 + $0x60] ss:$16 sps:$4 sm:$0xff]  }
   0x6   :  { %v724_v16 = vld [vmem:[%s991_s1 + $0x68] ss:$16 sps:$4 sm:$0xff]   ;;  %v725_v17 = vld [vmem:[%s991_s1 + $0x84] ss:$16 sps:$4 sm:$0xff]   ;;  %v727_v18 = vld [vmem:[%s991_s1 + $0x8c] ss:$16 sps:$4 sm:$0xff]  }
   0x7   :  { %226 = vmatpush1.bf16.msra.mxu0 %v711_v7  ;;  %269 = vmatpush1.bf16.msra.mxu1 %v712_v8  ;;  %v729_v19 = vld [vmem:[%s991_s1 + $0x80] ss:$16 sps:$4 sm:$0xff]   ;;  %v730_v20 = vld [vmem:[%s991_s1 + $0x88] ss:$16 sps:$4 sm:$0xff]   ;;  %v731_v21 = vld [vmem:[%s991_s1 + $0xa4] ss:$16 sps:$4 sm:$0xff]  }
   0x8   :  { %227 = vmatprep.subr.bf16.mxu0 %v713_v9  ;;  %270 = vmatprep.subr.bf16.mxu1 %v715_v10  ;;  %v733_v22 = vld [vmem:[%s991_s1 + $0xac] ss:$16 sps:$4 sm:$0xff]   ;;  %v735_v23 = vld [vmem:[%s991_s1 + $0xa0] ss:$16 sps:$4 sm:$0xff]   ;;  %v736_v24 = vld [vmem:[%s991_s1 + $0xa8] ss:$16 sps:$4 sm:$0xff]  }
   0x9   :  { %v737_v25 = vld [vmem:[%s991_s1 + $0xc4] ss:$16 sps:$4 sm:$0xff]   ;;  %v739_v26 = vld [vmem:[%s991_s1 + $0xcc] ss:$16 sps:$4 sm:$0xff]   ;;  %v741_v27 = vld [vmem:[%s991_s1 + $0xc0] ss:$16 sps:$4 sm:$0xff]  }
   0xa   :  { %v742_v28 = vld [vmem:[%s991_s1 + $0xc8] ss:$16 sps:$4 sm:$0xff]   ;;  %v743_v29 = vld [vmem:[%s991_s1 + $0xe4] ss:$16 sps:$4 sm:$0xff]   ;;  %v745_v30 = vld [vmem:[%s991_s1 + $0xec] ss:$16 sps:$4 sm:$0xff]  }
   0xb   :  { %228 = vmatpush1.bf16.msra.mxu0 %v717_v11  ;;  %271 = vmatpush1.bf16.msra.mxu1 %v718_v12  ;;  %v747_v31 = vld [vmem:[%s991_s1 + $0xe0] ss:$16 sps:$4 sm:$0xff]   ;;  %v748_v32 = vld [vmem:[%s991_s1 + $0xe8] ss:$16 sps:$4 sm:$0xff]   ;;  %v888_v36 = vshrl.u32 %v311_v35, 7  ;;  %v909_v50 = vand.u32 127, %v311_v35 }
   0xc   :  { %229 = vmatprep.subr.bf16.mxu0 %v719_v13  ;;  %272 = vmatprep.subr.bf16.mxu1 %v721_v14  ;;  %v749_v33 = vld [vmem:[%s992_s0] sm:$0xff]   ;;  %v387_v47 = vld [vmem:[%s995_s4 + $0x8] sm:$0xff] }
   0xd   :  { %v313_v37 = vsub.s32 0, %v888_v36  ;;  %v321_v38 = vsub.s32 2, %v888_v36  ;;  %v309_v39 = vld [vmem:[%s993_s2] sm:$0xf]  ;;  %v317_v40 = vsub.s32 1, %v888_v36  ;;  %v325_v41 = vsub.s32 3, %v888_v36 }
   0xe   :  { %v339_v42 = vld [vmem:[%s994_s3] sm:$0xf]  ;;  %v901_v43 = vadd.s32 8, %v888_v36  ;;  %vm376_vm0 = vcmp.lt.s32.totalorder %v888_v36, 2  ;;  %v392_v59 = vunpack.c.l.bf16 %v387_v47  ;;  %v393_v1 = vunpack.c.h.bf16 %v387_v47 }
   0xf   :  { %230 = vmatpush1.bf16.msra.mxu0 %v723_v15  ;;  %273 = vmatpush1.bf16.msra.mxu1 %v724_v16  ;;  %v314_v44 = vrot.slane %v309_v39, %v313_v37  ;;  %v386_v45 = vld [vmem:[%s995_s4] sm:$0xff]  ;;  %v322_v46 = vrot.slane %v309_v39, %v321_v38  ;;  %v318_v48 = vrot.slane %v309_v39, %v317_v40 }
  0x10   :  { %231 = vmatprep.subr.bf16.mxu0 %v725_v17  ;;  %274 = vmatprep.subr.bf16.mxu1 %v727_v18  ;;  %v326_v49 = vrot.slane %v309_v39, %v325_v41  ;;  %v912_v51 = vadd.s32 1, %v901_v43  ;;  %v344_v52 = vrot.slane %v339_v42, %v313_v37  ;;  %v352_v53 = vrot.slane %v339_v42, %v321_v38 }
  0x11   :  { %v348_v54 = vrot.slane %v339_v42, %v317_v40  ;;  %v356_v55 = vrot.slane %v339_v42, %v325_v41  ;;  %v390_v57 = vunpack.c.l.bf16 %v386_v45  ;;  %v391_v60 = vunpack.c.h.bf16 %v386_v45 }
  0x12   :  { %vm381_vm1 = vcmp.lt.s32.totalorder %v901_v43, 10  ;;  %vm472_vm2 = vcmp.ge.s32.totalorder %v909_v50, %v901_v43  ;;  %vm475_vm3 = vcmp.lt.s32.totalorder %v909_v50, %v912_v51 }
  0x13   :  { %232 = vmatpush1.bf16.msra.mxu0 %v729_v19  ;;  %275 = vmatpush1.bf16.msra.mxu1 %v730_v20  ;;  %vm925_vm4 = vmand %vm376_vm0, %vm472_vm2 }
  0x14   :  { %233 = vmatprep.subr.bf16.mxu0 %v731_v21  ;;  %276 = vmatprep.subr.bf16.mxu1 %v733_v22  ;;  %vm945_vm5 = vmpackc.low %vm381_vm1, %vm376_vm0 }
  0x15   :  { %vm476_vm6 = vmand %vm925_vm4, %vm475_vm3 }
  0x16   :  { %v477_v43 = vsel %vm476_vm6, 1.0, %v751_v34 }
  0x17   :  { %234 = vmatpush1.bf16.msra.mxu0 %v735_v23  ;;  %277 = vmatpush1.bf16.msra.mxu1 %v736_v24 }
  0x18   :  { %235 = vmatprep.subr.bf16.mxu0 %v737_v25  ;;  %278 = vmatprep.subr.bf16.mxu1 %v739_v26 }
  0x1b   :  { %236 = vmatpush1.bf16.msra.mxu0 %v741_v27  ;;  %279 = vmatpush1.bf16.msra.mxu1 %v742_v28 }
  0x1c   :  { %237 = vmatprep.subr.bf16.mxu0 %v743_v29  ;;  %280 = vmatprep.subr.bf16.mxu1 %v745_v30 }
  0x1f   :  { %238 = vmatpush1.bf16.msra.mxu0 %v747_v31  ;;  %281 = vmatpush1.bf16.msra.mxu1 %v748_v32 }
  0x22   :  { %256 = vmatmul.mubr.bf16.vlgmr.msra.gmra.mrb[0].mxu0 %v749_v33  ;;  %299 = vmatmul.mubr.bf16.vlgmr.msra.gmra.mrb[0].mxu1 %v749_v33 }
  0x23   :  { %546 = vmatprep.mubr.f32.mxu0 %v751_v34  ;;  %617 = vmatprep.mubr.f32.mxu1 %v751_v34 }
  0xf5   :  { %v257_v56 = vpop.f32.mrb[0].mxu0  ;;  %v300_v58 = vpop.f32.mrb[0].mxu1 }
  0xf6   :  { %v331_v61 = vmul.f32 %v314_v44, %v257_v56  ;;  %v333_v62 = vmul.f32 %v322_v46, %v300_v58  ;;  %v259_v63 = vpop.f32.mrb[1].mxu0  ;;  %v302_v0 = vpop.f32.mrb[1].mxu1 }
  0xf7   :  { %v332_v2 = vmul.f32 %v318_v48, %v259_v63  ;;  %v334_v3 = vmul.f32 %v326_v49, %v302_v0  ;;  %v261_v4 = vpop.f32.mrb[2].mxu0  ;;  %v304_v5 = vpop.f32.mrb[2].mxu1 }
  0xf8   :  { %v361_v6 = vadd.f32 %v344_v52, %v331_v61  ;;  %v363_v7 = vadd.f32 %v352_v53, %v333_v62  ;;  %v335_v8 = vmul.f32 %v314_v44, %v261_v4  ;;  %v337_v9 = vmul.f32 %v322_v46, %v304_v5  ;;  %v263_v10 = vpop.f32.mrb[3].mxu0  ;;  %v306_v11 = vpop.f32.mrb[3].mxu1 }
  0xf9   :  { %v362_v12 = vadd.f32 %v348_v54, %v332_v2  ;;  %v364_v13 = vadd.f32 %v356_v55, %v334_v3  ;;  %v336_v14 = vmul.f32 %v318_v48, %v263_v10  ;;  %v338_v15 = vmul.f32 %v326_v49, %v306_v11 }
  0xfa   :  { %v412_v16 = vadd.f32 %v390_v57, %v361_v6  ;;  %v414_v17 = vadd.f32 %v392_v59, %v363_v7  ;;  %v365_v18 = vadd.f32 %v344_v52, %v335_v8  ;;  %v367_v19 = vadd.f32 %v352_v53, %v337_v9 }
  0xfb   :  { %v413_v20 = vadd.f32 %v391_v60, %v362_v12  ;;  %v415_v21 = vadd.f32 %v393_v1, %v364_v13  ;;  %v366_v22 = vadd.f32 %v348_v54, %v336_v14  ;;  %v368_v23 = vadd.f32 %v356_v55, %v338_v15 }
  0xfc   :  { %v420_v24 = vmax.f32 %v412_v16, 0.0  ;;  %v422_v25 = vmax.f32 %v414_v17, 0.0  ;;  %v424_v26 = vmax.f32 %v365_v18, 0.0  ;;  %v426_v27 = vmax.f32 %v367_v19, 0.0 }
  0xfd   :  { %v421_v28 = vmax.f32 %v413_v20, 0.0  ;;  %v423_v29 = vmax.f32 %v415_v21, 0.0  ;;  %v425_v30 = vmax.f32 %v366_v22, 0.0  ;;  %v427_v31 = vmax.f32 %v368_v23, 0.0 }
  0xfe   :  { %v432_v33 = vsel %vm376_vm0, %v420_v24, 0.0  ;;  %v434_v35 = vsel %vm376_vm0, %v422_v25, 0.0  ;;  %v436_v37 = vsel %vm381_vm1, %v424_v26, 0.0  ;;  %v690_v38 = vpack.c.bf16 %v424_v26, %v420_v24 }
  0xff   :  { %v433_v39 = vsel %vm376_vm0, %v421_v28, 0.0  ;;  %v435_v40 = vsel %vm376_vm0, %v423_v29, 0.0  ;;  %v438_v41 = vsel %vm381_vm1, %v426_v27, 0.0  ;;  %v696_v42 = vpack.c.bf16 %v426_v27, %v422_v25 }
 0x100   :  { %v683_v45 = vpack.c.bf16 %v433_v39, %v432_v33  ;;  %v684_v46 = vpack.c.bf16 %v435_v40, %v434_v35  ;;  %v437_v47 = vsel %vm381_vm1, %v425_v30, 0.0  ;;  %v687_v48 = vpack.c.bf16 %v425_v30, %v421_v28 }
 0x101   :  { %v685_v49 = vpack.c.bf16 %v437_v47, %v436_v37  ;;  %v439_v36 = vsel %vm381_vm1, %v427_v31, 0.0  ;;  %v693_v52 = vpack.c.bf16 %v427_v31, %v423_v29 }
 0x102   :  { %464 = vst [vmem:[%s996_s5] sm:$0xff] %v683_v45  ;;  %465 = vst [vmem:[%s996_s5 + $0x8] sm:$0xff] %v684_v46  ;;  %v686_v53 = vpack.c.bf16 %v439_v36, %v438_v41  ;;  %689 = vmatprep.subr.msk.bf16.mxu0 %vm945_vm5, %v687_v48 }
 0x103   :  { %466 = vst [vmem:[%s996_s5 + $0x10] sm:$0xff] %v685_v49  ;;  %695 = vmatprep.subr.msk.bf16.mxu1 %vm945_vm5, %v693_v52  ;;  %692 = vmatpush1.bf16.msk.msra.mxu0 %vm945_vm5, %v690_v38 }
 0x104   :  { %467 = vst [vmem:[%s996_s5 + $0x18] sm:$0xff] %v686_v53  ;;  %698 = vmatpush1.bf16.msk.msra.mxu1 %vm945_vm5, %v696_v42 }
 0x106   :  { %677 = vmatmul.mubr.msk.f32.vlgmr.msra.gmra.mrb[4].mxu0 %vm478_vm7, %v477_v43 }
 0x107   :  { %682 = vmatmul.mubr.msk.f32.vlgmr.msra.gmra.mrb[4].mxu1 %vm478_vm7, %v477_v43 }
 0x1d9   :  { %v548_v50 = vpop.f32.mrb[4].mxu0 }
 0x1da   :  { %624 = vst [vmem:[%s997_s6] sm:$0xff] %v548_v50  ;;  %v619_v51 = vpop.f32.mrb[4].mxu1  ;;  %v550_v54 = vpop.f32.mrb[5].mxu0 }
 0x1db   :  { %626 = vst [vmem:[%s997_s6 + $0x10] sm:$0xff] %v619_v51  ;;  %625 = vst [vmem:[%s997_s6 + $0x8] sm:$0xff] %v550_v54  ;;  %v621_v34 = vpop.f32.mrb[5].mxu1 }
 0x1dc   :  { %627 = vst [vmem:[%s997_s6 + $0x18] sm:$0xff] %v621_v34 }

// kernel: _lambda_.97
= control target key start
LH: loop header
LB: loop body
LE: loop exit
PB: predicated region body
PF: predicated region fallthrough
CT: control target
= control target key end

     0   :  { %vm1217_vm0 = vmmov 0   ;;  %s1495_s1 = inlined_call_operand.vmem [shape: bf16[1152,128], index: 1, kind: input, shape index: {}]   ;;  %s1496_s0 = inlined_call_operand.vmem [shape: bf16[16,1152], index: 0, kind: input, shape index: {}]   ;;  %s1497_s2 = inlined_call_operand.vmem [shape: f32[1,128], index: 2, kind: input, shape index: {}]   ;;  %s1498_s3 = inlined_call_operand.vmem [shape: f32[1,128], index: 3, kind: input, shape index: {}]   ;;  %s1499_s4 = inlined_call_operand.vmem [shape: bf16[16,128], index: 4, kind: output, shape index: {}]  }
   0x1   :  { %v1131_v0 = vld [vmem:[%s1495_s1 + $0x40] sm:$0xff]   ;;  %v1135_v4 = vld [vmem:[%s1495_s1 + $0x48] sm:$0xff]   ;;  %v1139_v8 = vld [vmem:[%s1495_s1 + $0x50] sm:$0xff]  }
   0x2   :  { %v1132_v1 = vld [vmem:[%s1495_s1 + $0xc0] sm:$0xff]   ;;  %1012 = vmatprep.subr.bf16.mxu0 %v1131_v0  ;;  %v1136_v5 = vld [vmem:[%s1495_s1 + $0xc8] sm:$0xff]   ;;  %v1140_v9 = vld [vmem:[%s1495_s1 + $0xd0] sm:$0xff]  }
   0x3   :  { %v1133_v2 = vld [vmem:[%s1495_s1] sm:$0xff]   ;;  %1034 = vmatprep.subr.bf16.mxu1 %v1132_v1  ;;  %v1137_v6 = vld [vmem:[%s1495_s1 + $0x8] sm:$0xff]   ;;  %v1141_v10 = vld [vmem:[%s1495_s1 + $0x10] sm:$0xff]  }
   0x4   :  { %v1134_v3 = vld [vmem:[%s1495_s1 + $0x80] sm:$0xff]   ;;  %1013 = vmatpush3.bf16.msra.mxu0 %v1133_v2  ;;  %v1138_v7 = vld [vmem:[%s1495_s1 + $0x88] sm:$0xff]   ;;  %v1142_v11 = vld [vmem:[%s1495_s1 + $0x90] sm:$0xff]  }
   0x5   :  { %1035 = vmatpush3.bf16.msra.mxu1 %v1134_v3  ;;  %1014 = vmatprep.subr.bf16.mxu0 %v1135_v4  ;;  %v1143_v12 = vld [vmem:[%s1495_s1 + $0x58] sm:$0xff]   ;;  %v1147_v16 = vld [vmem:[%s1495_s1 + $0x60] sm:$0xff]   ;;  %v1151_v20 = vld [vmem:[%s1495_s1 + $0x68] sm:$0xff]  }
   0x6   :  { %1036 = vmatprep.subr.bf16.mxu1 %v1136_v5  ;;  %v1144_v13 = vld [vmem:[%s1495_s1 + $0xd8] sm:$0xff]   ;;  %v1148_v17 = vld [vmem:[%s1495_s1 + $0xe0] sm:$0xff]   ;;  %v1152_v21 = vld [vmem:[%s1495_s1 + $0xe8] sm:$0xff]  }
   0x7   :  { %v1145_v14 = vld [vmem:[%s1495_s1 + $0x18] sm:$0xff]   ;;  %v1149_v18 = vld [vmem:[%s1495_s1 + $0x20] sm:$0xff]   ;;  %v1153_v22 = vld [vmem:[%s1495_s1 + $0x28] sm:$0xff]  }
   0x8   :  { %1015 = vmatpush3.bf16.msra.mxu0 %v1137_v6  ;;  %v1146_v15 = vld [vmem:[%s1495_s1 + $0x98] sm:$0xff]   ;;  %v1150_v19 = vld [vmem:[%s1495_s1 + $0xa0] sm:$0xff]   ;;  %v1154_v23 = vld [vmem:[%s1495_s1 + $0xa8] sm:$0xff]   ;;  %v1216_v6 = vmov 0.0  }
   0x9   :  { %1037 = vmatpush3.bf16.msra.mxu1 %v1138_v7  ;;  %1016 = vmatprep.subr.bf16.mxu0 %v1139_v8  ;;  %v1155_v24 = vld [vmem:[%s1495_s1 + $0x70] sm:$0xff]   ;;  %v1159_v28 = vld [vmem:[%s1495_s1 + $0x78] sm:$0xff]   ;;  %v1163_v32 = vld [vmem:[%s1496_s0] ss:$36 sps:$4 sm:$0xff]  }
   0xa   :  { %1038 = vmatprep.subr.bf16.mxu1 %v1140_v9  ;;  %v1156_v25 = vld [vmem:[%s1495_s1 + $0xf0] sm:$0xff]   ;;  %v1160_v29 = vld [vmem:[%s1495_s1 + $0xf8] sm:$0xff]   ;;  %v1165_v33 = vld [vmem:[%s1496_s0 + $0x4] ss:$36 sps:$4 sm:$0xff]  }
   0xb   :  { %v1157_v26 = vld [vmem:[%s1495_s1 + $0x30] sm:$0xff]   ;;  %v1161_v30 = vld [vmem:[%s1495_s1 + $0x38] sm:$0xff]   ;;  %v1166_v34 = vld [vmem:[%s1496_s0 + $0x8] ss:$36 sps:$4 sm:$0xff]   ;;  %682 = vmatprep.mubr.bf16.mxu0 %v1165_v33 }
   0xc   :  { %1017 = vmatpush3.bf16.msra.mxu0 %v1141_v10  ;;  %v1158_v27 = vld [vmem:[%s1495_s1 + $0xb0] sm:$0xff]   ;;  %v1162_v31 = vld [vmem:[%s1495_s1 + $0xb8] sm:$0xff]   ;;  %v1169_v36 = vld [vmem:[%s1495_s1 + $0x140] sm:$0xff]  }
   0xd   :  { %1039 = vmatpush3.bf16.msra.mxu1 %v1142_v11  ;;  %1018 = vmatprep.subr.bf16.mxu0 %v1143_v12  ;;  %v1168_v35 = vld [vmem:[%s1496_s0 + $0xc] ss:$36 sps:$4 sm:$0xff]   ;;  %v1170_v37 = vld [vmem:[%s1495_s1 + $0x100] sm:$0xff]   ;;  %v1181_v48 = vld [vmem:[%s1495_s1 + $0x158] sm:$0xff]  }
   0xe   :  { %1040 = vmatprep.subr.bf16.mxu1 %v1144_v13  ;;  %723 = vmatprep.mubr.bf16.mxu1 %v1168_v35  ;;  %v1171_v38 = vld [vmem:[%s1495_s1 + $0x1c0] sm:$0xff]   ;;  %v1173_v40 = vld [vmem:[%s1495_s1 + $0x148] sm:$0xff]   ;;  %v1177_v44 = vld [vmem:[%s1495_s1 + $0x150] sm:$0xff]  }
   0xf   :  { %v1172_v39 = vld [vmem:[%s1495_s1 + $0x180] sm:$0xff]   ;;  %v1174_v41 = vld [vmem:[%s1495_s1 + $0x108] sm:$0xff]   ;;  %v1178_v45 = vld [vmem:[%s1495_s1 + $0x110] sm:$0xff]  }
  0x10   :  { %1019 = vmatpush3.bf16.msra.mxu0 %v1145_v14  ;;  %v1175_v42 = vld [vmem:[%s1495_s1 + $0x1c8] sm:$0xff]   ;;  %v1179_v46 = vld [vmem:[%s1495_s1 + $0x1d0] sm:$0xff]   ;;  %v1182_v49 = vld [vmem:[%s1495_s1 + $0x118] sm:$0xff]  }
  0x11   :  { %1041 = vmatpush3.bf16.msra.mxu1 %v1146_v15  ;;  %1020 = vmatprep.subr.bf16.mxu0 %v1147_v16  ;;  %v1176_v43 = vld [vmem:[%s1495_s1 + $0x188] sm:$0xff]   ;;  %v1180_v47 = vld [vmem:[%s1495_s1 + $0x190] sm:$0xff]   ;;  %v1183_v50 = vld [vmem:[%s1495_s1 + $0x1d8] sm:$0xff]  }
  0x12   :  { %1042 = vmatprep.subr.bf16.mxu1 %v1148_v17  ;;  %v1184_v51 = vld [vmem:[%s1495_s1 + $0x198] sm:$0xff]   ;;  %v1185_v52 = vld [vmem:[%s1495_s1 + $0x160] sm:$0xff]   ;;  %v1189_v56 = vld [vmem:[%s1495_s1 + $0x168] sm:$0xff]  }
  0x13   :  { %v1186_v53 = vld [vmem:[%s1495_s1 + $0x120] sm:$0xff]   ;;  %v1190_v57 = vld [vmem:[%s1495_s1 + $0x128] sm:$0xff]   ;;  %v1193_v60 = vld [vmem:[%s1495_s1 + $0x170] sm:$0xff]  }
  0x14   :  { %1021 = vmatpush3.bf16.msra.mxu0 %v1149_v18  ;;  %v1187_v54 = vld [vmem:[%s1495_s1 + $0x1e0] sm:$0xff]   ;;  %v1191_v58 = vld [vmem:[%s1495_s1 + $0x1e8] sm:$0xff]   ;;  %v1194_v61 = vld [vmem:[%s1495_s1 + $0x130] sm:$0xff]  }
  0x15   :  { %1043 = vmatpush3.bf16.msra.mxu1 %v1150_v19  ;;  %1022 = vmatprep.subr.bf16.mxu0 %v1151_v20  ;;  %v1188_v55 = vld [vmem:[%s1495_s1 + $0x1a0] sm:$0xff]   ;;  %v1192_v59 = vld [vmem:[%s1495_s1 + $0x1a8] sm:$0xff]   ;;  %v1195_v62 = vld [vmem:[%s1495_s1 + $0x1f0] sm:$0xff]  }
  0x16   :  { %1044 = vmatprep.subr.bf16.mxu1 %v1152_v21  ;;  %v1196_v63 = vld [vmem:[%s1495_s1 + $0x1b0] sm:$0xff]   ;;  %v1197_v0 = vld [vmem:[%s1495_s1 + $0x178] sm:$0xff]   ;;  %v1207_v9 = vld [vmem:[%s1495_s1 + $0x200] sm:$0xff]  }
  0x17   :  { %v1198_v1 = vld [vmem:[%s1495_s1 + $0x138] sm:$0xff]   ;;  %v1200_v3 = vld [vmem:[%s1496_s0 + $0x10] ss:$36 sps:$4 sm:$0xff]   ;;  %v1208_v10 = vld [vmem:[%s1495_s1 + $0x208] sm:$0xff]  }
  0x18   :  { %1023 = vmatpush3.bf16.msra.mxu0 %v1153_v22  ;;  %v1199_v2 = vld [vmem:[%s1495_s1 + $0x1f8] sm:$0xff]   ;;  %v1209_v11 = vld [vmem:[%s1495_s1 + $0x210] sm:$0xff]   ;;  %v1211_v13 = vld [vmem:[%s1495_s1 + $0x220] sm:$0xff]  }
  0x19   :  { %1045 = vmatpush3.bf16.msra.mxu1 %v1154_v23  ;;  %1024 = vmatprep.subr.bf16.mxu0 %v1155_v24  ;;  %v1202_v4 = vld [vmem:[%s1496_s0 + $0x14] ss:$36 sps:$4 sm:$0xff]   ;;  %v1206_v8 = vld [vmem:[%s1496_s0 + $0x1c] ss:$36 sps:$4 sm:$0xff]   ;;  %v1212_v14 = vld [vmem:[%s1495_s1 + $0x228] sm:$0xff]  }
  0x1a   :  { %1046 = vmatprep.subr.bf16.mxu1 %v1156_v25  ;;  %v1203_v5 = vld [vmem:[%s1495_s1 + $0x1b8] sm:$0xff]   ;;  %v1213_v15 = vld [vmem:[%s1495_s1 + $0x230] sm:$0xff]   ;;  %v1215_v17 = vld [vmem:[%s1496_s0 + $0x20] ss:$36 sps:$4 sm:$0xff]  }
  0x1b   :  { %v1204_v7 = vld [vmem:[%s1496_s0 + $0x18] ss:$36 sps:$4 sm:$0xff]  }
  0x1c   :  { %1025 = vmatpush3.bf16.msra.mxu0 %v1157_v26  ;;  %v1210_v12 = vld [vmem:[%s1495_s1 + $0x218] sm:$0xff]  }
  0x1d   :  { %1047 = vmatpush3.bf16.msra.mxu1 %v1158_v27  ;;  %1026 = vmatprep.subr.bf16.mxu0 %v1159_v28  ;;  %v1214_v16 = vld [vmem:[%s1495_s1 + $0x238] sm:$0xff]  }
  0x1e   :  { %1048 = vmatprep.subr.bf16.mxu1 %v1160_v29 }
  0x20   :  { %1027 = vmatpush3.bf16.msra.mxu0 %v1161_v30 }
  0x21   :  { %1049 = vmatpush3.bf16.msra.mxu1 %v1162_v31  ;;  %1056 = vmatprep.subr.bf16.mxu0 %v1169_v36 }
  0x22   :  { %1078 = vmatprep.subr.bf16.mxu1 %v1171_v38 }
  0x23   :  { %683 = vmatmul.mubr.bf16.vlgmr.msra.gmra.mrb[0].mxu0 %v1163_v32 }
  0x24   :  { %724 = vmatmul.mubr.bf16.vlgmr.msra.gmra.mrb[0].mxu1 %v1166_v34  ;;  %1057 = vmatpush3.bf16.msra.mxu0 %v1170_v37 }
  0x25   :  { %1079 = vmatpush3.bf16.msra.mxu1 %v1172_v39  ;;  %1058 = vmatprep.subr.bf16.mxu0 %v1173_v40 }
  0x26   :  { %1080 = vmatprep.subr.bf16.mxu1 %v1175_v42  ;;  %764 = vmatprep.mubr.bf16.mxu0 %v1202_v4 }
  0x27   :  { %805 = vmatprep.mubr.bf16.mxu1 %v1206_v8 }
  0x28   :  { %1059 = vmatpush3.bf16.msra.mxu0 %v1174_v41 }
  0x29   :  { %1081 = vmatpush3.bf16.msra.mxu1 %v1176_v43  ;;  %1060 = vmatprep.subr.bf16.mxu0 %v1177_v44 }
  0x2a   :  { %1082 = vmatprep.subr.bf16.mxu1 %v1179_v46 }
  0x2c   :  { %1061 = vmatpush3.bf16.msra.mxu0 %v1178_v45 }
  0x2d   :  { %1083 = vmatpush3.bf16.msra.mxu1 %v1180_v47  ;;  %1062 = vmatprep.subr.bf16.mxu0 %v1181_v48  ;;  %v874_v48 = vlaneseq }
  0x2e   :  { %1084 = vmatprep.subr.bf16.mxu1 %v1183_v50 }
  0x30   :  { %1063 = vmatpush3.bf16.msra.mxu0 %v1182_v49  ;;  %v875_v49 = vshrl.u32 %v874_v48, 7 }
  0x31   :  { %1085 = vmatpush3.bf16.msra.mxu1 %v1184_v51  ;;  %1064 = vmatprep.subr.bf16.mxu0 %v1185_v52  ;;  %v1001_v51 = vld [vmem:[%s1497_s2] ss:$0 sm:$0xff] }
  0x32   :  { %1086 = vmatprep.subr.bf16.mxu1 %v1187_v54  ;;  %v1002_v54 = vld [vmem:[%s1498_s3] ss:$0 sm:$0xff]  ;;  %vm880_vm1 = vcmp.lt.s32.totalorder %v875_v49, 2 }
  0x34   :  { %1065 = vmatpush3.bf16.msra.mxu0 %v1186_v53 }
  0x35   :  { %1087 = vmatpush3.bf16.msra.mxu1 %v1188_v55  ;;  %1066 = vmatprep.subr.bf16.mxu0 %v1189_v56  ;;  %v876_v56 = vadd.s32 8, %v875_v49 }
  0x36   :  { %1088 = vmatprep.subr.bf16.mxu1 %v1191_v58 }
  0x37   :  { %vm885_vm2 = vcmp.lt.s32.totalorder %v876_v56, 10 }
  0x38   :  { %1067 = vmatpush3.bf16.msra.mxu0 %v1190_v57 }
  0x39   :  { %1089 = vmatpush3.bf16.msra.mxu1 %v1192_v59  ;;  %1068 = vmatprep.subr.bf16.mxu0 %v1193_v60 }
  0x3a   :  { %1090 = vmatprep.subr.bf16.mxu1 %v1195_v62 }
  0x3c   :  { %1069 = vmatpush3.bf16.msra.mxu0 %v1194_v61 }
  0x3d   :  { %1091 = vmatpush3.bf16.msra.mxu1 %v1196_v63  ;;  %1070 = vmatprep.subr.bf16.mxu0 %v1197_v0 }
  0x3e   :  { %1092 = vmatprep.subr.bf16.mxu1 %v1199_v2 }
  0x40   :  { %1071 = vmatpush3.bf16.msra.mxu0 %v1198_v1 }
  0x41   :  { %1109 = vmatprep.subr.bf16.mxu0 %v1216_v6  ;;  %1093 = vmatpush3.bf16.msra.mxu1 %v1203_v5 }
  0x43   :  { %765 = vmatmul.mubr.bf16.vlgmr.msra.gmra.mrb[4].mxu0 %v1200_v3 }
  0x44   :  { %1125 = vmatprep.mubr.msk.bf16.mxu0 %vm1217_vm0, %v1216_v6  ;;  %1110 = vmatpush3.bf16.msra.mxu0 %v1207_v9 }
  0x45   :  { %806 = vmatmul.mubr.bf16.vlgmr.msra.gmra.mrb[4].mxu1 %v1204_v7  ;;  %1111 = vmatprep.subr.bf16.mxu0 %v1216_v6 }
  0x48   :  { %1112 = vmatpush3.bf16.msra.mxu0 %v1208_v10 }
  0x49   :  { %1113 = vmatprep.subr.bf16.mxu0 %v1216_v6 }
  0x4c   :  { %1114 = vmatpush3.bf16.msra.mxu0 %v1209_v11 }
  0x4d   :  { %1115 = vmatprep.subr.bf16.mxu0 %v1216_v6 }
  0x50   :  { %1116 = vmatpush3.bf16.msra.mxu0 %v1210_v12 }
  0x51   :  { %1117 = vmatprep.subr.bf16.mxu0 %v1216_v6 }
  0x54   :  { %1118 = vmatpush3.bf16.msra.mxu0 %v1211_v13 }
  0x55   :  { %1119 = vmatprep.subr.bf16.mxu0 %v1216_v6 }
  0x58   :  { %1120 = vmatpush3.bf16.msra.mxu0 %v1212_v14 }
  0x59   :  { %1121 = vmatprep.subr.bf16.mxu0 %v1216_v6 }
  0x5c   :  { %1122 = vmatpush3.bf16.msra.mxu0 %v1213_v15 }
  0x5d   :  { %1123 = vmatprep.subr.bf16.mxu0 %v1216_v6 }
  0x60   :  { %1124 = vmatpush3.bf16.msra.mxu0 %v1214_v16 }
  0x63   :  { %1126 = vmatmul.mubr.bf16.vlgmr.msra.gmra.mrb[8].mxu0 %v1215_v17 }
  0xf6   :  { %v1028_v18 = vpop.f32.mrb[0].mxu0 }
  0xf7   :  { %v1050_v19 = vpop.f32.mrb[0].mxu1  ;;  %v1029_v20 = vpop.f32.mrb[1].mxu0 }
  0xf8   :  { %v1030_v21 = vadd.f32 %v1029_v20, %v1028_v18  ;;  %v1051_v22 = vpop.f32.mrb[1].mxu1  ;;  %v1031_v23 = vpop.f32.mrb[2].mxu0 }
  0xf9   :  { %v1052_v24 = vadd.f32 %v1051_v22, %v1050_v19  ;;  %v1053_v25 = vpop.f32.mrb[2].mxu1  ;;  %v1032_v26 = vpop.f32.mrb[3].mxu0 }
  0xfa   :  { %v1033_v27 = vadd.f32 %v1032_v26, %v1031_v23  ;;  %v1054_v28 = vpop.f32.mrb[3].mxu1 }
  0xfb   :  { %v726_v29 = vadd.f32 %v1052_v24, %v1030_v21  ;;  %v1055_v30 = vadd.f32 %v1054_v28, %v1053_v25 }
  0xfd   :  { %v729_v31 = vadd.f32 %v1055_v30, %v1033_v27 }
 0x116   :  { %v1072_v32 = vpop.f32.mrb[4].mxu0 }
 0x117   :  { %v1073_v33 = vpop.f32.mrb[5].mxu0 }
 0x118   :  { %v1074_v34 = vadd.f32 %v1073_v33, %v1072_v32  ;;  %v1075_v35 = vpop.f32.mrb[6].mxu0  ;;  %v1094_v36 = vpop.f32.mrb[4].mxu1 }
 0x119   :  { %v1076_v37 = vpop.f32.mrb[7].mxu0  ;;  %v1095_v40 = vpop.f32.mrb[5].mxu1 }
 0x11a   :  { %v767_v38 = vadd.f32 %v1074_v34, %v726_v29  ;;  %v1077_v39 = vadd.f32 %v1076_v37, %v1075_v35  ;;  %v1096_v41 = vadd.f32 %v1095_v40, %v1094_v36  ;;  %v1097_v42 = vpop.f32.mrb[6].mxu1 }
 0x11b   :  { %v1098_v44 = vpop.f32.mrb[7].mxu1 }
 0x11c   :  { %v770_v43 = vadd.f32 %v1077_v39, %v729_v31  ;;  %v1099_v45 = vadd.f32 %v1098_v44, %v1097_v42  ;;  %v808_v46 = vadd.f32 %v1096_v41, %v767_v38 }
 0x11e   :  { %v811_v47 = vadd.f32 %v1099_v45, %v770_v43 }
 0x136   :  { %v848_v50 = vpop.f32.mrb[8].mxu0 }
 0x137   :  { %v849_v52 = vadd.f32 %v848_v50, %v808_v46  ;;  %v1127_v53 = vpop.f32.mrb[9].mxu0 }
 0x138   :  { %v851_v55 = vpop.f32.mrb[10].mxu0 }
 0x139   :  { %v862_v57 = vmul.f32 %v1001_v51, %v849_v52  ;;  %v852_v58 = vadd.f32 %v851_v55, %v811_v47  ;;  %v1128_v59 = vpop.f32.mrb[11].mxu0 }
 0x13b   :  { %v871_v60 = vadd.f32 %v1002_v54, %v862_v57  ;;  %v863_v61 = vmul.f32 %v1001_v51, %v852_v58 }
 0x13d   :  { %v892_v62 = vmax.f32 %v871_v60, 0.0  ;;  %v872_v63 = vadd.f32 %v1002_v54, %v863_v61 }
 0x13f   :  { %v904_v0 = vsel %vm880_vm1, %v892_v62, 0.0  ;;  %v905_v1 = vsel %vm885_vm2, %v872_v63, 0.0 }
 0x140   :  { %v1010_v2 = vpack.c.bf16 %v905_v1, %v904_v0 }
 0x142   :  { %1011 = vst [vmem:[%s1499_s4] sm:$0xff] %v1010_v2  }

// kernel: _lambda_.105
= control target key start
LH: loop header
LB: loop body
LE: loop exit
PB: predicated region body
PF: predicated region fallthrough
CT: control target
= control target key end

     0   :  { %v790_v2 = vmov 0   ;;  %s1028_s0 = inlined_call_operand.vmem [shape: bf16[16,128], index: 0, kind: input, shape index: {}]   ;;  %s1029_s1 = inlined_call_operand.vmem [shape: bf16[128,512], index: 1, kind: input, shape index: {}]   ;;  %s1030_s2 = inlined_call_operand.vmem [shape: f32[1,512], index: 2, kind: input, shape index: {}]   ;;  %s1031_s3 = inlined_call_operand.vmem [shape: f32[1,512], index: 3, kind: input, shape index: {}]   ;;  %s1032_s4 = inlined_call_operand.vmem [shape: bf16[16,512], index: 4, kind: input, shape index: {}]   ;;  %s1033_s5 = inlined_call_operand.hbm [shape: bf16[16,512], index: 5, kind: output, shape index: {0}]   ;;  %s1034_s6 = inlined_call_operand.vmem [shape: f32[1,8,512], index: 6, kind: output, shape index: {1}]  }
   0x1   :  { %v717_v0 = vld [vmem:[%s1029_s1 + $0x4] ss:$16 sps:$4 sm:$0xff]   ;;  %v719_v1 = vld [vmem:[%s1029_s1 + $0xc] ss:$16 sps:$4 sm:$0xff]   ;;  %256 = vmatprep.mubr.bf16.mxu0 %v790_v2  ;;  %299 = vmatprep.mubr.bf16.mxu1 %v790_v2  ;;  %v721_v3 = vld [vmem:[%s1029_s1] ss:$16 sps:$4 sm:$0xff]  }
   0x2   :  { %224 = vmatprep.subr.bf16.mxu0 %v717_v0  ;;  %v722_v4 = vld [vmem:[%s1029_s1 + $0x8] ss:$16 sps:$4 sm:$0xff]   ;;  %267 = vmatprep.subr.bf16.mxu1 %v719_v1  ;;  %v723_v5 = vld [vmem:[%s1029_s1 + $0x24] ss:$16 sps:$4 sm:$0xff]   ;;  %v725_v6 = vld [vmem:[%s1029_s1 + $0x2c] ss:$16 sps:$4 sm:$0xff]  }
   0x3   :  { %225 = vmatpush1.bf16.msra.mxu0 %v721_v3  ;;  %268 = vmatpush1.bf16.msra.mxu1 %v722_v4  ;;  %v727_v7 = vld [vmem:[%s1029_s1 + $0x20] ss:$16 sps:$4 sm:$0xff]   ;;  %v728_v8 = vld [vmem:[%s1029_s1 + $0x28] ss:$16 sps:$4 sm:$0xff]   ;;  %v729_v9 = vld [vmem:[%s1029_s1 + $0x44] ss:$16 sps:$4 sm:$0xff]  }
   0x4   :  { %226 = vmatprep.subr.bf16.mxu0 %v723_v5  ;;  %269 = vmatprep.subr.bf16.mxu1 %v725_v6  ;;  %v731_v10 = vld [vmem:[%s1029_s1 + $0x4c] ss:$16 sps:$4 sm:$0xff]   ;;  %v733_v11 = vld [vmem:[%s1029_s1 + $0x40] ss:$16 sps:$4 sm:$0xff]   ;;  %v734_v12 = vld [vmem:[%s1029_s1 + $0x48] ss:$16 sps:$4 sm:$0xff]  }
   0x5   :  { %v735_v13 = vld [vmem:[%s1029_s1 + $0x64] ss:$16 sps:$4 sm:$0xff]   ;;  %v737_v14 = vld [vmem:[%s1029_s1 + $0x6c] ss:$16 sps:$4 sm:$0xff]   ;;  %v739_v15 = vld [vmem:[%s1029_s1 + $0x60] ss:$16 sps:$4 sm:$0xff]  }
   0x6   :  { %v740_v16 = vld [vmem:[%s1029_s1 + $0x68] ss:$16 sps:$4 sm:$0xff]   ;;  %v741_v17 = vld [vmem:[%s1029_s1 + $0x84] ss:$16 sps:$4 sm:$0xff]   ;;  %v743_v18 = vld [vmem:[%s1029_s1 + $0x8c] ss:$16 sps:$4 sm:$0xff]  }
   0x7   :  { %227 = vmatpush1.bf16.msra.mxu0 %v727_v7  ;;  %270 = vmatpush1.bf16.msra.mxu1 %v728_v8  ;;  %v745_v19 = vld [vmem:[%s1029_s1 + $0x80] ss:$16 sps:$4 sm:$0xff]   ;;  %v746_v20 = vld [vmem:[%s1029_s1 + $0x88] ss:$16 sps:$4 sm:$0xff]   ;;  %v747_v21 = vld [vmem:[%s1029_s1 + $0xa4] ss:$16 sps:$4 sm:$0xff]  }
   0x8   :  { %228 = vmatprep.subr.bf16.mxu0 %v729_v9  ;;  %271 = vmatprep.subr.bf16.mxu1 %v731_v10  ;;  %v749_v22 = vld [vmem:[%s1029_s1 + $0xac] ss:$16 sps:$4 sm:$0xff]   ;;  %v751_v23 = vld [vmem:[%s1029_s1 + $0xa0] ss:$16 sps:$4 sm:$0xff]   ;;  %v752_v24 = vld [vmem:[%s1029_s1 + $0xa8] ss:$16 sps:$4 sm:$0xff]  }
   0x9   :  { %v753_v25 = vld [vmem:[%s1029_s1 + $0xc4] ss:$16 sps:$4 sm:$0xff]   ;;  %v755_v26 = vld [vmem:[%s1029_s1 + $0xcc] ss:$16 sps:$4 sm:$0xff]  }
   0xb   :  { %229 = vmatpush1.bf16.msra.mxu0 %v733_v11  ;;  %272 = vmatpush1.bf16.msra.mxu1 %v734_v12 }
   0xc   :  { %230 = vmatprep.subr.bf16.mxu0 %v735_v13  ;;  %273 = vmatprep.subr.bf16.mxu1 %v737_v14 }
   0xf   :  { %231 = vmatpush1.bf16.msra.mxu0 %v739_v15  ;;  %274 = vmatpush1.bf16.msra.mxu1 %v740_v16 }
  0x10   :  { %232 = vmatprep.subr.bf16.mxu0 %v741_v17  ;;  %275 = vmatprep.subr.bf16.mxu1 %v743_v18 }
  0x13   :  { %233 = vmatpush1.bf16.msra.mxu0 %v745_v19  ;;  %276 = vmatpush1.bf16.msra.mxu1 %v746_v20 }
  0x14   :  { %234 = vmatprep.subr.bf16.mxu0 %v747_v21  ;;  %277 = vmatprep.subr.bf16.mxu1 %v749_v22 }
  0x15   :  { %12 = vsyncpa [#allocation3], 0  ;;  %v757_v27 = vld [vmem:[%s1029_s1 + $0xc0] ss:$16 sps:$4 sm:$0xff]   ;;  %v758_v28 = vld [vmem:[%s1029_s1 + $0xc8] ss:$16 sps:$4 sm:$0xff]   ;;  %v312_v35 = vlaneseq }
  0x16   :  { %v759_v29 = vld [vmem:[%s1029_s1 + $0xe4] ss:$16 sps:$4 sm:$0xff]   ;;  %v761_v30 = vld [vmem:[%s1029_s1 + $0xec] ss:$16 sps:$4 sm:$0xff]   ;;  %v763_v31 = vld [vmem:[%s1029_s1 + $0xe0] ss:$16 sps:$4 sm:$0xff]  }
  0x17   :  { %235 = vmatpush1.bf16.msra.mxu0 %v751_v23  ;;  %278 = vmatpush1.bf16.msra.mxu1 %v752_v24  ;;  %v764_v32 = vld [vmem:[%s1029_s1 + $0xe8] ss:$16 sps:$4 sm:$0xff]   ;;  %v765_v33 = vld [vmem:[%s1028_s0] sm:$0xff]   ;;  %v791_v34 = vmov 0.0   ;;  %v931_v36 = vshrl.u32 %v312_v35, 7  ;;  %v952_v50 = vand.u32 127, %v312_v35 }
  0x18   :  { %236 = vmatprep.subr.bf16.mxu0 %v753_v25  ;;  %279 = vmatprep.subr.bf16.mxu1 %v755_v26  ;;  %v310_v39 = vld [vmem:[%s1030_s2] sm:$0xf]  ;;  %v388_v47 = vld [vmem:[%s1032_s4 + $0x8] sm:$0xff]  ;;  %vm479_vm7 = vcmask 130048   ;;  %s792_s2 = smov [#allocation2]  }
  0x19   :  { %v314_v37 = vsub.s32 0, %v931_v36  ;;  %v322_v38 = vsub.s32 2, %v931_v36  ;;  %v318_v40 = vsub.s32 1, %v931_v36  ;;  %v326_v41 = vsub.s32 3, %v931_v36  ;;  %v340_v42 = vld [vmem:[%s1031_s3] sm:$0xf] }
  0x1a   :  { %v944_v43 = vadd.s32 8, %v931_v36  ;;  %v387_v45 = vld [vmem:[%s1032_s4] sm:$0xff]  ;;  %vm377_vm0 = vcmp.lt.s32.totalorder %v931_v36, 2  ;;  %v393_v59 = vunpack.c.l.bf16 %v388_v47  ;;  %v394_v1 = vunpack.c.h.bf16 %v388_v47  ;;  %s634_s3 = sshll.u32 %s792_s2, 4  ;;  %s635_s3 = int_to_ptr.vmem [resolvable:$true] %s634_s3 }
  0x1b   :  { %237 = vmatpush1.bf16.msra.mxu0 %v757_v27  ;;  %280 = vmatpush1.bf16.msra.mxu1 %v758_v28  ;;  %v315_v44 = vrot.slane %v310_v39, %v314_v37  ;;  %v323_v46 = vrot.slane %v310_v39, %v322_v38  ;;  %v319_v48 = vrot.slane %v310_v39, %v318_v40  ;;  %v391_v57 = vunpack.c.l.bf16 %v387_v45  ;;  %s766_s4 = scalar_lea.vmem %s635_s3, 512  ;;  %p771_p1 = scmp.lt.s32.totalorder %s635_s3, %s635_s3 }
  0x1c   :  { %238 = vmatprep.subr.bf16.mxu0 %v759_v29  ;;  %281 = vmatprep.subr.bf16.mxu1 %v761_v30  ;;  %v327_v49 = vrot.slane %v310_v39, %v326_v41  ;;  %v955_v51 = vadd.s32 1, %v944_v43  ;;  %v345_v52 = vrot.slane %v340_v42, %v314_v37  ;;  %v353_v53 = vrot.slane %v340_v42, %v322_v38  ;;  %p767_p0 = scmp.ne.s32.totalorder %s635_s3, %s766_s4  ;;  %p772_p2 = scmp.lt.s32.totalorder %s766_s4, %s766_s4 }
  0x1d   :  { %v349_v54 = vrot.slane %v340_v42, %v318_v40  ;;  %v357_v55 = vrot.slane %v340_v42, %v326_v41  ;;  %v392_v60 = vunpack.c.h.bf16 %v387_v45  ;;  %vm382_vm1 = vcmp.lt.s32.totalorder %v944_v43, 10 }
  0x1e   :  { %vm473_vm2 = vcmp.ge.s32.totalorder %v952_v50, %v944_v43  ;;  %vm476_vm3 = vcmp.lt.s32.totalorder %v952_v50, %v955_v51  ;;  %vm984_vm5 = vmpackc.low %vm382_vm1, %vm377_vm0  ;;  %p773_p3 = por %p772_p2, %p771_p1 }
  0x1f   :  { %239 = vmatpush1.bf16.msra.mxu0 %v763_v31  ;;  %282 = vmatpush1.bf16.msra.mxu1 %v764_v32  ;;  %vm474_vm4 = vmand %vm377_vm0, %vm473_vm2 }
  0x20   :  { %vm477_vm6 = vmand %vm474_vm4, %vm476_vm3  ;;  %p774_p4 = pnand %p773_p3, %p767_p0 }
  0x21   :  { %v478_v50 = vsel %vm477_vm6, 1.0, %v791_v34 }
  0x22   :  { %257 = vmatmul.mubr.bf16.vlgmr.msra.gmra.mrb[0].mxu0 %v765_v33  ;;  %300 = vmatmul.mubr.bf16.vlgmr.msra.gmra.mrb[0].mxu1 %v765_v33 }
  0x23   :  { %547 = vmatprep.mubr.f32.mxu0 %v791_v34  ;;  %618 = vmatprep.mubr.f32.mxu1 %v791_v34 }
  0xf5   :  { %v258_v56 = vpop.f32.mrb[0].mxu0  ;;  %v301_v58 = vpop.f32.mrb[0].mxu1 }
  0xf6   :  { %v332_v61 = vmul.f32 %v315_v44, %v258_v56  ;;  %v334_v62 = vmul.f32 %v323_v46, %v301_v58  ;;  %v260_v63 = vpop.f32.mrb[1].mxu0  ;;  %v303_v0 = vpop.f32.mrb[1].mxu1 }
  0xf7   :  { %v333_v2 = vmul.f32 %v319_v48, %v260_v63  ;;  %v335_v3 = vmul.f32 %v327_v49, %v303_v0  ;;  %v262_v4 = vpop.f32.mrb[2].mxu0  ;;  %v305_v5 = vpop.f32.mrb[2].mxu1 }
  0xf8   :  { %v362_v6 = vadd.f32 %v345_v52, %v332_v61  ;;  %v364_v7 = vadd.f32 %v353_v53, %v334_v62  ;;  %v336_v8 = vmul.f32 %v315_v44, %v262_v4  ;;  %v338_v9 = vmul.f32 %v323_v46, %v305_v5  ;;  %v264_v10 = vpop.f32.mrb[3].mxu0  ;;  %v307_v11 = vpop.f32.mrb[3].mxu1 }
  0xf9   :  { %v363_v12 = vadd.f32 %v349_v54, %v333_v2  ;;  %v365_v13 = vadd.f32 %v357_v55, %v335_v3  ;;  %v337_v14 = vmul.f32 %v319_v48, %v264_v10  ;;  %v339_v15 = vmul.f32 %v327_v49, %v307_v11 }
  0xfa   :  { %v413_v16 = vadd.f32 %v391_v57, %v362_v6  ;;  %v415_v17 = vadd.f32 %v393_v59, %v364_v7  ;;  %v366_v18 = vadd.f32 %v345_v52, %v336_v8  ;;  %v368_v19 = vadd.f32 %v353_v53, %v338_v9 }
  0xfb   :  { %v414_v20 = vadd.f32 %v392_v60, %v363_v12  ;;  %v416_v21 = vadd.f32 %v394_v1, %v365_v13  ;;  %v367_v22 = vadd.f32 %v349_v54, %v337_v14  ;;  %v369_v23 = vadd.f32 %v357_v55, %v339_v15 }
  0xfc   :  { %v421_v24 = vmax.f32 %v413_v16, 0.0  ;;  %v423_v25 = vmax.f32 %v415_v17, 0.0  ;;  %v425_v26 = vmax.f32 %v366_v18, 0.0  ;;  %v427_v27 = vmax.f32 %v368_v19, 0.0 }
  0xfd   :  { %v422_v28 = vmax.f32 %v414_v20, 0.0  ;;  %v424_v29 = vmax.f32 %v416_v21, 0.0  ;;  %v426_v30 = vmax.f32 %v367_v22, 0.0  ;;  %v428_v31 = vmax.f32 %v369_v23, 0.0 }
  0xfe   :  { %v433_v32 = vsel %vm377_vm0, %v421_v24, 0.0  ;;  %v435_v33 = vsel %vm377_vm0, %v423_v25, 0.0  ;;  %v437_v35 = vsel %vm382_vm1, %v425_v26, 0.0  ;;  %v703_v37 = vpack.c.bf16 %v425_v26, %v421_v24 }
  0xff   :  { %v434_v38 = vsel %vm377_vm0, %v422_v28, 0.0  ;;  %v436_v39 = vsel %vm377_vm0, %v424_v29, 0.0  ;;  %v439_v40 = vsel %vm382_vm1, %v427_v27, 0.0  ;;  %v709_v41 = vpack.c.bf16 %v427_v27, %v423_v25 }
 0x100   :  { %v696_v44 = vpack.c.bf16 %v434_v38, %v433_v32  ;;  %v697_v45 = vpack.c.bf16 %v436_v39, %v435_v33  ;;  %v438_v46 = vsel %vm382_vm1, %v426_v30, 0.0  ;;  %v700_v47 = vpack.c.bf16 %v426_v30, %v422_v28 }
 0x101   :  { %v698_v48 = vpack.c.bf16 %v438_v46, %v437_v35  ;;  %v440_v36 = vsel %vm382_vm1, %v428_v31, 0.0  ;;  %v706_v49 = vpack.c.bf16 %v428_v31, %v424_v29 }
 0x102   :  { %465 = vst [vmem:[#allocation2] sm:$0xff] %v696_v44  ;;  %466 = vst [vmem:[#allocation2 + $0x8] sm:$0xff] %v697_v45  ;;  %v699_v52 = vpack.c.bf16 %v440_v36, %v439_v40  ;;  %702 = vmatprep.subr.msk.bf16.mxu0 %vm984_vm5, %v700_v47 }
 0x103   :  { %467 = vst [vmem:[#allocation2 + $0x10] sm:$0xff] %v698_v48  ;;  %708 = vmatprep.subr.msk.bf16.mxu1 %vm984_vm5, %v706_v49  ;;  %705 = vmatpush1.bf16.msk.msra.mxu0 %vm984_vm5, %v703_v37 }
 0x104   :  { %468 = vst [vmem:[#allocation2 + $0x18] sm:$0xff] %v699_v52  ;;  %711 = vmatpush1.bf16.msk.msra.mxu1 %vm984_vm5, %v709_v41 }
 0x106   :  { %690 = vmatmul.mubr.msk.f32.vlgmr.msra.gmra.mrb[4].mxu0 %vm479_vm7, %v478_v50 }
 0x107   :  { %695 = vmatmul.mubr.msk.f32.vlgmr.msra.gmra.mrb[4].mxu1 %vm479_vm7, %v478_v50 }
 0x108   :  { %777 = shalt.err (!%p774_p4)
}
 0x109   :  { %s778_s23 = scalar_lea.hbm %s1033_s5, 512 }
 0x10a   :  { %p779_p5 = scmp.ne.s32.totalorder %s1033_s5, %s778_s23  ;;  %p782_p6 = scmp.lt.u32.totalorder %s778_s23, %s1033_s5 }
 0x10c   :  { %p784_p7 = pnand %p782_p6, %p779_p5 }
 0x10e   :  { %787 = shalt.err (!%p784_p7)
}
 0x10f   :  { %s793_s28 = smov 256   ;;  %s794_s29 = smov 16  }
 0x110   :  { %640 = dma.vmem_to_hbm [thread:$0]  %s635_s3, 512, %s1033_s5, [#allocation3], %s793_s28, %s793_s28, %s794_s29  }
 0x1d9   :  { %v549_v34 = vpop.f32.mrb[4].mxu0 }
 0x1da   :  { %625 = vst [vmem:[%s1034_s6] sm:$0xff] %v549_v34  ;;  %v620_v43 = vpop.f32.mrb[4].mxu1  ;;  %v551_v51 = vpop.f32.mrb[5].mxu0 }
 0x1db   :  { %627 = vst [vmem:[%s1034_s6 + $0x10] sm:$0xff] %v620_v43  ;;  %626 = vst [vmem:[%s1034_s6 + $0x8] sm:$0xff] %v551_v51  ;;  %v622_v53 = vpop.f32.mrb[5].mxu1 }
 0x1dc   :  { %628 = vst [vmem:[%s1034_s6 + $0x18] sm:$0xff] %v622_v53 }
 0x1dd   :  { %788 = dma.done.wait [#allocation3], 512  }
 0x1de   :  { %789 = vsyncadd [#allocation3], 4294966784 }
 0x1df   :  { %648 = vsyncpa [#allocation3], 1 }

</bundles_post_ra>
